<compile_context>
chip_gen: v7x
topology: tpu7x:2x2x1
jax: 0.10.0
libtpu: 0.0.40
codegen_flags: <defaults>
</compile_context>

<pallas_src>
import functools

import numpy as np

import jax
import jax.numpy as jnp
from jax.experimental import pallas as pl
from jax.experimental.pallas import tpu as pltpu

_BN_EPS = 1e-5


# ----------------------------------------------------------------------------- kernels

def _psp_pool_conv_kernel(x_ref, p_ref, w_ref, z_ref, *, sizes, offs):
    """Adaptive average pool (all stages at once) + per-stage 1x1 conv.

    x_ref : (1, (H+2)*W, C)  bf16 row-padded input (flattened spatial)
    p_ref : (S_tot, (H+2)*W) bf16 stacked pooling matrices (zero cols on pads)
    w_ref : (n_stage, C, F)  bf16 1x1 conv weights (bias=False)
    z_ref : (1, S_tot, F)    f32 pre-BN stage activations
    """
    pooled = jnp.dot(p_ref[...], x_ref[0],
                     preferred_element_type=jnp.float32)          # (S_tot, C)
    pooled = pooled.astype(jnp.bfloat16)
    zs = []
    for si, s in enumerate(sizes):
        off, cc = offs[si], s * s
        zs.append(jnp.dot(pooled[off:off + cc, :], w_ref[si],
                          preferred_element_type=jnp.float32))
    z_ref[0] = jnp.concatenate(zs, axis=0)


def _psp_upsample_kernel(z_ref, sc_ref, sh_ref, u_ref, o_ref,
                         *, sizes, offs, h, w, f):
    """Stage BN apply + bilinear upsample (align_corners=True), row-padded out.

    z_ref : (1, S_tot, F) f32 ; sc_ref / sh_ref : (n_stage, F) f32 folded BN
    u_ref : (H*W, S_tot)  bf16 stacked upsampling matrices
    o_ref : (1, (H+2)*W, n_stage*F) bf16, rows [0,W) and [(H+1)W,(H+2)W) zero
            (the zero rows double as the conv's top/bottom halo).
    """
    hw = h * w
    ctot = o_ref.shape[-1]
    o_ref[0, :w, :] = jnp.zeros((w, ctot), o_ref.dtype)
    o_ref[0, (h + 1) * w:, :] = jnp.zeros((w, ctot), o_ref.dtype)
    for si, s in enumerate(sizes):
        off, cc = offs[si], s * s
        zhat = (z_ref[0, off:off + cc, :] * sc_ref[si:si + 1, :]
                + sh_ref[si:si + 1, :])                           # (cc, F) f32
        if s == 1:
            up = jnp.broadcast_to(zhat, (hw, f))
        else:
            up = jnp.dot(u_ref[:, off:off + cc], zhat.astype(jnp.bfloat16),
                         preferred_element_type=jnp.float32)
        o_ref[0, w:(h + 1) * w, si * f:(si + 1) * f] = up.astype(o_ref.dtype)


def _bottleneck_conv_kernel(pr_hbm, x_hbm, w_ref, y_ref, ssum_ref, ssq_ref,
                            pwin, xwin, sem, *, th, w, fp, c, fo):
    """3x3 conv (padding=1, bias=False) over the concatenated channels.

    pr_hbm : (N, H+2, W, Fp) bf16 row-padded priors, left in HBM (pl.ANY)
    x_hbm  : (N, H+2, W, C)  bf16 row-padded features, left in HBM (pl.ANY)
    w_ref  : (3, 3*(Fp+C), Fo) bf16 weights, ky-major with (kx, channel) rows
    y_ref  : (1, TH*W, Fo)   bf16 pre-BN conv output tile
    ssum_ref / ssq_ref : (1, 1, Fo) f32 per-batch channel sum / sum-of-squares
    pwin / xwin : VMEM (2, TH+2, W, *) bf16 double-buffered halo row windows
    sem    : DMA semaphores, (input, slot)
    """
    n = pl.program_id(0)
    j = pl.program_id(1)
    nj = pl.num_programs(1)

    def start_window(jt, slot):
        r0 = jt * th                         # padded-row index of window start
        pltpu.make_async_copy(pr_hbm.at[n, pl.ds(r0, th + 2)],
                              pwin.at[slot], sem.at[0, slot]).start()
        pltpu.make_async_copy(x_hbm.at[n, pl.ds(r0, th + 2)],
                              xwin.at[slot], sem.at[1, slot]).start()

    def wait_window(slot):
        pltpu.make_async_copy(pr_hbm.at[n, pl.ds(0, th + 2)],
                              pwin.at[slot], sem.at[0, slot]).wait()
        pltpu.make_async_copy(x_hbm.at[n, pl.ds(0, th + 2)],
                              xwin.at[slot], sem.at[1, slot]).wait()

    slot = j & 1

    @pl.when(j == 0)
    def _():                                 # prime this batch element
        start_window(0, 0)

    wait_window(slot)

    @pl.when(j + 1 < nj)
    def _():                                 # prefetch next tile during compute
        start_window(j + 1, 1 - slot)

    p = pwin[slot]                           # (TH+2, W, Fp) bf16
    x = xwin[slot]                           # (TH+2, W, C)  bf16
    zp = jnp.zeros((th + 2, 1, fp), p.dtype)
    zx = jnp.zeros((th + 2, 1, c), x.dtype)
    # Three kx-shifted column views, channel-concatenated -> K = 3*(Fp+C).
    shifted = jnp.concatenate([
        jnp.concatenate([zp, p[:, :w - 1, :]], axis=1),   # kx=0 (left tap)
        jnp.concatenate([zx, x[:, :w - 1, :]], axis=1),
        p, x,                                             # kx=1 (center tap)
        jnp.concatenate([p[:, 1:, :], zp], axis=1),       # kx=2 (right tap)
        jnp.concatenate([x[:, 1:, :], zx], axis=1),
    ], axis=-1).reshape((th + 2) * w, 3 * (fp + c))

    acc = jnp.zeros((th * w, fo), jnp.float32)
    for ky in range(3):                      # ky shift = free leading slice
        acc = acc + jnp.dot(shifted[ky * w:(ky + th) * w, :], w_ref[ky],
                            preferred_element_type=jnp.float32)

    @pl.when(j == 0)
    def _():                                 # per-batch accumulators (parallel-safe)
        ssum_ref[...] = jnp.zeros_like(ssum_ref)
        ssq_ref[...] = jnp.zeros_like(ssq_ref)

    ssum_ref[...] += jnp.sum(acc, axis=0, keepdims=True).reshape(1, 1, fo)
    ssq_ref[...] += jnp.sum(acc * acc, axis=0, keepdims=True).reshape(1, 1, fo)
    y_ref[...] = acc.reshape(1, th * w, fo).astype(y_ref.dtype)


def _bn_relu_kernel(y_ref, sc_ref, sh_ref, o_ref):
    """Second BN pass (global stats folded into scale/shift) + ReLU."""
    o_ref[...] = jnp.maximum(
        y_ref[...].astype(jnp.float32) * sc_ref[...] + sh_ref[...], 0.0)


# ----------------------------------------------------------------------------- pallas_call wrappers

def _pool_conv_call(x_rp_flat, pool_mat, stage_w, *, sizes, offs):
    n, hwp, c = x_rp_flat.shape
    ns, _, f = stage_w.shape
    s_tot = pool_mat.shape[0]
    kern = functools.partial(_psp_pool_conv_kernel, sizes=sizes, offs=offs)
    return pl.pallas_call(
        kern,
        out_shape=jax.ShapeDtypeStruct((n, s_tot, f), jnp.float32),
        grid=(n,),
        in_specs=[
            pl.BlockSpec((1, hwp, c), lambda i: (i, 0, 0)),
            pl.BlockSpec((s_tot, hwp), lambda i: (0, 0)),
            pl.BlockSpec((ns, c, f), lambda i: (0, 0, 0)),
        ],
        out_specs=pl.BlockSpec((1, s_tot, f), lambda i: (i, 0, 0)),
        compiler_params=pltpu.CompilerParams(dimension_semantics=("parallel",)),
    )(x_rp_flat, pool_mat, stage_w)


def _upsample_call(z, st_scale, st_shift, up_mat, *, sizes, offs, h, w, f):
    n, s_tot, _ = z.shape
    ns = len(sizes)
    hwp = (h + 2) * w
    kern = functools.partial(_psp_upsample_kernel, sizes=sizes, offs=offs,
                             h=h, w=w, f=f)
    return pl.pallas_call(
        kern,
        out_shape=jax.ShapeDtypeStruct((n, hwp, ns * f), jnp.bfloat16),
        grid=(n,),
        in_specs=[
            pl.BlockSpec((1, s_tot, f), lambda i: (i, 0, 0)),
            pl.BlockSpec((ns, f), lambda i: (0, 0)),
            pl.BlockSpec((ns, f), lambda i: (0, 0)),
            pl.BlockSpec((h * w, s_tot), lambda i: (0, 0)),
        ],
        out_specs=pl.BlockSpec((1, hwp, ns * f), lambda i: (i, 0, 0)),
        compiler_params=pltpu.CompilerParams(dimension_semantics=("parallel",)),
    )(z, st_scale, st_shift, up_mat)


def _bottleneck_conv_call(priors_rp4, x_rp4, w3, *, n, h, w, fp, c, fo, th):
    kern = functools.partial(_bottleneck_conv_kernel, th=th, w=w, fp=fp, c=c,
                             fo=fo)
    ccat3 = 3 * (fp + c)
    return pl.pallas_call(
        kern,
        out_shape=(
            jax.ShapeDtypeStruct((n, h * w, fo), jnp.bfloat16),   # pre-BN conv
            jax.ShapeDtypeStruct((n, 1, fo), jnp.float32),        # per-batch sum
            jax.ShapeDtypeStruct((n, 1, fo), jnp.float32),        # per-batch sumsq
        ),
        grid_spec=pltpu.PrefetchScalarGridSpec(
            num_scalar_prefetch=0,
            grid=(n, h // th),
            in_specs=[
                pl.BlockSpec(memory_space=pl.ANY),    # row-padded priors in HBM
                pl.BlockSpec(memory_space=pl.ANY),    # row-padded features in HBM
                # Resident weights; constant index map -> fetched once.
                # TODO(synk): at production Ccat/Fout consider single-buffering
                #             (pipeline_mode=pl.Buffered(1)) to fit v7x's VMEM.
                pl.BlockSpec((3, ccat3, fo), lambda nn, jj: (0, 0, 0)),
            ],
            out_specs=[
                pl.BlockSpec((1, th * w, fo), lambda nn, jj: (nn, jj, 0)),
                pl.BlockSpec((1, 1, fo), lambda nn, jj: (nn, 0, 0)),
                pl.BlockSpec((1, 1, fo), lambda nn, jj: (nn, 0, 0)),
            ],
            scratch_shapes=[
                pltpu.VMEM((2, th + 2, w, fp), jnp.bfloat16),
                pltpu.VMEM((2, th + 2, w, c), jnp.bfloat16),
                pltpu.SemaphoreType.DMA((2, 2)),
            ],
        ),
        # Batch axis parallel (v7x megacore); row-tile axis carries the
        # per-batch BN accumulator -> arbitrary.
        compiler_params=pltpu.CompilerParams(
            dimension_semantics=("parallel", "arbitrary")),
    )(priors_rp4, x_rp4, w3)


def _bn_relu_call(y2d, scale, shift, *, tm):
    m, fo = y2d.shape
    return pl.pallas_call(
        _bn_relu_kernel,
        out_shape=jax.ShapeDtypeStruct((m, fo), jnp.float32),
        grid=(m // tm,),
        in_specs=[
            pl.BlockSpec((tm, fo), lambda i: (i, 0)),
            pl.BlockSpec((1, fo), lambda i: (0, 0)),
            pl.BlockSpec((1, fo), lambda i: (0, 0)),
        ],
        out_specs=pl.BlockSpec((tm, fo), lambda i: (i, 0)),
        compiler_params=pltpu.CompilerParams(dimension_semantics=("parallel",)),
    )(y2d, scale, shift)


# ----------------------------------------------------------------------------- constants & params

def _adaptive_pool_matrix(length, s):
    """(s, L) matrix implementing PyTorch AdaptiveAvgPool1d bins."""
    a = np.zeros((s, length), np.float32)
    for i in range(s):
        lo = (i * length) // s
        hi = -(-((i + 1) * length) // s)     # ceil
        a[i, lo:hi] = 1.0 / (hi - lo)
    return a


def _upsample_matrix(length, s):
    """(L, s) bilinear interpolation matrix, align_corners=True."""
    u = np.zeros((length, s), np.float32)
    if s == 1:
        u[:, 0] = 1.0
        return u
    for y in range(length):
        src = y * (s - 1) / (length - 1)
        i0 = min(int(np.floor(src)), s - 2)
        t = src - i0
        u[y, i0] += 1.0 - t
        u[y, i0 + 1] += t
    return u


def build_consts(h, w, sizes):
    """Pooling matrices act on the ROW-PADDED (H+2, W) flattened input."""
    p_blocks, b_blocks = [], []
    for s in sizes:
        ph = _adaptive_pool_matrix(h, s)                         # (s, H)
        ph_pad = np.concatenate(
            [np.zeros((s, 1), np.float32), ph, np.zeros((s, 1), np.float32)],
            axis=1)                                              # (s, H+2)
        p_blocks.append(np.kron(ph_pad, _adaptive_pool_matrix(w, s)))
        b_blocks.append(np.kron(_upsample_matrix(h, s), _upsample_matrix(w, s)))
    pool_mat = jnp.asarray(np.concatenate(p_blocks, axis=0), jnp.bfloat16)
    up_mat = jnp.asarray(np.concatenate(b_blocks, axis=1), jnp.bfloat16)
    return pool_mat, up_mat


def init_params(key, features, out_features, sizes):
    ns = len(sizes)
    ccat = features + ns * out_features
    ks = jax.random.split(key, 6)
    stage_w = (jax.random.normal(ks[0], (ns, features, out_features), jnp.float32)
               / jnp.sqrt(jnp.float32(features)))
    stage_gamma = 1.0 + 0.1 * jax.random.normal(ks[1], (ns, out_features), jnp.float32)
    stage_beta = 0.1 * jax.random.normal(ks[2], (ns, out_features), jnp.float32)
    # PyTorch Conv2d weight (Fout, Ccat, ky, kx) -> (ky, kx*Ccat + c, Fout)
    # matching the kernel's kx-shifted channel-concatenated operand.
    w_conv = (jax.random.normal(ks[3], (out_features, ccat, 3, 3), jnp.float32)
              / jnp.sqrt(jnp.float32(ccat * 9)))
    w3 = jnp.transpose(w_conv, (2, 3, 1, 0)).reshape(3, 3 * ccat, out_features)
    bn_gamma = 1.0 + 0.1 * jax.random.normal(ks[4], (out_features,), jnp.float32)
    bn_beta = 0.1 * jax.random.normal(ks[5], (out_features,), jnp.float32)
    return {"stage_w": stage_w, "stage_gamma": stage_gamma,
            "stage_beta": stage_beta, "w3": w3,
            "bn_gamma": bn_gamma, "bn_beta": bn_beta}


def _pick_row_tile(h, w):
    """Row-tile height for the bottleneck conv.

    Prefer >=2 tiles per image (so the next halo window's DMA overlaps the
    current tile's matmuls) and an MXU-friendly M = th*w that is a multiple
    of 128 and <= 512 rows.  On v6e/v7x with larger H, this yields M >= 256.
    """
    divs = [d for d in range(1, h + 1) if h % d == 0]
    cands = [d for d in divs if d * w <= 512 and (d * w) % 128 == 0]
    if not cands:
        cands = divs
    multi = [d for d in cands if h // d >= 2]
    return max(multi) if multi else max(cands)


def _pick_bn_rows(m):
    """Largest multiple-of-8 divisor of m that is <= 2048 (HBM-bound pass)."""
    best = 0
    for d in range(1, m + 1):
        if m % d == 0 and d % 8 == 0 and d <= 2048:
            best = d
    return best if best else m


# ----------------------------------------------------------------------------- forward

@functools.partial(jax.jit, static_argnames=("sizes",))
def psp_forward(feats_nchw, params, pool_mat, up_mat, sizes=(1, 2, 3, 6)):
    """feats: (N, C, H, W) -> bottleneck output (N, out_features, H, W)."""
    n, c, h, w = feats_nchw.shape
    f = params["stage_w"].shape[-1]
    ns = len(sizes)
    offs = tuple(int(v) for v in np.cumsum([0] + [s * s for s in sizes])[:-1])
    hwp = (h + 2) * w

    # Single layout pass: NCHW f32 -> row-padded NHWC bf16 (the zero halo rows
    # come along for free; the column halo is synthesized inside the kernel).
    x_nhwc = jnp.transpose(feats_nchw, (0, 2, 3, 1)).astype(jnp.bfloat16)
    x_rp = jnp.pad(x_nhwc, ((0, 0), (1, 1), (0, 0), (0, 0)))      # (N,H+2,W,C)
    x_rp_flat = x_rp.reshape(n, hwp, c)

    # ---- pyramid stages: pool -> 1x1 conv (per batch, bf16 matmuls) --------
    z = _pool_conv_call(x_rp_flat, pool_mat,
                        params["stage_w"].astype(jnp.bfloat16),
                        sizes=sizes, offs=offs)                   # (N,S_tot,F) f32

    # Per-stage BN folding (training-mode batch stats) on the tiny z tensor.
    scales, shifts = [], []
    for si, s in enumerate(sizes):
        zi = z[:, offs[si]:offs[si] + s * s, :]
        mean = jnp.mean(zi, axis=(0, 1))
        var = jnp.maximum(jnp.var(zi, axis=(0, 1)), 0.0)
        sc = params["stage_gamma"][si] * jax.lax.rsqrt(var + _BN_EPS)
        scales.append(sc)
        shifts.append(params["stage_beta"][si] - mean * sc)
    st_scale = jnp.stack(scales)                                  # (ns, F)
    st_shift = jnp.stack(shifts)

    # ---- BN apply + bilinear upsample; output already row-padded -----------
    priors_rp = _upsample_call(z, st_scale, st_shift, up_mat,
                               sizes=sizes, offs=offs, h=h, w=w, f=f)

    # ---- bottleneck 3x3 conv + one-pass BN statistics -----------------------
    th = _pick_row_tile(h, w)
    y, ssum, ssq = _bottleneck_conv_call(
        priors_rp.reshape(n, h + 2, w, ns * f), x_rp,
        params["w3"].astype(jnp.bfloat16),
        n=n, h=h, w=w, fp=ns * f, c=c, fo=f, th=th)

    m_total = jnp.float32(n * h * w)
    mean = jnp.sum(ssum, axis=0).reshape(1, f) / m_total
    var = jnp.maximum(jnp.sum(ssq, axis=0).reshape(1, f) / m_total - mean * mean, 0.0)
    inv = jax.lax.rsqrt(var + _BN_EPS)
    scale = params["bn_gamma"].reshape(1, f) * inv
    shift = params["bn_beta"].reshape(1, f) - mean * scale

    # ---- BN normalize + ReLU (Dropout2d = identity, see TODO at top) --------
    tm = _pick_bn_rows(n * h * w)
    out = _bn_relu_call(y.reshape(n * h * w, f), scale, shift, tm=tm)
    return jnp.transpose(out.reshape(n, h, w, f), (0, 3, 1, 2))   # NHWC -> NCHW


# ----------------------------------------------------------------------------- main

if __name__ == "__main__":
    key = jax.random.PRNGKey(0)
    k_p, k_x = jax.random.split(key)

    # Small test shapes consistent with the module (features=C, out_features=F).
    N, C, H, W = 2, 128, 16, 16
    F_OUT = 128
    SIZES = (1, 2, 3, 6)

    params = init_params(k_p, C, F_OUT, SIZES)
    pool_mat, up_mat = build_consts(H, W, SIZES)
    feats = jax.random.normal(k_x, (N, C, H, W), jnp.float32)

    out = psp_forward(feats, params, pool_mat, up_mat, sizes=SIZES)
    out = jax.block_until_ready(out)

    assert out.shape == (N, F_OUT, H, W), (out.shape, (N, F_OUT, H, W))
    assert bool(jnp.all(jnp.isfinite(out)))
    print("KERNEL_OK")
</pallas_src>

<mosaic_0001>
module attributes {stable_mosaic.version = 11 : i64} {
  func.func @_psp_pool_conv_kernel(%arg0: i32, %arg1: memref<1x288x128xbf16, #tpu.memory_space<vmem>>, %arg2: memref<50x288xbf16, #tpu.memory_space<vmem>>, %arg3: memref<4x128x128xbf16, #tpu.memory_space<vmem>>, %arg4: memref<1x50x128xf32, #tpu.memory_space<vmem>>) attributes {dimension_semantics = [#tpu.dimension_semantics<parallel>], iteration_bounds = array<i64: 2>, scalar_prefetch = 0 : i64, scratch_operands = 0 : i64, tpu.core_type = #tpu.core_type<tc>, window_params = [{transform_indices = @transform_0, window_bounds = array<i64: 1, 288, 128>}, {pipeline_mode = #tpu.pipeline_mode<synchronous>, transform_indices = @transform_1, window_bounds = array<i64: 50, 288>}, {pipeline_mode = #tpu.pipeline_mode<synchronous>, transform_indices = @transform_2, window_bounds = array<i64: 4, 128, 128>}, {transform_indices = @transform_3, window_bounds = array<i64: 1, 50, 128>}]} {
    %c0 = arith.constant 0 : index
    %c0_0 = arith.constant 0 : index
    %0 = vector.load %arg2[%c0, %c0_0] : memref<50x288xbf16, #tpu.memory_space<vmem>>, vector<50x288xbf16>
    %c0_1 = arith.constant 0 : index
    %c0_2 = arith.constant 0 : index
    %c0_3 = arith.constant 0 : index
    %1 = vector.load %arg1[%c0_1, %c0_2, %c0_3] : memref<1x288x128xbf16, #tpu.memory_space<vmem>>, vector<1x288x128xbf16>
    %2 = vector.shape_cast %1 : vector<1x288x128xbf16> to vector<288x128xbf16>
    %cst = arith.constant dense<0.000000e+00> : vector<50x128xf32>
    %3 = tpu.matmul %0, %2, %cst {dimension_numbers = #tpu.dot_dimension_numbers<[1], [0], [0], [1], [0, 0, 1, 1], [], []>} : vector<50x288xbf16>, vector<288x128xbf16>, vector<50x128xf32> -> vector<50x128xf32>
    %4 = arith.truncf %3 : vector<50x128xf32> to vector<50x128xbf16>
    %5 = vector.extract_strided_slice %4 {offsets = [0, 0], sizes = [1, 128], strides = [1, 1]} : vector<50x128xbf16> to vector<1x128xbf16>
    %c0_4 = arith.constant 0 : index
    %c0_5 = arith.constant 0 : index
    %c0_6 = arith.constant 0 : index
    %6 = vector.load %arg3[%c0_4, %c0_5, %c0_6] : memref<4x128x128xbf16, #tpu.memory_space<vmem>>, vector<1x128x128xbf16>
    %7 = vector.shape_cast %6 : vector<1x128x128xbf16> to vector<128x128xbf16>
    %cst_7 = arith.constant dense<0.000000e+00> : vector<1x128xf32>
    %8 = tpu.matmul %5, %7, %cst_7 {dimension_numbers = #tpu.dot_dimension_numbers<[1], [0], [0], [1], [0, 0, 1, 1], [], []>} : vector<1x128xbf16>, vector<128x128xbf16>, vector<1x128xf32> -> vector<1x128xf32>
    %9 = vector.extract_strided_slice %4 {offsets = [1, 0], sizes = [4, 128], strides = [1, 1]} : vector<50x128xbf16> to vector<4x128xbf16>
    %c1 = arith.constant 1 : index
    %c0_8 = arith.constant 0 : index
    %c0_9 = arith.constant 0 : index
    %10 = vector.load %arg3[%c1, %c0_8, %c0_9] : memref<4x128x128xbf16, #tpu.memory_space<vmem>>, vector<1x128x128xbf16>
    %11 = vector.shape_cast %10 : vector<1x128x128xbf16> to vector<128x128xbf16>
    %cst_10 = arith.constant dense<0.000000e+00> : vector<4x128xf32>
    %12 = tpu.matmul %9, %11, %cst_10 {dimension_numbers = #tpu.dot_dimension_numbers<[1], [0], [0], [1], [0, 0, 1, 1], [], []>} : vector<4x128xbf16>, vector<128x128xbf16>, vector<4x128xf32> -> vector<4x128xf32>
    %13 = vector.extract_strided_slice %4 {offsets = [5, 0], sizes = [9, 128], strides = [1, 1]} : vector<50x128xbf16> to vector<9x128xbf16>
    %c2 = arith.constant 2 : index
    %c0_11 = arith.constant 0 : index
    %c0_12 = arith.constant 0 : index
    %14 = vector.load %arg3[%c2, %c0_11, %c0_12] : memref<4x128x128xbf16, #tpu.memory_space<vmem>>, vector<1x128x128xbf16>
    %15 = vector.shape_cast %14 : vector<1x128x128xbf16> to vector<128x128xbf16>
    %cst_13 = arith.constant dense<0.000000e+00> : vector<9x128xf32>
    %16 = tpu.matmul %13, %15, %cst_13 {dimension_numbers = #tpu.dot_dimension_numbers<[1], [0], [0], [1], [0, 0, 1, 1], [], []>} : vector<9x128xbf16>, vector<128x128xbf16>, vector<9x128xf32> -> vector<9x128xf32>
    %17 = vector.extract_strided_slice %4 {offsets = [14, 0], sizes = [36, 128], strides = [1, 1]} : vector<50x128xbf16> to vector<36x128xbf16>
    %c3 = arith.constant 3 : index
    %c0_14 = arith.constant 0 : index
    %c0_15 = arith.constant 0 : index
    %18 = vector.load %arg3[%c3, %c0_14, %c0_15] : memref<4x128x128xbf16, #tpu.memory_space<vmem>>, vector<1x128x128xbf16>
    %19 = vector.shape_cast %18 : vector<1x128x128xbf16> to vector<128x128xbf16>
    %cst_16 = arith.constant dense<0.000000e+00> : vector<36x128xf32>
    %20 = tpu.matmul %17, %19, %cst_16 {dimension_numbers = #tpu.dot_dimension_numbers<[1], [0], [0], [1], [0, 0, 1, 1], [], []>} : vector<36x128xbf16>, vector<128x128xbf16>, vector<36x128xf32> -> vector<36x128xf32>
    %21 = tpu.concatenate %8, %12, %16, %20 in 0 : vector<1x128xf32>, vector<4x128xf32>, vector<9x128xf32>, vector<36x128xf32> -> vector<50x128xf32>
    %c0_17 = arith.constant 0 : index
    %c0_18 = arith.constant 0 : index
    %c0_19 = arith.constant 0 : index
    %22 = vector.load %arg4[%c0_17, %c0_18, %c0_19] : memref<1x50x128xf32, #tpu.memory_space<vmem>>, vector<1x50x128xf32>
    %23 = vector.shape_cast %22 : vector<1x50x128xf32> to vector<50x128xf32>
    %24 = vector.shape_cast %21 : vector<50x128xf32> to vector<1x50x128xf32>
    tpu.vector_store %arg4[%c0_17, %c0_18, %c0_19], %24 {strides = array<i32>} : memref<1x50x128xf32, #tpu.memory_space<vmem>>, vector<1x50x128xf32>,
    return
  }
  func.func @transform_0(%arg0: i32) -> (i32, i32, i32) {
    %c0_i32 = arith.constant 0 : i32
    %c0_i32_0 = arith.constant 0 : i32
    %c0_i32_1 = arith.constant 0 : i32
    return %arg0, %c0_i32, %c0_i32_0 : i32, i32, i32
  }
  func.func @transform_1(%arg0: i32) -> (i32, i32) {
    %c0_i32 = arith.constant 0 : i32
    %c0_i32_0 = arith.constant 0 : i32
    %c0_i32_1 = arith.constant 0 : i32
    return %c0_i32, %c0_i32_0 : i32, i32
  }
  func.func @transform_2(%arg0: i32) -> (i32, i32, i32) {
    %c0_i32 = arith.constant 0 : i32
    %c0_i32_0 = arith.constant 0 : i32
    %c0_i32_1 = arith.constant 0 : i32
    %c0_i32_2 = arith.constant 0 : i32
    return %c0_i32, %c0_i32_0, %c0_i32_1 : i32, i32, i32
  }
  func.func @transform_3(%arg0: i32) -> (i32, i32, i32) {
    %c0_i32 = arith.constant 0 : i32
    %c0_i32_0 = arith.constant 0 : i32
    %c0_i32_1 = arith.constant 0 : i32
    return %arg0, %c0_i32, %c0_i32_0 : i32, i32, i32
  }
}

module attributes {stable_mosaic.version = 11 : i64} {
  func.func @_bottleneck_conv_kernel(%arg0: i32, %arg1: i32, %arg2: memref<2x18x16x512xbf16, #tpu.memory_space<any>>, %arg3: memref<2x18x16x128xbf16, #tpu.memory_space<any>>, %arg4: memref<3x1920x128xbf16, #tpu.memory_space<vmem>>, %arg5: memref<1x128x128xbf16, #tpu.memory_space<vmem>>, %arg6: memref<1x1x128xf32, #tpu.memory_space<vmem>>, %arg7: memref<1x1x128xf32, #tpu.memory_space<vmem>>, %arg8: memref<2x10x16x512xbf16, #tpu.memory_space<vmem>>, %arg9: memref<2x10x16x128xbf16, #tpu.memory_space<vmem>>, %arg10: memref<2x2x!tpu.dma_semaphore, #tpu.memory_space<semaphore_mem>>) attributes {dimension_semantics = [#tpu.dimension_semantics<parallel>, #tpu.dimension_semantics<arbitrary>], iteration_bounds = array<i64: 2, 2>, scalar_prefetch = 0 : i64, scratch_operands = 3 : i64, tpu.core_type = #tpu.core_type<tc>, window_params = [{}, {}, {pipeline_mode = #tpu.pipeline_mode<synchronous>, transform_indices = @transform_2, window_bounds = array<i64: 3, 1920, 128>}, {transform_indices = @transform_3, window_bounds = array<i64: 1, 128, 128>}, {transform_indices = @transform_4, window_bounds = array<i64: 1, 1, 128>}, {transform_indices = @transform_5, window_bounds = array<i64: 1, 1, 128>}]} {
    %c1_i32 = arith.constant 1 : i32
    %0 = arith.andi %arg1, %c1_i32 : i32
    %c0_i32 = arith.constant 0 : i32
    %1 = arith.cmpi eq, %arg1, %c0_i32 : i32
    %2 = arith.extui %1 : i1 to i32
    %c0_i32_0 = arith.constant 0 : i32
    %3 = arith.cmpi ne, %2, %c0_i32_0 : i32
    scf.if %3 {
      %c0_i32_53 = arith.constant 0 : i32
      %c0_i32_54 = arith.constant 0 : i32
      %c0_i32_55 = arith.constant 0 : i32
      %c0_i32_56 = arith.constant 0 : i32
      %c0_i32_57 = arith.constant 0 : i32
      %c0_i32_58 = arith.constant 0 : i32
      %73 = tpu.memref_slice %arg2[%arg0, %c0_i32_56, %c0_i32_57, %c0_i32_58] : memref<2x18x16x512xbf16, #tpu.memory_space<any>> -> memref<1x10x16x512xbf16, #tpu.memory_space<any>>
      %74 = tpu.memref_squeeze %73 : memref<1x10x16x512xbf16, #tpu.memory_space<any>> -> memref<10x16x512xbf16, #tpu.memory_space<any>>
      %c0_i32_59 = arith.constant 0 : i32
      %c0_i32_60 = arith.constant 0 : i32
      %c0_i32_61 = arith.constant 0 : i32
      %75 = tpu.memref_slice %arg8[%c0_i32_53, %c0_i32_59, %c0_i32_60, %c0_i32_61] : memref<2x10x16x512xbf16, #tpu.memory_space<vmem>> -> memref<1x10x16x512xbf16, #tpu.memory_space<vmem>>
      %76 = tpu.memref_squeeze %75 : memref<1x10x16x512xbf16, #tpu.memory_space<vmem>> -> memref<10x16x512xbf16, #tpu.memory_space<vmem>>
      %77 = tpu.memref_slice %arg10[%c0_i32_54, %c0_i32_55] : memref<2x2x!tpu.dma_semaphore, #tpu.memory_space<semaphore_mem>> -> memref<1x1x!tpu.dma_semaphore, #tpu.memory_space<semaphore_mem>>
      %78 = tpu.memref_squeeze %77 : memref<1x1x!tpu.dma_semaphore, #tpu.memory_space<semaphore_mem>> -> memref<!tpu.dma_semaphore, #tpu.memory_space<semaphore_mem>>
      tpu.enqueue_dma source(%74 : memref<10x16x512xbf16, #tpu.memory_space<any>>) target(%76 : memref<10x16x512xbf16, #tpu.memory_space<vmem>>) target_semaphore(%78 : memref<!tpu.dma_semaphore, #tpu.memory_space<semaphore_mem>>)
      %c0_i32_62 = arith.constant 0 : i32
      %c1_i32_63 = arith.constant 1 : i32
      %c0_i32_64 = arith.constant 0 : i32
      %c0_i32_65 = arith.constant 0 : i32
      %c0_i32_66 = arith.constant 0 : i32
      %c0_i32_67 = arith.constant 0 : i32
      %79 = tpu.memref_slice %arg3[%arg0, %c0_i32_65, %c0_i32_66, %c0_i32_67] : memref<2x18x16x128xbf16, #tpu.memory_space<any>> -> memref<1x10x16x128xbf16, #tpu.memory_space<any>>
      %80 = tpu.memref_squeeze %79 : memref<1x10x16x128xbf16, #tpu.memory_space<any>> -> memref<10x16x128xbf16, #tpu.memory_space<any>>
      %c0_i32_68 = arith.constant 0 : i32
      %c0_i32_69 = arith.constant 0 : i32
      %c0_i32_70 = arith.constant 0 : i32
      %81 = tpu.memref_slice %arg9[%c0_i32_62, %c0_i32_68, %c0_i32_69, %c0_i32_70] : memref<2x10x16x128xbf16, #tpu.memory_space<vmem>> -> memref<1x10x16x128xbf16, #tpu.memory_space<vmem>>
      %82 = tpu.memref_squeeze %81 : memref<1x10x16x128xbf16, #tpu.memory_space<vmem>> -> memref<10x16x128xbf16, #tpu.memory_space<vmem>>
      %83 = tpu.memref_slice %arg10[%c1_i32_63, %c0_i32_64] : memref<2x2x!tpu.dma_semaphore, #tpu.memory_space<semaphore_mem>> -> memref<1x1x!tpu.dma_semaphore, #tpu.memory_space<semaphore_mem>>
      %84 = tpu.memref_squeeze %83 : memref<1x1x!tpu.dma_semaphore, #tpu.memory_space<semaphore_mem>> -> memref<!tpu.dma_semaphore, #tpu.memory_space<semaphore_mem>>
      tpu.enqueue_dma source(%80 : memref<10x16x128xbf16, #tpu.memory_space<any>>) target(%82 : memref<10x16x128xbf16, #tpu.memory_space<vmem>>) target_semaphore(%84 : memref<!tpu.dma_semaphore, #tpu.memory_space<semaphore_mem>>)
    } else {
    }
    %c0_i32_1 = arith.constant 0 : i32
    %c0_i32_2 = arith.constant 0 : i32
    %c0_i32_3 = arith.constant 0 : i32
    %c0_i32_4 = arith.constant 0 : i32
    %4 = tpu.memref_slice %arg2[%arg0, %c0_i32_2, %c0_i32_3, %c0_i32_4] : memref<2x18x16x512xbf16, #tpu.memory_space<any>> -> memref<1x10x16x512xbf16, #tpu.memory_space<any>>
    %5 = tpu.memref_squeeze %4 : memref<1x10x16x512xbf16, #tpu.memory_space<any>> -> memref<10x16x512xbf16, #tpu.memory_space<any>>
    %c0_i32_5 = arith.constant 0 : i32
    %c0_i32_6 = arith.constant 0 : i32
    %c0_i32_7 = arith.constant 0 : i32
    %6 = tpu.memref_slice %arg8[%0, %c0_i32_5, %c0_i32_6, %c0_i32_7] : memref<2x10x16x512xbf16, #tpu.memory_space<vmem>> -> memref<1x10x16x512xbf16, #tpu.memory_space<vmem>>
    %7 = tpu.memref_squeeze %6 : memref<1x10x16x512xbf16, #tpu.memory_space<vmem>> -> memref<10x16x512xbf16, #tpu.memory_space<vmem>>
    %8 = tpu.memref_slice %arg10[%c0_i32_1, %0] : memref<2x2x!tpu.dma_semaphore, #tpu.memory_space<semaphore_mem>> -> memref<1x1x!tpu.dma_semaphore, #tpu.memory_space<semaphore_mem>>
    %9 = tpu.memref_squeeze %8 : memref<1x1x!tpu.dma_semaphore, #tpu.memory_space<semaphore_mem>> -> memref<!tpu.dma_semaphore, #tpu.memory_space<semaphore_mem>>
    tpu.wait_dma2 semaphore(%9 : memref<!tpu.dma_semaphore, #tpu.memory_space<semaphore_mem>>) src(%5 : memref<10x16x512xbf16, #tpu.memory_space<any>>) dst(%7 : memref<10x16x512xbf16, #tpu.memory_space<vmem>>)
    %c1_i32_8 = arith.constant 1 : i32
    %c0_i32_9 = arith.constant 0 : i32
    %c0_i32_10 = arith.constant 0 : i32
    %c0_i32_11 = arith.constant 0 : i32
    %10 = tpu.memref_slice %arg3[%arg0, %c0_i32_9, %c0_i32_10, %c0_i32_11] : memref<2x18x16x128xbf16, #tpu.memory_space<any>> -> memref<1x10x16x128xbf16, #tpu.memory_space<any>>
    %11 = tpu.memref_squeeze %10 : memref<1x10x16x128xbf16, #tpu.memory_space<any>> -> memref<10x16x128xbf16, #tpu.memory_space<any>>
    %c0_i32_12 = arith.constant 0 : i32
    %c0_i32_13 = arith.constant 0 : i32
    %c0_i32_14 = arith.constant 0 : i32
    %12 = tpu.memref_slice %arg9[%0, %c0_i32_12, %c0_i32_13, %c0_i32_14] : memref<2x10x16x128xbf16, #tpu.memory_space<vmem>> -> memref<1x10x16x128xbf16, #tpu.memory_space<vmem>>
    %13 = tpu.memref_squeeze %12 : memref<1x10x16x128xbf16, #tpu.memory_space<vmem>> -> memref<10x16x128xbf16, #tpu.memory_space<vmem>>
    %14 = tpu.memref_slice %arg10[%c1_i32_8, %0] : memref<2x2x!tpu.dma_semaphore, #tpu.memory_space<semaphore_mem>> -> memref<1x1x!tpu.dma_semaphore, #tpu.memory_space<semaphore_mem>>
    %15 = tpu.memref_squeeze %14 : memref<1x1x!tpu.dma_semaphore, #tpu.memory_space<semaphore_mem>> -> memref<!tpu.dma_semaphore, #tpu.memory_space<semaphore_mem>>
    tpu.wait_dma2 semaphore(%15 : memref<!tpu.dma_semaphore, #tpu.memory_space<semaphore_mem>>) src(%11 : memref<10x16x128xbf16, #tpu.memory_space<any>>) dst(%13 : memref<10x16x128xbf16, #tpu.memory_space<vmem>>)
    %c1_i32_15 = arith.constant 1 : i32
    %16 = arith.addi %arg1, %c1_i32_15 : i32
    %c2_i32 = arith.constant 2 : i32
    %17 = arith.cmpi slt, %16, %c2_i32 : i32
    %18 = arith.extui %17 : i1 to i32
    %c0_i32_16 = arith.constant 0 : i32
    %19 = arith.cmpi ne, %18, %c0_i32_16 : i32
    scf.if %19 {
      %c1_i32_53 = arith.constant 1 : i32
      %73 = arith.addi %arg1, %c1_i32_53 : i32
      %c1_i32_54 = arith.constant 1 : i32
      %74 = arith.subi %c1_i32_54, %0 : i32
      %c8_i32 = arith.constant 8 : i32
      %75 = arith.muli %73, %c8_i32 : i32
      %c0_i32_55 = arith.constant 0 : i32
      %c0_i32_56 = arith.constant 0 : i32
      %c0_i32_57 = arith.constant 0 : i32
      %76 = tpu.memref_slice %arg2[%arg0, %75, %c0_i32_56, %c0_i32_57] : memref<2x18x16x512xbf16, #tpu.memory_space<any>> -> memref<1x10x16x512xbf16, #tpu.memory_space<any>>
      %77 = tpu.memref_squeeze %76 : memref<1x10x16x512xbf16, #tpu.memory_space<any>> -> memref<10x16x512xbf16, #tpu.memory_space<any>>
      %c0_i32_58 = arith.constant 0 : i32
      %c0_i32_59 = arith.constant 0 : i32
      %c0_i32_60 = arith.constant 0 : i32
      %78 = tpu.memref_slice %arg8[%74, %c0_i32_58, %c0_i32_59, %c0_i32_60] : memref<2x10x16x512xbf16, #tpu.memory_space<vmem>> -> memref<1x10x16x512xbf16, #tpu.memory_space<vmem>>
      %79 = tpu.memref_squeeze %78 : memref<1x10x16x512xbf16, #tpu.memory_space<vmem>> -> memref<10x16x512xbf16, #tpu.memory_space<vmem>>
      %80 = tpu.memref_slice %arg10[%c0_i32_55, %74] : memref<2x2x!tpu.dma_semaphore, #tpu.memory_space<semaphore_mem>> -> memref<1x1x!tpu.dma_semaphore, #tpu.memory_space<semaphore_mem>>
      %81 = tpu.memref_squeeze %80 : memref<1x1x!tpu.dma_semaphore, #tpu.memory_space<semaphore_mem>> -> memref<!tpu.dma_semaphore, #tpu.memory_space<semaphore_mem>>
      tpu.enqueue_dma source(%77 : memref<10x16x512xbf16, #tpu.memory_space<any>>) target(%79 : memref<10x16x512xbf16, #tpu.memory_space<vmem>>) target_semaphore(%81 : memref<!tpu.dma_semaphore, #tpu.memory_space<semaphore_mem>>)
      %c1_i32_61 = arith.constant 1 : i32
      %c0_i32_62 = arith.constant 0 : i32
      %c0_i32_63 = arith.constant 0 : i32
      %82 = tpu.memref_slice %arg3[%arg0, %75, %c0_i32_62, %c0_i32_63] : memref<2x18x16x128xbf16, #tpu.memory_space<any>> -> memref<1x10x16x128xbf16, #tpu.memory_space<any>>
      %83 = tpu.memref_squeeze %82 : memref<1x10x16x128xbf16, #tpu.memory_space<any>> -> memref<10x16x128xbf16, #tpu.memory_space<any>>
      %c0_i32_64 = arith.constant 0 : i32
      %c0_i32_65 = arith.constant 0 : i32
      %c0_i32_66 = arith.constant 0 : i32
      %84 = tpu.memref_slice %arg9[%74, %c0_i32_64, %c0_i32_65, %c0_i32_66] : memref<2x10x16x128xbf16, #tpu.memory_space<vmem>> -> memref<1x10x16x128xbf16, #tpu.memory_space<vmem>>
      %85 = tpu.memref_squeeze %84 : memref<1x10x16x128xbf16, #tpu.memory_space<vmem>> -> memref<10x16x128xbf16, #tpu.memory_space<vmem>>
      %86 = tpu.memref_slice %arg10[%c1_i32_61, %74] : memref<2x2x!tpu.dma_semaphore, #tpu.memory_space<semaphore_mem>> -> memref<1x1x!tpu.dma_semaphore, #tpu.memory_space<semaphore_mem>>
      %87 = tpu.memref_squeeze %86 : memref<1x1x!tpu.dma_semaphore, #tpu.memory_space<semaphore_mem>> -> memref<!tpu.dma_semaphore, #tpu.memory_space<semaphore_mem>>
      tpu.enqueue_dma source(%83 : memref<10x16x128xbf16, #tpu.memory_space<any>>) target(%85 : memref<10x16x128xbf16, #tpu.memory_space<vmem>>) target_semaphore(%87 : memref<!tpu.dma_semaphore, #tpu.memory_space<semaphore_mem>>)
    } else {
    }
    %20 = arith.index_cast %0 : i32 to index
    %c0 = arith.constant 0 : index
    %c0_17 = arith.constant 0 : index
    %c0_18 = arith.constant 0 : index
    %21 = vector.load %arg8[%20, %c0, %c0_17, %c0_18] : memref<2x10x16x512xbf16, #tpu.memory_space<vmem>>, vector<1x10x16x512xbf16>
    %22 = vector.shape_cast %21 : vector<1x10x16x512xbf16> to vector<10x16x512xbf16>
    %23 = arith.index_cast %0 : i32 to index
    %c0_19 = arith.constant 0 : index
    %c0_20 = arith.constant 0 : index
    %c0_21 = arith.constant 0 : index
    %24 = vector.load %arg9[%23, %c0_19, %c0_20, %c0_21] : memref<2x10x16x128xbf16, #tpu.memory_space<vmem>>, vector<1x10x16x128xbf16>
    %25 = vector.shape_cast %24 : vector<1x10x16x128xbf16> to vector<10x16x128xbf16>
    %cst = arith.constant 0.000000e+00 : bf16
    %26 = vector.broadcast %cst : bf16 to vector<10x1x512xbf16>
    %cst_22 = arith.constant 0.000000e+00 : bf16
    %27 = vector.broadcast %cst_22 : bf16 to vector<10x1x128xbf16>
    %28 = vector.extract_strided_slice %22 {offsets = [0, 0, 0], sizes = [10, 15, 512], strides = [1, 1, 1]} : vector<10x16x512xbf16> to vector<10x15x512xbf16>
    %29 = tpu.concatenate %26, %28 in 1 : vector<10x1x512xbf16>, vector<10x15x512xbf16> -> vector<10x16x512xbf16>
    %30 = vector.extract_strided_slice %25 {offsets = [0, 0, 0], sizes = [10, 15, 128], strides = [1, 1, 1]} : vector<10x16x128xbf16> to vector<10x15x128xbf16>
    %31 = tpu.concatenate %27, %30 in 1 : vector<10x1x128xbf16>, vector<10x15x128xbf16> -> vector<10x16x128xbf16>
    %32 = vector.extract_strided_slice %22 {offsets = [0, 1, 0], sizes = [10, 15, 512], strides = [1, 1, 1]} : vector<10x16x512xbf16> to vector<10x15x512xbf16>
    %33 = tpu.concatenate %32, %26 in 1 : vector<10x15x512xbf16>, vector<10x1x512xbf16> -> vector<10x16x512xbf16>
    %34 = vector.extract_strided_slice %25 {offsets = [0, 1, 0], sizes = [10, 15, 128], strides = [1, 1, 1]} : vector<10x16x128xbf16> to vector<10x15x128xbf16>
    %35 = tpu.concatenate %34, %27 in 1 : vector<10x15x128xbf16>, vector<10x1x128xbf16> -> vector<10x16x128xbf16>
    %36 = tpu.concatenate %29, %31, %22, %25, %33, %35 in 2 : vector<10x16x512xbf16>, vector<10x16x128xbf16>, vector<10x16x512xbf16>, vector<10x16x128xbf16>, vector<10x16x512xbf16>, vector<10x16x128xbf16> -> vector<10x16x1920xbf16>
    %37 = vector.shape_cast %36 : vector<10x16x1920xbf16> to vector<160x1920xbf16>
    %cst_23 = arith.constant 0.000000e+00 : f32
    %38 = vector.broadcast %cst_23 : f32 to vector<128x128xf32>
    %39 = vector.extract_strided_slice %37 {offsets = [0, 0], sizes = [128, 1920], strides = [1, 1]} : vector<160x1920xbf16> to vector<128x1920xbf16>
    %c0_24 = arith.constant 0 : index
    %c0_25 = arith.constant 0 : index
    %c0_26 = arith.constant 0 : index
    %40 = vector.load %arg4[%c0_24, %c0_25, %c0_26] : memref<3x1920x128xbf16, #tpu.memory_space<vmem>>, vector<1x1920x128xbf16>
    %41 = vector.shape_cast %40 : vector<1x1920x128xbf16> to vector<1920x128xbf16>
    %cst_27 = arith.constant dense<0.000000e+00> : vector<128x128xf32>
    %42 = tpu.matmul %39, %41, %cst_27 {dimension_numbers = #tpu.dot_dimension_numbers<[1], [0], [0], [1], [0, 0, 1, 1], [], []>} : vector<128x1920xbf16>, vector<1920x128xbf16>, vector<128x128xf32> -> vector<128x128xf32>
    %43 = arith.addf %38, %42 : vector<128x128xf32>
    %44 = vector.extract_strided_slice %37 {offsets = [16, 0], sizes = [128, 1920], strides = [1, 1]} : vector<160x1920xbf16> to vector<128x1920xbf16>
    %c1 = arith.constant 1 : index
    %c0_28 = arith.constant 0 : index
    %c0_29 = arith.constant 0 : index
    %45 = vector.load %arg4[%c1, %c0_28, %c0_29] : memref<3x1920x128xbf16, #tpu.memory_space<vmem>>, vector<1x1920x128xbf16>
    %46 = vector.shape_cast %45 : vector<1x1920x128xbf16> to vector<1920x128xbf16>
    %cst_30 = arith.constant dense<0.000000e+00> : vector<128x128xf32>
    %47 = tpu.matmul %44, %46, %cst_30 {dimension_numbers = #tpu.dot_dimension_numbers<[1], [0], [0], [1], [0, 0, 1, 1], [], []>} : vector<128x1920xbf16>, vector<1920x128xbf16>, vector<128x128xf32> -> vector<128x128xf32>
    %48 = arith.addf %43, %47 : vector<128x128xf32>
    %49 = vector.extract_strided_slice %37 {offsets = [32, 0], sizes = [128, 1920], strides = [1, 1]} : vector<160x1920xbf16> to vector<128x1920xbf16>
    %c2 = arith.constant 2 : index
    %c0_31 = arith.constant 0 : index
    %c0_32 = arith.constant 0 : index
    %50 = vector.load %arg4[%c2, %c0_31, %c0_32] : memref<3x1920x128xbf16, #tpu.memory_space<vmem>>, vector<1x1920x128xbf16>
    %51 = vector.shape_cast %50 : vector<1x1920x128xbf16> to vector<1920x128xbf16>
    %cst_33 = arith.constant dense<0.000000e+00> : vector<128x128xf32>
    %52 = tpu.matmul %49, %51, %cst_33 {dimension_numbers = #tpu.dot_dimension_numbers<[1], [0], [0], [1], [0, 0, 1, 1], [], []>} : vector<128x1920xbf16>, vector<1920x128xbf16>, vector<128x128xf32> -> vector<128x128xf32>
    %53 = arith.addf %48, %52 : vector<128x128xf32>
    %c0_i32_34 = arith.constant 0 : i32
    %54 = arith.cmpi eq, %arg1, %c0_i32_34 : i32
    %55 = arith.extui %54 : i1 to i32
    %c0_i32_35 = arith.constant 0 : i32
    %56 = arith.cmpi ne, %55, %c0_i32_35 : i32
    scf.if %56 {
      %cst_53 = arith.constant 0.000000e+00 : f32
      %73 = vector.broadcast %cst_53 : f32 to vector<1x1x128xf32>
      %c0_54 = arith.constant 0 : index
      %c0_55 = arith.constant 0 : index
      %c0_56 = arith.constant 0 : index
      %74 = vector.load %arg6[%c0_54, %c0_55, %c0_56] : memref<1x1x128xf32, #tpu.memory_space<vmem>>, vector<1x1x128xf32>
      tpu.vector_store %arg6[%c0_54, %c0_55, %c0_56], %73 {strides = array<i32>} : memref<1x1x128xf32, #tpu.memory_space<vmem>>, vector<1x1x128xf32>,
      %cst_57 = arith.constant 0.000000e+00 : f32
      %75 = vector.broadcast %cst_57 : f32 to vector<1x1x128xf32>
      %c0_58 = arith.constant 0 : index
      %c0_59 = arith.constant 0 : index
      %c0_60 = arith.constant 0 : index
      %76 = vector.load %arg7[%c0_58, %c0_59, %c0_60] : memref<1x1x128xf32, #tpu.memory_space<vmem>>, vector<1x1x128xf32>
      tpu.vector_store %arg7[%c0_58, %c0_59, %c0_60], %75 {strides = array<i32>} : memref<1x1x128xf32, #tpu.memory_space<vmem>>, vector<1x1x128xf32>,
    } else {
    }
    %c0_36 = arith.constant 0 : index
    %c0_37 = arith.constant 0 : index
    %c0_38 = arith.constant 0 : index
    %57 = vector.load %arg6[%c0_36, %c0_37, %c0_38] : memref<1x1x128xf32, #tpu.memory_space<vmem>>, vector<1x1x128xf32>
    %cst_39 = arith.constant dense<0.000000e+00> : vector<128xf32>
    %58 = vector.multi_reduction <add>, %53, %cst_39 [0] : vector<128x128xf32> to vector<128xf32>
    %59 = vector.shape_cast %58 : vector<128xf32> to vector<1x128xf32>
    %60 = vector.shape_cast %59 : vector<1x128xf32> to vector<1x1x128xf32>
    %61 = arith.addf %57, %60 : vector<1x1x128xf32>
    %c0_40 = arith.constant 0 : index
    %c0_41 = arith.constant 0 : index
    %c0_42 = arith.constant 0 : index
    %62 = vector.load %arg6[%c0_40, %c0_41, %c0_42] : memref<1x1x128xf32, #tpu.memory_space<vmem>>, vector<1x1x128xf32>
    tpu.vector_store %arg6[%c0_40, %c0_41, %c0_42], %61 {strides = array<i32>} : memref<1x1x128xf32, #tpu.memory_space<vmem>>, vector<1x1x128xf32>,
    %c0_43 = arith.constant 0 : index
    %c0_44 = arith.constant 0 : index
    %c0_45 = arith.constant 0 : index
    %63 = vector.load %arg7[%c0_43, %c0_44, %c0_45] : memref<1x1x128xf32, #tpu.memory_space<vmem>>, vector<1x1x128xf32>
    %64 = arith.mulf %53, %53 : vector<128x128xf32>
    %cst_46 = arith.constant dense<0.000000e+00> : vector<128xf32>
    %65 = vector.multi_reduction <add>, %64, %cst_46 [0] : vector<128x128xf32> to vector<128xf32>
    %66 = vector.shape_cast %65 : vector<128xf32> to vector<1x128xf32>
    %67 = vector.shape_cast %66 : vector<1x128xf32> to vector<1x1x128xf32>
    %68 = arith.addf %63, %67 : vector<1x1x128xf32>
    %c0_47 = arith.constant 0 : index
    %c0_48 = arith.constant 0 : index
    %c0_49 = arith.constant 0 : index
    %69 = vector.load %arg7[%c0_47, %c0_48, %c0_49] : memref<1x1x128xf32, #tpu.memory_space<vmem>>, vector<1x1x128xf32>
    tpu.vector_store %arg7[%c0_47, %c0_48, %c0_49], %68 {strides = array<i32>} : memref<1x1x128xf32, #tpu.memory_space<vmem>>, vector<1x1x128xf32>,
    %70 = vector.shape_cast %53 : vector<128x128xf32> to vector<1x128x128xf32>
    %71 = arith.truncf %70 : vector<1x128x128xf32> to vector<1x128x128xbf16>
    %c0_50 = arith.constant 0 : index
    %c0_51 = arith.constant 0 : index
    %c0_52 = arith.constant 0 : index
    %72 = vector.load %arg5[%c0_50, %c0_51, %c0_52] : memref<1x128x128xbf16, #tpu.memory_space<vmem>>, vector<1x128x128xbf16>
    tpu.vector_store %arg5[%c0_50, %c0_51, %c0_52], %71 {strides = array<i32>} : memref<1x128x128xbf16, #tpu.memory_space<vmem>>, vector<1x128x128xbf16>,
    return
  }
  func.func @transform_2(%arg0: i32, %arg1: i32) -> (i32, i32, i32) {
    %c0_i32 = arith.constant 0 : i32
    %c0_i32_0 = arith.constant 0 : i32
    %c0_i32_1 = arith.constant 0 : i32
    %c0_i32_2 = arith.constant 0 : i32
    return %c0_i32, %c0_i32_0, %c0_i32_1 : i32, i32, i32
  }
  func.func @transform_3(%arg0: i32, %arg1: i32) -> (i32, i32, i32) {
    %c0_i32 = arith.constant 0 : i32
    %c0_i32_0 = arith.constant 0 : i32
    return %arg0, %arg1, %c0_i32 : i32, i32, i32
  }
  func.func @transform_4(%arg0: i32, %arg1: i32) -> (i32, i32, i32) {
    %c0_i32 = arith.constant 0 : i32
    %c0_i32_0 = arith.constant 0 : i32
    %c0_i32_1 = arith.constant 0 : i32
    return %arg0, %c0_i32, %c0_i32_0 : i32, i32, i32
  }
  func.func @transform_5(%arg0: i32, %arg1: i32) -> (i32, i32, i32) {
    %c0_i32 = arith.constant 0 : i32
    %c0_i32_0 = arith.constant 0 : i32
    %c0_i32_1 = arith.constant 0 : i32
    return %arg0, %c0_i32, %c0_i32_0 : i32, i32, i32
  }
}

module attributes {stable_mosaic.version = 11 : i64} {
  func.func @_psp_upsample_kernel(%arg0: i32, %arg1: memref<1x50x128xf32, #tpu.memory_space<vmem>>, %arg2: memref<4x128xf32, #tpu.memory_space<vmem>>, %arg3: memref<4x128xf32, #tpu.memory_space<vmem>>, %arg4: memref<256x50xbf16, #tpu.memory_space<vmem>>, %arg5: memref<1x288x512xbf16, #tpu.memory_space<vmem>>) attributes {dimension_semantics = [#tpu.dimension_semantics<parallel>], iteration_bounds = array<i64: 2>, scalar_prefetch = 0 : i64, scratch_operands = 0 : i64, tpu.core_type = #tpu.core_type<tc>, window_params = [{transform_indices = @transform_0, window_bounds = array<i64: 1, 50, 128>}, {pipeline_mode = #tpu.pipeline_mode<synchronous>, transform_indices = @transform_1, window_bounds = array<i64: 4, 128>}, {pipeline_mode = #tpu.pipeline_mode<synchronous>, transform_indices = @transform_2, window_bounds = array<i64: 4, 128>}, {pipeline_mode = #tpu.pipeline_mode<synchronous>, transform_indices = @transform_3, window_bounds = array<i64: 256, 50>}, {transform_indices = @transform_4, window_bounds = array<i64: 1, 288, 512>}]} {
    %cst = arith.constant 0.000000e+00 : bf16
    %0 = vector.broadcast %cst : bf16 to vector<16x512xbf16>
    %c0 = arith.constant 0 : index
    %c0_0 = arith.constant 0 : index
    %c0_1 = arith.constant 0 : index
    %1 = vector.load %arg5[%c0, %c0_0, %c0_1] : memref<1x288x512xbf16, #tpu.memory_space<vmem>>, vector<1x16x512xbf16>
    %2 = vector.shape_cast %1 : vector<1x16x512xbf16> to vector<16x512xbf16>
    %3 = vector.shape_cast %0 : vector<16x512xbf16> to vector<1x16x512xbf16>
    tpu.vector_store %arg5[%c0, %c0_0, %c0_1], %3 {strides = array<i32>} : memref<1x288x512xbf16, #tpu.memory_space<vmem>>, vector<1x16x512xbf16>,
    %cst_2 = arith.constant 0.000000e+00 : bf16
    %4 = vector.broadcast %cst_2 : bf16 to vector<16x512xbf16>
    %c0_3 = arith.constant 0 : index
    %c272 = arith.constant 272 : index
    %c0_4 = arith.constant 0 : index
    %5 = vector.load %arg5[%c0_3, %c272, %c0_4] : memref<1x288x512xbf16, #tpu.memory_space<vmem>>, vector<1x16x512xbf16>
    %6 = vector.shape_cast %5 : vector<1x16x512xbf16> to vector<16x512xbf16>
    %7 = vector.shape_cast %4 : vector<16x512xbf16> to vector<1x16x512xbf16>
    tpu.vector_store %arg5[%c0_3, %c272, %c0_4], %7 {strides = array<i32>} : memref<1x288x512xbf16, #tpu.memory_space<vmem>>, vector<1x16x512xbf16>,
    %c0_5 = arith.constant 0 : index
    %c0_6 = arith.constant 0 : index
    %c0_7 = arith.constant 0 : index
    %8 = vector.load %arg1[%c0_5, %c0_6, %c0_7] : memref<1x50x128xf32, #tpu.memory_space<vmem>>, vector<1x1x128xf32>
    %9 = vector.shape_cast %8 : vector<1x1x128xf32> to vector<1x128xf32>
    %c0_8 = arith.constant 0 : index
    %c0_9 = arith.constant 0 : index
    %10 = vector.load %arg2[%c0_8, %c0_9] : memref<4x128xf32, #tpu.memory_space<vmem>>, vector<1x128xf32>
    %11 = arith.mulf %9, %10 : vector<1x128xf32>
    %c0_10 = arith.constant 0 : index
    %c0_11 = arith.constant 0 : index
    %12 = vector.load %arg3[%c0_10, %c0_11] : memref<4x128xf32, #tpu.memory_space<vmem>>, vector<1x128xf32>
    %13 = arith.addf %11, %12 : vector<1x128xf32>
    %14 = vector.shape_cast %13 : vector<1x128xf32> to vector<1x128xf32>
    %15 = vector.broadcast %14 : vector<1x128xf32> to vector<256x128xf32>
    %16 = arith.truncf %15 : vector<256x128xf32> to vector<256x128xbf16>
    %c0_12 = arith.constant 0 : index
    %c16 = arith.constant 16 : index
    %c0_13 = arith.constant 0 : index
    %17 = vector.load %arg5[%c0_12, %c16, %c0_13] : memref<1x288x512xbf16, #tpu.memory_space<vmem>>, vector<1x256x128xbf16>
    %18 = vector.shape_cast %17 : vector<1x256x128xbf16> to vector<256x128xbf16>
    %19 = vector.shape_cast %16 : vector<256x128xbf16> to vector<1x256x128xbf16>
    tpu.vector_store %arg5[%c0_12, %c16, %c0_13], %19 {strides = array<i32>} : memref<1x288x512xbf16, #tpu.memory_space<vmem>>, vector<1x256x128xbf16>,
    %c0_14 = arith.constant 0 : index
    %c1 = arith.constant 1 : index
    %c0_15 = arith.constant 0 : index
    %20 = vector.load %arg1[%c0_14, %c1, %c0_15] : memref<1x50x128xf32, #tpu.memory_space<vmem>>, vector<1x4x128xf32>
    %21 = vector.shape_cast %20 : vector<1x4x128xf32> to vector<4x128xf32>
    %c1_16 = arith.constant 1 : index
    %c0_17 = arith.constant 0 : index
    %22 = vector.load %arg2[%c1_16, %c0_17] : memref<4x128xf32, #tpu.memory_space<vmem>>, vector<1x128xf32>
    %23 = vector.broadcast %22 : vector<1x128xf32> to vector<4x128xf32>
    %24 = arith.mulf %21, %23 : vector<4x128xf32>
    %c1_18 = arith.constant 1 : index
    %c0_19 = arith.constant 0 : index
    %25 = vector.load %arg3[%c1_18, %c0_19] : memref<4x128xf32, #tpu.memory_space<vmem>>, vector<1x128xf32>
    %26 = vector.broadcast %25 : vector<1x128xf32> to vector<4x128xf32>
    %27 = arith.addf %24, %26 : vector<4x128xf32>
    %c0_20 = arith.constant 0 : index
    %c1_21 = arith.constant 1 : index
    %28 = vector.load %arg4[%c0_20, %c1_21] : memref<256x50xbf16, #tpu.memory_space<vmem>>, vector<256x4xbf16>
    %29 = arith.truncf %27 : vector<4x128xf32> to vector<4x128xbf16>
    %cst_22 = arith.constant dense<0.000000e+00> : vector<256x128xf32>
    %30 = tpu.matmul %28, %29, %cst_22 {dimension_numbers = #tpu.dot_dimension_numbers<[1], [0], [0], [1], [0, 0, 1, 1], [], []>} : vector<256x4xbf16>, vector<4x128xbf16>, vector<256x128xf32> -> vector<256x128xf32>
    %31 = arith.truncf %30 : vector<256x128xf32> to vector<256x128xbf16>
    %c0_23 = arith.constant 0 : index
    %c16_24 = arith.constant 16 : index
    %c128 = arith.constant 128 : index
    %32 = vector.load %arg5[%c0_23, %c16_24, %c128] : memref<1x288x512xbf16, #tpu.memory_space<vmem>>, vector<1x256x128xbf16>
    %33 = vector.shape_cast %32 : vector<1x256x128xbf16> to vector<256x128xbf16>
    %34 = vector.shape_cast %31 : vector<256x128xbf16> to vector<1x256x128xbf16>
    tpu.vector_store %arg5[%c0_23, %c16_24, %c128], %34 {strides = array<i32>} : memref<1x288x512xbf16, #tpu.memory_space<vmem>>, vector<1x256x128xbf16>,
    %c0_25 = arith.constant 0 : index
    %c5 = arith.constant 5 : index
    %c0_26 = arith.constant 0 : index
    %35 = vector.load %arg1[%c0_25, %c5, %c0_26] : memref<1x50x128xf32, #tpu.memory_space<vmem>>, vector<1x9x128xf32>
    %36 = vector.shape_cast %35 : vector<1x9x128xf32> to vector<9x128xf32>
    %c2 = arith.constant 2 : index
    %c0_27 = arith.constant 0 : index
    %37 = vector.load %arg2[%c2, %c0_27] : memref<4x128xf32, #tpu.memory_space<vmem>>, vector<1x128xf32>
    %38 = vector.broadcast %37 : vector<1x128xf32> to vector<9x128xf32>
    %39 = arith.mulf %36, %38 : vector<9x128xf32>
    %c2_28 = arith.constant 2 : index
    %c0_29 = arith.constant 0 : index
    %40 = vector.load %arg3[%c2_28, %c0_29] : memref<4x128xf32, #tpu.memory_space<vmem>>, vector<1x128xf32>
    %41 = vector.broadcast %40 : vector<1x128xf32> to vector<9x128xf32>
    %42 = arith.addf %39, %41 : vector<9x128xf32>
    %c0_30 = arith.constant 0 : index
    %c5_31 = arith.constant 5 : index
    %43 = vector.load %arg4[%c0_30, %c5_31] : memref<256x50xbf16, #tpu.memory_space<vmem>>, vector<256x9xbf16>
    %44 = arith.truncf %42 : vector<9x128xf32> to vector<9x128xbf16>
    %cst_32 = arith.constant dense<0.000000e+00> : vector<256x128xf32>
    %45 = tpu.matmul %43, %44, %cst_32 {dimension_numbers = #tpu.dot_dimension_numbers<[1], [0], [0], [1], [0, 0, 1, 1], [], []>} : vector<256x9xbf16>, vector<9x128xbf16>, vector<256x128xf32> -> vector<256x128xf32>
    %46 = arith.truncf %45 : vector<256x128xf32> to vector<256x128xbf16>
    %c0_33 = arith.constant 0 : index
    %c16_34 = arith.constant 16 : index
    %c256 = arith.constant 256 : index
    %47 = vector.load %arg5[%c0_33, %c16_34, %c256] : memref<1x288x512xbf16, #tpu.memory_space<vmem>>, vector<1x256x128xbf16>
    %48 = vector.shape_cast %47 : vector<1x256x128xbf16> to vector<256x128xbf16>
    %49 = vector.shape_cast %46 : vector<256x128xbf16> to vector<1x256x128xbf16>
    tpu.vector_store %arg5[%c0_33, %c16_34, %c256], %49 {strides = array<i32>} : memref<1x288x512xbf16, #tpu.memory_space<vmem>>, vector<1x256x128xbf16>,
    %c0_35 = arith.constant 0 : index
    %c14 = arith.constant 14 : index
    %c0_36 = arith.constant 0 : index
    %50 = vector.load %arg1[%c0_35, %c14, %c0_36] : memref<1x50x128xf32, #tpu.memory_space<vmem>>, vector<1x36x128xf32>
    %51 = vector.shape_cast %50 : vector<1x36x128xf32> to vector<36x128xf32>
    %c3 = arith.constant 3 : index
    %c0_37 = arith.constant 0 : index
    %52 = vector.load %arg2[%c3, %c0_37] : memref<4x128xf32, #tpu.memory_space<vmem>>, vector<1x128xf32>
    %53 = vector.broadcast %52 : vector<1x128xf32> to vector<36x128xf32>
    %54 = arith.mulf %51, %53 : vector<36x128xf32>
    %c3_38 = arith.constant 3 : index
    %c0_39 = arith.constant 0 : index
    %55 = vector.load %arg3[%c3_38, %c0_39] : memref<4x128xf32, #tpu.memory_space<vmem>>, vector<1x128xf32>
    %56 = vector.broadcast %55 : vector<1x128xf32> to vector<36x128xf32>
    %57 = arith.addf %54, %56 : vector<36x128xf32>
    %c0_40 = arith.constant 0 : index
    %c14_41 = arith.constant 14 : index
    %58 = vector.load %arg4[%c0_40, %c14_41] : memref<256x50xbf16, #tpu.memory_space<vmem>>, vector<256x36xbf16>
    %59 = arith.truncf %57 : vector<36x128xf32> to vector<36x128xbf16>
    %cst_42 = arith.constant dense<0.000000e+00> : vector<256x128xf32>
    %60 = tpu.matmul %58, %59, %cst_42 {dimension_numbers = #tpu.dot_dimension_numbers<[1], [0], [0], [1], [0, 0, 1, 1], [], []>} : vector<256x36xbf16>, vector<36x128xbf16>, vector<256x128xf32> -> vector<256x128xf32>
    %61 = arith.truncf %60 : vector<256x128xf32> to vector<256x128xbf16>
    %c0_43 = arith.constant 0 : index
    %c16_44 = arith.constant 16 : index
    %c384 = arith.constant 384 : index
    %62 = vector.load %arg5[%c0_43, %c16_44, %c384] : memref<1x288x512xbf16, #tpu.memory_space<vmem>>, vector<1x256x128xbf16>
    %63 = vector.shape_cast %62 : vector<1x256x128xbf16> to vector<256x128xbf16>
    %64 = vector.shape_cast %61 : vector<256x128xbf16> to vector<1x256x128xbf16>
    tpu.vector_store %arg5[%c0_43, %c16_44, %c384], %64 {strides = array<i32>} : memref<1x288x512xbf16, #tpu.memory_space<vmem>>, vector<1x256x128xbf16>,
    return
  }
  func.func @transform_0(%arg0: i32) -> (i32, i32, i32) {
    %c0_i32 = arith.constant 0 : i32
    %c0_i32_0 = arith.constant 0 : i32
    %c0_i32_1 = arith.constant 0 : i32
    return %arg0, %c0_i32, %c0_i32_0 : i32, i32, i32
  }
  func.func @transform_1(%arg0: i32) -> (i32, i32) {
    %c0_i32 = arith.constant 0 : i32
    %c0_i32_0 = arith.constant 0 : i32
    %c0_i32_1 = arith.constant 0 : i32
    return %c0_i32, %c0_i32_0 : i32, i32
  }
  func.func @transform_2(%arg0: i32) -> (i32, i32) {
    %c0_i32 = arith.constant 0 : i32
    %c0_i32_0 = arith.constant 0 : i32
    %c0_i32_1 = arith.constant 0 : i32
    return %c0_i32, %c0_i32_0 : i32, i32
  }
  func.func @transform_3(%arg0: i32) -> (i32, i32) {
    %c0_i32 = arith.constant 0 : i32
    %c0_i32_0 = arith.constant 0 : i32
    %c0_i32_1 = arith.constant 0 : i32
    return %c0_i32, %c0_i32_0 : i32, i32
  }
  func.func @transform_4(%arg0: i32) -> (i32, i32, i32) {
    %c0_i32 = arith.constant 0 : i32
    %c0_i32_0 = arith.constant 0 : i32
    %c0_i32_1 = arith.constant 0 : i32
    return %arg0, %c0_i32, %c0_i32_0 : i32, i32, i32
  }
}

module attributes {stable_mosaic.version = 11 : i64} {
  func.func @_bn_relu_kernel(%arg0: i32, %arg1: memref<512x128xbf16, #tpu.memory_space<vmem>>, %arg2: memref<1x128xf32, #tpu.memory_space<vmem>>, %arg3: memref<1x128xf32, #tpu.memory_space<vmem>>, %arg4: memref<512x128xf32, #tpu.memory_space<vmem>>) attributes {dimension_semantics = [#tpu.dimension_semantics<parallel>], iteration_bounds = array<i64: 1>, scalar_prefetch = 0 : i64, scratch_operands = 0 : i64, tpu.core_type = #tpu.core_type<tc>, window_params = [{transform_indices = @transform_0, window_bounds = array<i64: 512, 128>}, {pipeline_mode = #tpu.pipeline_mode<synchronous>, transform_indices = @transform_1, window_bounds = array<i64: 1, 128>}, {pipeline_mode = #tpu.pipeline_mode<synchronous>, transform_indices = @transform_2, window_bounds = array<i64: 1, 128>}, {transform_indices = @transform_3, window_bounds = array<i64: 512, 128>}]} {
    %c0 = arith.constant 0 : index
    %c0_0 = arith.constant 0 : index
    %0 = vector.load %arg1[%c0, %c0_0] : memref<512x128xbf16, #tpu.memory_space<vmem>>, vector<512x128xbf16>
    %1 = arith.extf %0 : vector<512x128xbf16> to vector<512x128xf32>
    %c0_1 = arith.constant 0 : index
    %c0_2 = arith.constant 0 : index
    %2 = vector.load %arg2[%c0_1, %c0_2] : memref<1x128xf32, #tpu.memory_space<vmem>>, vector<1x128xf32>
    %3 = vector.broadcast %2 : vector<1x128xf32> to vector<512x128xf32>
    %4 = arith.mulf %1, %3 : vector<512x128xf32>
    %c0_3 = arith.constant 0 : index
    %c0_4 = arith.constant 0 : index
    %5 = vector.load %arg3[%c0_3, %c0_4] : memref<1x128xf32, #tpu.memory_space<vmem>>, vector<1x128xf32>
    %6 = vector.broadcast %5 : vector<1x128xf32> to vector<512x128xf32>
    %7 = arith.addf %4, %6 : vector<512x128xf32>
    %cst = arith.constant 0.000000e+00 : f32
    %8 = vector.broadcast %cst : f32 to vector<512x128xf32>
    %9 = arith.maximumf %7, %8 : vector<512x128xf32>
    %c0_5 = arith.constant 0 : index
    %c0_6 = arith.constant 0 : index
    %10 = vector.load %arg4[%c0_5, %c0_6] : memref<512x128xf32, #tpu.memory_space<vmem>>, vector<512x128xf32>
    tpu.vector_store %arg4[%c0_5, %c0_6], %9 {strides = array<i32>} : memref<512x128xf32, #tpu.memory_space<vmem>>, vector<512x128xf32>,
    return
  }
  func.func @transform_0(%arg0: i32) -> (i32, i32) {
    %c0_i32 = arith.constant 0 : i32
    %c0_i32_0 = arith.constant 0 : i32
    return %arg0, %c0_i32 : i32, i32
  }
  func.func @transform_1(%arg0: i32) -> (i32, i32) {
    %c0_i32 = arith.constant 0 : i32
    %c0_i32_0 = arith.constant 0 : i32
    %c0_i32_1 = arith.constant 0 : i32
    return %c0_i32, %c0_i32_0 : i32, i32
  }
  func.func @transform_2(%arg0: i32) -> (i32, i32) {
    %c0_i32 = arith.constant 0 : i32
    %c0_i32_0 = arith.constant 0 : i32
    %c0_i32_1 = arith.constant 0 : i32
    return %c0_i32, %c0_i32_0 : i32, i32
  }
  func.func @transform_3(%arg0: i32) -> (i32, i32) {
    %c0_i32 = arith.constant 0 : i32
    %c0_i32_0 = arith.constant 0 : i32
    return %arg0, %c0_i32 : i32, i32
  }
}

</mosaic_0001>

<bundles_post_ra>
// kernel: psp_forward.4
= control target key start
LH: loop header
LB: loop body
LE: loop exit
PB: predicated region body
PF: predicated region fallthrough
CT: control target
= control target key end

     0   :  { %8 = vsyncpa [#allocation3], 0  ;;  %s1582_s12 = smov 0   ;;  %s1830_s0 = inlined_call_operand.vmem [shape: bf16[2,288,128], index: 0, kind: input, shape index: {}]   ;;  %s1831_s1 = inlined_call_operand.hbm [shape: bf16[50,288], index: 1, kind: input, shape index: {}]   ;;  %s1832_s2 = inlined_call_operand.vmem [shape: bf16[4,128,128], index: 2, kind: input, shape index: {}]   ;;  %s1833_s3 = inlined_call_operand.vmem [shape: f32[2,50,128], index: 3, kind: output, shape index: {}]  }
   0x1 LB: > { %s1588_s13 = sadd.s32 4294967295, %s1555_s12   ;;  %p1120_p0 = scmp.ge.s32.totalorder %s1555_s12, 1  ;;  %s1555_s12 = sphi %s1582_s12, %s14_s12  }
   0x2   : > { %p113_p1 = scmp.lt.s32.totalorder %s1555_s12, 3  ;;  %s1557_s14 = smov [#allocation2]  }
   0x3   : > { %s125_s15 = sshll.u32 %s1557_s14, 4  ;;  %p1834_p3 = scmp.eq.s32.totalorder %s1588_s13, 0  ;;  %s126_s15 = int_to_ptr.vmem [resolvable:$true] %s125_s15 }
   0x4   : > { %p1592_p2 = pnand %p1120_p0, %p113_p1  ;;  %s1517_s20 = scalar_lea.hbm %s1831_s1, 1344 }
   0x5   : > { %p1518_p6 = scmp.ne.s32.totalorder %s1831_s1, %s1517_s20  ;;  %p1524_p10 = scmp.lt.u32.totalorder %s1517_s20, %s1831_s1 }
   0x6   : > { %s1836_s16 = scalar_select %p1592_p2, 1, 0 }
   0x7   : > { %p1433_p4 = pneg %p1592_p2 }
   0x9   : > { %p1601_p5 = pnand %p1834_p3, %p1433_p4 }
   0xb   : > { %p1519_p7 = pneg %p1601_p5 }
   0xd   : > { %p1520_p8 = pnand %p1519_p7, %p1518_p6 }
   0xf   : > { %p1521_p9 = pneg %p1520_p8 }
  0x11   : > { %p1526_p11 = pnand %p1524_p10, %p1521_p9 }
  0x13   : > { %1529 = shalt.err (!%p1526_p11)
}
  0x14   : > { %s1530_s25 = scalar_lea.vmem %s126_s15, 1344  ;;  %p1538_p1 = scmp.lt.s32.totalorder %s126_s15, %s126_s15 }
  0x15   : > { %p1531_p12 = scmp.ne.s32.totalorder %s126_s15, %s1530_s25  ;;  %p1539_p4 = scmp.lt.s32.totalorder %s1530_s25, %s1530_s25 }
  0x17   : > { %p1533_p13 = pnand %p1531_p12, %p1519_p7  ;;  %p1540_p3 = por %p1539_p4, %p1538_p1 }
  0x19   : > { %p1534_p0 = pneg %p1533_p13 }
  0x1b   : > { %p1541_p2 = pnand %p1540_p3, %p1534_p0 }
  0x1d   : > { %1544 = shalt.err (!%p1541_p2)
}
  0x1e   : > { %s1558_s26 = smov 192   ;;  %s1559_s27 = smov 12  }
  0x1f   : > { %1436 = dma.hbm_to_vmem [thread:$0]  (!%p1601_p5), %s1831_s1, 1344, %s126_s15, [#allocation3], %s1558_s26, %s1558_s26, %s1559_s27  }
  0x20   : > { %p1838_p6 = scmp.ne.s32.totalorder %s1836_s16, 0 }
  0x21   : > { %p1839_p8 = scmp.eq.s32.totalorder (!%p1838_p6), %s1588_s13, 0 }
  0x22   : > { %152 = sbr.rel (%p1838_p6) target bundleno = 585 (0x249), region = 32 }
  0x29   : > { %1550 = dma.done.wait (%p1839_p8), [#allocation3], 1344   ;;  %p1840_p7 = pmov %p1839_p8 }
  0x2a   : > { %p176_p2 = scmp.lt.s32.totalorder %s1588_s13, 1  ;;  %vm400_vm0 = vcmask 261120   ;;  %v1470_v14 = vld [vmem:[#allocation2 + $0x8] ss:$12 sps:$4 sm:$0xff]   ;;  %v1473_v16 = vld [vmem:[#allocation2 + $0x4] ss:$12 sps:$4 sm:$0xff]  }
  0x2b   : > { %1552 = vsyncadd (%p1840_p7), [#allocation3], 4294965952  ;;  %1331 = vmatprep.mubr.msk.bf16.mxu1 %vm400_vm0, %v1470_v14  ;;  %v1474_v17 = vld [vmem:[#allocation2 + $0x20] ss:$12 sps:$4 sm:$0xff]   ;;  %v1560_v18 = vmov 0.0   ;;  %445 = vmatprep.mubr.bf16.mxu0 %v1473_v16  ;;  %v1487_v29 = vld [vmem:[%s1832_s2 + $0x10] sm:$0xff]  }
  0x2c   : > { %s1842_s13 = smov (!%p176_p2, %s1588_s13), 1  ;;  %v1481_v21 = vld [vmem:[#allocation2 + $0x38] ss:$12 sps:$4 sm:$0xff]   ;;  %v1482_v22 = vld [vmem:[#allocation2 + $0x50] ss:$0 sps:$4 sm:$0x11]  }
  0x2d   : > { %s1427_s30 = smul.u32 144, %s1842_s13  ;;  %v1485_v23 = vld [vmem:[%s1832_s2] sm:$0xff]   ;;  %v1486_v25 = vld [vmem:[%s1832_s2 + $0x8] sm:$0xff]   ;;  %v1488_v30 = vld [vmem:[%s1832_s2 + $0x18] sm:$0xff]   ;;  %vm1561_vm1 = vmmov 0   ;;  %vm893_vm2 = vcmask 1040384  }
  0x2e   : > { %v1471_v26 = vld [vmem:[#allocation2] ss:$12 sps:$4 sm:$0xff]   ;;  %v1475_v27 = vld [vmem:[#allocation2 + $0x1c] ss:$12 sps:$4 sm:$0xff]   ;;  %v1477_v32 = vld [vmem:[#allocation2 + $0x18] ss:$12 sps:$4 sm:$0xff]  }
  0x2f   : > { %s1635_s6 = scalar_lea.vmem %s1830_s0, %s1427_s30  ;;  %v1489_v28 = vld [vmem:[%s1832_s2 + $0xc0] sm:$0xff]   ;;  %v1491_v31 = vld [vmem:[%s1832_s2 + $0xc8] sm:$0xff]   ;;  %v1493_v34 = vld [vmem:[%s1832_s2 + $0xd0] sm:$0xff]   ;;  %s1428_s23 = smul.u32 56, %s1842_s13  ;;  %vm1024_vm3 = vcmask 1045504   ;;  %vm1013_vm4 = vcmask 1044480  }
  0x30   : > { %v1452_v0 = vld [vmem:[%s1635_s6 + $0x40] sm:$0xff]   ;;  %v1454_v2 = vld [vmem:[%s1635_s6 + $0x48] sm:$0xff]   ;;  %v1456_v4 = vld [vmem:[%s1635_s6 + $0x50] sm:$0xff]  }
  0x31   : > { %v1453_v1 = vld [vmem:[%s1635_s6] sm:$0xff]   ;;  %1243 = vmatprep.subr.bf16.mxu0 %v1452_v0  ;;  %v1455_v3 = vld [vmem:[%s1635_s6 + $0x8] sm:$0xff]   ;;  %v1457_v5 = vld [vmem:[%s1635_s6 + $0x10] sm:$0xff]   ;;  %s1812_s26 = scalar_lea.vmem %s1833_s3, %s1428_s23 }
  0x32   : > { %1244 = vmatpush3.bf16.msra.mxu0 %v1453_v1  ;;  %v1458_v6 = vld [vmem:[%s1635_s6 + $0x58] sm:$0xff]   ;;  %v1460_v8 = vld [vmem:[%s1635_s6 + $0x60] sm:$0xff]   ;;  %v1467_v11 = vld [vmem:[%s1635_s6 + $0x88] sm:$0xff]  }
  0x33   : > { %1245 = vmatprep.subr.bf16.mxu0 %v1454_v2  ;;  %v1459_v7 = vld [vmem:[%s1635_s6 + $0x18] sm:$0xff]   ;;  %v1464_v9 = vld [vmem:[%s1635_s6 + $0x80] sm:$0xff]   ;;  %v1462_v12 = vld [vmem:[%s1635_s6 + $0x68] sm:$0xff]  }
  0x34   : > { %v1461_v10 = vld [vmem:[%s1635_s6 + $0x20] sm:$0xff]   ;;  %1327 = vmatprep.subr.bf16.mxu1 %v1464_v9  ;;  %v1463_v13 = vld [vmem:[%s1635_s6 + $0x28] sm:$0xff]   ;;  %v1465_v15 = vld [vmem:[%s1635_s6 + $0x70] sm:$0xff]  }
  0x35   : > { %1328 = vmatpush3.bf16.msra.mxu1 %v1464_v9  ;;  %v1466_v19 = vld [vmem:[%s1635_s6 + $0x30] sm:$0xff]   ;;  %v1468_v20 = vld [vmem:[%s1635_s6 + $0x78] sm:$0xff]   ;;  %v1490_v35 = vld [vmem:[%s1832_s2 + $0x20] sm:$0xff]  }
  0x36   : > { %1246 = vmatpush3.bf16.msra.mxu0 %v1455_v3  ;;  %1329 = vmatprep.subr.bf16.mxu1 %v1467_v11  ;;  %v1469_v24 = vld [vmem:[%s1635_s6 + $0x38] sm:$0xff]   ;;  %v1478_v33 = vld [vmem:[#allocation2 + $0x34] ss:$12 sps:$4 sm:$0xff]   ;;  %v199_v36 = vld [vmem:[#allocation2 + $0x48] sm:$0x11] }
  0x37   : > { %1247 = vmatprep.subr.bf16.mxu0 %v1456_v4  ;;  %v1492_v37 = vld [vmem:[%s1832_s2 + $0x28] sm:$0xff]   ;;  %v1480_v38 = vld [vmem:[#allocation2 + $0x30] ss:$12 sps:$4 sm:$0xff]   ;;  %v1137_v39 = vcombine.high %v199_v36, %v199_v36  ;;  %v1136_v40 = vcombine.low %v199_v36, %v199_v36  ;;  %v1497_v44 = vld [vmem:[%s1832_s2 + $0xe0] sm:$0xff]  }
  0x38   : > { %v1494_v41 = vld [vmem:[%s1832_s2 + $0x30] sm:$0xff]   ;;  %v1495_v42 = vld [vmem:[%s1832_s2 + $0xd8] sm:$0xff]   ;;  %v1499_v45 = vld [vmem:[%s1832_s2 + $0xe8] sm:$0xff]  }
  0x39   : > { %1330 = vmatpush3.bf16.msra.mxu1 %v1467_v11  ;;  %v1496_v43 = vld [vmem:[%s1832_s2 + $0x38] sm:$0xff]   ;;  %v1501_v46 = vld [vmem:[%s1832_s2 + $0xf0] sm:$0xff]   ;;  %v1498_v0 = vld [vmem:[%s1832_s2 + $0x40] sm:$0xff]  }
  0x3a   : > { %1248 = vmatpush3.bf16.msra.mxu0 %v1457_v5  ;;  %1339 = vmatprep.subr.bf16.mxu1 %v1560_v18  ;;  %v1503_v47 = vld [vmem:[%s1832_s2 + $0xf8] sm:$0xff]   ;;  %v1502_v11 = vld [vmem:[%s1832_s2 + $0x50] sm:$0xff]  }
  0x3b   : > { %1249 = vmatprep.subr.bf16.mxu0 %v1458_v6 }
  0x3c   : > { %1332 = vmatmul.mubr.msk.bf16.vlgmr.msra.gmra.mrb[0].mxu1 %vm400_vm0, %v1474_v17 }
  0x3d   : > { %1335 = vmatprep.mubr.msk.bf16.mxu1 %vm400_vm0, %v1481_v21  ;;  %1340 = vmatpush3.bf16.msra.mxu1 %v1485_v23  ;;  %v1504_v21 = vld [vmem:[%s1832_s2 + $0x58] sm:$0xff]  }
  0x3e   : > { %1250 = vmatpush3.bf16.msra.mxu0 %v1459_v7  ;;  %1341 = vmatprep.subr.bf16.mxu1 %v1560_v18  ;;  %v1500_v7 = vld [vmem:[%s1832_s2 + $0x48] sm:$0xff]  }
  0x3f   : > { %1251 = vmatprep.subr.bf16.mxu0 %v1460_v8 }
  0x41   : > { %1342 = vmatpush3.bf16.msra.mxu1 %v1486_v25 }
  0x42   : > { %1252 = vmatpush3.bf16.msra.mxu0 %v1461_v10  ;;  %1343 = vmatprep.subr.bf16.mxu1 %v1560_v18 }
  0x43   : > { %1253 = vmatprep.subr.bf16.mxu0 %v1462_v12 }
  0x44   : > { %1336 = vmatmul.mubr.msk.bf16.gmra.mrb[4].mxu1 %vm400_vm0, %v1482_v22 }
  0x45   : > { %1344 = vmatpush3.bf16.msra.mxu1 %v1487_v29  ;;  %1355 = vmatprep.mubr.msk.bf16.mxu1 %vm1561_vm1, %v1560_v18 }
  0x46   : > { %1254 = vmatpush3.bf16.msra.mxu0 %v1463_v13  ;;  %1345 = vmatprep.subr.bf16.mxu1 %v1560_v18 }
  0x47   : > { %1255 = vmatprep.subr.bf16.mxu0 %v1465_v15 }
  0x49   : > { %1346 = vmatpush3.bf16.msra.mxu1 %v1488_v30 }
  0x4a   : > { %1256 = vmatpush3.bf16.msra.mxu0 %v1466_v19  ;;  %1347 = vmatprep.subr.bf16.mxu1 %v1560_v18 }
  0x4b   : > { %1257 = vmatprep.subr.bf16.mxu0 %v1468_v20 }
  0x4d   : > { %1348 = vmatpush3.bf16.msra.mxu1 %v1490_v35 }
  0x4e   : > { %1258 = vmatpush3.bf16.msra.mxu0 %v1469_v24  ;;  %1349 = vmatprep.subr.bf16.mxu1 %v1560_v18 }
  0x4f   : > { %1399 = vmatprep.subr.bf16.mxu0 %v1560_v18 }
  0x51   : > { %446 = vmatmul.mubr.bf16.vlgmr.msra.gmra.mrb[0].mxu0 %v1471_v26  ;;  %1350 = vmatpush3.bf16.msra.mxu1 %v1492_v37  ;;  %v1505_v26 = vld [vmem:[%s1832_s2 + $0x60] sm:$0xff]  }
  0x52   : > { %453 = vmatprep.mubr.bf16.mxu0 %v1475_v27  ;;  %1400 = vmatpush3.bf16.msra.mxu0 %v1489_v28 }
  0x53   : > { %1401 = vmatprep.subr.bf16.mxu0 %v1560_v18  ;;  %1351 = vmatprep.subr.bf16.mxu1 %v1560_v18 }
  0x55   : > { %1352 = vmatpush3.bf16.msra.mxu1 %v1494_v41 }
  0x56   : > { %1402 = vmatpush3.bf16.msra.mxu0 %v1491_v31  ;;  %1353 = vmatprep.subr.bf16.mxu1 %v1560_v18 }
  0x57   : > { %1403 = vmatprep.subr.bf16.mxu0 %v1560_v18 }
  0x59   : > { %454 = vmatmul.mubr.bf16.gmra.mrb[4].mxu0 %v1477_v32  ;;  %1354 = vmatpush3.bf16.msra.mxu1 %v1496_v43 }
  0x5a   : > { %461 = vmatprep.mubr.bf16.mxu0 %v1478_v33  ;;  %1404 = vmatpush3.bf16.msra.mxu0 %v1493_v34  ;;  %v1506_v33 = vld [vmem:[%s1832_s2 + $0x68] sm:$0xff]  }
  0x5b   : > { %1405 = vmatprep.subr.bf16.mxu0 %v1560_v18  ;;  %1359 = vmatprep.subr.bf16.mxu1 %v1560_v18 }
  0x5e   : > { %1406 = vmatpush3.bf16.msra.mxu0 %v1495_v42  ;;  %v1508_v42 = vld [vmem:[%s1832_s2 + $0x78] sm:$0xff]  }
  0x5f   : > { %1407 = vmatprep.subr.bf16.mxu0 %v1560_v18 }
  0x61   : > { %462 = vmatmul.mubr.bf16.gmra.mrb[8].mxu0 %v1480_v38  ;;  %v1507_v38 = vld [vmem:[%s1832_s2 + $0x70] sm:$0xff]  }
  0x62   : > { %469 = vmatprep.mubr.bf16.mxu0 %v1137_v39  ;;  %1408 = vmatpush3.bf16.msra.mxu0 %v1497_v44 }
  0x63   : > { %1409 = vmatprep.subr.bf16.mxu0 %v1560_v18 }
  0x66   : > { %1410 = vmatpush3.bf16.msra.mxu0 %v1499_v45  ;;  %v1509_v45 = vld [vmem:[%s1832_s2 + $0x80] sm:$0xff]  }
  0x67   : > { %1411 = vmatprep.subr.bf16.mxu0 %v1560_v18 }
  0x69   : > { %470 = vmatmul.mubr.bf16.gmra.mrb[12].mxu0 %v1136_v40 }
  0x6a   : > { %1415 = vmatprep.mubr.msk.bf16.mxu0 %vm1561_vm1, %v1560_v18  ;;  %1412 = vmatpush3.bf16.msra.mxu0 %v1501_v46 }
  0x6b   : > { %1413 = vmatprep.subr.bf16.mxu0 %v1560_v18 }
  0x6e   : > { %1414 = vmatpush3.bf16.msra.mxu0 %v1503_v47  ;;  %v1510_v47 = vld [vmem:[%s1832_s2 + $0x88] sm:$0xff]  }
 0x10f   : > { %v1333_v48 = vpop.f32.mrb[0].mxu1 }
 0x110   : > { %v511_v49 = vpop.f32.mrb[1].mxu1 }
 0x111   : > { %v1334_v50 = vpop.f32.mrb[2].mxu1 }
 0x112   : > { %v514_v51 = vpop.f32.mrb[3].mxu1 }
 0x117   : > { %v1337_v52 = vpop.f32.mrb[4].mxu1 }
 0x118   : > { %v527_v53 = vpop.f32.mrb[5].mxu1 }
 0x119   : > { %v1338_v54 = vpop.f32.mrb[6].mxu1 }
 0x11a   : > { %v530_v56 = vpop.f32.mrb[7].mxu1 }
 0x124   : > { %v1259_v55 = vpop.f32.mrb[0].mxu0 }
 0x125   : > { %v1260_v57 = vpop.f32.mrb[1].mxu0 }
 0x126   : > { %v1261_v58 = vadd.f32 %v1260_v57, %v1259_v55  ;;  %v1262_v59 = vpop.f32.mrb[2].mxu0 }
 0x127   : > { %v1263_v60 = vpop.f32.mrb[3].mxu0 }
 0x128   : > { %v512_v61 = vadd.f32 %v1261_v58, %v511_v49  ;;  %v1264_v62 = vadd.f32 %v1263_v60, %v1262_v59  ;;  %v1512_v49 = vld [vmem:[%s1832_s2 + $0x98] sm:$0xff]  }
 0x12a   : > { %v515_v63 = vadd.f32 %v1264_v62, %v514_v51  ;;  %v1514_v51 = vld [vmem:[%s1832_s2 + $0xa8] sm:$0xff]  }
 0x12c   : > { %v1731_v1 = vpack.c.bf16 %v515_v63, %v512_v61  ;;  %v1265_v2 = vpop.f32.mrb[4].mxu0 }
 0x12d   : > { %v1266_v3 = vpop.f32.mrb[5].mxu0 }
 0x12e   : > { %v1267_v4 = vadd.f32 %v1266_v3, %v1265_v2  ;;  %v1268_v5 = vpop.f32.mrb[6].mxu0  ;;  %1356 = vmatmul.mubr.bf16.vlgmr.msra.gmra.mrb[8].mxu1 %v1731_v1  ;;  %v894_v19 = vrot.slane %v1731_v1, 7  ;;  %v669_v40 = vshll.u32 %v1731_v1, 16  ;;  %v667_v44 = vshrl.u32 %v1731_v1, 16 }
 0x12f   : > { %1360 = vmatpush3.bf16.msra.mxu1 %v1498_v0  ;;  %v1269_v6 = vpop.f32.mrb[7].mxu0  ;;  %1375 = vmatprep.mubr.msk.bf16.mxu1 %vm1561_vm1, %v1560_v18 }
 0x130   : > { %v520_v8 = vadd.f32 %v1333_v48, %v1267_v4  ;;  %v1270_v9 = vadd.f32 %v1269_v6, %v1268_v5  ;;  %1361 = vmatprep.subr.bf16.mxu1 %v1560_v18  ;;  %v671_v43 = vrot.slane %v669_v40, 1  ;;  %v1511_v48 = vld [vmem:[%s1832_s2 + $0x90] sm:$0xff]   ;;  %v779_v54 = vrot.slane %v667_v44, 2 }
 0x131   : > { %v780_v55 = vrot.slane %v669_v40, 3 }
 0x132   : > { %v523_v10 = vadd.f32 %v1334_v50, %v1270_v9  ;;  %v672_v46 = vor.u32 %v671_v43, %v667_v44  ;;  %v1513_v50 = vld [vmem:[%s1832_s2 + $0xa0] sm:$0xff]  }
 0x133   : > { %1362 = vmatpush3.bf16.msra.mxu1 %v1500_v7 }
 0x134   : > { %v542_v12 = vpack.c.bf16 %v523_v10, %v520_v8  ;;  %v1271_v13 = vpop.f32.mrb[8].mxu0  ;;  %1363 = vmatprep.subr.bf16.mxu1 %v1560_v18 }
 0x135   : > { %v1272_v14 = vpop.f32.mrb[9].mxu0 }
 0x136   : > { %v895_v15 = vrot.slane %v542_v12, 7  ;;  %v1273_v16 = vadd.f32 %v1272_v14, %v1271_v13  ;;  %v1274_v17 = vpop.f32.mrb[10].mxu0 }
 0x137   : > { %1364 = vmatpush3.bf16.msra.mxu1 %v1502_v11  ;;  %v1275_v20 = vpop.f32.mrb[11].mxu0 }
 0x138   : > { %v1276_v22 = vadd.f32 %v1275_v20, %v1274_v17  ;;  %v528_v23 = vadd.f32 %v1273_v16, %v527_v53  ;;  %1365 = vmatprep.subr.bf16.mxu1 %v1560_v18  ;;  %v896_v24 = vsel %vm893_vm2, %v894_v19, %v895_v15  ;;  %v1516_v53 = vld [vmem:[%s1832_s2 + $0xb8] sm:$0xff]  }
 0x139   : > { %1416 = vmatmul.mubr.bf16.vlgmr.msra.gmra.mrb[16].mxu0 %v896_v24 }
 0x13a   : > { %v531_v25 = vadd.f32 %v1276_v22, %v530_v56  ;;  %1419 = vmatprep.mubr.msk.bf16.mxu0 %vm1561_vm1, %v1560_v18  ;;  %v781_v56 = vor.u32 %v780_v55, %v779_v54 }
 0x13b   : > { %1366 = vmatpush3.bf16.msra.mxu1 %v1504_v21 }
 0x13c   : > { %v543_v27 = vpack.c.bf16 %v531_v25, %v528_v23  ;;  %1367 = vmatprep.subr.bf16.mxu1 %v1560_v18  ;;  %v1277_v28 = vpop.f32.mrb[12].mxu0 }
 0x13d   : > { %v1278_v29 = vpop.f32.mrb[13].mxu0 }
 0x13e   : > { %v897_v30 = vrot.slane %v543_v27, 7  ;;  %v1279_v31 = vadd.f32 %v1278_v29, %v1277_v28  ;;  %v1280_v32 = vpop.f32.mrb[14].mxu0 }
 0x13f   : > { %1368 = vmatpush3.bf16.msra.mxu1 %v1505_v26  ;;  %v1281_v34 = vpop.f32.mrb[15].mxu0 }
 0x140   : > { %v536_v35 = vadd.f32 %v1337_v52, %v1279_v31  ;;  %1369 = vmatprep.subr.bf16.mxu1 %v1560_v18  ;;  %v898_v36 = vsel %vm893_vm2, %v895_v15, %v897_v30  ;;  %v1515_v52 = vld [vmem:[%s1832_s2 + $0xb0] sm:$0xff]  }
 0x141   : > { %1420 = vmatmul.mubr.bf16.gmra.mrb[20].mxu0 %v898_v36 }
 0x142   : > { %v544_v37 = vpack.c.bf16 %v536_v35, %v536_v35  ;;  %1423 = vmatprep.mubr.msk.bf16.mxu0 %vm1561_vm1, %v1560_v18 }
 0x143   : > { %1370 = vmatpush3.bf16.msra.mxu1 %v1506_v33 }
 0x144   : > { %v899_v39 = vrot.slane %v544_v37, 7  ;;  %1371 = vmatprep.subr.bf16.mxu1 %v1560_v18 }
 0x146   : > { %v900_v41 = vsel %vm893_vm2, %v897_v30, %v899_v39 }
 0x147   : > { %1372 = vmatpush3.bf16.msra.mxu1 %v1507_v38 }
 0x148   : > { %1373 = vmatprep.subr.bf16.mxu1 %v1560_v18 }
 0x149   : > { %1424 = vmatmul.mubr.bf16.gmra.mrb[24].mxu0 %v900_v41 }
 0x14b   : > { %1374 = vmatpush3.bf16.msra.mxu1 %v1508_v42 }
 0x14c   : > { %1379 = vmatprep.subr.bf16.mxu1 %v1560_v18 }
 0x14e   : > { %1376 = vmatmul.mubr.bf16.vlgmr.msra.gmra.mrb[12].mxu1 %v672_v46 }
 0x14f   : > { %1380 = vmatpush3.bf16.msra.mxu1 %v1509_v45  ;;  %1395 = vmatprep.mubr.msk.bf16.mxu1 %vm1561_vm1, %v1560_v18 }
 0x150   : > { %1381 = vmatprep.subr.bf16.mxu1 %v1560_v18 }
 0x153   : > { %1382 = vmatpush3.bf16.msra.mxu1 %v1510_v47 }
 0x154   : > { %1383 = vmatprep.subr.bf16.mxu1 %v1560_v18 }
 0x157   : > { %1384 = vmatpush3.bf16.msra.mxu1 %v1511_v48 }
 0x158   : > { %1385 = vmatprep.subr.bf16.mxu1 %v1560_v18 }
 0x15b   : > { %1386 = vmatpush3.bf16.msra.mxu1 %v1512_v49 }
 0x15c   : > { %1387 = vmatprep.subr.bf16.mxu1 %v1560_v18 }
 0x15f   : > { %1388 = vmatpush3.bf16.msra.mxu1 %v1513_v50 }
 0x160   : > { %1389 = vmatprep.subr.bf16.mxu1 %v1560_v18 }
 0x163   : > { %1390 = vmatpush3.bf16.msra.mxu1 %v1514_v51 }
 0x164   : > { %1391 = vmatprep.subr.bf16.mxu1 %v1560_v18 }
 0x167   : > { %1392 = vmatpush3.bf16.msra.mxu1 %v1515_v52 }
 0x168   : > { %1393 = vmatprep.subr.bf16.mxu1 %v1560_v18 }
 0x16b   : > { %1394 = vmatpush3.bf16.msra.mxu1 %v1516_v53 }
 0x16e   : > { %1396 = vmatmul.mubr.bf16.vlgmr.msra.gmra.mrb[16].mxu1 %v781_v56 }
 0x201   : > { %v643_v57 = vpop.f32.mrb[8].mxu1 }
 0x202   : > { %v1357_v58 = vpop.f32.mrb[9].mxu1 }
 0x203   : > { %v646_v59 = vpop.f32.mrb[10].mxu1 }
 0x204   : > { %v1358_v60 = vpop.f32.mrb[11].mxu1 }
 0x20c   : > { %v986_v61 = vpop.f32.mrb[16].mxu0 }
 0x20d   : > { %v1417_v62 = vpop.f32.mrb[17].mxu0  ;;  %v1025_v0 = vrot.slane %v986_v61, 2 }
 0x20e   : > { %v989_v63 = vpop.f32.mrb[18].mxu0 }
 0x20f   : > { %v1026_v18 = vrot.slane %v989_v63, 2  ;;  %v1418_v1 = vpop.f32.mrb[19].mxu0 }
 0x211   : > { %v1027_v2 = vsel %vm1024_vm3, %v1025_v0, %v1026_v18 }
 0x212   : > { %1046 = vst [vmem:[%s1812_s26 + $0x10] sm:$0xff] %v1027_v2 }
 0x214   : > { %v994_v3 = vpop.f32.mrb[20].mxu0 }
 0x215   : > { %v1028_v4 = vrot.slane %v994_v3, 2  ;;  %v1421_v5 = vpop.f32.mrb[21].mxu0 }
 0x216   : > { %v997_v6 = vpop.f32.mrb[22].mxu0 }
 0x217   : > { %v1029_v7 = vsel %vm1024_vm3, %v1026_v18, %v1028_v4  ;;  %v1030_v8 = vrot.slane %v997_v6, 2  ;;  %v1422_v9 = vpop.f32.mrb[23].mxu0 }
 0x218   : > { %1047 = vst [vmem:[%s1812_s26 + $0x18] sm:$0xff] %v1029_v7 }
 0x219   : > { %v1031_v10 = vsel %vm1024_vm3, %v1028_v4, %v1030_v8 }
 0x21a   : > { %1048 = vst [vmem:[%s1812_s26 + $0x20] sm:$0xff] %v1031_v10 }
 0x21c   : > { %v1002_v11 = vpop.f32.mrb[24].mxu0 }
 0x21d   : > { %v1032_v12 = vrot.slane %v1002_v11, 2  ;;  %v1425_v13 = vpop.f32.mrb[25].mxu0 }
 0x21e   : > { %v1005_v14 = vpop.f32.mrb[26].mxu0 }
 0x21f   : > { %v1033_v15 = vsel %vm1024_vm3, %v1030_v8, %v1032_v12  ;;  %1050 = vst [vmem:[%s1812_s26 + $0x30] sm:$0x3] %v1032_v12  ;;  %v1426_v16 = vpop.f32.mrb[27].mxu0 }
 0x220   : > { %1049 = vst [vmem:[%s1812_s26 + $0x28] sm:$0xff] %v1033_v15 }
 0x221   : > { %v756_v17 = vpop.f32.mrb[12].mxu1 }
 0x222   : > { %v1009_v19 = vrot.slane %v756_v17, 7  ;;  %v1377_v20 = vpop.f32.mrb[13].mxu1 }
 0x223   : > { %v759_v21 = vpop.f32.mrb[14].mxu1 }
 0x224   : > { %v1041_v22 = vsel %vm893_vm2, %v643_v57, %v1009_v19  ;;  %v1378_v23 = vpop.f32.mrb[15].mxu1 }
 0x241   : > { %v865_v24 = vpop.f32.mrb[16].mxu1 }
 0x242   : > { %v1014_v25 = vrot.slane %v865_v24, 3  ;;  %v1397_v26 = vpop.f32.mrb[17].mxu1 }
 0x243   : > { %v868_v27 = vpop.f32.mrb[18].mxu1 }
 0x244   : > { %v1042_v28 = vsel %vm1013_vm4, %v1041_v22, %v1014_v25  ;;  %v1015_v29 = vrot.slane %v868_v27, 3  ;;  %v1398_v30 = vpop.f32.mrb[19].mxu1 }
 0x245   : > { %1044 = vst [vmem:[%s1812_s26] sm:$0xff] %v1042_v28 }
 0x246   : > { %v1016_v31 = vsel %vm1013_vm4, %v1014_v25, %v1015_v29 }
 0x247   : > { %v1043_v32 = vsel %vm1024_vm3, %v1016_v31, %v1025_v0 }
 0x248   : > { %1045 = vst [vmem:[%s1812_s26 + $0x8] sm:$0xff] %v1043_v32 }
 0x249 PF: > { %s14_s12 = sadd.s32 1, %s1555_s12  }
 0x24a   : > { %p11_p3 = scmp.ge.s32.totalorder %s14_s12, 4  }
 0x24c   :  { %13 = sbr.rel (!%p11_p3) target bundleno = 1 (0x1), region = 70 }
 0x253   :  { %1072 = vsyncpa [#allocation3], 1 }
 0x254   :  { %1074 = vsyncpa [#allocation3 + $0x1], 1 }

// kernel: psp_forward.5
= control target key start
LH: loop header
LB: loop body
LE: loop exit
PB: predicated region body
PF: predicated region fallthrough
CT: control target
= control target key end

     0   :  { %s2493_s15 = smov 0   ;;  %s2948_s0 = inlined_call_operand.vmem [shape: f32[2,50,128], index: 0, kind: input, shape index: {}]   ;;  %s2949_s1 = inlined_call_operand.vmem [shape: f32[4,128], index: 1, kind: input, shape index: {}]   ;;  %s2950_s2 = inlined_call_operand.vmem [shape: f32[4,128], index: 2, kind: input, shape index: {}]   ;;  %s2951_s3 = inlined_call_operand.vmem [shape: bf16[256,50], index: 3, kind: input, shape index: {}]   ;;  %s2952_s4 = inlined_call_operand.vmem [shape: bf16[2,288,512], index: 4, kind: output, shape index: {}]  }
   0x1 LB: > { %s1923_s16 = sadd.s32 4294967295, %s2461_s15   ;;  %p1927_p0 = scmp.ge.s32.totalorder %s2461_s15, 1  ;;  %s2461_s15 = sphi %s2493_s15, %s14_s15  }
   0x2   : > { %p162_p1 = scmp.lt.s32.totalorder %s2461_s15, 3 }
   0x4   : > { %p163_p2 = pnand %p1927_p0, %p162_p1 }
   0x5   : > { %v2407_v0 = vld [vmem:[%s2951_s3 + $0x8] sm:$0xff] (!%p163_p2)   ;;  %v2408_v1 = vld [vmem:[%s2951_s3] sm:$0xff] (!%p163_p2)   ;;  %s2463_s21 = smov (!%p163_p2), 127   ;;  %p188_p3 = scmp.lt.s32.totalorder (!%p163_p2), %s1923_s16, 1  ;;  %v2411_v4 = vld [vmem:[%s2951_s3 + $0x50] sm:$0xff] (!%p163_p2)   ;;  %v2464_v8 = vmov (!%p163_p2), 0   ;;  %v212_v21 = vlaneseq (!%p163_p2) }
   0x6   : > { %166 = sbr.rel (%p163_p2) target bundleno = 432 (0x1b0), region = 36  ;;  %381 = vrot.lane.b32.xlu1 (!%p163_p2), %v2407_v0, %s2463_s21  ;;  %v2409_v2 = vld [vmem:[%s2951_s3 + $0x48] sm:$0xff] (!%p163_p2)   ;;  %379 = vrot.lane.b32.xlu0 (!%p163_p2), %v2408_v1, %s2463_s21  ;;  %v2410_v3 = vld [vmem:[%s2951_s3 + $0x40] sm:$0xff] (!%p163_p2)   ;;  %s2465_s10 = smov (!%p163_p2), 114   ;;  %vm995_vm0 = vcmask (!%p163_p2), 1043456   ;;  %vm996_vm1 = vcmask (!%p163_p2), 1044480  }
   0x7   : > { %v2412_v5 = vld [vmem:[%s2951_s3 + $0x10] sm:$0xff] (!%p163_p2)   ;;  %v2413_v6 = vld [vmem:[%s2951_s3 + $0x58] sm:$0xff] (!%p163_p2)   ;;  %v2415_v9 = vld [vmem:[%s2951_s3 + $0x60] sm:$0xff] (!%p163_p2)   ;;  %s2466_s13 = smov (!%p163_p2), 123   ;;  %v213_v24 = vshrl.u32 (!%p163_p2), %v212_v21, 7  ;;  %v2467_v47 = vmov (!%p163_p2), 65535  }
   0x8   : > { %v2414_v7 = vld [vmem:[%s2951_s3 + $0x18] sm:$0xff] (!%p163_p2)   ;;  %v2416_v10 = vld [vmem:[%s2951_s3 + $0x20] sm:$0xff] (!%p163_p2)   ;;  %v2417_v11 = vld [vmem:[%s2951_s3 + $0x68] sm:$0xff] (!%p163_p2)   ;;  %v997_v48 = vsel (!%p163_p2), %vm995_vm0, 4294967295, %v2467_v47  ;;  %vm460_vm2 = vcmask (!%p163_p2), 1041408   ;;  %vm411_vm3 = vcmask (!%p163_p2), 31744  }
   0x9   : > { %v2418_v12 = vld [vmem:[%s2951_s3 + $0x28] sm:$0xff] (!%p163_p2)   ;;  %v2419_v13 = vld [vmem:[%s2951_s3 + $0x70] sm:$0xff] (!%p163_p2)   ;;  %v2421_v15 = vld [vmem:[%s2951_s3 + $0x78] sm:$0xff] (!%p163_p2)   ;;  %v214_v27 = vsub.s32 (!%p163_p2), 0, %v213_v24  ;;  %v998_v61 = vsel (!%p163_p2), %vm996_vm1, %v997_v48, 0  ;;  %vm1495_vm4 = vcmask (!%p163_p2), 293888  }
   0xa   : > { %397 = vrot.lane.b32.xlu1 (!%p163_p2), %v2409_v2, %s2463_s21  ;;  %395 = vrot.lane.b32.xlu0 (!%p163_p2), %v2410_v3, %s2463_s21  ;;  %v2420_v14 = vld [vmem:[%s2951_s3 + $0x30] sm:$0xff] (!%p163_p2)   ;;  %v2422_v16 = vld [vmem:[%s2951_s3 + $0x38] sm:$0xff] (!%p163_p2)   ;;  %vm946_vm5 = vcmask (!%p163_p2), 72704  }
   0xb   : > { %v2423_v17 = vld [vmem:[%s2951_s3] sm:$0xff] (!%p163_p2)   ;;  %v2425_v19 = vld [vmem:[%s2951_s3 + $0x8] sm:$0xff] (!%p163_p2)   ;;  %v2427_v22 = vld [vmem:[%s2951_s3 + $0x10] sm:$0xff] (!%p163_p2)  }
   0xc   : > { %v2424_v18 = vld [vmem:[%s2951_s3] sm:$0xff] (!%p163_p2)   ;;  %v2426_v20 = vld [vmem:[%s2951_s3 + $0x8] sm:$0xff] (!%p163_p2)   ;;  %v2428_v23 = vld [vmem:[%s2951_s3 + $0x10] sm:$0xff] (!%p163_p2)  }
   0xd   : > { %s2954_s16 = smov (!%p188_p3, %s1923_s16), 1  ;;  %v2429_v25 = vld [vmem:[%s2951_s3 + $0x18] sm:$0xff]   ;;  %v2431_v28 = vld [vmem:[%s2951_s3 + $0x20] sm:$0xff]   ;;  %v2433_v30 = vld [vmem:[%s2951_s3 + $0x28] sm:$0xff]  }
   0xe   : > { %s2393_s30 = smul.u32 576, %s2954_s16  ;;  %399 = vrot.lane.b32.xlu1 %v2411_v4, %s2463_s21  ;;  %383 = vrot.lane.b32.xlu0 %v2412_v5, %s2463_s21  ;;  %v2430_v26 = vld [vmem:[%s2951_s3 + $0x18] sm:$0xff]   ;;  %v2432_v29 = vld [vmem:[%s2951_s3 + $0x20] sm:$0xff]  }
   0xf   : > { %s2392_s24 = smul.u32 56, %s2954_s16  ;;  %v208_v32 = vld [vmem:[%s2949_s1] sm:$0x1]  ;;  %v2434_v34 = vld [vmem:[%s2951_s3 + $0x28] sm:$0xff]   ;;  %v1931_v37 = vld [vmem:[%s2949_s1 + $0x1] ss:$0 sm:$0xff] }
  0x10   : > { %s2533_s9 = scalar_lea.vmem %s2952_s4, %s2393_s30  ;;  %v210_v33 = vld [vmem:[%s2950_s2] sm:$0x1]  ;;  %v1932_v38 = vld [vmem:[%s2950_s2 + $0x1] ss:$0 sm:$0xff]  ;;  %v1997_v42 = vld [vmem:[%s2949_s1 + $0x2] ss:$0 sm:$0xff] }
  0x11   : > { %199 = vst [vmem:[%s2533_s9] sm:$0xff] %v2464_v8  ;;  %200 = vst [vmem:[%s2533_s9 + $0x8] sm:$0xff] %v2464_v8  ;;  %s2619_s5 = scalar_lea.vmem %s2948_s0, %s2392_s24  ;;  %v1998_v46 = vld [vmem:[%s2950_s2 + $0x2] ss:$0 sm:$0xff]  ;;  %v2661_v52 = vld [vmem:[%s2949_s1 + $0x3] ss:$0 sm:$0xff] }
  0x12   : > { %201 = vst [vmem:[%s2533_s9 + $0x10] sm:$0xff] %v2464_v8  ;;  %202 = vst [vmem:[%s2533_s9 + $0x18] sm:$0xff] %v2464_v8  ;;  %401 = vrot.lane.b32.xlu1 %v2413_v6, %s2463_s21  ;;  %385 = vrot.lane.b32.xlu0 %v2414_v7, %s2463_s21 }
  0x13   : > { %203 = vst [vmem:[%s2533_s9 + $0x220] sm:$0xff] %v2464_v8  ;;  %204 = vst [vmem:[%s2533_s9 + $0x228] sm:$0xff] %v2464_v8  ;;  %v207_v31 = vld [vmem:[%s2619_s5] sm:$0x1]  ;;  %v253_v36 = vld [vmem:[%s2619_s5 + $0x1] sm:$0xf] }
  0x14   : > { %205 = vst [vmem:[%s2533_s9 + $0x230] sm:$0xff] %v2464_v8  ;;  %206 = vst [vmem:[%s2533_s9 + $0x238] sm:$0xff] %v2464_v8  ;;  %v209_v35 = vmul.f32 %v208_v32, %v207_v31  ;;  %v259_v39 = vmul.f32 %v1931_v37, %v253_v36  ;;  %v785_v40 = vld [vmem:[%s2619_s5 + $0x5] sm:$0xff]  ;;  %v786_v41 = vld [vmem:[%s2619_s5 + $0xd] sm:$0x1] }
  0x15   : > { %v792_v44 = vmul.f32 %v1997_v42, %v785_v40  ;;  %v793_v45 = vmul.f32 %v1997_v42, %v786_v41  ;;  %v1323_v49 = vld [vmem:[%s2619_s5 + $0xe] sm:$0xff]  ;;  %v1324_v50 = vld [vmem:[%s2619_s5 + $0x16] sm:$0xff]  ;;  %v2666_v53 = vld [vmem:[%s2950_s2 + $0x3] ss:$0 sm:$0xff] }
  0x16   : > { %403 = vrot.lane.b32.xlu1 %v2415_v9, %s2463_s21  ;;  %387 = vrot.lane.b32.xlu0 %v2416_v10, %s2463_s21  ;;  %v211_v43 = vadd.f32 %v210_v33, %v209_v35  ;;  %v265_v51 = vadd.f32 %v1932_v38, %v259_v39  ;;  %v1333_v57 = vmul.f32 %v2661_v52, %v1323_v49  ;;  %v1327_v58 = vld [vmem:[%s2619_s5 + $0x2e] sm:$0xf]  ;;  %v2437_v8 = vld [vmem:[%s2951_s3 + $0x38] sm:$0xff]  }
  0x17   : > { %v799_v55 = vadd.f32 %v1998_v46, %v792_v44  ;;  %v800_v56 = vadd.f32 %v1998_v46, %v793_v45  ;;  %v2435_v59 = vld [vmem:[%s2951_s3 + $0x30] sm:$0xff]   ;;  %v1334_v62 = vmul.f32 %v2661_v52, %v1324_v50  ;;  %v1337_v3 = vmul.f32 %v2661_v52, %v1327_v58  ;;  %v2438_v10 = vld [vmem:[%s2951_s3 + $0x38] sm:$0xff]   ;;  %v2449_v21 = vld [vmem:[%s2951_s3 + $0x68] sm:$0xff]  }
  0x18   : > { %v215_v54 = vrot.slane %v211_v43, %v214_v27  ;;  %v298_v60 = vpack.c.bf16 %v265_v51, %v265_v51  ;;  %v2436_v63 = vld [vmem:[%s2951_s3 + $0x30] sm:$0xff]   ;;  %v1343_v2 = vadd.f32 %v2666_v53, %v1333_v57  ;;  %v1325_v27 = vld [vmem:[%s2619_s5 + $0x1e] sm:$0xff] }
  0x19   : > { %v833_v1 = vpack.c.bf16 %v800_v56, %v799_v55  ;;  %v1344_v5 = vadd.f32 %v2666_v53, %v1334_v62  ;;  %v1347_v7 = vadd.f32 %v2666_v53, %v1337_v3  ;;  %v2452_v24 = vld [vmem:[%s2951_s3 + $0x70] sm:$0xff]  }
  0x1a   : > { %405 = vrot.lane.b32.xlu1 %v2417_v11, %s2463_s21  ;;  %389 = vrot.lane.b32.xlu0 %v2418_v12, %s2463_s21  ;;  %v2131_v0 = vpack.c.bf16 %v215_v54, %v215_v54  ;;  %v462_v4 = vsel %vm460_vm2, %v298_v60, 0  ;;  %v2439_v11 = vld [vmem:[%s2951_s3 + $0x40] sm:$0xff]  }
  0x1b   : > { %2389 = vmatprep.subr.msk.bf16.mxu0 %vm460_vm2, %v298_v60  ;;  %2390 = vmatprep.subr.msk.bf16.mxu1 %vm460_vm2, %v298_v60  ;;  %v1000_v6 = vand.u32 %v998_v61, %v833_v1  ;;  %v1380_v9 = vpack.c.bf16 %v1344_v5, %v1343_v2  ;;  %v2440_v12 = vld [vmem:[%s2951_s3 + $0x40] sm:$0xff]   ;;  %v1382_v38 = vpack.c.bf16 %v1347_v7, %v1347_v7 }
  0x1c   : > { %221 = vst [vmem:[%s2533_s9 + $0x20] sm:$0xf] %v2131_v0  ;;  %222 = vst [vmem:[%s2533_s9 + $0x30] sm:$0xf] %v2131_v0  ;;  %2282 = vmatpush3.bf16.msra.mxu0 %v462_v4  ;;  %2388 = vmatpush3.bf16.msra.mxu1 %v462_v4 }
  0x1d   : > { %223 = vst [vmem:[%s2533_s9 + $0x40] sm:$0xf] %v2131_v0  ;;  %224 = vst [vmem:[%s2533_s9 + $0x50] sm:$0xf] %v2131_v0  ;;  %2315 = vmatprep.subr.bf16.mxu1 %v1000_v6  ;;  %2349 = vmatprep.subr.bf16.mxu0 %v1380_v9  ;;  %v1545_v41 = vsel %vm460_vm2, %v1382_v38, 0 }
  0x1e   : > { %407 = vrot.lane.b32.xlu1 %v2419_v13, %s2463_s21  ;;  %391 = vrot.lane.b32.xlu0 %v2420_v14, %s2463_s21  ;;  %225 = vst [vmem:[%s2533_s9 + $0x60] sm:$0xf] %v2131_v0  ;;  %226 = vst [vmem:[%s2533_s9 + $0x70] sm:$0xf] %v2131_v0 }
  0x1f   : > { %227 = vst [vmem:[%s2533_s9 + $0x80] sm:$0xf] %v2131_v0  ;;  %228 = vst [vmem:[%s2533_s9 + $0x90] sm:$0xf] %v2131_v0  ;;  %v2441_v13 = vld [vmem:[%s2951_s3 + $0x48] sm:$0xff]  }
  0x20   : > { %229 = vst [vmem:[%s2533_s9 + $0xa0] sm:$0xf] %v2131_v0  ;;  %230 = vst [vmem:[%s2533_s9 + $0xb0] sm:$0xf] %v2131_v0  ;;  %v2442_v14 = vld [vmem:[%s2951_s3 + $0x48] sm:$0xff]  }
  0x21   : > { %231 = vst [vmem:[%s2533_s9 + $0xc0] sm:$0xf] %v2131_v0  ;;  %232 = vst [vmem:[%s2533_s9 + $0xd0] sm:$0xf] %v2131_v0 }
  0x22   : > { %409 = vrot.lane.b32.xlu1 %v2421_v15, %s2463_s21  ;;  %393 = vrot.lane.b32.xlu0 %v2422_v16, %s2463_s21  ;;  %233 = vst [vmem:[%s2533_s9 + $0xe0] sm:$0xf] %v2131_v0  ;;  %234 = vst [vmem:[%s2533_s9 + $0xf0] sm:$0xf] %v2131_v0 }
  0x23   : > { %235 = vst [vmem:[%s2533_s9 + $0x100] sm:$0xf] %v2131_v0  ;;  %236 = vst [vmem:[%s2533_s9 + $0x110] sm:$0xf] %v2131_v0  ;;  %v2443_v15 = vld [vmem:[%s2951_s3 + $0x50] sm:$0xff]  }
  0x24   : > { %237 = vst [vmem:[%s2533_s9 + $0x120] sm:$0xf] %v2131_v0  ;;  %238 = vst [vmem:[%s2533_s9 + $0x130] sm:$0xf] %v2131_v0  ;;  %v2444_v16 = vld [vmem:[%s2951_s3 + $0x50] sm:$0xff]  }
  0x25   : > { %239 = vst [vmem:[%s2533_s9 + $0x140] sm:$0xf] %v2131_v0  ;;  %240 = vst [vmem:[%s2533_s9 + $0x150] sm:$0xf] %v2131_v0 }
  0x26   : > { %1463 = vrot.lane.b32.xlu1 %v2423_v17, %s2465_s10  ;;  %914 = vrot.lane.b32.xlu0 %v2424_v18, %s2466_s13  ;;  %241 = vst [vmem:[%s2533_s9 + $0x160] sm:$0xf] %v2131_v0  ;;  %242 = vst [vmem:[%s2533_s9 + $0x170] sm:$0xf] %v2131_v0 }
  0x27   : > { %243 = vst [vmem:[%s2533_s9 + $0x180] sm:$0xf] %v2131_v0  ;;  %244 = vst [vmem:[%s2533_s9 + $0x190] sm:$0xf] %v2131_v0  ;;  %v2445_v17 = vld [vmem:[%s2951_s3 + $0x58] sm:$0xff]  }
  0x28   : > { %245 = vst [vmem:[%s2533_s9 + $0x1a0] sm:$0xf] %v2131_v0  ;;  %246 = vst [vmem:[%s2533_s9 + $0x1b0] sm:$0xf] %v2131_v0  ;;  %v2446_v18 = vld [vmem:[%s2951_s3 + $0x58] sm:$0xff]  }
  0x29   : > { %247 = vst [vmem:[%s2533_s9 + $0x1c0] sm:$0xf] %v2131_v0  ;;  %248 = vst [vmem:[%s2533_s9 + $0x1d0] sm:$0xf] %v2131_v0 }
  0x2a   : > { %1465 = vrot.lane.b32.xlu1 %v2425_v19, %s2465_s10  ;;  %916 = vrot.lane.b32.xlu0 %v2426_v20, %s2466_s13  ;;  %249 = vst [vmem:[%s2533_s9 + $0x1e0] sm:$0xf] %v2131_v0  ;;  %250 = vst [vmem:[%s2533_s9 + $0x1f0] sm:$0xf] %v2131_v0 }
  0x2b   : > { %251 = vst [vmem:[%s2533_s9 + $0x200] sm:$0xf] %v2131_v0  ;;  %252 = vst [vmem:[%s2533_s9 + $0x210] sm:$0xf] %v2131_v0  ;;  %v2447_v19 = vld [vmem:[%s2951_s3 + $0x60] sm:$0xff]  }
  0x2c   : > { %v2448_v20 = vld [vmem:[%s2951_s3 + $0x60] sm:$0xff]  }
  0x2e   : > { %1467 = vrot.lane.b32.xlu1 %v2427_v22, %s2465_s10  ;;  %918 = vrot.lane.b32.xlu0 %v2428_v23, %s2466_s13  ;;  %v2450_v22 = vld [vmem:[%s2951_s3 + $0x68] sm:$0xff]   ;;  %v2451_v23 = vld [vmem:[%s2951_s3 + $0x70] sm:$0xff]  }
  0x32   : > { %1469 = vrot.lane.b32.xlu1 %v2429_v25, %s2465_s10  ;;  %920 = vrot.lane.b32.xlu0 %v2430_v26, %s2466_s13  ;;  %v2453_v25 = vld [vmem:[%s2951_s3 + $0x78] sm:$0xff]  }
  0x33   : > { %v2454_v26 = vld [vmem:[%s2951_s3 + $0x78] sm:$0xff]  }
  0x36   : > { %1471 = vrot.lane.b32.xlu1 %v2431_v28, %s2465_s10  ;;  %922 = vrot.lane.b32.xlu0 %v2432_v29, %s2466_s13  ;;  %v1326_v28 = vld [vmem:[%s2619_s5 + $0x26] sm:$0xff]  ;;  %v1335_v29 = vmul.f32 %v2661_v52, %v1325_v27 }
  0x38   : > { %v1345_v31 = vadd.f32 %v2666_v53, %v1335_v29 }
  0x3a   : > { %1473 = vrot.lane.b32.xlu1 %v2433_v30, %s2465_s10  ;;  %924 = vrot.lane.b32.xlu0 %v2434_v34, %s2466_s13  ;;  %v1336_v30 = vmul.f32 %v2661_v52, %v1326_v28 }
  0x3c   : > { %v1346_v32 = vadd.f32 %v2666_v53, %v1336_v30 }
  0x3e   : > { %1475 = vrot.lane.b32.xlu1 %v2435_v59, %s2465_s10  ;;  %926 = vrot.lane.b32.xlu0 %v2436_v63, %s2466_s13  ;;  %v1381_v35 = vpack.c.bf16 %v1346_v32, %v1345_v31 }
  0x42   : > { %1477 = vrot.lane.b32.xlu1 %v2437_v8, %s2465_s10  ;;  %928 = vrot.lane.b32.xlu0 %v2438_v10, %s2466_s13 }
  0x46   : > { %1479 = vrot.lane.b32.xlu1 %v2439_v11, %s2465_s10  ;;  %930 = vrot.lane.b32.xlu0 %v2440_v12, %s2466_s13 }
  0x4a   : > { %1481 = vrot.lane.b32.xlu1 %v2441_v13, %s2465_s10  ;;  %932 = vrot.lane.b32.xlu0 %v2442_v14, %s2466_s13 }
  0x4e   : > { %1483 = vrot.lane.b32.xlu1 %v2443_v15, %s2465_s10  ;;  %934 = vrot.lane.b32.xlu0 %v2444_v16, %s2466_s13 }
  0x52   : > { %1485 = vrot.lane.b32.xlu1 %v2445_v17, %s2465_s10  ;;  %936 = vrot.lane.b32.xlu0 %v2446_v18, %s2466_s13 }
  0x56   : > { %1487 = vrot.lane.b32.xlu1 %v2447_v19, %s2465_s10  ;;  %938 = vrot.lane.b32.xlu0 %v2448_v20, %s2466_s13 }
  0x5a   : > { %1489 = vrot.lane.b32.xlu1 %v2449_v21, %s2465_s10  ;;  %940 = vrot.lane.b32.xlu0 %v2450_v22, %s2466_s13 }
  0x5e   : > { %1491 = vrot.lane.b32.xlu1 %v2451_v23, %s2465_s10  ;;  %942 = vrot.lane.b32.xlu0 %v2452_v24, %s2466_s13 }
  0x62   : > { %1493 = vrot.lane.b32.xlu1 %v2453_v25, %s2465_s10  ;;  %944 = vrot.lane.b32.xlu0 %v2454_v26, %s2466_s13 }
  0x78   : > { %v382_v33 = vpop.permute.xlu1 %381  ;;  %v380_v34 = vpop.permute.xlu0 %379 }
  0x79   : > { %2283 = vmatprep.mubr.msk.bf16.mxu0 %vm411_vm3, %v380_v34 }
  0x7a   : > { %2284 = vmatmul.mubr.msk.bf16.vlgmr.msra.gmra.mrb[0].mxu0 %vm411_vm3, %v382_v33 }
  0x7b   : > { %2350 = vmatpush3.bf16.msra.mxu0 %v1380_v9 }
  0x7c   : > { %v398_v36 = vpop.permute.xlu1 %397  ;;  %v396_v37 = vpop.permute.xlu0 %395  ;;  %2351 = vmatprep.subr.bf16.mxu0 %v1381_v35 }
  0x7d   : > { %2299 = vmatprep.mubr.msk.bf16.mxu1 %vm411_vm3, %v396_v37 }
  0x7e   : > { %2300 = vmatmul.mubr.msk.bf16.vlgmr.msra.gmra.mrb[0].mxu1 %vm411_vm3, %v398_v36 }
  0x7f   : > { %2316 = vmatpush3.bf16.msra.mxu1 %v1000_v6  ;;  %2352 = vmatpush3.bf16.msra.mxu0 %v1381_v35 }
  0x80   : > { %v400_v39 = vpop.permute.xlu1 %399  ;;  %v384_v40 = vpop.permute.xlu0 %383  ;;  %2391 = vmatprep.subr.msk.bf16.mxu0 %vm460_vm2, %v1382_v38 }
  0x81   : > { %2303 = vmatprep.mubr.msk.bf16.mxu1 %vm411_vm3, %v400_v39  ;;  %2287 = vmatprep.mubr.msk.bf16.mxu0 %vm411_vm3, %v384_v40 }
  0x83   : > { %2354 = vmatpush3.bf16.msra.mxu0 %v1545_v41 }
  0x84   : > { %v402_v42 = vpop.permute.xlu1 %401  ;;  %v386_v43 = vpop.permute.xlu0 %385 }
  0x85   : > { %2288 = vmatmul.mubr.msk.bf16.gmra.mrb[4].mxu0 %vm411_vm3, %v386_v43 }
  0x86   : > { %2304 = vmatmul.mubr.msk.bf16.gmra.mrb[4].mxu1 %vm411_vm3, %v402_v42 }
  0x88   : > { %v404_v44 = vpop.permute.xlu1 %403  ;;  %v388_v45 = vpop.permute.xlu0 %387 }
  0x89   : > { %2307 = vmatprep.mubr.msk.bf16.mxu1 %vm411_vm3, %v404_v44  ;;  %2291 = vmatprep.mubr.msk.bf16.mxu0 %vm411_vm3, %v388_v45 }
  0x8c   : > { %v406_v46 = vpop.permute.xlu1 %405  ;;  %v390_v47 = vpop.permute.xlu0 %389 }
  0x8d   : > { %2292 = vmatmul.mubr.msk.bf16.gmra.mrb[8].mxu0 %vm411_vm3, %v390_v47 }
  0x8e   : > { %2308 = vmatmul.mubr.msk.bf16.gmra.mrb[8].mxu1 %vm411_vm3, %v406_v46 }
  0x90   : > { %v408_v48 = vpop.permute.xlu1 %407  ;;  %v392_v49 = vpop.permute.xlu0 %391 }
  0x91   : > { %2311 = vmatprep.mubr.msk.bf16.mxu1 %vm411_vm3, %v408_v48  ;;  %2295 = vmatprep.mubr.msk.bf16.mxu0 %vm411_vm3, %v392_v49 }
  0x94   : > { %v410_v50 = vpop.permute.xlu1 %409  ;;  %v394_v51 = vpop.permute.xlu0 %393 }
  0x95   : > { %2296 = vmatmul.mubr.msk.bf16.gmra.mrb[12].mxu0 %vm411_vm3, %v394_v51 }
  0x96   : > { %2312 = vmatmul.mubr.msk.bf16.gmra.mrb[12].mxu1 %vm411_vm3, %v410_v50 }
  0x98   : > { %v1464_v52 = vpop.permute.xlu1 %1463  ;;  %v915_v53 = vpop.permute.xlu0 %914 }
  0x99   : > { %2355 = vmatprep.mubr.msk.bf16.mxu0 %vm1495_vm4, %v1464_v52  ;;  %2317 = vmatprep.mubr.msk.bf16.mxu1 %vm946_vm5, %v915_v53 }
  0x9c   : > { %v1466_v54 = vpop.permute.xlu1 %1465  ;;  %v917_v55 = vpop.permute.xlu0 %916 }
  0x9d   : > { %2356 = vmatmul.mubr.msk.bf16.vlgmr.msra.gmra.mrb[16].mxu0 %vm1495_vm4, %v1466_v54 }
  0x9e   : > { %2318 = vmatmul.mubr.msk.bf16.vlgmr.msra.gmra.mrb[16].mxu1 %vm946_vm5, %v917_v55 }
  0xa0   : > { %v1468_v56 = vpop.permute.xlu1 %1467  ;;  %v919_v57 = vpop.permute.xlu0 %918 }
  0xa1   : > { %2359 = vmatprep.mubr.msk.bf16.mxu0 %vm1495_vm4, %v1468_v56  ;;  %2321 = vmatprep.mubr.msk.bf16.mxu1 %vm946_vm5, %v919_v57 }
  0xa4   : > { %v1470_v58 = vpop.permute.xlu1 %1469  ;;  %v921_v59 = vpop.permute.xlu0 %920 }
  0xa5   : > { %2360 = vmatmul.mubr.msk.bf16.gmra.mrb[20].mxu0 %vm1495_vm4, %v1470_v58 }
  0xa6   : > { %2322 = vmatmul.mubr.msk.bf16.gmra.mrb[20].mxu1 %vm946_vm5, %v921_v59 }
  0xa8   : > { %v1472_v60 = vpop.permute.xlu1 %1471  ;;  %v923_v61 = vpop.permute.xlu0 %922 }
  0xa9   : > { %2363 = vmatprep.mubr.msk.bf16.mxu0 %vm1495_vm4, %v1472_v60  ;;  %2325 = vmatprep.mubr.msk.bf16.mxu1 %vm946_vm5, %v923_v61 }
  0xac   : > { %v1474_v62 = vpop.permute.xlu1 %1473  ;;  %v925_v63 = vpop.permute.xlu0 %924 }
  0xad   : > { %2364 = vmatmul.mubr.msk.bf16.gmra.mrb[24].mxu0 %vm1495_vm4, %v1474_v62 }
  0xae   : > { %2326 = vmatmul.mubr.msk.bf16.gmra.mrb[24].mxu1 %vm946_vm5, %v925_v63 }
  0xb0   : > { %v1476_v0 = vpop.permute.xlu1 %1475  ;;  %v927_v1 = vpop.permute.xlu0 %926 }
  0xb1   : > { %2367 = vmatprep.mubr.msk.bf16.mxu0 %vm1495_vm4, %v1476_v0  ;;  %2329 = vmatprep.mubr.msk.bf16.mxu1 %vm946_vm5, %v927_v1 }
  0xb4   : > { %v1478_v2 = vpop.permute.xlu1 %1477  ;;  %v929_v3 = vpop.permute.xlu0 %928 }
  0xb5   : > { %2368 = vmatmul.mubr.msk.bf16.gmra.mrb[28].mxu0 %vm1495_vm4, %v1478_v2 }
  0xb6   : > { %2330 = vmatmul.mubr.msk.bf16.gmra.mrb[28].mxu1 %vm946_vm5, %v929_v3 }
  0xb8   : > { %v1480_v4 = vpop.permute.xlu1 %1479  ;;  %v931_v5 = vpop.permute.xlu0 %930 }
  0xb9   : > { %2371 = vmatprep.mubr.msk.bf16.mxu0 %vm1495_vm4, %v1480_v4  ;;  %2333 = vmatprep.mubr.msk.bf16.mxu1 %vm946_vm5, %v931_v5 }
  0xbc   : > { %v1482_v6 = vpop.permute.xlu1 %1481  ;;  %v933_v7 = vpop.permute.xlu0 %932 }
  0xbd   : > { %2372 = vmatmul.mubr.msk.bf16.gmra.mrb[32].mxu0 %vm1495_vm4, %v1482_v6 }
  0xbe   : > { %2334 = vmatmul.mubr.msk.bf16.gmra.mrb[32].mxu1 %vm946_vm5, %v933_v7 }
  0xc0   : > { %v1484_v8 = vpop.permute.xlu1 %1483  ;;  %v935_v9 = vpop.permute.xlu0 %934 }
  0xc1   : > { %2375 = vmatprep.mubr.msk.bf16.mxu0 %vm1495_vm4, %v1484_v8  ;;  %2337 = vmatprep.mubr.msk.bf16.mxu1 %vm946_vm5, %v935_v9 }
  0xc4   : > { %v1486_v10 = vpop.permute.xlu1 %1485  ;;  %v937_v11 = vpop.permute.xlu0 %936 }
  0xc5   : > { %2376 = vmatmul.mubr.msk.bf16.gmra.mrb[36].mxu0 %vm1495_vm4, %v1486_v10 }
  0xc6   : > { %2338 = vmatmul.mubr.msk.bf16.gmra.mrb[36].mxu1 %vm946_vm5, %v937_v11 }
  0xc8   : > { %v1488_v12 = vpop.permute.xlu1 %1487  ;;  %v939_v13 = vpop.permute.xlu0 %938 }
  0xc9   : > { %2379 = vmatprep.mubr.msk.bf16.mxu0 %vm1495_vm4, %v1488_v12  ;;  %2341 = vmatprep.mubr.msk.bf16.mxu1 %vm946_vm5, %v939_v13 }
  0xcc   : > { %v1490_v14 = vpop.permute.xlu1 %1489  ;;  %v941_v15 = vpop.permute.xlu0 %940 }
  0xcd   : > { %2380 = vmatmul.mubr.msk.bf16.gmra.mrb[40].mxu0 %vm1495_vm4, %v1490_v14 }
  0xce   : > { %2342 = vmatmul.mubr.msk.bf16.gmra.mrb[40].mxu1 %vm946_vm5, %v941_v15 }
  0xd0   : > { %v1492_v16 = vpop.permute.xlu1 %1491  ;;  %v943_v17 = vpop.permute.xlu0 %942 }
  0xd1   : > { %2383 = vmatprep.mubr.msk.bf16.mxu0 %vm1495_vm4, %v1492_v16  ;;  %2345 = vmatprep.mubr.msk.bf16.mxu1 %vm946_vm5, %v943_v17 }
  0xd4   : > { %v1494_v18 = vpop.permute.xlu1 %1493  ;;  %v945_v19 = vpop.permute.xlu0 %944 }
  0xd5   : > { %2384 = vmatmul.mubr.msk.bf16.gmra.mrb[44].mxu0 %vm1495_vm4, %v1494_v18 }
  0xd6   : > { %2346 = vmatmul.mubr.msk.bf16.gmra.mrb[44].mxu1 %vm946_vm5, %v945_v19 }
 0x14d   : > { %v2285_v20 = vpop.f32.mrb[0].mxu0 }
 0x14e   : > { %v2134_v21 = vpack.c.bf16 %v2285_v20, %v2285_v20  ;;  %v498_v22 = vpop.f32.mrb[1].mxu0 }
 0x14f   : > { %v2132_v23 = vpack.c.bf16 %v498_v22, %v498_v22  ;;  %v2286_v24 = vpop.f32.mrb[2].mxu0 }
 0x150   : > { %755 = vst [vmem:[%s2533_s9 + $0x44] sm:$0xf] %v2134_v21  ;;  %v2135_v25 = vpack.c.bf16 %v2286_v24, %v2286_v24  ;;  %v501_v26 = vpop.f32.mrb[3].mxu0 }
 0x151   : > { %753 = vst [vmem:[%s2533_s9 + $0x24] sm:$0xf] %v2132_v23  ;;  %v2133_v27 = vpack.c.bf16 %v501_v26, %v501_v26  ;;  %v2301_v28 = vpop.f32.mrb[0].mxu1 }
 0x152   : > { %756 = vst [vmem:[%s2533_s9 + $0x54] sm:$0xf] %v2135_v25  ;;  %v2150_v29 = vpack.c.bf16 %v2301_v28, %v2301_v28  ;;  %v562_v30 = vpop.f32.mrb[1].mxu1 }
 0x153   : > { %754 = vst [vmem:[%s2533_s9 + $0x34] sm:$0xf] %v2133_v27  ;;  %v2148_v31 = vpack.c.bf16 %v562_v30, %v562_v30  ;;  %v2302_v32 = vpop.f32.mrb[2].mxu1 }
 0x154   : > { %771 = vst [vmem:[%s2533_s9 + $0x144] sm:$0xf] %v2150_v29  ;;  %v2151_v33 = vpack.c.bf16 %v2302_v32, %v2302_v32  ;;  %v565_v34 = vpop.f32.mrb[3].mxu1 }
 0x155   : > { %769 = vst [vmem:[%s2533_s9 + $0x124] sm:$0xf] %v2148_v31  ;;  %v2149_v35 = vpack.c.bf16 %v565_v34, %v565_v34 }
 0x156   : > { %772 = vst [vmem:[%s2533_s9 + $0x154] sm:$0xf] %v2151_v33 }
 0x157   : > { %770 = vst [vmem:[%s2533_s9 + $0x134] sm:$0xf] %v2149_v35 }
 0x158   : > { %v2289_v36 = vpop.f32.mrb[4].mxu0 }
 0x159   : > { %v2138_v37 = vpack.c.bf16 %v2289_v36, %v2289_v36  ;;  %v514_v38 = vpop.f32.mrb[5].mxu0  ;;  %v2305_v39 = vpop.f32.mrb[4].mxu1 }
 0x15a   : > { %v2136_v40 = vpack.c.bf16 %v514_v38, %v514_v38  ;;  %v2154_v41 = vpack.c.bf16 %v2305_v39, %v2305_v39  ;;  %v2290_v42 = vpop.f32.mrb[6].mxu0  ;;  %v578_v43 = vpop.f32.mrb[5].mxu1 }
 0x15b   : > { %759 = vst [vmem:[%s2533_s9 + $0x84] sm:$0xf] %v2138_v37  ;;  %v2139_v44 = vpack.c.bf16 %v2290_v42, %v2290_v42  ;;  %v2152_v45 = vpack.c.bf16 %v578_v43, %v578_v43  ;;  %v517_v46 = vpop.f32.mrb[7].mxu0  ;;  %v2306_v47 = vpop.f32.mrb[6].mxu1 }
 0x15c   : > { %757 = vst [vmem:[%s2533_s9 + $0x64] sm:$0xf] %v2136_v40  ;;  %775 = vst [vmem:[%s2533_s9 + $0x184] sm:$0xf] %v2154_v41  ;;  %v2137_v48 = vpack.c.bf16 %v517_v46, %v517_v46  ;;  %v2155_v49 = vpack.c.bf16 %v2306_v47, %v2306_v47  ;;  %v581_v50 = vpop.f32.mrb[7].mxu1 }
 0x15d   : > { %760 = vst [vmem:[%s2533_s9 + $0x94] sm:$0xf] %v2139_v44  ;;  %773 = vst [vmem:[%s2533_s9 + $0x164] sm:$0xf] %v2152_v45  ;;  %v2153_v51 = vpack.c.bf16 %v581_v50, %v581_v50 }
 0x15e   : > { %758 = vst [vmem:[%s2533_s9 + $0x74] sm:$0xf] %v2137_v48  ;;  %776 = vst [vmem:[%s2533_s9 + $0x194] sm:$0xf] %v2155_v49 }
 0x15f   : > { %774 = vst [vmem:[%s2533_s9 + $0x174] sm:$0xf] %v2153_v51 }
 0x160   : > { %v2293_v52 = vpop.f32.mrb[8].mxu0 }
 0x161   : > { %v2142_v53 = vpack.c.bf16 %v2293_v52, %v2293_v52  ;;  %v530_v54 = vpop.f32.mrb[9].mxu0  ;;  %v2309_v55 = vpop.f32.mrb[8].mxu1 }
 0x162   : > { %v2140_v56 = vpack.c.bf16 %v530_v54, %v530_v54  ;;  %v2158_v57 = vpack.c.bf16 %v2309_v55, %v2309_v55  ;;  %v2294_v58 = vpop.f32.mrb[10].mxu0  ;;  %v594_v59 = vpop.f32.mrb[9].mxu1 }
 0x163   : > { %763 = vst [vmem:[%s2533_s9 + $0xc4] sm:$0xf] %v2142_v53  ;;  %v2143_v60 = vpack.c.bf16 %v2294_v58, %v2294_v58  ;;  %v2156_v61 = vpack.c.bf16 %v594_v59, %v594_v59  ;;  %v533_v62 = vpop.f32.mrb[11].mxu0  ;;  %v2310_v63 = vpop.f32.mrb[10].mxu1 }
 0x164   : > { %761 = vst [vmem:[%s2533_s9 + $0xa4] sm:$0xf] %v2140_v56  ;;  %779 = vst [vmem:[%s2533_s9 + $0x1c4] sm:$0xf] %v2158_v57  ;;  %v2141_v0 = vpack.c.bf16 %v533_v62, %v533_v62  ;;  %v2159_v1 = vpack.c.bf16 %v2310_v63, %v2310_v63  ;;  %v597_v2 = vpop.f32.mrb[11].mxu1 }
 0x165   : > { %764 = vst [vmem:[%s2533_s9 + $0xd4] sm:$0xf] %v2143_v60  ;;  %777 = vst [vmem:[%s2533_s9 + $0x1a4] sm:$0xf] %v2156_v61  ;;  %v2157_v3 = vpack.c.bf16 %v597_v2, %v597_v2 }
 0x166   : > { %762 = vst [vmem:[%s2533_s9 + $0xb4] sm:$0xf] %v2141_v0  ;;  %780 = vst [vmem:[%s2533_s9 + $0x1d4] sm:$0xf] %v2159_v1 }
 0x167   : > { %778 = vst [vmem:[%s2533_s9 + $0x1b4] sm:$0xf] %v2157_v3 }
 0x168   : > { %v2297_v4 = vpop.f32.mrb[12].mxu0 }
 0x169   : > { %v2146_v5 = vpack.c.bf16 %v2297_v4, %v2297_v4  ;;  %v546_v6 = vpop.f32.mrb[13].mxu0  ;;  %v2313_v7 = vpop.f32.mrb[12].mxu1 }
 0x16a   : > { %v2144_v8 = vpack.c.bf16 %v546_v6, %v546_v6  ;;  %v2162_v9 = vpack.c.bf16 %v2313_v7, %v2313_v7  ;;  %v2298_v10 = vpop.f32.mrb[14].mxu0  ;;  %v610_v11 = vpop.f32.mrb[13].mxu1 }
 0x16b   : > { %767 = vst [vmem:[%s2533_s9 + $0x104] sm:$0xf] %v2146_v5  ;;  %v2147_v12 = vpack.c.bf16 %v2298_v10, %v2298_v10  ;;  %v2160_v13 = vpack.c.bf16 %v610_v11, %v610_v11  ;;  %v549_v14 = vpop.f32.mrb[15].mxu0  ;;  %v2314_v15 = vpop.f32.mrb[14].mxu1 }
 0x16c   : > { %765 = vst [vmem:[%s2533_s9 + $0xe4] sm:$0xf] %v2144_v8  ;;  %783 = vst [vmem:[%s2533_s9 + $0x204] sm:$0xf] %v2162_v9  ;;  %v2145_v16 = vpack.c.bf16 %v549_v14, %v549_v14  ;;  %v2163_v17 = vpack.c.bf16 %v2314_v15, %v2314_v15  ;;  %v613_v18 = vpop.f32.mrb[15].mxu1 }
 0x16d   : > { %768 = vst [vmem:[%s2533_s9 + $0x114] sm:$0xf] %v2147_v12  ;;  %781 = vst [vmem:[%s2533_s9 + $0x1e4] sm:$0xf] %v2160_v13  ;;  %v2161_v19 = vpack.c.bf16 %v613_v18, %v613_v18 }
 0x16e   : > { %766 = vst [vmem:[%s2533_s9 + $0xf4] sm:$0xf] %v2145_v16  ;;  %784 = vst [vmem:[%s2533_s9 + $0x214] sm:$0xf] %v2163_v17 }
 0x16f   : > { %782 = vst [vmem:[%s2533_s9 + $0x1f4] sm:$0xf] %v2161_v19 }
 0x170   : > { %v2357_v20 = vpop.f32.mrb[16].mxu0 }
 0x171   : > { %v2198_v21 = vpack.c.bf16 %v2357_v20, %v2357_v20  ;;  %v2319_v22 = vpop.f32.mrb[16].mxu1  ;;  %v1581_v23 = vpop.f32.mrb[17].mxu0 }
 0x172   : > { %v2166_v24 = vpack.c.bf16 %v2319_v22, %v2319_v22  ;;  %v2196_v25 = vpack.c.bf16 %v1581_v23, %v1581_v23  ;;  %v1036_v26 = vpop.f32.mrb[17].mxu1  ;;  %v2358_v27 = vpop.f32.mrb[18].mxu0 }
 0x173   : > { %1838 = vst [vmem:[%s2533_s9 + $0x4c] sm:$0xf] %v2198_v21  ;;  %v2164_v28 = vpack.c.bf16 %v1036_v26, %v1036_v26  ;;  %v2199_v29 = vpack.c.bf16 %v2358_v27, %v2358_v27  ;;  %v2320_v30 = vpop.f32.mrb[18].mxu1  ;;  %v1584_v31 = vpop.f32.mrb[19].mxu0 }
 0x174   : > { %1293 = vst [vmem:[%s2533_s9 + $0x48] sm:$0xf] %v2166_v24  ;;  %1836 = vst [vmem:[%s2533_s9 + $0x2c] sm:$0xf] %v2196_v25  ;;  %v2167_v32 = vpack.c.bf16 %v2320_v30, %v2320_v30  ;;  %v2197_v33 = vpack.c.bf16 %v1584_v31, %v1584_v31  ;;  %v1039_v34 = vpop.f32.mrb[19].mxu1 }
 0x175   : > { %1291 = vst [vmem:[%s2533_s9 + $0x28] sm:$0xf] %v2164_v28  ;;  %1839 = vst [vmem:[%s2533_s9 + $0x5c] sm:$0xf] %v2199_v29  ;;  %v2165_v35 = vpack.c.bf16 %v1039_v34, %v1039_v34 }
 0x176   : > { %1294 = vst [vmem:[%s2533_s9 + $0x58] sm:$0xf] %v2167_v32  ;;  %1837 = vst [vmem:[%s2533_s9 + $0x3c] sm:$0xf] %v2197_v33 }
 0x177   : > { %1292 = vst [vmem:[%s2533_s9 + $0x38] sm:$0xf] %v2165_v35 }
 0x178   : > { %v2361_v36 = vpop.f32.mrb[20].mxu0 }
 0x179   : > { %v2202_v37 = vpack.c.bf16 %v2361_v36, %v2361_v36  ;;  %v2323_v38 = vpop.f32.mrb[20].mxu1  ;;  %v1597_v39 = vpop.f32.mrb[21].mxu0 }
 0x17a   : > { %v2170_v40 = vpack.c.bf16 %v2323_v38, %v2323_v38  ;;  %v2200_v41 = vpack.c.bf16 %v1597_v39, %v1597_v39  ;;  %v1052_v42 = vpop.f32.mrb[21].mxu1  ;;  %v2362_v43 = vpop.f32.mrb[22].mxu0 }
 0x17b   : > { %1842 = vst [vmem:[%s2533_s9 + $0x8c] sm:$0xf] %v2202_v37  ;;  %v2168_v44 = vpack.c.bf16 %v1052_v42, %v1052_v42  ;;  %v2203_v45 = vpack.c.bf16 %v2362_v43, %v2362_v43  ;;  %v2324_v46 = vpop.f32.mrb[22].mxu1  ;;  %v1600_v47 = vpop.f32.mrb[23].mxu0 }
 0x17c   : > { %1297 = vst [vmem:[%s2533_s9 + $0x88] sm:$0xf] %v2170_v40  ;;  %1840 = vst [vmem:[%s2533_s9 + $0x6c] sm:$0xf] %v2200_v41  ;;  %v2171_v48 = vpack.c.bf16 %v2324_v46, %v2324_v46  ;;  %v2201_v49 = vpack.c.bf16 %v1600_v47, %v1600_v47  ;;  %v1055_v50 = vpop.f32.mrb[23].mxu1 }
 0x17d   : > { %1295 = vst [vmem:[%s2533_s9 + $0x68] sm:$0xf] %v2168_v44  ;;  %1843 = vst [vmem:[%s2533_s9 + $0x9c] sm:$0xf] %v2203_v45  ;;  %v2169_v51 = vpack.c.bf16 %v1055_v50, %v1055_v50 }
 0x17e   : > { %1298 = vst [vmem:[%s2533_s9 + $0x98] sm:$0xf] %v2171_v48  ;;  %1841 = vst [vmem:[%s2533_s9 + $0x7c] sm:$0xf] %v2201_v49 }
 0x17f   : > { %1296 = vst [vmem:[%s2533_s9 + $0x78] sm:$0xf] %v2169_v51 }
 0x180   : > { %v2365_v52 = vpop.f32.mrb[24].mxu0 }
 0x181   : > { %v2206_v53 = vpack.c.bf16 %v2365_v52, %v2365_v52  ;;  %v2327_v54 = vpop.f32.mrb[24].mxu1  ;;  %v1613_v55 = vpop.f32.mrb[25].mxu0 }
 0x182   : > { %v2174_v56 = vpack.c.bf16 %v2327_v54, %v2327_v54  ;;  %v2204_v57 = vpack.c.bf16 %v1613_v55, %v1613_v55  ;;  %v1068_v58 = vpop.f32.mrb[25].mxu1  ;;  %v2366_v59 = vpop.f32.mrb[26].mxu0 }
 0x183   : > { %1846 = vst [vmem:[%s2533_s9 + $0xcc] sm:$0xf] %v2206_v53  ;;  %v2172_v60 = vpack.c.bf16 %v1068_v58, %v1068_v58  ;;  %v2207_v61 = vpack.c.bf16 %v2366_v59, %v2366_v59  ;;  %v2328_v62 = vpop.f32.mrb[26].mxu1  ;;  %v1616_v63 = vpop.f32.mrb[27].mxu0 }
 0x184   : > { %1301 = vst [vmem:[%s2533_s9 + $0xc8] sm:$0xf] %v2174_v56  ;;  %1844 = vst [vmem:[%s2533_s9 + $0xac] sm:$0xf] %v2204_v57  ;;  %v2175_v0 = vpack.c.bf16 %v2328_v62, %v2328_v62  ;;  %v2205_v1 = vpack.c.bf16 %v1616_v63, %v1616_v63  ;;  %v1071_v2 = vpop.f32.mrb[27].mxu1 }
 0x185   : > { %1299 = vst [vmem:[%s2533_s9 + $0xa8] sm:$0xf] %v2172_v60  ;;  %1847 = vst [vmem:[%s2533_s9 + $0xdc] sm:$0xf] %v2207_v61  ;;  %v2173_v3 = vpack.c.bf16 %v1071_v2, %v1071_v2 }
 0x186   : > { %1302 = vst [vmem:[%s2533_s9 + $0xd8] sm:$0xf] %v2175_v0  ;;  %1845 = vst [vmem:[%s2533_s9 + $0xbc] sm:$0xf] %v2205_v1 }
 0x187   : > { %1300 = vst [vmem:[%s2533_s9 + $0xb8] sm:$0xf] %v2173_v3 }
 0x188   : > { %v2369_v4 = vpop.f32.mrb[28].mxu0 }
 0x189   : > { %v2210_v5 = vpack.c.bf16 %v2369_v4, %v2369_v4  ;;  %v2331_v6 = vpop.f32.mrb[28].mxu1  ;;  %v1629_v7 = vpop.f32.mrb[29].mxu0 }
 0x18a   : > { %v2178_v8 = vpack.c.bf16 %v2331_v6, %v2331_v6  ;;  %v2208_v9 = vpack.c.bf16 %v1629_v7, %v1629_v7  ;;  %v1084_v10 = vpop.f32.mrb[29].mxu1  ;;  %v2370_v11 = vpop.f32.mrb[30].mxu0 }
 0x18b   : > { %1850 = vst [vmem:[%s2533_s9 + $0x10c] sm:$0xf] %v2210_v5  ;;  %v2176_v12 = vpack.c.bf16 %v1084_v10, %v1084_v10  ;;  %v2211_v13 = vpack.c.bf16 %v2370_v11, %v2370_v11  ;;  %v2332_v14 = vpop.f32.mrb[30].mxu1  ;;  %v1632_v15 = vpop.f32.mrb[31].mxu0 }
 0x18c   : > { %1305 = vst [vmem:[%s2533_s9 + $0x108] sm:$0xf] %v2178_v8  ;;  %1848 = vst [vmem:[%s2533_s9 + $0xec] sm:$0xf] %v2208_v9  ;;  %v2179_v16 = vpack.c.bf16 %v2332_v14, %v2332_v14  ;;  %v2209_v17 = vpack.c.bf16 %v1632_v15, %v1632_v15  ;;  %v1087_v18 = vpop.f32.mrb[31].mxu1 }
 0x18d   : > { %1303 = vst [vmem:[%s2533_s9 + $0xe8] sm:$0xf] %v2176_v12  ;;  %1851 = vst [vmem:[%s2533_s9 + $0x11c] sm:$0xf] %v2211_v13  ;;  %v2177_v19 = vpack.c.bf16 %v1087_v18, %v1087_v18 }
 0x18e   : > { %1306 = vst [vmem:[%s2533_s9 + $0x118] sm:$0xf] %v2179_v16  ;;  %1849 = vst [vmem:[%s2533_s9 + $0xfc] sm:$0xf] %v2209_v17 }
 0x18f   : > { %1304 = vst [vmem:[%s2533_s9 + $0xf8] sm:$0xf] %v2177_v19 }
 0x190   : > { %v2373_v20 = vpop.f32.mrb[32].mxu0 }
 0x191   : > { %v2214_v21 = vpack.c.bf16 %v2373_v20, %v2373_v20  ;;  %v2335_v22 = vpop.f32.mrb[32].mxu1  ;;  %v1645_v23 = vpop.f32.mrb[33].mxu0 }
 0x192   : > { %v2182_v24 = vpack.c.bf16 %v2335_v22, %v2335_v22  ;;  %v2212_v25 = vpack.c.bf16 %v1645_v23, %v1645_v23  ;;  %v1100_v26 = vpop.f32.mrb[33].mxu1  ;;  %v2374_v27 = vpop.f32.mrb[34].mxu0 }
 0x193   : > { %1854 = vst [vmem:[%s2533_s9 + $0x14c] sm:$0xf] %v2214_v21  ;;  %v2180_v28 = vpack.c.bf16 %v1100_v26, %v1100_v26  ;;  %v2215_v29 = vpack.c.bf16 %v2374_v27, %v2374_v27  ;;  %v2336_v30 = vpop.f32.mrb[34].mxu1  ;;  %v1648_v31 = vpop.f32.mrb[35].mxu0 }
 0x194   : > { %1309 = vst [vmem:[%s2533_s9 + $0x148] sm:$0xf] %v2182_v24  ;;  %1852 = vst [vmem:[%s2533_s9 + $0x12c] sm:$0xf] %v2212_v25  ;;  %v2183_v32 = vpack.c.bf16 %v2336_v30, %v2336_v30  ;;  %v2213_v33 = vpack.c.bf16 %v1648_v31, %v1648_v31  ;;  %v1103_v34 = vpop.f32.mrb[35].mxu1 }
 0x195   : > { %1307 = vst [vmem:[%s2533_s9 + $0x128] sm:$0xf] %v2180_v28  ;;  %1855 = vst [vmem:[%s2533_s9 + $0x15c] sm:$0xf] %v2215_v29  ;;  %v2181_v35 = vpack.c.bf16 %v1103_v34, %v1103_v34 }
 0x196   : > { %1310 = vst [vmem:[%s2533_s9 + $0x158] sm:$0xf] %v2183_v32  ;;  %1853 = vst [vmem:[%s2533_s9 + $0x13c] sm:$0xf] %v2213_v33 }
 0x197   : > { %1308 = vst [vmem:[%s2533_s9 + $0x138] sm:$0xf] %v2181_v35 }
 0x198   : > { %v2377_v36 = vpop.f32.mrb[36].mxu0 }
 0x199   : > { %v2218_v37 = vpack.c.bf16 %v2377_v36, %v2377_v36  ;;  %v2339_v38 = vpop.f32.mrb[36].mxu1  ;;  %v1661_v39 = vpop.f32.mrb[37].mxu0 }
 0x19a   : > { %v2186_v40 = vpack.c.bf16 %v2339_v38, %v2339_v38  ;;  %v2216_v41 = vpack.c.bf16 %v1661_v39, %v1661_v39  ;;  %v1116_v42 = vpop.f32.mrb[37].mxu1  ;;  %v2378_v43 = vpop.f32.mrb[38].mxu0 }
 0x19b   : > { %1858 = vst [vmem:[%s2533_s9 + $0x18c] sm:$0xf] %v2218_v37  ;;  %v2184_v44 = vpack.c.bf16 %v1116_v42, %v1116_v42  ;;  %v2219_v45 = vpack.c.bf16 %v2378_v43, %v2378_v43  ;;  %v2340_v46 = vpop.f32.mrb[38].mxu1  ;;  %v1664_v47 = vpop.f32.mrb[39].mxu0 }
 0x19c   : > { %1313 = vst [vmem:[%s2533_s9 + $0x188] sm:$0xf] %v2186_v40  ;;  %1856 = vst [vmem:[%s2533_s9 + $0x16c] sm:$0xf] %v2216_v41  ;;  %v2187_v48 = vpack.c.bf16 %v2340_v46, %v2340_v46  ;;  %v2217_v49 = vpack.c.bf16 %v1664_v47, %v1664_v47  ;;  %v1119_v50 = vpop.f32.mrb[39].mxu1 }
 0x19d   : > { %1311 = vst [vmem:[%s2533_s9 + $0x168] sm:$0xf] %v2184_v44  ;;  %1859 = vst [vmem:[%s2533_s9 + $0x19c] sm:$0xf] %v2219_v45  ;;  %v2185_v51 = vpack.c.bf16 %v1119_v50, %v1119_v50 }
 0x19e   : > { %1314 = vst [vmem:[%s2533_s9 + $0x198] sm:$0xf] %v2187_v48  ;;  %1857 = vst [vmem:[%s2533_s9 + $0x17c] sm:$0xf] %v2217_v49 }
 0x19f   : > { %1312 = vst [vmem:[%s2533_s9 + $0x178] sm:$0xf] %v2185_v51 }
 0x1a0   : > { %v2381_v52 = vpop.f32.mrb[40].mxu0 }
 0x1a1   : > { %v2222_v53 = vpack.c.bf16 %v2381_v52, %v2381_v52  ;;  %v2343_v54 = vpop.f32.mrb[40].mxu1  ;;  %v1677_v55 = vpop.f32.mrb[41].mxu0 }
 0x1a2   : > { %v2190_v56 = vpack.c.bf16 %v2343_v54, %v2343_v54  ;;  %v2220_v57 = vpack.c.bf16 %v1677_v55, %v1677_v55  ;;  %v1132_v58 = vpop.f32.mrb[41].mxu1  ;;  %v2382_v59 = vpop.f32.mrb[42].mxu0 }
 0x1a3   : > { %1862 = vst [vmem:[%s2533_s9 + $0x1cc] sm:$0xf] %v2222_v53  ;;  %v2188_v60 = vpack.c.bf16 %v1132_v58, %v1132_v58  ;;  %v2223_v61 = vpack.c.bf16 %v2382_v59, %v2382_v59  ;;  %v2344_v62 = vpop.f32.mrb[42].mxu1  ;;  %v1680_v63 = vpop.f32.mrb[43].mxu0 }
 0x1a4   : > { %1317 = vst [vmem:[%s2533_s9 + $0x1c8] sm:$0xf] %v2190_v56  ;;  %1860 = vst [vmem:[%s2533_s9 + $0x1ac] sm:$0xf] %v2220_v57  ;;  %v2191_v0 = vpack.c.bf16 %v2344_v62, %v2344_v62  ;;  %v2221_v1 = vpack.c.bf16 %v1680_v63, %v1680_v63  ;;  %v1135_v2 = vpop.f32.mrb[43].mxu1 }
 0x1a5   : > { %1315 = vst [vmem:[%s2533_s9 + $0x1a8] sm:$0xf] %v2188_v60  ;;  %1863 = vst [vmem:[%s2533_s9 + $0x1dc] sm:$0xf] %v2223_v61  ;;  %v2189_v3 = vpack.c.bf16 %v1135_v2, %v1135_v2 }
 0x1a6   : > { %1318 = vst [vmem:[%s2533_s9 + $0x1d8] sm:$0xf] %v2191_v0  ;;  %1861 = vst [vmem:[%s2533_s9 + $0x1bc] sm:$0xf] %v2221_v1 }
 0x1a7   : > { %1316 = vst [vmem:[%s2533_s9 + $0x1b8] sm:$0xf] %v2189_v3 }
 0x1a8   : > { %v2385_v4 = vpop.f32.mrb[44].mxu0 }
 0x1a9   : > { %v2226_v5 = vpack.c.bf16 %v2385_v4, %v2385_v4  ;;  %v2347_v6 = vpop.f32.mrb[44].mxu1  ;;  %v1693_v7 = vpop.f32.mrb[45].mxu0 }
 0x1aa   : > { %v2194_v8 = vpack.c.bf16 %v2347_v6, %v2347_v6  ;;  %v2224_v9 = vpack.c.bf16 %v1693_v7, %v1693_v7  ;;  %v1148_v10 = vpop.f32.mrb[45].mxu1  ;;  %v2386_v11 = vpop.f32.mrb[46].mxu0 }
 0x1ab   : > { %1866 = vst [vmem:[%s2533_s9 + $0x20c] sm:$0xf] %v2226_v5  ;;  %v2192_v12 = vpack.c.bf16 %v1148_v10, %v1148_v10  ;;  %v2227_v13 = vpack.c.bf16 %v2386_v11, %v2386_v11  ;;  %v2348_v14 = vpop.f32.mrb[46].mxu1  ;;  %v1696_v15 = vpop.f32.mrb[47].mxu0 }
 0x1ac   : > { %1321 = vst [vmem:[%s2533_s9 + $0x208] sm:$0xf] %v2194_v8  ;;  %1864 = vst [vmem:[%s2533_s9 + $0x1ec] sm:$0xf] %v2224_v9  ;;  %v2195_v16 = vpack.c.bf16 %v2348_v14, %v2348_v14  ;;  %v2225_v17 = vpack.c.bf16 %v1696_v15, %v1696_v15  ;;  %v1151_v18 = vpop.f32.mrb[47].mxu1 }
 0x1ad   : > { %1319 = vst [vmem:[%s2533_s9 + $0x1e8] sm:$0xf] %v2192_v12  ;;  %1867 = vst [vmem:[%s2533_s9 + $0x21c] sm:$0xf] %v2227_v13  ;;  %v2193_v19 = vpack.c.bf16 %v1151_v18, %v1151_v18 }
 0x1ae   : > { %1322 = vst [vmem:[%s2533_s9 + $0x218] sm:$0xf] %v2195_v16  ;;  %1865 = vst [vmem:[%s2533_s9 + $0x1fc] sm:$0xf] %v2225_v17 }
 0x1af   : > { %1320 = vst [vmem:[%s2533_s9 + $0x1f8] sm:$0xf] %v2193_v19 }
 0x1b0 PF: > { %s14_s15 = sadd.s32 1, %s2461_s15  }
 0x1b1   : > { %p11_p4 = scmp.ge.s32.totalorder %s14_s15, 4  }
 0x1b3   :  { %13 = sbr.rel (!%p11_p4) target bundleno = 1 (0x1), region = 66 }

// kernel: psp_forward.7
= control target key start
LH: loop header
LB: loop body
LE: loop exit
PB: predicated region body
PF: predicated region fallthrough
CT: control target
= control target key end

     0   :  { %s886_s0 = inlined_call_operand.vmem [shape: bf16[512,128], index: 0, kind: input, shape index: {}]   ;;  %s887_s1 = inlined_call_operand.vmem [shape: f32[1,128], index: 1, kind: input, shape index: {}]   ;;  %s888_s2 = inlined_call_operand.vmem [shape: f32[1,128], index: 2, kind: input, shape index: {}]   ;;  %s889_s3 = inlined_call_operand.hbm [shape: f32[512,128], index: 3, kind: output, shape index: {}]  }
   0x1   :  { %v432_v0 = vld [vmem:[%s886_s0] sm:$0xff]   ;;  %v559_v4 = vld [vmem:[%s886_s0 + $0x8] sm:$0xff]   ;;  %v560_v5 = vld [vmem:[%s886_s0 + $0x10] sm:$0xff]  }
   0x2   :  { %v646_v1 = vld [vmem:[%s887_s1] ss:$0 sm:$0xff]  ;;  %v433_v2 = vunpack.c.l.bf16 %v432_v0  ;;  %v434_v3 = vunpack.c.h.bf16 %v432_v0  ;;  %v561_v6 = vld [vmem:[%s886_s0 + $0x18] sm:$0xff]   ;;  %v437_v8 = vunpack.c.l.bf16 %v559_v4  ;;  %v438_v9 = vunpack.c.h.bf16 %v559_v4  ;;  %v563_v33 = vld [vmem:[%s886_s0 + $0x28] sm:$0xff]  }
   0x3   :  { %v660_v7 = vld [vmem:[%s888_s2] ss:$0 sm:$0xff]  ;;  %v441_v10 = vunpack.c.l.bf16 %v560_v5  ;;  %v442_v11 = vunpack.c.h.bf16 %v560_v5  ;;  %v445_v14 = vunpack.c.l.bf16 %v561_v6  ;;  %v446_v15 = vunpack.c.h.bf16 %v561_v6  ;;  %v564_v34 = vld [vmem:[%s886_s0 + $0x30] sm:$0xff]   ;;  %v565_v39 = vld [vmem:[%s886_s0 + $0x38] sm:$0xff]  }
   0x4   :  { %v150_v12 = vmul.f32 %v433_v2, %v646_v1  ;;  %v151_v13 = vmul.f32 %v434_v3, %v646_v1  ;;  %v152_v16 = vmul.f32 %v437_v8, %v646_v1  ;;  %v153_v17 = vmul.f32 %v438_v9, %v646_v1  ;;  %v562_v28 = vld [vmem:[%s886_s0 + $0x20] sm:$0xff]  }
   0x5   :  { %v154_v18 = vmul.f32 %v441_v10, %v646_v1  ;;  %v155_v19 = vmul.f32 %v442_v11, %v646_v1  ;;  %v156_v22 = vmul.f32 %v445_v14, %v646_v1  ;;  %v157_v23 = vmul.f32 %v446_v15, %v646_v1 }
   0x6   :  { %v221_v20 = vadd.f32 %v660_v7, %v150_v12  ;;  %v222_v21 = vadd.f32 %v660_v7, %v151_v13  ;;  %v223_v24 = vadd.f32 %v660_v7, %v152_v16  ;;  %v224_v25 = vadd.f32 %v660_v7, %v153_v17 }
   0x7   :  { %v225_v26 = vadd.f32 %v660_v7, %v154_v18  ;;  %v226_v27 = vadd.f32 %v660_v7, %v155_v19  ;;  %v227_v31 = vadd.f32 %v660_v7, %v156_v22  ;;  %v228_v32 = vadd.f32 %v660_v7, %v157_v23 }
   0x8   :  { %v285_v29 = vmax.f32 %v221_v20, 0.0  ;;  %v286_v30 = vmax.f32 %v222_v21, 0.0  ;;  %v287_v35 = vmax.f32 %v223_v24, 0.0  ;;  %v288_v36 = vmax.f32 %v224_v25, 0.0 }
   0x9   :  { %v289_v37 = vmax.f32 %v225_v26, 0.0  ;;  %v290_v38 = vmax.f32 %v226_v27, 0.0  ;;  %v291_v40 = vmax.f32 %v227_v31, 0.0  ;;  %v292_v41 = vmax.f32 %v228_v32, 0.0 }
   0xa   :  { %349 = vst [vmem:[#allocation2] sm:$0xff] %v285_v29  ;;  %350 = vst [vmem:[#allocation2 + $0x8] sm:$0xff] %v286_v30  ;;  %v449_v42 = vunpack.c.l.bf16 %v562_v28  ;;  %v450_v43 = vunpack.c.h.bf16 %v562_v28  ;;  %v453_v44 = vunpack.c.l.bf16 %v563_v33  ;;  %v454_v45 = vunpack.c.h.bf16 %v563_v33 }
   0xb   :  { %351 = vst [vmem:[#allocation2 + $0x10] sm:$0xff] %v287_v35  ;;  %352 = vst [vmem:[#allocation2 + $0x18] sm:$0xff] %v288_v36  ;;  %v457_v46 = vunpack.c.l.bf16 %v564_v34  ;;  %v458_v47 = vunpack.c.h.bf16 %v564_v34  ;;  %v461_v50 = vunpack.c.l.bf16 %v565_v39  ;;  %v462_v51 = vunpack.c.h.bf16 %v565_v39 }
   0xc   :  { %353 = vst [vmem:[#allocation2 + $0x20] sm:$0xff] %v289_v37  ;;  %354 = vst [vmem:[#allocation2 + $0x28] sm:$0xff] %v290_v38  ;;  %v158_v48 = vmul.f32 %v449_v42, %v646_v1  ;;  %v159_v49 = vmul.f32 %v450_v43, %v646_v1 }
   0xd   :  { %355 = vst [vmem:[#allocation2 + $0x30] sm:$0xff] %v291_v40  ;;  %356 = vst [vmem:[#allocation2 + $0x38] sm:$0xff] %v292_v41 }
   0xe   :  { %8 = vsyncpa [#allocation3], 0  ;;  %v160_v52 = vmul.f32 %v453_v44, %v646_v1  ;;  %v161_v53 = vmul.f32 %v454_v45, %v646_v1  ;;  %v162_v54 = vmul.f32 %v457_v46, %v646_v1  ;;  %v163_v55 = vmul.f32 %v458_v47, %v646_v1  ;;  %v566_v0 = vld [vmem:[%s886_s0 + $0x40] sm:$0xff]   ;;  %v567_v6 = vld [vmem:[%s886_s0 + $0x48] sm:$0xff]  }
   0xf   :  { %v229_v56 = vadd.f32 %v660_v7, %v158_v48  ;;  %v230_v57 = vadd.f32 %v660_v7, %v159_v49  ;;  %v164_v58 = vmul.f32 %v461_v50, %v646_v1  ;;  %v165_v59 = vmul.f32 %v462_v51, %v646_v1  ;;  %v568_v8 = vld [vmem:[%s886_s0 + $0x50] sm:$0xff]   ;;  %v569_v13 = vld [vmem:[%s886_s0 + $0x58] sm:$0xff]   ;;  %v570_v38 = vld [vmem:[%s886_s0 + $0x60] sm:$0xff]  }
  0x10   :  { %v231_v60 = vadd.f32 %v660_v7, %v160_v52  ;;  %v232_v61 = vadd.f32 %v660_v7, %v161_v53  ;;  %v233_v62 = vadd.f32 %v660_v7, %v162_v54  ;;  %v234_v63 = vadd.f32 %v660_v7, %v163_v55  ;;  %v571_v43 = vld [vmem:[%s886_s0 + $0x68] sm:$0xff]   ;;  %v572_v44 = vld [vmem:[%s886_s0 + $0x70] sm:$0xff]   ;;  %v573_v49 = vld [vmem:[%s886_s0 + $0x78] sm:$0xff]  }
  0x11   :  { %v293_v2 = vmax.f32 %v229_v56, 0.0  ;;  %v294_v3 = vmax.f32 %v230_v57, 0.0  ;;  %v235_v4 = vadd.f32 %v660_v7, %v164_v58  ;;  %v236_v5 = vadd.f32 %v660_v7, %v165_v59 }
  0x12   :  { %v295_v9 = vmax.f32 %v231_v60, 0.0  ;;  %v296_v10 = vmax.f32 %v232_v61, 0.0  ;;  %v297_v11 = vmax.f32 %v233_v62, 0.0  ;;  %v298_v12 = vmax.f32 %v234_v63, 0.0 }
  0x13   :  { %357 = vst [vmem:[#allocation2 + $0x40] sm:$0xff] %v293_v2  ;;  %358 = vst [vmem:[#allocation2 + $0x48] sm:$0xff] %v294_v3  ;;  %v299_v14 = vmax.f32 %v235_v4, 0.0  ;;  %v300_v15 = vmax.f32 %v236_v5, 0.0  ;;  %v465_v16 = vunpack.c.l.bf16 %v566_v0  ;;  %v466_v17 = vunpack.c.h.bf16 %v566_v0 }
  0x14   :  { %359 = vst [vmem:[#allocation2 + $0x50] sm:$0xff] %v295_v9  ;;  %360 = vst [vmem:[#allocation2 + $0x58] sm:$0xff] %v296_v10  ;;  %v469_v18 = vunpack.c.l.bf16 %v567_v6  ;;  %v470_v19 = vunpack.c.h.bf16 %v567_v6  ;;  %v473_v20 = vunpack.c.l.bf16 %v568_v8  ;;  %v474_v21 = vunpack.c.h.bf16 %v568_v8 }
  0x15   :  { %361 = vst [vmem:[#allocation2 + $0x60] sm:$0xff] %v297_v11  ;;  %362 = vst [vmem:[#allocation2 + $0x68] sm:$0xff] %v298_v12  ;;  %v166_v22 = vmul.f32 %v465_v16, %v646_v1  ;;  %v167_v23 = vmul.f32 %v466_v17, %v646_v1  ;;  %v477_v24 = vunpack.c.l.bf16 %v569_v13  ;;  %v478_v25 = vunpack.c.h.bf16 %v569_v13  ;;  %v574_v12 = vld [vmem:[%s886_s0 + $0x80] sm:$0xff]   ;;  %v575_v17 = vld [vmem:[%s886_s0 + $0x88] sm:$0xff]  }
  0x16   :  { %363 = vst [vmem:[#allocation2 + $0x70] sm:$0xff] %v299_v14  ;;  %364 = vst [vmem:[#allocation2 + $0x78] sm:$0xff] %v300_v15  ;;  %v168_v26 = vmul.f32 %v469_v18, %v646_v1  ;;  %v169_v27 = vmul.f32 %v470_v19, %v646_v1  ;;  %v170_v28 = vmul.f32 %v473_v20, %v646_v1  ;;  %v481_v52 = vunpack.c.l.bf16 %v570_v38  ;;  %v576_v18 = vld [vmem:[%s886_s0 + $0x90] sm:$0xff]  }
  0x17   :  { %v171_v29 = vmul.f32 %v474_v21, %v646_v1  ;;  %v237_v30 = vadd.f32 %v660_v7, %v166_v22  ;;  %v238_v31 = vadd.f32 %v660_v7, %v167_v23  ;;  %v172_v32 = vmul.f32 %v477_v24, %v646_v1  ;;  %v577_v23 = vld [vmem:[%s886_s0 + $0x98] sm:$0xff]  }
  0x18   :  { %v173_v33 = vmul.f32 %v478_v25, %v646_v1  ;;  %v239_v34 = vadd.f32 %v660_v7, %v168_v26  ;;  %v240_v35 = vadd.f32 %v660_v7, %v169_v27  ;;  %v241_v36 = vadd.f32 %v660_v7, %v170_v28 }
  0x19   :  { %v242_v37 = vadd.f32 %v660_v7, %v171_v29  ;;  %v301_v39 = vmax.f32 %v237_v30, 0.0  ;;  %v302_v40 = vmax.f32 %v238_v31, 0.0  ;;  %v243_v41 = vadd.f32 %v660_v7, %v172_v32 }
  0x1a   :  { %v244_v42 = vadd.f32 %v660_v7, %v173_v33  ;;  %v303_v45 = vmax.f32 %v239_v34, 0.0  ;;  %v304_v46 = vmax.f32 %v240_v35, 0.0  ;;  %v305_v47 = vmax.f32 %v241_v36, 0.0 }
  0x1b   :  { %v306_v48 = vmax.f32 %v242_v37, 0.0  ;;  %365 = vst [vmem:[#allocation2 + $0x80] sm:$0xff] %v301_v39  ;;  %366 = vst [vmem:[#allocation2 + $0x88] sm:$0xff] %v302_v40  ;;  %v307_v50 = vmax.f32 %v243_v41, 0.0  ;;  %v482_v53 = vunpack.c.h.bf16 %v570_v38  ;;  %v485_v54 = vunpack.c.l.bf16 %v571_v43 }
  0x1c   :  { %v308_v51 = vmax.f32 %v244_v42, 0.0  ;;  %367 = vst [vmem:[#allocation2 + $0x90] sm:$0xff] %v303_v45  ;;  %368 = vst [vmem:[#allocation2 + $0x98] sm:$0xff] %v304_v46  ;;  %v486_v55 = vunpack.c.h.bf16 %v571_v43  ;;  %v489_v56 = vunpack.c.l.bf16 %v572_v44  ;;  %v490_v57 = vunpack.c.h.bf16 %v572_v44 }
  0x1d   :  { %369 = vst [vmem:[#allocation2 + $0xa0] sm:$0xff] %v305_v47  ;;  %370 = vst [vmem:[#allocation2 + $0xa8] sm:$0xff] %v306_v48  ;;  %v174_v58 = vmul.f32 %v481_v52, %v646_v1  ;;  %v175_v59 = vmul.f32 %v482_v53, %v646_v1  ;;  %v493_v60 = vunpack.c.l.bf16 %v573_v49  ;;  %v494_v61 = vunpack.c.h.bf16 %v573_v49  ;;  %v578_v48 = vld [vmem:[%s886_s0 + $0xa0] sm:$0xff]   ;;  %v579_v53 = vld [vmem:[%s886_s0 + $0xa8] sm:$0xff]  }
  0x1e   :  { %371 = vst [vmem:[#allocation2 + $0xb0] sm:$0xff] %v307_v50  ;;  %372 = vst [vmem:[#allocation2 + $0xb8] sm:$0xff] %v308_v51  ;;  %v176_v62 = vmul.f32 %v485_v54, %v646_v1  ;;  %v177_v63 = vmul.f32 %v486_v55, %v646_v1  ;;  %v178_v0 = vmul.f32 %v489_v56, %v646_v1  ;;  %v497_v26 = vunpack.c.l.bf16 %v574_v12  ;;  %v580_v54 = vld [vmem:[%s886_s0 + $0xb0] sm:$0xff]  }
  0x1f   :  { %v179_v2 = vmul.f32 %v490_v57, %v646_v1  ;;  %v245_v3 = vadd.f32 %v660_v7, %v174_v58  ;;  %v246_v4 = vadd.f32 %v660_v7, %v175_v59  ;;  %v180_v5 = vmul.f32 %v493_v60, %v646_v1  ;;  %v581_v59 = vld [vmem:[%s886_s0 + $0xb8] sm:$0xff]  }
  0x20   :  { %v181_v6 = vmul.f32 %v494_v61, %v646_v1  ;;  %v247_v8 = vadd.f32 %v660_v7, %v176_v62  ;;  %v248_v9 = vadd.f32 %v660_v7, %v177_v63  ;;  %v249_v10 = vadd.f32 %v660_v7, %v178_v0 }
  0x21   :  { %v250_v11 = vadd.f32 %v660_v7, %v179_v2  ;;  %v309_v13 = vmax.f32 %v245_v3, 0.0  ;;  %v310_v14 = vmax.f32 %v246_v4, 0.0  ;;  %v251_v15 = vadd.f32 %v660_v7, %v180_v5 }
  0x22   :  { %v252_v16 = vadd.f32 %v660_v7, %v181_v6  ;;  %v311_v19 = vmax.f32 %v247_v8, 0.0  ;;  %v312_v20 = vmax.f32 %v248_v9, 0.0  ;;  %v313_v21 = vmax.f32 %v249_v10, 0.0 }
  0x23   :  { %v314_v22 = vmax.f32 %v250_v11, 0.0  ;;  %373 = vst [vmem:[#allocation2 + $0xc0] sm:$0xff] %v309_v13  ;;  %374 = vst [vmem:[#allocation2 + $0xc8] sm:$0xff] %v310_v14  ;;  %v315_v24 = vmax.f32 %v251_v15, 0.0  ;;  %v498_v27 = vunpack.c.h.bf16 %v574_v12  ;;  %v501_v28 = vunpack.c.l.bf16 %v575_v17 }
  0x24   :  { %v316_v25 = vmax.f32 %v252_v16, 0.0  ;;  %375 = vst [vmem:[#allocation2 + $0xd0] sm:$0xff] %v311_v19  ;;  %376 = vst [vmem:[#allocation2 + $0xd8] sm:$0xff] %v312_v20  ;;  %v502_v29 = vunpack.c.h.bf16 %v575_v17  ;;  %v505_v30 = vunpack.c.l.bf16 %v576_v18  ;;  %v506_v31 = vunpack.c.h.bf16 %v576_v18 }
  0x25   :  { %377 = vst [vmem:[#allocation2 + $0xe0] sm:$0xff] %v313_v21  ;;  %378 = vst [vmem:[#allocation2 + $0xe8] sm:$0xff] %v314_v22  ;;  %v182_v32 = vmul.f32 %v497_v26, %v646_v1  ;;  %v183_v33 = vmul.f32 %v498_v27, %v646_v1  ;;  %v509_v34 = vunpack.c.l.bf16 %v577_v23  ;;  %v510_v35 = vunpack.c.h.bf16 %v577_v23  ;;  %v582_v22 = vld [vmem:[%s886_s0 + $0xc0] sm:$0xff]   ;;  %v583_v27 = vld [vmem:[%s886_s0 + $0xc8] sm:$0xff]  }
  0x26   :  { %379 = vst [vmem:[#allocation2 + $0xf0] sm:$0xff] %v315_v24  ;;  %380 = vst [vmem:[#allocation2 + $0xf8] sm:$0xff] %v316_v25  ;;  %v184_v36 = vmul.f32 %v501_v28, %v646_v1  ;;  %v185_v37 = vmul.f32 %v502_v29, %v646_v1  ;;  %v186_v38 = vmul.f32 %v505_v30, %v646_v1  ;;  %v513_v62 = vunpack.c.l.bf16 %v578_v48  ;;  %v584_v28 = vld [vmem:[%s886_s0 + $0xd0] sm:$0xff]  }
  0x27   :  { %v187_v39 = vmul.f32 %v506_v31, %v646_v1  ;;  %v253_v40 = vadd.f32 %v660_v7, %v182_v32  ;;  %v254_v41 = vadd.f32 %v660_v7, %v183_v33  ;;  %v188_v42 = vmul.f32 %v509_v34, %v646_v1  ;;  %v585_v33 = vld [vmem:[%s886_s0 + $0xd8] sm:$0xff]  }
  0x28   :  { %v189_v43 = vmul.f32 %v510_v35, %v646_v1  ;;  %v255_v44 = vadd.f32 %v660_v7, %v184_v36  ;;  %v256_v45 = vadd.f32 %v660_v7, %v185_v37  ;;  %v257_v46 = vadd.f32 %v660_v7, %v186_v38 }
  0x29   :  { %v258_v47 = vadd.f32 %v660_v7, %v187_v39  ;;  %v317_v49 = vmax.f32 %v253_v40, 0.0  ;;  %v318_v50 = vmax.f32 %v254_v41, 0.0  ;;  %v259_v51 = vadd.f32 %v660_v7, %v188_v42 }
  0x2a   :  { %v260_v52 = vadd.f32 %v660_v7, %v189_v43  ;;  %v319_v55 = vmax.f32 %v255_v44, 0.0  ;;  %v320_v56 = vmax.f32 %v256_v45, 0.0  ;;  %v321_v57 = vmax.f32 %v257_v46, 0.0 }
  0x2b   :  { %v322_v58 = vmax.f32 %v258_v47, 0.0  ;;  %381 = vst [vmem:[#allocation2 + $0x100] sm:$0xff] %v317_v49  ;;  %382 = vst [vmem:[#allocation2 + $0x108] sm:$0xff] %v318_v50  ;;  %v323_v60 = vmax.f32 %v259_v51, 0.0  ;;  %v514_v63 = vunpack.c.h.bf16 %v578_v48  ;;  %v517_v0 = vunpack.c.l.bf16 %v579_v53 }
  0x2c   :  { %v324_v61 = vmax.f32 %v260_v52, 0.0  ;;  %383 = vst [vmem:[#allocation2 + $0x110] sm:$0xff] %v319_v55  ;;  %384 = vst [vmem:[#allocation2 + $0x118] sm:$0xff] %v320_v56  ;;  %v518_v2 = vunpack.c.h.bf16 %v579_v53  ;;  %v521_v3 = vunpack.c.l.bf16 %v580_v54  ;;  %v522_v4 = vunpack.c.h.bf16 %v580_v54 }
  0x2d   :  { %385 = vst [vmem:[#allocation2 + $0x120] sm:$0xff] %v321_v57  ;;  %386 = vst [vmem:[#allocation2 + $0x128] sm:$0xff] %v322_v58  ;;  %v190_v5 = vmul.f32 %v513_v62, %v646_v1  ;;  %v191_v6 = vmul.f32 %v514_v63, %v646_v1  ;;  %v525_v8 = vunpack.c.l.bf16 %v581_v59  ;;  %v526_v9 = vunpack.c.h.bf16 %v581_v59  ;;  %v586_v58 = vld [vmem:[%s886_s0 + $0xe0] sm:$0xff]   ;;  %v587_v63 = vld [vmem:[%s886_s0 + $0xe8] sm:$0xff]  }
  0x2e   :  { %387 = vst [vmem:[#allocation2 + $0x130] sm:$0xff] %v323_v60  ;;  %388 = vst [vmem:[#allocation2 + $0x138] sm:$0xff] %v324_v61  ;;  %v192_v10 = vmul.f32 %v517_v0, %v646_v1  ;;  %v193_v11 = vmul.f32 %v518_v2, %v646_v1  ;;  %v194_v12 = vmul.f32 %v521_v3, %v646_v1  ;;  %v529_v36 = vunpack.c.l.bf16 %v582_v22  ;;  %v588_v0 = vld [vmem:[%s886_s0 + $0xf0] sm:$0xff]  }
  0x2f   :  { %v195_v13 = vmul.f32 %v522_v4, %v646_v1  ;;  %v261_v14 = vadd.f32 %v660_v7, %v190_v5  ;;  %v262_v15 = vadd.f32 %v660_v7, %v191_v6  ;;  %v196_v16 = vmul.f32 %v525_v8, %v646_v1  ;;  %v589_v6 = vld [vmem:[%s886_s0 + $0xf8] sm:$0xff]   ;;  %s617_s0 = smov [#allocation2]  }
  0x30   :  { %v197_v17 = vmul.f32 %v526_v9, %v646_v1  ;;  %v263_v18 = vadd.f32 %v660_v7, %v192_v10  ;;  %v264_v19 = vadd.f32 %v660_v7, %v193_v11  ;;  %v265_v20 = vadd.f32 %v660_v7, %v194_v12  ;;  %s418_s22 = sshll.u32 %s617_s0, 4  ;;  %s419_s22 = int_to_ptr.vmem [resolvable:$true] %s418_s22 }
  0x31   :  { %v266_v21 = vadd.f32 %v660_v7, %v195_v13  ;;  %v325_v23 = vmax.f32 %v261_v14, 0.0  ;;  %v326_v24 = vmax.f32 %v262_v15, 0.0  ;;  %v267_v25 = vadd.f32 %v660_v7, %v196_v16  ;;  %s593_s23 = scalar_lea.vmem %s419_s22, 8192  ;;  %p598_p1 = scmp.lt.s32.totalorder %s419_s22, %s419_s22 }
  0x32   :  { %v268_v26 = vadd.f32 %v660_v7, %v197_v17  ;;  %v327_v29 = vmax.f32 %v263_v18, 0.0  ;;  %v328_v30 = vmax.f32 %v264_v19, 0.0  ;;  %v329_v31 = vmax.f32 %v265_v20, 0.0  ;;  %p594_p0 = scmp.ne.s32.totalorder %s419_s22, %s593_s23  ;;  %p599_p2 = scmp.lt.s32.totalorder %s593_s23, %s593_s23 }
  0x33   :  { %v330_v32 = vmax.f32 %v266_v21, 0.0  ;;  %389 = vst [vmem:[#allocation2 + $0x140] sm:$0xff] %v325_v23  ;;  %390 = vst [vmem:[#allocation2 + $0x148] sm:$0xff] %v326_v24  ;;  %v331_v34 = vmax.f32 %v267_v25, 0.0  ;;  %v530_v37 = vunpack.c.h.bf16 %v582_v22  ;;  %v533_v38 = vunpack.c.l.bf16 %v583_v27 }
  0x34   :  { %v332_v35 = vmax.f32 %v268_v26, 0.0  ;;  %391 = vst [vmem:[#allocation2 + $0x150] sm:$0xff] %v327_v29  ;;  %392 = vst [vmem:[#allocation2 + $0x158] sm:$0xff] %v328_v30  ;;  %v534_v39 = vunpack.c.h.bf16 %v583_v27  ;;  %v537_v40 = vunpack.c.l.bf16 %v584_v28  ;;  %v538_v41 = vunpack.c.h.bf16 %v584_v28  ;;  %p600_p3 = por %p599_p2, %p598_p1 }
  0x35   :  { %393 = vst [vmem:[#allocation2 + $0x160] sm:$0xff] %v329_v31  ;;  %394 = vst [vmem:[#allocation2 + $0x168] sm:$0xff] %v330_v32  ;;  %v198_v42 = vmul.f32 %v529_v36, %v646_v1  ;;  %v199_v43 = vmul.f32 %v530_v37, %v646_v1  ;;  %v541_v44 = vunpack.c.l.bf16 %v585_v33  ;;  %v542_v45 = vunpack.c.h.bf16 %v585_v33 }
  0x36   :  { %395 = vst [vmem:[#allocation2 + $0x170] sm:$0xff] %v331_v34  ;;  %396 = vst [vmem:[#allocation2 + $0x178] sm:$0xff] %v332_v35  ;;  %v200_v46 = vmul.f32 %v533_v38, %v646_v1  ;;  %v201_v47 = vmul.f32 %v534_v39, %v646_v1  ;;  %v202_v48 = vmul.f32 %v537_v40, %v646_v1  ;;  %v545_v10 = vunpack.c.l.bf16 %v586_v58  ;;  %p601_p4 = pnand %p600_p3, %p594_p0 }
  0x37   :  { %v203_v49 = vmul.f32 %v538_v41, %v646_v1  ;;  %v269_v50 = vadd.f32 %v660_v7, %v198_v42  ;;  %v270_v51 = vadd.f32 %v660_v7, %v199_v43  ;;  %v204_v52 = vmul.f32 %v541_v44, %v646_v1 }
  0x38   :  { %v205_v53 = vmul.f32 %v542_v45, %v646_v1  ;;  %v271_v54 = vadd.f32 %v660_v7, %v200_v46  ;;  %v272_v55 = vadd.f32 %v660_v7, %v201_v47  ;;  %v273_v56 = vadd.f32 %v660_v7, %v202_v48 }
  0x39   :  { %v274_v57 = vadd.f32 %v660_v7, %v203_v49  ;;  %v333_v59 = vmax.f32 %v269_v50, 0.0  ;;  %v334_v60 = vmax.f32 %v270_v51, 0.0  ;;  %v275_v61 = vadd.f32 %v660_v7, %v204_v52 }
  0x3a   :  { %v276_v62 = vadd.f32 %v660_v7, %v205_v53  ;;  %v335_v2 = vmax.f32 %v271_v54, 0.0  ;;  %v336_v3 = vmax.f32 %v272_v55, 0.0  ;;  %v337_v4 = vmax.f32 %v273_v56, 0.0 }
  0x3b   :  { %v338_v5 = vmax.f32 %v274_v57, 0.0  ;;  %397 = vst [vmem:[#allocation2 + $0x180] sm:$0xff] %v333_v59  ;;  %398 = vst [vmem:[#allocation2 + $0x188] sm:$0xff] %v334_v60  ;;  %v339_v8 = vmax.f32 %v275_v61, 0.0  ;;  %v546_v11 = vunpack.c.h.bf16 %v586_v58  ;;  %v549_v12 = vunpack.c.l.bf16 %v587_v63 }
  0x3c   :  { %v340_v9 = vmax.f32 %v276_v62, 0.0  ;;  %399 = vst [vmem:[#allocation2 + $0x190] sm:$0xff] %v335_v2  ;;  %400 = vst [vmem:[#allocation2 + $0x198] sm:$0xff] %v336_v3  ;;  %v550_v13 = vunpack.c.h.bf16 %v587_v63  ;;  %v553_v14 = vunpack.c.l.bf16 %v588_v0  ;;  %v554_v15 = vunpack.c.h.bf16 %v588_v0 }
  0x3d   :  { %401 = vst [vmem:[#allocation2 + $0x1a0] sm:$0xff] %v337_v4  ;;  %402 = vst [vmem:[#allocation2 + $0x1a8] sm:$0xff] %v338_v5  ;;  %v206_v16 = vmul.f32 %v545_v10, %v646_v1  ;;  %v207_v17 = vmul.f32 %v546_v11, %v646_v1  ;;  %v557_v18 = vunpack.c.l.bf16 %v589_v6  ;;  %v558_v19 = vunpack.c.h.bf16 %v589_v6 }
  0x3e   :  { %403 = vst [vmem:[#allocation2 + $0x1b0] sm:$0xff] %v339_v8  ;;  %404 = vst [vmem:[#allocation2 + $0x1b8] sm:$0xff] %v340_v9  ;;  %v208_v20 = vmul.f32 %v549_v12, %v646_v1  ;;  %v209_v21 = vmul.f32 %v550_v13, %v646_v1  ;;  %v210_v22 = vmul.f32 %v553_v14, %v646_v1 }
  0x3f   :  { %v211_v23 = vmul.f32 %v554_v15, %v646_v1  ;;  %v277_v24 = vadd.f32 %v660_v7, %v206_v16  ;;  %v278_v25 = vadd.f32 %v660_v7, %v207_v17  ;;  %v212_v26 = vmul.f32 %v557_v18, %v646_v1 }
  0x40   :  { %v213_v27 = vmul.f32 %v558_v19, %v646_v1  ;;  %v279_v28 = vadd.f32 %v660_v7, %v208_v20  ;;  %v280_v29 = vadd.f32 %v660_v7, %v209_v21  ;;  %v281_v30 = vadd.f32 %v660_v7, %v210_v22 }
  0x41   :  { %v282_v31 = vadd.f32 %v660_v7, %v211_v23  ;;  %v341_v32 = vmax.f32 %v277_v24, 0.0  ;;  %v342_v33 = vmax.f32 %v278_v25, 0.0  ;;  %v283_v34 = vadd.f32 %v660_v7, %v212_v26 }
  0x42   :  { %v284_v35 = vadd.f32 %v660_v7, %v213_v27  ;;  %v343_v36 = vmax.f32 %v279_v28, 0.0  ;;  %v344_v37 = vmax.f32 %v280_v29, 0.0  ;;  %v345_v38 = vmax.f32 %v281_v30, 0.0 }
  0x43   :  { %v346_v1 = vmax.f32 %v282_v31, 0.0  ;;  %405 = vst [vmem:[#allocation2 + $0x1c0] sm:$0xff] %v341_v32  ;;  %406 = vst [vmem:[#allocation2 + $0x1c8] sm:$0xff] %v342_v33  ;;  %v347_v39 = vmax.f32 %v283_v34, 0.0 }
  0x44   :  { %v348_v40 = vmax.f32 %v284_v35, 0.0  ;;  %407 = vst [vmem:[#allocation2 + $0x1d0] sm:$0xff] %v343_v36  ;;  %408 = vst [vmem:[#allocation2 + $0x1d8] sm:$0xff] %v344_v37 }
  0x45   :  { %409 = vst [vmem:[#allocation2 + $0x1e0] sm:$0xff] %v345_v38  ;;  %410 = vst [vmem:[#allocation2 + $0x1e8] sm:$0xff] %v346_v1 }
  0x46   :  { %411 = vst [vmem:[#allocation2 + $0x1f0] sm:$0xff] %v347_v39  ;;  %412 = vst [vmem:[#allocation2 + $0x1f8] sm:$0xff] %v348_v40 }
  0x47   :  { %604 = shalt.err (!%p601_p4)
}
  0x48   :  { %s605_s24 = scalar_lea.hbm %s889_s3, 8192 }
  0x49   :  { %p606_p5 = scmp.ne.s32.totalorder %s889_s3, %s605_s24  ;;  %p609_p6 = scmp.lt.u32.totalorder %s605_s24, %s889_s3 }
  0x4b   :  { %p611_p7 = pnand %p609_p6, %p606_p5 }
  0x4d   :  { %614 = shalt.err (!%p611_p7)
}
  0x4e   :  { %s618_s29 = smov 128   ;;  %s619_s30 = smov 8  }
  0x4f   :  { %424 = dma.vmem_to_hbm [thread:$0]  %s419_s22, 8192, %s889_s3, [#allocation3], %s618_s29, %s618_s29, %s619_s30  }
  0x50   :  { %615 = dma.done.wait [#allocation3], 8192  }
  0x51   :  { %616 = vsyncadd [#allocation3], 4294959104 }
  0x52   :  { %428 = vsyncpa [#allocation3], 1 }

// kernel: psp_forward.6
= control target key start
LH: loop header
LB: loop body
LE: loop exit
PB: predicated region body
PF: predicated region fallthrough
CT: control target
= control target key end

     0   :  { %s10770_s18 = smov 0   ;;  %s10772_s19 = smov 0   ;;  %s14429_s0 = inlined_call_operand.vmem [shape: bf16[2,18,16,512], index: 0, kind: input, shape index: {}]   ;;  %s14430_s1 = inlined_call_operand.vmem [shape: bf16[2,18,16,128], index: 1, kind: input, shape index: {}]   ;;  %s14431_s2 = inlined_call_operand.vmem [shape: bf16[3,1920,128], index: 2, kind: input, shape index: {}]   ;;  %s14432_s3 = inlined_call_operand.vmem [shape: bf16[2,256,128], index: 3, kind: output, shape index: {0}]   ;;  %s14433_s4 = inlined_call_operand.vmem [shape: f32[2,1,128], index: 4, kind: output, shape index: {1}]   ;;  %s14434_s5 = inlined_call_operand.vmem [shape: f32[2,1,128], index: 5, kind: output, shape index: {2}]  }
   0x1   :  { %s10774_s20 = smov 0   ;;  %s10776_s21 = smov 0  }
   0x2   :  { %s10778_s22 = smov 0  }
   0x3 LB: > { %s25_s23 = sadd.s32 1, %s10729_s20  ;;  %s28_s24 = sadd.s32 1, %s10733_s21  ;;  %s10737_s22 = sphi %s10778_s22, %s16_s22   ;;  %s10733_s21 = sphi %s10776_s21, %s14924_s21   ;;  %s10729_s20 = sphi %s10774_s20, %s14923_s20   ;;  %s10725_s19 = sphi %s10772_s19, %s14922_s19   ;;  %s10721_s18 = sphi %s10770_s18, %s14921_s18  }
   0x4   : > { %p26_p0 = scmp.ge.s32.totalorder %s25_s23, 2  ;;  %p7413_p1 = scmp.ge.s32.totalorder %s10737_s22, 1 }
   0x5   : > { %p148_p2 = scmp.lt.s32.totalorder %s10737_s22, 5 }
   0x6   : > { %s14926_s23 = smov (%p26_p0, %s25_s23), 0  ;;  %s14928_s24 = smov (!%p26_p0, %s28_s24), %s10733_s21 }
   0x7   : > { %p149_p3 = pnand %p7413_p1, %p148_p2  ;;  %p30_p4 = scmp.ge.s32.totalorder %s14928_s24, 2 }
   0x9   : > { %s14930_s24 = smov (%p30_p4, %s14928_s24), 0  ;;  %152 = sbr.rel (%p149_p3) target bundleno = 1170 (0x492), region = 24 }
  0x10   : > { %s10805_s25 = sshll.u32 %s10721_s18, 4  ;;  %p178_p5 = scmp.lt.s32.totalorder %s10725_s19, 1 }
  0x11   : > { %p180_p6 = scmp.lt.s32.totalorder %s10805_s25, 31  ;;  %s10810_s26 = sand.u32 1, %s10721_s18 }
  0x12   : > { %s179_s27 = scalar_select %p178_p5, %s10725_s19, 1 }
  0x13   : > { %s181_s28 = scalar_select %p180_p6, %s10805_s25, 31 }
  0x14   : > { %s7415_s29 = sshll.u32 %s179_s27, 5  ;;  %s10817_s7 = scalar_lea.vmem %s14433_s4, %s179_s27 }
  0x15   : > { %s183_s8 = sadd.s32 %s7415_s29, %s181_s28  ;;  %s10822_s11 = scalar_lea.vmem %s14434_s5, %s179_s27 }
  0x16   : > { %s7416_s12 = sshll.u32 %s183_s8, 2  ;;  %p7417_p7 = scmp.ne.s32.totalorder %s10721_s18, 0 }
  0x17   : > { %s10827_s15 = scalar_lea.vmem %s14432_s3, %s7416_s12  ;;  %s8463_s16 = smul.u32 (!%p7417_p7), 576, %s10725_s19 }
  0x18   : > { %198 = sbr.rel (%p7417_p7) target bundleno = 81 (0x51), region = 28 }
  0x19   : > { %s10836_s29 = scalar_lea.vmem (!%p7417_p7), %s14429_s0, %s8463_s16 }
  0x1a   : > { %v219_v0 = vld [vmem:[%s10836_s29] sm:$0xf] (!%p7417_p7)  ;;  %v221_v1 = vld [vmem:[%s10836_s29 + $0x10] sm:$0xf] (!%p7417_p7)  ;;  %v223_v2 = vld [vmem:[%s10836_s29 + $0x4] sm:$0xf] (!%p7417_p7) }
  0x1b   : > { %220 = vst [vmem:[#allocation2] sm:$0xf] (!%p7417_p7), %v219_v0  ;;  %222 = vst [vmem:[#allocation2 + $0x4] sm:$0xf] (!%p7417_p7), %v221_v1  ;;  %v225_v3 = vld [vmem:[%s10836_s29 + $0x14] sm:$0xf] (!%p7417_p7) }
  0x1c   : > { %224 = vst [vmem:[#allocation2 + $0x8] sm:$0xf] (!%p7417_p7), %v223_v2  ;;  %v227_v4 = vld [vmem:[%s10836_s29 + $0x8] sm:$0xf] (!%p7417_p7)  ;;  %v229_v5 = vld [vmem:[%s10836_s29 + $0x18] sm:$0xf] (!%p7417_p7) }
  0x1d   : > { %226 = vst [vmem:[#allocation2 + $0xc] sm:$0xf] (!%p7417_p7), %v225_v3  ;;  %228 = vst [vmem:[#allocation2 + $0x10] sm:$0xf] (!%p7417_p7), %v227_v4  ;;  %v231_v6 = vld [vmem:[%s10836_s29 + $0xc] sm:$0xf] (!%p7417_p7) }
  0x1e   : > { %230 = vst [vmem:[#allocation2 + $0x14] sm:$0xf] (!%p7417_p7), %v229_v5  ;;  %v233_v7 = vld [vmem:[%s10836_s29 + $0x1c] sm:$0xff] (!%p7417_p7)   ;;  %v237_v8 = vld [vmem:[%s10836_s29 + $0x30] sm:$0xf] (!%p7417_p7) }
  0x1f   : > { %232 = vst [vmem:[#allocation2 + $0x18] sm:$0xf] %v231_v6  ;;  %234 = vst [vmem:[#allocation2 + $0x1c] sm:$0xff] %v233_v7   ;;  %v239_v9 = vld [vmem:[%s10836_s29 + $0x24] sm:$0xf]  ;;  %v249_v14 = vld [vmem:[%s10836_s29 + $0x3c] sm:$0xff]  }
  0x20   : > { %238 = vst [vmem:[#allocation2 + $0x24] sm:$0xf] %v237_v8  ;;  %v241_v10 = vld [vmem:[%s10836_s29 + $0x34] sm:$0xf]  ;;  %v243_v11 = vld [vmem:[%s10836_s29 + $0x28] sm:$0xf] }
  0x21   : > { %240 = vst [vmem:[#allocation2 + $0x28] sm:$0xf] %v239_v9  ;;  %242 = vst [vmem:[#allocation2 + $0x2c] sm:$0xf] %v241_v10  ;;  %v245_v12 = vld [vmem:[%s10836_s29 + $0x38] sm:$0xf] }
  0x22   : > { %244 = vst [vmem:[#allocation2 + $0x30] sm:$0xf] %v243_v11  ;;  %v247_v13 = vld [vmem:[%s10836_s29 + $0x2c] sm:$0xf]  ;;  %246 = vst [vmem:[#allocation2 + $0x34] sm:$0xf] %v245_v12 }
  0x23   : > { %248 = vst [vmem:[#allocation2 + $0x38] sm:$0xf] %v247_v13  ;;  %250 = vst [vmem:[#allocation2 + $0x3c] sm:$0xff] %v249_v14   ;;  %v253_v15 = vld [vmem:[%s10836_s29 + $0x50] sm:$0xf]  ;;  %v265_v21 = vld [vmem:[%s10836_s29 + $0x5c] sm:$0xff]  }
  0x24   : > { %v255_v16 = vld [vmem:[%s10836_s29 + $0x44] sm:$0xf]  ;;  %v257_v17 = vld [vmem:[%s10836_s29 + $0x54] sm:$0xf]  ;;  %254 = vst [vmem:[#allocation2 + $0x44] sm:$0xf] %v253_v15 }
  0x25   : > { %256 = vst [vmem:[#allocation2 + $0x48] sm:$0xf] %v255_v16  ;;  %258 = vst [vmem:[#allocation2 + $0x4c] sm:$0xf] %v257_v17  ;;  %v259_v18 = vld [vmem:[%s10836_s29 + $0x48] sm:$0xf] }
  0x26   : > { %v261_v19 = vld [vmem:[%s10836_s29 + $0x58] sm:$0xf]  ;;  %v263_v20 = vld [vmem:[%s10836_s29 + $0x4c] sm:$0xf]  ;;  %260 = vst [vmem:[#allocation2 + $0x50] sm:$0xf] %v259_v18 }
  0x27   : > { %262 = vst [vmem:[#allocation2 + $0x54] sm:$0xf] %v261_v19  ;;  %264 = vst [vmem:[#allocation2 + $0x58] sm:$0xf] %v263_v20  ;;  %v269_v22 = vld [vmem:[%s10836_s29 + $0x70] sm:$0xf] }
  0x28   : > { %v271_v23 = vld [vmem:[%s10836_s29 + $0x64] sm:$0xf]  ;;  %266 = vst [vmem:[#allocation2 + $0x5c] sm:$0xff] %v265_v21   ;;  %270 = vst [vmem:[#allocation2 + $0x64] sm:$0xf] %v269_v22  ;;  %v281_v28 = vld [vmem:[%s10836_s29 + $0x7c] sm:$0xff]  }
  0x29   : > { %272 = vst [vmem:[#allocation2 + $0x68] sm:$0xf] %v271_v23  ;;  %v273_v24 = vld [vmem:[%s10836_s29 + $0x74] sm:$0xf]  ;;  %v275_v25 = vld [vmem:[%s10836_s29 + $0x68] sm:$0xf] }
  0x2a   : > { %v277_v26 = vld [vmem:[%s10836_s29 + $0x78] sm:$0xf]  ;;  %274 = vst [vmem:[#allocation2 + $0x6c] sm:$0xf] %v273_v24  ;;  %276 = vst [vmem:[#allocation2 + $0x70] sm:$0xf] %v275_v25 }
  0x2b   : > { %278 = vst [vmem:[#allocation2 + $0x74] sm:$0xf] %v277_v26  ;;  %v279_v27 = vld [vmem:[%s10836_s29 + $0x6c] sm:$0xf]  ;;  %v285_v29 = vld [vmem:[%s10836_s29 + $0x90] sm:$0xf] }
  0x2c   : > { %280 = vst [vmem:[#allocation2 + $0x78] sm:$0xf] %v279_v27  ;;  %282 = vst [vmem:[#allocation2 + $0x7c] sm:$0xff] %v281_v28   ;;  %v287_v30 = vld [vmem:[%s10836_s29 + $0x84] sm:$0xf]  ;;  %v297_v35 = vld [vmem:[%s10836_s29 + $0x9c] sm:$0xff]  }
  0x2d   : > { %286 = vst [vmem:[#allocation2 + $0x84] sm:$0xf] %v285_v29  ;;  %v289_v31 = vld [vmem:[%s10836_s29 + $0x94] sm:$0xf]  ;;  %v291_v32 = vld [vmem:[%s10836_s29 + $0x88] sm:$0xf] }
  0x2e   : > { %288 = vst [vmem:[#allocation2 + $0x88] sm:$0xf] %v287_v30  ;;  %290 = vst [vmem:[#allocation2 + $0x8c] sm:$0xf] %v289_v31  ;;  %v293_v33 = vld [vmem:[%s10836_s29 + $0x98] sm:$0xf] }
  0x2f   : > { %292 = vst [vmem:[#allocation2 + $0x90] sm:$0xf] %v291_v32  ;;  %v295_v34 = vld [vmem:[%s10836_s29 + $0x8c] sm:$0xf]  ;;  %294 = vst [vmem:[#allocation2 + $0x94] sm:$0xf] %v293_v33 }
  0x30   : > { %296 = vst [vmem:[#allocation2 + $0x98] sm:$0xf] %v295_v34  ;;  %298 = vst [vmem:[#allocation2 + $0x9c] sm:$0xff] %v297_v35   ;;  %v301_v36 = vld [vmem:[%s10836_s29 + $0xb0] sm:$0xf]  ;;  %v313_v42 = vld [vmem:[%s10836_s29 + $0xbc] sm:$0xff]  }
  0x31   : > { %v303_v37 = vld [vmem:[%s10836_s29 + $0xa4] sm:$0xf]  ;;  %v305_v38 = vld [vmem:[%s10836_s29 + $0xb4] sm:$0xf]  ;;  %302 = vst [vmem:[#allocation2 + $0xa4] sm:$0xf] %v301_v36 }
  0x32   : > { %304 = vst [vmem:[#allocation2 + $0xa8] sm:$0xf] %v303_v37  ;;  %306 = vst [vmem:[#allocation2 + $0xac] sm:$0xf] %v305_v38  ;;  %v307_v39 = vld [vmem:[%s10836_s29 + $0xa8] sm:$0xf] }
  0x33   : > { %v309_v40 = vld [vmem:[%s10836_s29 + $0xb8] sm:$0xf]  ;;  %v311_v41 = vld [vmem:[%s10836_s29 + $0xac] sm:$0xf]  ;;  %308 = vst [vmem:[#allocation2 + $0xb0] sm:$0xf] %v307_v39 }
  0x34   : > { %310 = vst [vmem:[#allocation2 + $0xb4] sm:$0xf] %v309_v40  ;;  %312 = vst [vmem:[#allocation2 + $0xb8] sm:$0xf] %v311_v41  ;;  %v317_v43 = vld [vmem:[%s10836_s29 + $0xd0] sm:$0xf] }
  0x35   : > { %v319_v44 = vld [vmem:[%s10836_s29 + $0xc4] sm:$0xf]  ;;  %314 = vst [vmem:[#allocation2 + $0xbc] sm:$0xff] %v313_v42   ;;  %318 = vst [vmem:[#allocation2 + $0xc4] sm:$0xf] %v317_v43  ;;  %v329_v49 = vld [vmem:[%s10836_s29 + $0xdc] sm:$0xff]  }
  0x36   : > { %320 = vst [vmem:[#allocation2 + $0xc8] sm:$0xf] %v319_v44  ;;  %v321_v45 = vld [vmem:[%s10836_s29 + $0xd4] sm:$0xf]  ;;  %v323_v46 = vld [vmem:[%s10836_s29 + $0xc8] sm:$0xf] }
  0x37   : > { %v325_v47 = vld [vmem:[%s10836_s29 + $0xd8] sm:$0xf]  ;;  %322 = vst [vmem:[#allocation2 + $0xcc] sm:$0xf] %v321_v45  ;;  %324 = vst [vmem:[#allocation2 + $0xd0] sm:$0xf] %v323_v46 }
  0x38   : > { %326 = vst [vmem:[#allocation2 + $0xd4] sm:$0xf] %v325_v47  ;;  %v327_v48 = vld [vmem:[%s10836_s29 + $0xcc] sm:$0xf]  ;;  %v333_v50 = vld [vmem:[%s10836_s29 + $0xf0] sm:$0xf] }
  0x39   : > { %328 = vst [vmem:[#allocation2 + $0xd8] sm:$0xf] %v327_v48  ;;  %330 = vst [vmem:[#allocation2 + $0xdc] sm:$0xff] %v329_v49   ;;  %v335_v51 = vld [vmem:[%s10836_s29 + $0xe4] sm:$0xf]  ;;  %v345_v56 = vld [vmem:[%s10836_s29 + $0xfc] sm:$0xff]  }
  0x3a   : > { %334 = vst [vmem:[#allocation2 + $0xe4] sm:$0xf] %v333_v50  ;;  %v337_v52 = vld [vmem:[%s10836_s29 + $0xf4] sm:$0xf]  ;;  %v339_v53 = vld [vmem:[%s10836_s29 + $0xe8] sm:$0xf] }
  0x3b   : > { %336 = vst [vmem:[#allocation2 + $0xe8] sm:$0xf] %v335_v51  ;;  %338 = vst [vmem:[#allocation2 + $0xec] sm:$0xf] %v337_v52  ;;  %v341_v54 = vld [vmem:[%s10836_s29 + $0xf8] sm:$0xf] }
  0x3c   : > { %340 = vst [vmem:[#allocation2 + $0xf0] sm:$0xf] %v339_v53  ;;  %v343_v55 = vld [vmem:[%s10836_s29 + $0xec] sm:$0xf]  ;;  %342 = vst [vmem:[#allocation2 + $0xf4] sm:$0xf] %v341_v54 }
  0x3d   : > { %344 = vst [vmem:[#allocation2 + $0xf8] sm:$0xf] %v343_v55  ;;  %346 = vst [vmem:[#allocation2 + $0xfc] sm:$0xff] %v345_v56   ;;  %v349_v57 = vld [vmem:[%s10836_s29 + $0x110] sm:$0xf]  ;;  %v361_v63 = vld [vmem:[%s10836_s29 + $0x11c] sm:$0xff]  }
  0x3e   : > { %v351_v58 = vld [vmem:[%s10836_s29 + $0x104] sm:$0xf]  ;;  %v353_v59 = vld [vmem:[%s10836_s29 + $0x114] sm:$0xf]  ;;  %350 = vst [vmem:[#allocation2 + $0x104] sm:$0xf] %v349_v57 }
  0x3f   : > { %352 = vst [vmem:[#allocation2 + $0x108] sm:$0xf] %v351_v58  ;;  %354 = vst [vmem:[#allocation2 + $0x10c] sm:$0xf] %v353_v59  ;;  %v355_v60 = vld [vmem:[%s10836_s29 + $0x108] sm:$0xf] }
  0x40   : > { %v357_v61 = vld [vmem:[%s10836_s29 + $0x118] sm:$0xf]  ;;  %v359_v62 = vld [vmem:[%s10836_s29 + $0x10c] sm:$0xf]  ;;  %356 = vst [vmem:[#allocation2 + $0x110] sm:$0xf] %v355_v60 }
  0x41   : > { %358 = vst [vmem:[#allocation2 + $0x114] sm:$0xf] %v357_v61  ;;  %360 = vst [vmem:[#allocation2 + $0x118] sm:$0xf] %v359_v62  ;;  %v365_v0 = vld [vmem:[%s10836_s29 + $0x130] sm:$0xf] }
  0x42   : > { %v367_v1 = vld [vmem:[%s10836_s29 + $0x124] sm:$0xf]  ;;  %362 = vst [vmem:[#allocation2 + $0x11c] sm:$0xff] %v361_v63   ;;  %366 = vst [vmem:[#allocation2 + $0x124] sm:$0xf] %v365_v0 }
  0x43   : > { %368 = vst [vmem:[#allocation2 + $0x128] sm:$0xf] %v367_v1  ;;  %v369_v2 = vld [vmem:[%s10836_s29 + $0x134] sm:$0xf]  ;;  %v371_v3 = vld [vmem:[%s10836_s29 + $0x128] sm:$0xf] }
  0x44   : > { %v373_v4 = vld [vmem:[%s10836_s29 + $0x138] sm:$0xf]  ;;  %370 = vst [vmem:[#allocation2 + $0x12c] sm:$0xf] %v369_v2  ;;  %372 = vst [vmem:[#allocation2 + $0x130] sm:$0xf] %v371_v3 }
  0x45   : > { %374 = vst [vmem:[#allocation2 + $0x134] sm:$0xf] %v373_v4  ;;  %v375_v5 = vld [vmem:[%s10836_s29 + $0x12c] sm:$0xf]  ;;  %v377_v6 = vld [vmem:[%s10836_s29 + $0x13c] sm:$0xf] }
  0x46   : > { %376 = vst [vmem:[#allocation2 + $0x138] sm:$0xf] %v375_v5  ;;  %378 = vst [vmem:[#allocation2 + $0x13c] sm:$0xf] %v377_v6 }
  0x47   : > { %569 = vsyncadd [#allocation4], 5120  ;;  %s8464_s27 = smul.u32 144, %s10725_s19 }
  0x49   : > { %s572_s8 = scalar_lea.vmem %s14430_s1, %s8464_s27 }
  0x4a   : > { %v606_v7 = vld [vmem:[%s572_s8] sm:$0xff]  ;;  %v608_v8 = vld [vmem:[%s572_s8 + $0x8] sm:$0xff]  ;;  %v610_v9 = vld [vmem:[%s572_s8 + $0x10] sm:$0xff] }
  0x4b   : > { %607 = vst [vmem:[#allocation3] sm:$0xff] %v606_v7  ;;  %609 = vst [vmem:[#allocation3 + $0x8] sm:$0xff] %v608_v8  ;;  %v612_v10 = vld [vmem:[%s572_s8 + $0x18] sm:$0xff]  ;;  %v614_v11 = vld [vmem:[%s572_s8 + $0x20] sm:$0xff] }
  0x4c   : > { %611 = vst [vmem:[#allocation3 + $0x10] sm:$0xff] %v610_v9  ;;  %v616_v12 = vld [vmem:[%s572_s8 + $0x28] sm:$0xff]  ;;  %613 = vst [vmem:[#allocation3 + $0x18] sm:$0xff] %v612_v10  ;;  %v618_v13 = vld [vmem:[%s572_s8 + $0x30] sm:$0xff] }
  0x4d   : > { %615 = vst [vmem:[#allocation3 + $0x20] sm:$0xff] %v614_v11  ;;  %617 = vst [vmem:[#allocation3 + $0x28] sm:$0xff] %v616_v12  ;;  %v620_v14 = vld [vmem:[%s572_s8 + $0x38] sm:$0xff]  ;;  %v622_v15 = vld [vmem:[%s572_s8 + $0x40] sm:$0xff] }
  0x4e   : > { %619 = vst [vmem:[#allocation3 + $0x30] sm:$0xff] %v618_v13  ;;  %621 = vst [vmem:[#allocation3 + $0x38] sm:$0xff] %v620_v14  ;;  %v624_v16 = vld [vmem:[%s572_s8 + $0x48] sm:$0xff] }
  0x4f   : > { %623 = vst [vmem:[#allocation3 + $0x40] sm:$0xff] %v622_v15  ;;  %625 = vst [vmem:[#allocation3 + $0x48] sm:$0xff] %v624_v16 }
  0x50   : > { %633 = vsyncadd [#allocation4 + $0x2], 1280 }
  0x51 PF: > { %s8465_s9 = smul.u32 320, %s10810_s26  ;;  %s637_s12 = scalar_lea.sflag [#allocation4], %s10810_s26 }
  0x53   : > { %s10914_s10 = scalar_lea.vmem [#allocation2], %s8465_s9 }
  0x54   : > { %10715 = dma.done.wait %s637_s12, 5120 }
  0x55   : > { %10716 = vsyncadd %s637_s12, 4294962176  ;;  %s8466_s13 = smul.u32 80, %s10810_s26  ;;  %s7291_s14 = scalar_lea.sflag %s637_s12, 2 [#allocation4] }
  0x57   : > { %s10918_s16 = scalar_lea.vmem [#allocation3], %s8466_s13 }
  0x58   : > { %10717 = dma.done.wait %s7291_s14, 1280 }
  0x59   : > { %10718 = vsyncadd %s7291_s14, 4294966016  ;;  %s651_s17 = sadd.s32 1, %s10721_s18 }
  0x5a   : > { %p7422_p8 = scmp.ge.s32.totalorder %s651_s17, 2 }
  0x5b   : > { %s10922_s28 = ssub.s32 (!%p7422_p8), 1, %s10810_s26  ;;  %s7423_s29 = sshll.u32 (!%p7422_p8), %s10721_s18, 6 }
  0x5c   : > { %655 = sbr.rel (%p7422_p8) target bundleno = 155 (0x9b), region = 103  ;;  %s666_s14 = scalar_lea.sflag (!%p7422_p8), [#allocation4], %s10922_s28 }
  0x5d   : > { %s7293_s27 = smul.u32 (!%p7422_p8), 144, %s10725_s19 }
  0x5e   : > { %s8467_s30 = smul.u32 (!%p7422_p8), 320, %s10922_s28 }
  0x5f   : > { %s7294_s6 = sadd.s32 (!%p7422_p8), %s7423_s29, %s7293_s27 }
  0x60   : > { %s7424_s8 = sshll.u32 (!%p7422_p8), %s7294_s6, 2  ;;  %s10935_s26 = scalar_lea.vmem (!%p7422_p8), [#allocation2], %s8467_s30 }
  0x61   : > { %s10930_s13 = scalar_lea.vmem (!%p7422_p8), %s14429_s0, %s7424_s8 }
  0x62   : > { %v7506_v17 = vld [vmem:[%s10930_s13 + $0x100] sm:$0xf] (!%p7422_p8)  ;;  %v7507_v18 = vld [vmem:[%s10930_s13 + $0x110] sm:$0xf] (!%p7422_p8)  ;;  %v7508_v19 = vld [vmem:[%s10930_s13 + $0x104] sm:$0xf] (!%p7422_p8) }
  0x63   : > { %685 = vst [vmem:[%s10935_s26] sm:$0xf] %v7506_v17  ;;  %687 = vst [vmem:[%s10935_s26 + $0x4] sm:$0xf] %v7507_v18  ;;  %v7509_v20 = vld [vmem:[%s10930_s13 + $0x114] sm:$0xf]  ;;  %v7513_v24 = vld [vmem:[%s10930_s13 + $0x11c] sm:$0xff]  }
  0x64   : > { %689 = vst [vmem:[%s10935_s26 + $0x8] sm:$0xf] %v7508_v19  ;;  %v7510_v21 = vld [vmem:[%s10930_s13 + $0x108] sm:$0xf]  ;;  %v7511_v22 = vld [vmem:[%s10930_s13 + $0x118] sm:$0xf] }
  0x65   : > { %691 = vst [vmem:[%s10935_s26 + $0xc] sm:$0xf] %v7509_v20  ;;  %693 = vst [vmem:[%s10935_s26 + $0x10] sm:$0xf] %v7510_v21  ;;  %v7512_v23 = vld [vmem:[%s10930_s13 + $0x10c] sm:$0xf] }
  0x66   : > { %695 = vst [vmem:[%s10935_s26 + $0x14] sm:$0xf] %v7511_v22  ;;  %v7515_v25 = vld [vmem:[%s10930_s13 + $0x130] sm:$0xf]  ;;  %697 = vst [vmem:[%s10935_s26 + $0x18] sm:$0xf] %v7512_v23 }
  0x67   : > { %699 = vst [vmem:[%s10935_s26 + $0x1c] sm:$0xff] %v7513_v24   ;;  %703 = vst [vmem:[%s10935_s26 + $0x24] sm:$0xf] %v7515_v25  ;;  %v7516_v26 = vld [vmem:[%s10930_s13 + $0x124] sm:$0xf]  ;;  %v7521_v31 = vld [vmem:[%s10930_s13 + $0x13c] sm:$0xff]  }
  0x68   : > { %v7517_v27 = vld [vmem:[%s10930_s13 + $0x134] sm:$0xf]  ;;  %v7518_v28 = vld [vmem:[%s10930_s13 + $0x128] sm:$0xf]  ;;  %705 = vst [vmem:[%s10935_s26 + $0x28] sm:$0xf] %v7516_v26 }
  0x69   : > { %707 = vst [vmem:[%s10935_s26 + $0x2c] sm:$0xf] %v7517_v27  ;;  %709 = vst [vmem:[%s10935_s26 + $0x30] sm:$0xf] %v7518_v28  ;;  %v7519_v29 = vld [vmem:[%s10930_s13 + $0x138] sm:$0xf] }
  0x6a   : > { %v7520_v30 = vld [vmem:[%s10930_s13 + $0x12c] sm:$0xf]  ;;  %711 = vst [vmem:[%s10935_s26 + $0x34] sm:$0xf] %v7519_v29  ;;  %715 = vst [vmem:[%s10935_s26 + $0x3c] sm:$0xff] %v7521_v31   ;;  %v7529_v38 = vld [vmem:[%s10930_s13 + $0x15c] sm:$0xff]  }
  0x6b   : > { %713 = vst [vmem:[%s10935_s26 + $0x38] sm:$0xf] %v7520_v30  ;;  %v7523_v32 = vld [vmem:[%s10930_s13 + $0x150] sm:$0xf]  ;;  %v7524_v33 = vld [vmem:[%s10930_s13 + $0x144] sm:$0xf] }
  0x6c   : > { %v7525_v34 = vld [vmem:[%s10930_s13 + $0x154] sm:$0xf]  ;;  %719 = vst [vmem:[%s10935_s26 + $0x44] sm:$0xf] %v7523_v32  ;;  %721 = vst [vmem:[%s10935_s26 + $0x48] sm:$0xf] %v7524_v33 }
  0x6d   : > { %723 = vst [vmem:[%s10935_s26 + $0x4c] sm:$0xf] %v7525_v34  ;;  %v7526_v35 = vld [vmem:[%s10930_s13 + $0x148] sm:$0xf]  ;;  %v7527_v36 = vld [vmem:[%s10930_s13 + $0x158] sm:$0xf] }
  0x6e   : > { %v7528_v37 = vld [vmem:[%s10930_s13 + $0x14c] sm:$0xf]  ;;  %725 = vst [vmem:[%s10935_s26 + $0x50] sm:$0xf] %v7526_v35  ;;  %727 = vst [vmem:[%s10935_s26 + $0x54] sm:$0xf] %v7527_v36 }
  0x6f   : > { %729 = vst [vmem:[%s10935_s26 + $0x58] sm:$0xf] %v7528_v37  ;;  %v7531_v39 = vld [vmem:[%s10930_s13 + $0x170] sm:$0xf]  ;;  %v7532_v40 = vld [vmem:[%s10930_s13 + $0x164] sm:$0xf] }
  0x70   : > { %731 = vst [vmem:[%s10935_s26 + $0x5c] sm:$0xff] %v7529_v38   ;;  %735 = vst [vmem:[%s10935_s26 + $0x64] sm:$0xf] %v7531_v39  ;;  %v7533_v41 = vld [vmem:[%s10930_s13 + $0x174] sm:$0xf]  ;;  %v7537_v45 = vld [vmem:[%s10930_s13 + $0x17c] sm:$0xff]  }
  0x71   : > { %737 = vst [vmem:[%s10935_s26 + $0x68] sm:$0xf] %v7532_v40  ;;  %v7534_v42 = vld [vmem:[%s10930_s13 + $0x168] sm:$0xf]  ;;  %v7535_v43 = vld [vmem:[%s10930_s13 + $0x178] sm:$0xf] }
  0x72   : > { %739 = vst [vmem:[%s10935_s26 + $0x6c] sm:$0xf] %v7533_v41  ;;  %741 = vst [vmem:[%s10935_s26 + $0x70] sm:$0xf] %v7534_v42  ;;  %v7536_v44 = vld [vmem:[%s10930_s13 + $0x16c] sm:$0xf] }
  0x73   : > { %743 = vst [vmem:[%s10935_s26 + $0x74] sm:$0xf] %v7535_v43  ;;  %v7539_v46 = vld [vmem:[%s10930_s13 + $0x190] sm:$0xf]  ;;  %745 = vst [vmem:[%s10935_s26 + $0x78] sm:$0xf] %v7536_v44 }
  0x74   : > { %747 = vst [vmem:[%s10935_s26 + $0x7c] sm:$0xff] %v7537_v45   ;;  %751 = vst [vmem:[%s10935_s26 + $0x84] sm:$0xf] %v7539_v46  ;;  %v7540_v47 = vld [vmem:[%s10930_s13 + $0x184] sm:$0xf]  ;;  %v7545_v52 = vld [vmem:[%s10930_s13 + $0x19c] sm:$0xff]  }
  0x75   : > { %v7541_v48 = vld [vmem:[%s10930_s13 + $0x194] sm:$0xf]  ;;  %v7542_v49 = vld [vmem:[%s10930_s13 + $0x188] sm:$0xf]  ;;  %753 = vst [vmem:[%s10935_s26 + $0x88] sm:$0xf] %v7540_v47 }
  0x76   : > { %755 = vst [vmem:[%s10935_s26 + $0x8c] sm:$0xf] %v7541_v48  ;;  %757 = vst [vmem:[%s10935_s26 + $0x90] sm:$0xf] %v7542_v49  ;;  %v7543_v50 = vld [vmem:[%s10930_s13 + $0x198] sm:$0xf] }
  0x77   : > { %v7544_v51 = vld [vmem:[%s10930_s13 + $0x18c] sm:$0xf]  ;;  %759 = vst [vmem:[%s10935_s26 + $0x94] sm:$0xf] %v7543_v50  ;;  %763 = vst [vmem:[%s10935_s26 + $0x9c] sm:$0xff] %v7545_v52   ;;  %v7553_v59 = vld [vmem:[%s10930_s13 + $0x1bc] sm:$0xff]  }
  0x78   : > { %761 = vst [vmem:[%s10935_s26 + $0x98] sm:$0xf] %v7544_v51  ;;  %v7547_v53 = vld [vmem:[%s10930_s13 + $0x1b0] sm:$0xf]  ;;  %v7548_v54 = vld [vmem:[%s10930_s13 + $0x1a4] sm:$0xf] }
  0x79   : > { %v7549_v55 = vld [vmem:[%s10930_s13 + $0x1b4] sm:$0xf]  ;;  %767 = vst [vmem:[%s10935_s26 + $0xa4] sm:$0xf] %v7547_v53  ;;  %769 = vst [vmem:[%s10935_s26 + $0xa8] sm:$0xf] %v7548_v54 }
  0x7a   : > { %771 = vst [vmem:[%s10935_s26 + $0xac] sm:$0xf] %v7549_v55  ;;  %v7550_v56 = vld [vmem:[%s10930_s13 + $0x1a8] sm:$0xf]  ;;  %v7551_v57 = vld [vmem:[%s10930_s13 + $0x1b8] sm:$0xf] }
  0x7b   : > { %v7552_v58 = vld [vmem:[%s10930_s13 + $0x1ac] sm:$0xf]  ;;  %773 = vst [vmem:[%s10935_s26 + $0xb0] sm:$0xf] %v7550_v56  ;;  %775 = vst [vmem:[%s10935_s26 + $0xb4] sm:$0xf] %v7551_v57 }
  0x7c   : > { %777 = vst [vmem:[%s10935_s26 + $0xb8] sm:$0xf] %v7552_v58  ;;  %v7555_v60 = vld [vmem:[%s10930_s13 + $0x1d0] sm:$0xf]  ;;  %v7556_v61 = vld [vmem:[%s10930_s13 + $0x1c4] sm:$0xf] }
  0x7d   : > { %779 = vst [vmem:[%s10935_s26 + $0xbc] sm:$0xff] %v7553_v59   ;;  %783 = vst [vmem:[%s10935_s26 + $0xc4] sm:$0xf] %v7555_v60  ;;  %v7557_v62 = vld [vmem:[%s10930_s13 + $0x1d4] sm:$0xf]  ;;  %v7561_v2 = vld [vmem:[%s10930_s13 + $0x1dc] sm:$0xff]  }
  0x7e   : > { %785 = vst [vmem:[%s10935_s26 + $0xc8] sm:$0xf] %v7556_v61  ;;  %v7558_v63 = vld [vmem:[%s10930_s13 + $0x1c8] sm:$0xf]  ;;  %v7559_v0 = vld [vmem:[%s10930_s13 + $0x1d8] sm:$0xf] }
  0x7f   : > { %787 = vst [vmem:[%s10935_s26 + $0xcc] sm:$0xf] %v7557_v62  ;;  %789 = vst [vmem:[%s10935_s26 + $0xd0] sm:$0xf] %v7558_v63  ;;  %v7560_v1 = vld [vmem:[%s10930_s13 + $0x1cc] sm:$0xf] }
  0x80   : > { %791 = vst [vmem:[%s10935_s26 + $0xd4] sm:$0xf] %v7559_v0  ;;  %v7563_v3 = vld [vmem:[%s10930_s13 + $0x1f0] sm:$0xf]  ;;  %793 = vst [vmem:[%s10935_s26 + $0xd8] sm:$0xf] %v7560_v1 }
  0x81   : > { %795 = vst [vmem:[%s10935_s26 + $0xdc] sm:$0xff] %v7561_v2   ;;  %799 = vst [vmem:[%s10935_s26 + $0xe4] sm:$0xf] %v7563_v3  ;;  %v7564_v4 = vld [vmem:[%s10930_s13 + $0x1e4] sm:$0xf]  ;;  %v7569_v9 = vld [vmem:[%s10930_s13 + $0x1fc] sm:$0xff]  }
  0x82   : > { %v7565_v5 = vld [vmem:[%s10930_s13 + $0x1f4] sm:$0xf]  ;;  %v7566_v6 = vld [vmem:[%s10930_s13 + $0x1e8] sm:$0xf]  ;;  %801 = vst [vmem:[%s10935_s26 + $0xe8] sm:$0xf] %v7564_v4 }
  0x83   : > { %803 = vst [vmem:[%s10935_s26 + $0xec] sm:$0xf] %v7565_v5  ;;  %805 = vst [vmem:[%s10935_s26 + $0xf0] sm:$0xf] %v7566_v6  ;;  %v7567_v7 = vld [vmem:[%s10930_s13 + $0x1f8] sm:$0xf] }
  0x84   : > { %v7568_v8 = vld [vmem:[%s10930_s13 + $0x1ec] sm:$0xf]  ;;  %807 = vst [vmem:[%s10935_s26 + $0xf4] sm:$0xf] %v7567_v7  ;;  %811 = vst [vmem:[%s10935_s26 + $0xfc] sm:$0xff] %v7569_v9   ;;  %v7577_v16 = vld [vmem:[%s10930_s13 + $0x21c] sm:$0xff]  }
  0x85   : > { %809 = vst [vmem:[%s10935_s26 + $0xf8] sm:$0xf] %v7568_v8  ;;  %v7571_v10 = vld [vmem:[%s10930_s13 + $0x210] sm:$0xf]  ;;  %v7572_v11 = vld [vmem:[%s10930_s13 + $0x204] sm:$0xf] }
  0x86   : > { %v7573_v12 = vld [vmem:[%s10930_s13 + $0x214] sm:$0xf]  ;;  %815 = vst [vmem:[%s10935_s26 + $0x104] sm:$0xf] %v7571_v10  ;;  %817 = vst [vmem:[%s10935_s26 + $0x108] sm:$0xf] %v7572_v11 }
  0x87   : > { %819 = vst [vmem:[%s10935_s26 + $0x10c] sm:$0xf] %v7573_v12  ;;  %v7574_v13 = vld [vmem:[%s10930_s13 + $0x208] sm:$0xf]  ;;  %v7575_v14 = vld [vmem:[%s10930_s13 + $0x218] sm:$0xf] }
  0x88   : > { %v7576_v15 = vld [vmem:[%s10930_s13 + $0x20c] sm:$0xf]  ;;  %821 = vst [vmem:[%s10935_s26 + $0x110] sm:$0xf] %v7574_v13  ;;  %823 = vst [vmem:[%s10935_s26 + $0x114] sm:$0xf] %v7575_v14 }
  0x89   : > { %825 = vst [vmem:[%s10935_s26 + $0x118] sm:$0xf] %v7576_v15  ;;  %v7579_v17 = vld [vmem:[%s10930_s13 + $0x230] sm:$0xf]  ;;  %v7580_v18 = vld [vmem:[%s10930_s13 + $0x224] sm:$0xf] }
  0x8a   : > { %827 = vst [vmem:[%s10935_s26 + $0x11c] sm:$0xff] %v7577_v16   ;;  %831 = vst [vmem:[%s10935_s26 + $0x124] sm:$0xf] %v7579_v17  ;;  %v7581_v19 = vld [vmem:[%s10930_s13 + $0x234] sm:$0xf] }
  0x8b   : > { %833 = vst [vmem:[%s10935_s26 + $0x128] sm:$0xf] %v7580_v18  ;;  %v7582_v20 = vld [vmem:[%s10930_s13 + $0x228] sm:$0xf]  ;;  %v7583_v21 = vld [vmem:[%s10930_s13 + $0x238] sm:$0xf] }
  0x8c   : > { %835 = vst [vmem:[%s10935_s26 + $0x12c] sm:$0xf] %v7581_v19  ;;  %837 = vst [vmem:[%s10935_s26 + $0x130] sm:$0xf] %v7582_v20  ;;  %v7584_v22 = vld [vmem:[%s10930_s13 + $0x22c] sm:$0xf] }
  0x8d   : > { %839 = vst [vmem:[%s10935_s26 + $0x134] sm:$0xf] %v7583_v21  ;;  %v7585_v23 = vld [vmem:[%s10930_s13 + $0x23c] sm:$0xf]  ;;  %841 = vst [vmem:[%s10935_s26 + $0x138] sm:$0xf] %v7584_v22 }
  0x8e   : > { %843 = vst [vmem:[%s10935_s26 + $0x13c] sm:$0xf] %v7585_v23 }
  0x8f   : > { %1034 = vsyncadd %s666_s14, 5120  ;;  %s7305_s17 = smul.u32 36, %s10725_s19  ;;  %s7313_s29 = scalar_lea.sflag %s666_s14, 2 [#allocation4] }
  0x90   : > { %s8468_s27 = smul.u32 80, %s10922_s28 }
  0x91   : > { %s7306_s30 = sadd.s32 %s10805_s25, %s7305_s17 }
  0x92   : > { %s7587_s6 = sshll.u32 %s7306_s30, 2  ;;  %s1042_s13 = scalar_lea.vmem [#allocation3], %s8468_s27 }
  0x93   : > { %s7308_s12 = scalar_lea.vmem %s14430_s1, %s7587_s6 }
  0x94   : > { %v7589_v24 = vld [vmem:[%s7308_s12 + $0x40] sm:$0xff]  ;;  %v7590_v25 = vld [vmem:[%s7308_s12 + $0x48] sm:$0xff]  ;;  %v7591_v26 = vld [vmem:[%s7308_s12 + $0x50] sm:$0xff] }
  0x95   : > { %1078 = vst [vmem:[%s1042_s13] sm:$0xff] %v7589_v24  ;;  %1080 = vst [vmem:[%s1042_s13 + $0x8] sm:$0xff] %v7590_v25  ;;  %v7592_v27 = vld [vmem:[%s7308_s12 + $0x58] sm:$0xff]  ;;  %v7593_v28 = vld [vmem:[%s7308_s12 + $0x60] sm:$0xff] }
  0x96   : > { %1082 = vst [vmem:[%s1042_s13 + $0x10] sm:$0xff] %v7591_v26  ;;  %v7594_v29 = vld [vmem:[%s7308_s12 + $0x68] sm:$0xff]  ;;  %1084 = vst [vmem:[%s1042_s13 + $0x18] sm:$0xff] %v7592_v27  ;;  %v7595_v30 = vld [vmem:[%s7308_s12 + $0x70] sm:$0xff] }
  0x97   : > { %1086 = vst [vmem:[%s1042_s13 + $0x20] sm:$0xff] %v7593_v28  ;;  %1088 = vst [vmem:[%s1042_s13 + $0x28] sm:$0xff] %v7594_v29  ;;  %v7596_v31 = vld [vmem:[%s7308_s12 + $0x78] sm:$0xff]  ;;  %v7597_v32 = vld [vmem:[%s7308_s12 + $0x80] sm:$0xff] }
  0x98   : > { %1090 = vst [vmem:[%s1042_s13 + $0x30] sm:$0xff] %v7595_v30  ;;  %1092 = vst [vmem:[%s1042_s13 + $0x38] sm:$0xff] %v7596_v31  ;;  %v7598_v33 = vld [vmem:[%s7308_s12 + $0x88] sm:$0xff] }
  0x99   : > { %1094 = vst [vmem:[%s1042_s13 + $0x40] sm:$0xff] %v7597_v32  ;;  %1096 = vst [vmem:[%s1042_s13 + $0x48] sm:$0xff] %v7598_v33 }
  0x9a   : > { %1104 = vsyncadd %s7313_s29, 1280 }
  0x9b PF: > { %v10253_v34 = vld [vmem:[%s14431_s2 + $0x400] sm:$0xff]   ;;  %v10257_v38 = vld [vmem:[%s14431_s2 + $0x408] sm:$0xff]   ;;  %v10261_v42 = vld [vmem:[%s14431_s2 + $0x410] sm:$0xff]   ;;  %vm1475_vm0 = vcmask 1040384   ;;  %vm1476_vm1 = vsmask.f32 256 }
  0x9c   : > { %v10254_v35 = vld [vmem:[%s14431_s2 + $0x480] sm:$0xff]   ;;  %8532 = vmatprep.subr.bf16.mxu0 %v10253_v34  ;;  %v10258_v39 = vld [vmem:[%s14431_s2 + $0x488] sm:$0xff]   ;;  %v10262_v43 = vld [vmem:[%s14431_s2 + $0x490] sm:$0xff]   ;;  %v14623_v17 = vmov 0  ;;  %vm1729_vm3 = vsmask.f32 7424 }
  0x9d   : > { %v10255_v36 = vld [vmem:[%s14431_s2 + $0x3c0] sm:$0xff]   ;;  %8596 = vmatprep.subr.bf16.mxu1 %v10254_v35  ;;  %v10259_v40 = vld [vmem:[%s14431_s2 + $0x3c8] sm:$0xff]   ;;  %v10263_v44 = vld [vmem:[%s14431_s2 + $0x3d0] sm:$0xff]   ;;  %vm1728_vm4 = vcmask 1047552  }
  0x9e   : > { %v10256_v37 = vld [vmem:[%s14431_s2 + $0x440] sm:$0xff]   ;;  %8533 = vmatpush3.bf16.msra.mxu0 %v10255_v36  ;;  %v10260_v41 = vld [vmem:[%s14431_s2 + $0x448] sm:$0xff]   ;;  %v10264_v45 = vld [vmem:[%s14431_s2 + $0x450] sm:$0xff]  }
  0x9f   : > { %8597 = vmatpush3.bf16.msra.mxu1 %v10256_v37  ;;  %8534 = vmatprep.subr.bf16.mxu0 %v10257_v38  ;;  %v10265_v46 = vld [vmem:[%s14431_s2 + $0x418] sm:$0xff]   ;;  %v10269_v50 = vld [vmem:[%s14431_s2 + $0x420] sm:$0xff]   ;;  %v10273_v54 = vld [vmem:[%s14431_s2 + $0x428] sm:$0xff]  }
  0xa0   : > { %8598 = vmatprep.subr.bf16.mxu1 %v10258_v39  ;;  %v10266_v47 = vld [vmem:[%s14431_s2 + $0x498] sm:$0xff]   ;;  %v10270_v51 = vld [vmem:[%s14431_s2 + $0x4a0] sm:$0xff]   ;;  %v10274_v55 = vld [vmem:[%s14431_s2 + $0x4a8] sm:$0xff]  }
  0xa1   : > { %v10267_v48 = vld [vmem:[%s14431_s2 + $0x3d8] sm:$0xff]   ;;  %v10271_v52 = vld [vmem:[%s14431_s2 + $0x3e0] sm:$0xff]   ;;  %v10275_v56 = vld [vmem:[%s14431_s2 + $0x3e8] sm:$0xff]  }
  0xa2   : > { %8535 = vmatpush3.bf16.msra.mxu0 %v10259_v40  ;;  %v10268_v49 = vld [vmem:[%s14431_s2 + $0x458] sm:$0xff]   ;;  %v10272_v53 = vld [vmem:[%s14431_s2 + $0x460] sm:$0xff]   ;;  %v10276_v57 = vld [vmem:[%s14431_s2 + $0x468] sm:$0xff]  }
  0xa3   : > { %8599 = vmatpush3.bf16.msra.mxu1 %v10260_v41  ;;  %8536 = vmatprep.subr.bf16.mxu0 %v10261_v42  ;;  %v10277_v58 = vld [vmem:[%s14431_s2 + $0x430] sm:$0xff]   ;;  %v10281_v62 = vld [vmem:[%s14431_s2 + $0x438] sm:$0xff]   ;;  %v11180_v2 = vld [vmem:[%s10914_s10 + $0x28] sm:$0xff] }
  0xa4   : > { %8600 = vmatprep.subr.bf16.mxu1 %v10262_v43  ;;  %v10278_v59 = vld [vmem:[%s14431_s2 + $0x4b0] sm:$0xff]   ;;  %v10282_v63 = vld [vmem:[%s14431_s2 + $0x4b8] sm:$0xff]   ;;  %v11186_v4 = vld [vmem:[%s10914_s10 + $0x20] sm:$0xff]  ;;  %v1191_v5 = vshrl.u32 %v11180_v2, 16  ;;  %v1194_v6 = vshll.u32 %v11180_v2, 16 }
  0xa5   : > { %v10279_v60 = vld [vmem:[%s14431_s2 + $0x3f0] sm:$0xff]   ;;  %v10283_v0 = vld [vmem:[%s14431_s2 + $0x3f8] sm:$0xff]   ;;  %v10285_v10 = vld [vmem:[%s14431_s2 + $0x500] sm:$0xff]   ;;  %v1184_v11 = vshrl.u32 %v11186_v4, 16  ;;  %v1187_v12 = vshll.u32 %v11186_v4, 16 }
  0xa6   : > { %8537 = vmatpush3.bf16.msra.mxu0 %v10263_v44  ;;  %v10280_v61 = vld [vmem:[%s14431_s2 + $0x470] sm:$0xff]   ;;  %v10284_v1 = vld [vmem:[%s14431_s2 + $0x478] sm:$0xff]   ;;  %v1193_v15 = vrot.slane %v1191_v5, 7  ;;  %vm11206_vm2 = vmand %vm1475_vm0, %vm1476_vm1  ;;  %v1618_v24 = vrot.slane %v1194_v6, 1 }
  0xa7   : > { %8601 = vmatpush3.bf16.msra.mxu1 %v10264_v45  ;;  %8538 = vmatprep.subr.bf16.mxu0 %v10265_v46  ;;  %v11183_v3 = vld [vmem:[%s10914_s10 + $0x38] sm:$0xff]  ;;  %v11193_v9 = vld [vmem:[%s10914_s10 + $0x30] sm:$0xff]  ;;  %v14624_v17 = vsel %vm11206_vm2, 4294967295, %v14623_v17  ;;  %v1186_v18 = vrot.slane %v1184_v11, 7  ;;  %v1616_v19 = vrot.slane %v1187_v12, 1  ;;  %v10286_v23 = vld [vmem:[%s14431_s2 + $0x4c0] sm:$0xff]  }
  0xa8   : > { %8602 = vmatprep.subr.bf16.mxu1 %v10266_v47  ;;  %v14446_v7 = vshrl.u32 %v11183_v3, 16  ;;  %v14448_v8 = vshll.u32 %v11183_v3, 16  ;;  %v14461_v13 = vshrl.u32 %v11193_v9, 16  ;;  %v14469_v14 = vshll.u32 %v11193_v9, 16  ;;  %14625 = vst [vmem:[#allocation11_spill] sm:$0xff] %v14624_v17  ;;  %v10287_v27 = vld [vmem:[%s14431_s2 + $0x580] sm:$0xff]   ;;  %vm12066_vm5 = vmand %vm1728_vm4, %vm1729_vm3 }
  0xa9   : > { %v1196_v21 = vor.u32 %v1194_v6, %v1193_v15  ;;  %v1189_v25 = vor.u32 %v1187_v12, %v1186_v18  ;;  %v11223_v28 = vld [vmem:[%s10914_s10 + $0x48] sm:$0xff]  ;;  %v11226_v29 = vld [vmem:[%s10914_s10 + $0x58] sm:$0xff]  ;;  %v10288_v39 = vld [vmem:[%s14431_s2 + $0x540] sm:$0xff]   ;;  %v11263_v42 = vor.u32 %v1618_v24, %v1191_v5  ;;  %v11265_v43 = vor.u32 %v1616_v19, %v1184_v11 }
  0xaa   : > { %8539 = vmatpush3.bf16.msra.mxu0 %v10267_v48  ;;  %v1207_v16 = vrot.slane %v14446_v7, 7  ;;  %v1200_v20 = vrot.slane %v14461_v13, 7  ;;  %v14471_v32 = vshrl.u32 %v11223_v28, 16  ;;  %v1222_v33 = vshll.u32 %v11223_v28, 16  ;;  %v11258_v40 = vld [vmem:[%s10914_s10 + $0x40] sm:$0xff]  ;;  %v11261_v41 = vld [vmem:[%s10914_s10 + $0x50] sm:$0xff] }
  0xab   : > { %8603 = vmatpush3.bf16.msra.mxu1 %v10268_v49  ;;  %8540 = vmatprep.subr.bf16.mxu0 %v10269_v50  ;;  %v11230_v30 = vsel %vm11206_vm2, 0, %v1196_v21  ;;  %v11242_v34 = vsel %vm11206_vm2, 0, %v1189_v25  ;;  %v14444_v36 = vshrl.u32 %v11226_v29, 16  ;;  %v14447_v37 = vshll.u32 %v11226_v29, 16  ;;  %v10289_v50 = vld [vmem:[%s14431_s2 + $0x508] sm:$0xff]   ;;  %v11318_v6 = vld [vmem:[%s10914_s10 + $0x60] sm:$0xff] }
  0xac   : > { %8604 = vmatprep.subr.bf16.mxu1 %v10270_v51  ;;  %v1210_v22 = vor.u32 %v14448_v8, %v1207_v16  ;;  %v1203_v26 = vor.u32 %v14469_v14, %v1200_v20  ;;  %14626 = vst [vmem:[#allocation12_spill] sm:$0xff] %v11230_v30  ;;  %3044 = vmatprep.mubr.bf16.mxu0 %v11230_v30  ;;  %14628 = vst [vmem:[#allocation14_spill] sm:$0xff] %v11242_v34  ;;  %v1221_v38 = vrot.slane %v14471_v32, 7  ;;  %v11332_v16 = vld [vmem:[%s10914_s10 + $0x70] sm:$0xff]  ;;  %v11526_v13 = vld [vmem:[%s10914_s10 + $0xc0] sm:$0xff] }
  0xad   : > { %v1235_v44 = vrot.slane %v14444_v36, 7  ;;  %v14465_v45 = vshrl.u32 %v11258_v40, 16  ;;  %v14470_v46 = vshll.u32 %v11258_v40, 16  ;;  %v14438_v47 = vshrl.u32 %v11261_v41, 16  ;;  %v10293_v18 = vld [vmem:[%s14431_s2 + $0x510] sm:$0xff]   ;;  %v11460_v36 = vld [vmem:[%s10914_s10 + $0xa0] sm:$0xff] }
  0xae   : > { %8541 = vmatpush3.bf16.msra.mxu0 %v10271_v52  ;;  %v11234_v31 = vsel %vm11206_vm2, 0, %v1210_v22  ;;  %v11246_v35 = vsel %vm11206_vm2, 0, %v1203_v26  ;;  %v1224_v48 = vor.u32 %v1222_v33, %v1221_v38  ;;  %v14441_v49 = vshll.u32 %v11261_v41, 16  ;;  %v10294_v25 = vld [vmem:[%s14431_s2 + $0x4d0] sm:$0xff]   ;;  %v11561_v32 = vld [vmem:[%s10914_s10 + $0xe8] sm:$0xff] }
  0xaf   : > { %8605 = vmatpush3.bf16.msra.mxu1 %v10272_v53  ;;  %8542 = vmatprep.subr.bf16.mxu0 %v10273_v54  ;;  %14627 = vst [vmem:[#allocation13_spill] sm:$0xff] %v11234_v31  ;;  %14629 = vst [vmem:[#allocation15_spill] sm:$0xff] %v11246_v35  ;;  %v1238_v51 = vor.u32 %v14447_v37, %v1235_v44  ;;  %v1214_v52 = vrot.slane %v14465_v45, 7  ;;  %v1228_v53 = vrot.slane %v14438_v47, 7  ;;  %v10290_v54 = vld [vmem:[%s14431_s2 + $0x4c8] sm:$0xff]   ;;  %v14459_v15 = vshrl.u32 %v11318_v6, 16 }
  0xb0   : > { %8606 = vmatprep.subr.bf16.mxu1 %v10274_v55  ;;  %3141 = vmatprep.mubr.bf16.mxu1 %v11234_v31  ;;  %v10291_v55 = vld [vmem:[%s14431_s2 + $0x588] sm:$0xff]   ;;  %v14463_v20 = vshll.u32 %v11318_v6, 16  ;;  %v14435_v21 = vshrl.u32 %v11332_v16, 16  ;;  %v14439_v22 = vshll.u32 %v11332_v16, 16  ;;  %v10295_v38 = vld [vmem:[%s14431_s2 + $0x590] sm:$0xff]   ;;  %v14456_v37 = vshrl.u32 %v11460_v36, 16 }
  0xb1   : > { %v1242_v24 = vrot.slane %v14459_v15, 7 }
  0xb2   : > { %8543 = vmatpush3.bf16.msra.mxu0 %v10275_v56  ;;  %v11292_v56 = vsel %vm11206_vm2, 0, %v1224_v48  ;;  %v11365_v48 = vld [vmem:[%s10914_s10 + $0x88] sm:$0xff] }
  0xb3   : > { %8607 = vmatpush3.bf16.msra.mxu1 %v10276_v57  ;;  %8544 = vmatprep.subr.bf16.mxu0 %v10277_v58  ;;  %14630 = vst [vmem:[#allocation16_spill] sm:$0xff] %v11292_v56  ;;  %v11295_v57 = vld [vmem:[%s10914_s10 + $0x68] sm:$0xff]  ;;  %v11300_v58 = vsel %vm11206_vm2, 0, %v1238_v51  ;;  %v1245_v44 = vor.u32 %v14463_v20, %v1242_v24 }
  0xb4   : > { %8608 = vmatprep.subr.bf16.mxu1 %v10278_v59  ;;  %14631 = vst [vmem:[#allocation17_spill] sm:$0xff] %v11300_v58  ;;  %v1217_v59 = vor.u32 %v14470_v46, %v1214_v52  ;;  %v10307_v46 = vld [vmem:[%s14431_s2 + $0x5a8] sm:$0xff]  }
  0xb6   : > { %8545 = vmatpush3.bf16.msra.mxu0 %v10279_v60  ;;  %v1231_v60 = vor.u32 %v14441_v49, %v1228_v53  ;;  %v14453_v53 = vshrl.u32 %v11365_v48, 16 }
  0xb7   : > { %8609 = vmatpush3.bf16.msra.mxu1 %v10280_v61  ;;  %8546 = vmatprep.subr.bf16.mxu0 %v10281_v62  ;;  %v14464_v61 = vshrl.u32 %v11295_v57, 16  ;;  %v11308_v62 = vld [vmem:[%s10914_s10 + $0x78] sm:$0xff] }
  0xb8   : > { %8610 = vmatprep.subr.bf16.mxu1 %v10282_v63  ;;  %v10292_v63 = vld [vmem:[%s14431_s2 + $0x548] sm:$0xff]   ;;  %v14440_v5 = vshll.u32 %v11308_v62, 16  ;;  %v11326_v11 = vsel %vm11206_vm2, 0, %v1231_v60 }
  0xb9   : > { %14633 = vst [vmem:[#allocation19_spill] sm:$0xff] %v11326_v11  ;;  %v1249_v12 = vrot.slane %v14464_v61, 7 }
  0xba   : > { %8547 = vmatpush3.bf16.msra.mxu0 %v10283_v0  ;;  %v14468_v0 = vshll.u32 %v11295_v57, 16 }
  0xbb   : > { %8611 = vmatpush3.bf16.msra.mxu1 %v10284_v1  ;;  %8660 = vmatprep.subr.bf16.mxu0 %v10285_v10  ;;  %v14437_v1 = vshrl.u32 %v11308_v62, 16  ;;  %v11322_v10 = vsel %vm11206_vm2, 0, %v1217_v59  ;;  %v11385_v59 = vsel %vm11206_vm2, 0, %v1245_v44 }
  0xbc   : > { %8724 = vmatprep.subr.bf16.mxu1 %v10287_v27  ;;  %14632 = vst [vmem:[#allocation18_spill] sm:$0xff] %v11322_v10  ;;  %v1256_v27 = vrot.slane %v14435_v21, 7  ;;  %14636 = vst [vmem:[#allocation22_spill] sm:$0xff] %v11385_v59 }
  0xbd   : > { %3045 = vmatmul.mubr.bf16.vlgmr.msra.gmra.mrb[0].mxu0 %v11242_v34  ;;  %v1263_v19 = vrot.slane %v14437_v1, 7 }
  0xbe   : > { %3142 = vmatmul.mubr.bf16.vlgmr.msra.gmra.mrb[0].mxu1 %v11246_v35  ;;  %8661 = vmatpush3.bf16.msra.mxu0 %v10286_v23  ;;  %v1252_v23 = vor.u32 %v14468_v0, %v1249_v12  ;;  %v1259_v52 = vor.u32 %v14439_v22, %v1256_v27  ;;  %v11390_v12 = vld [vmem:[%s10914_s10 + $0x80] sm:$0xff]  ;;  %v11427_v22 = vld [vmem:[%s10914_s10 + $0xa8] sm:$0xff] }
  0xbf   : > { %8725 = vmatpush3.bf16.msra.mxu1 %v10288_v39  ;;  %8662 = vmatprep.subr.bf16.mxu0 %v10289_v50  ;;  %v1266_v26 = vor.u32 %v14440_v5, %v1263_v19  ;;  %v11368_v50 = vld [vmem:[%s10914_s10 + $0x98] sm:$0xff]  ;;  %v1277_v19 = vrot.slane %v14453_v53, 7  ;;  %v14454_v24 = vshll.u32 %v11390_v12, 16  ;;  %v14449_v49 = vshrl.u32 %v11427_v22, 16  ;;  %v10306_v0 = vld [vmem:[%s14431_s2 + $0x4e8] sm:$0xff]  }
  0xc0   : > { %3052 = vmatprep.mubr.bf16.mxu0 %v11292_v56  ;;  %3149 = vmatprep.mubr.bf16.mxu1 %v11300_v58  ;;  %v11360_v39 = vsel %vm11206_vm2, 0, %v1252_v23  ;;  %v14436_v60 = vshrl.u32 %v11368_v50, 16  ;;  %v14450_v23 = vshrl.u32 %v11390_v12, 16 }
  0xc1   : > { %8726 = vmatprep.subr.bf16.mxu1 %v10291_v55  ;;  %14634 = vst [vmem:[#allocation20_spill] sm:$0xff] %v11360_v39  ;;  %v11373_v51 = vsel %vm11206_vm2, 0, %v1266_v26  ;;  %v10296_v55 = vld [vmem:[%s14431_s2 + $0x550] sm:$0xff]   ;;  %v10297_v26 = vld [vmem:[%s14431_s2 + $0x518] sm:$0xff]  }
  0xc2   : > { %8663 = vmatpush3.bf16.msra.mxu0 %v10290_v54  ;;  %14635 = vst [vmem:[#allocation21_spill] sm:$0xff] %v11373_v51  ;;  %v14457_v54 = vshll.u32 %v11365_v48, 16  ;;  %v1291_v27 = vrot.slane %v14436_v60, 7  ;;  %v1270_v21 = vrot.slane %v14450_v23, 7  ;;  %v10299_v60 = vld [vmem:[%s14431_s2 + $0x598] sm:$0xff]  }
  0xc3   : > { %8727 = vmatpush3.bf16.msra.mxu1 %v10292_v63  ;;  %8664 = vmatprep.subr.bf16.mxu0 %v10293_v18  ;;  %v14442_v63 = vshll.u32 %v11368_v50, 16  ;;  %v11394_v18 = vsel %vm11206_vm2, 0, %v1259_v52  ;;  %v10298_v52 = vld [vmem:[%s14431_s2 + $0x4d8] sm:$0xff]  }
  0xc4   : > { %8728 = vmatprep.subr.bf16.mxu1 %v10295_v38  ;;  %14637 = vst [vmem:[#allocation23_spill] sm:$0xff] %v11394_v18 }
  0xc5   : > { %3053 = vmatmul.mubr.bf16.gmra.mrb[4].mxu0 %v11322_v10  ;;  %v1294_v1 = vor.u32 %v14442_v63, %v1291_v27  ;;  %v14452_v27 = vshll.u32 %v11427_v22, 16  ;;  %v11438_v63 = vld [vmem:[%s10914_s10 + $0xb8] sm:$0xff] }
  0xc6   : > { %3150 = vmatmul.mubr.bf16.gmra.mrb[4].mxu1 %v11326_v11  ;;  %8665 = vmatpush3.bf16.msra.mxu0 %v10294_v25  ;;  %v11401_v25 = vld [vmem:[%s10914_s10 + $0x90] sm:$0xff]  ;;  %v11660_v11 = vld [vmem:[%s10914_s10 + $0x100] sm:$0xff] }
  0xc7   : > { %3060 = vmatprep.mubr.bf16.mxu0 %v11360_v39  ;;  %3157 = vmatprep.mubr.bf16.mxu1 %v11373_v51  ;;  %v14443_v38 = vshrl.u32 %v11401_v25, 16  ;;  %v14445_v44 = vshll.u32 %v11401_v25, 16 }
  0xc8   : > { %8729 = vmatpush3.bf16.msra.mxu1 %v10296_v55  ;;  %v1280_v55 = vor.u32 %v14457_v54, %v1277_v19  ;;  %8666 = vmatprep.subr.bf16.mxu0 %v10297_v26  ;;  %v1273_v19 = vor.u32 %v14454_v24, %v1270_v21  ;;  %v11443_v26 = vsel %vm11206_vm2, 0, %v1294_v1  ;;  %v14451_v21 = vshrl.u32 %v11438_v63, 16  ;;  %v11509_v54 = vld [vmem:[%s10914_s10 + $0xd8] sm:$0xff] }
  0xc9   : > { %v1284_v47 = vrot.slane %v14443_v38, 7  ;;  %8730 = vmatprep.subr.bf16.mxu1 %v10299_v60  ;;  %14639 = vst [vmem:[#allocation25_spill] sm:$0xff] %v11443_v26  ;;  %v10300_v60 = vld [vmem:[%s14431_s2 + $0x558] sm:$0xff]   ;;  %v1305_v1 = vrot.slane %v14449_v49, 7  ;;  %v14467_v15 = vshrl.u32 %v11509_v54, 16 }
  0xca   : > { %v11431_v5 = vsel %vm11206_vm2, 0, %v1280_v55  ;;  %8667 = vmatpush3.bf16.msra.mxu0 %v10298_v52  ;;  %v14455_v52 = vshll.u32 %v11438_v63, 16  ;;  %v11455_v38 = vsel %vm11206_vm2, 0, %v1273_v19  ;;  %v1319_v7 = vrot.slane %v14451_v21, 7 }
  0xcb   : > { %14638 = vst [vmem:[#allocation24_spill] sm:$0xff] %v11431_v5  ;;  %v1287_v55 = vor.u32 %v14445_v44, %v1284_v47  ;;  %14640 = vst [vmem:[#allocation26_spill] sm:$0xff] %v11455_v38  ;;  %v11463_v47 = vld [vmem:[%s10914_s10 + $0xb0] sm:$0xff]  ;;  %v14460_v19 = vshll.u32 %v11460_v36, 16  ;;  %v1308_v8 = vor.u32 %v14452_v27, %v1305_v1  ;;  %v1298_v1 = vrot.slane %v14456_v37, 7  ;;  %v10303_v27 = vld [vmem:[%s14431_s2 + $0x5a0] sm:$0xff]  }
  0xcc   : > { %8731 = vmatpush3.bf16.msra.mxu1 %v10300_v60  ;;  %v14458_v49 = vshrl.u32 %v11463_v47, 16  ;;  %v14462_v23 = vshll.u32 %v11463_v47, 16  ;;  %v10302_v60 = vld [vmem:[%s14431_s2 + $0x4e0] sm:$0xff]   ;;  %v1322_v21 = vor.u32 %v14455_v52, %v1319_v7  ;;  %v11506_v37 = vld [vmem:[%s10914_s10 + $0xc8] sm:$0xff]  ;;  %v1347_v20 = vrot.slane %v14467_v15, 7 }
  0xcd   : > { %3061 = vmatmul.mubr.bf16.gmra.mrb[8].mxu0 %v11385_v59  ;;  %v11467_v44 = vsel %vm11206_vm2, 0, %v1287_v55  ;;  %v10301_v55 = vld [vmem:[%s14431_s2 + $0x520] sm:$0xff]   ;;  %v11494_v53 = vsel %vm11206_vm2, 0, %v1308_v8  ;;  %v1301_v52 = vor.u32 %v14460_v19, %v1298_v1  ;;  %8732 = vmatprep.subr.bf16.mxu1 %v10303_v27  ;;  %v14473_v19 = vshll.u32 %v11509_v54, 16 }
  0xce   : > { %3158 = vmatmul.mubr.bf16.gmra.mrb[8].mxu1 %v11394_v18  ;;  %3068 = vmatprep.mubr.bf16.mxu0 %v11431_v5  ;;  %14641 = vst [vmem:[#allocation27_spill] sm:$0xff] %v11467_v44  ;;  %14642 = vst [vmem:[#allocation28_spill] sm:$0xff] %v11494_v53  ;;  %v1312_v24 = vrot.slane %v14458_v49, 7  ;;  %v11501_v7 = vsel %vm11206_vm2, 0, %v1322_v21  ;;  %v14466_v49 = vshrl.u32 %v11506_v37, 16  ;;  %v14475_v21 = vshll.u32 %v11506_v37, 16 }
  0xcf   : > { %3165 = vmatprep.mubr.bf16.mxu1 %v11443_v26  ;;  %14643 = vst [vmem:[#allocation29_spill] sm:$0xff] %v11501_v7  ;;  %8668 = vmatprep.subr.bf16.mxu0 %v10301_v55  ;;  %v10304_v55 = vld [vmem:[%s14431_s2 + $0x560] sm:$0xff]   ;;  %v11522_v1 = vsel %vm11206_vm2, 0, %v1301_v52  ;;  %v14474_v27 = vshrl.u32 %v11526_v13, 16  ;;  %v14476_v52 = vshll.u32 %v11526_v13, 16  ;;  %v1350_v15 = vor.u32 %v14473_v19, %v1347_v20  ;;  %v11639_v26 = vld [vmem:[%s10914_s10 + $0x108] sm:$0xff] }
  0xd0   : > { %v1315_v8 = vor.u32 %v14462_v23, %v1312_v24  ;;  %8669 = vmatpush3.bf16.msra.mxu0 %v10302_v60  ;;  %14644 = vst [vmem:[#allocation30_spill] sm:$0xff] %v11522_v1  ;;  %v11529_v24 = vld [vmem:[%s10914_s10 + $0xd0] sm:$0xff]  ;;  %v1333_v23 = vrot.slane %v14466_v49, 7  ;;  %8733 = vmatpush3.bf16.msra.mxu1 %v10304_v55  ;;  %v1626_v20 = vrot.slane %v1222_v33, 1  ;;  %v14480_v19 = vshrl.u32 %v11561_v32, 16  ;;  %v11579_v33 = vld [vmem:[%s10914_s10 + $0xf8] sm:$0xff] }
  0xd1   : > { %v14472_v61 = vshrl.u32 %v11529_v24, 16  ;;  %v14479_v45 = vshll.u32 %v11529_v24, 16  ;;  %v1326_v55 = vrot.slane %v14474_v27, 7  ;;  %8734 = vmatprep.subr.bf16.mxu1 %v10307_v46  ;;  %v14649_v27 = vshrl.u32 %v11223_v28, 16 }
  0xd2   : > { %v11533_v60 = vsel %vm11206_vm2, 0, %v1315_v8  ;;  %v10305_v8 = vld [vmem:[%s14431_s2 + $0x528] sm:$0xff]   ;;  %v1336_v49 = vor.u32 %v14475_v21, %v1333_v23  ;;  %v14692_v59 = vshrl.u32 %v11526_v13, 16 }
  0xd3   : > { %14645 = vst [vmem:[#allocation31_spill] sm:$0xff] %v11533_v60  ;;  %v1340_v14 = vrot.slane %v14472_v61, 7  ;;  %8670 = vmatprep.subr.bf16.mxu0 %v10305_v8  ;;  %v11573_v8 = vsel %vm11206_vm2, 0, %v1350_v15  ;;  %v1329_v61 = vor.u32 %v14476_v52, %v1326_v55  ;;  %v10308_v55 = vld [vmem:[%s14431_s2 + $0x568] sm:$0xff]   ;;  %v11605_v21 = vor.u32 %v1626_v20, %v14649_v27 }
  0xd4   : > { %v11569_v23 = vsel %vm11206_vm2, 0, %v1336_v49  ;;  %14647 = vst [vmem:[#allocation33_spill] sm:$0xff] %v11573_v8  ;;  %8671 = vmatpush3.bf16.msra.mxu0 %v10306_v0  ;;  %8735 = vmatpush3.bf16.msra.mxu1 %v10308_v55  ;;  %v14653_v55 = vshll.u32 %v11579_v33, 16 }
  0xd5   : > { %3069 = vmatmul.mubr.bf16.gmra.mrb[12].mxu0 %v11455_v38  ;;  %14646 = vst [vmem:[#allocation32_spill] sm:$0xff] %v11569_v23  ;;  %v1343_v49 = vor.u32 %v14479_v45, %v1340_v14  ;;  %v11593_v52 = vsel %vm11206_vm2, 0, %v1329_v61  ;;  %v11598_v14 = vld [vmem:[%s10914_s10 + $0xe0] sm:$0xff]  ;;  %v11601_v45 = vld [vmem:[%s10914_s10 + $0xf0] sm:$0xff]  ;;  %v14651_v61 = vshrl.u32 %v11579_v33, 16  ;;  %v10323_v38 = vld [vmem:[%s14431_s2 + $0x688] sm:$0xff]  }
  0xd6   : > { %3166 = vmatmul.mubr.bf16.gmra.mrb[12].mxu1 %v11467_v44  ;;  %3076 = vmatprep.mubr.bf16.mxu0 %v11494_v53  ;;  %14648 = vst [vmem:[#allocation34_spill] sm:$0xff] %v11593_v52  ;;  %v14493_v27 = vshrl.u32 %v11601_v45, 16  ;;  %v14678_v53 = vshll.u32 %v11390_v12, 16 }
  0xd7   : > { %3173 = vmatprep.mubr.bf16.mxu1 %v11501_v7  ;;  %v11609_v15 = vsel %vm11206_vm2, 0, %v1343_v49  ;;  %v1375_v0 = vrot.slane %v14651_v61, 7  ;;  %v10309_v49 = vld [vmem:[%s14431_s2 + $0x530] sm:$0xff]  }
  0xd8   : > { %14650 = vst [vmem:[#allocation35_spill] sm:$0xff] %v11609_v15  ;;  %v10310_v61 = vld [vmem:[%s14431_s2 + $0x4f0] sm:$0xff]   ;;  %v1368_v20 = vrot.slane %v14493_v27, 7  ;;  %8672 = vmatprep.subr.bf16.mxu0 %v10309_v49  ;;  %v14508_v27 = vshrl.u32 %v11660_v11, 16 }
  0xd9   : > { %v1378_v46 = vor.u32 %v14653_v55, %v1375_v0  ;;  %v11642_v0 = vld [vmem:[%s10914_s10 + $0x118] sm:$0xff]  ;;  %v14657_v55 = vshll.u32 %v11598_v14, 16  ;;  %8673 = vmatpush3.bf16.msra.mxu0 %v10310_v61  ;;  %v10312_v49 = vld [vmem:[%s14431_s2 + $0x570] sm:$0xff]  }
  0xdd   : > { %3077 = vmatmul.mubr.bf16.gmra.mrb[16].mxu0 %v11522_v1  ;;  %v11778_v1 = vld [vmem:[%s10918_s16 + $0x18] sm:$0xff] }
  0xde   : > { %3174 = vmatmul.mubr.bf16.gmra.mrb[16].mxu1 %v11533_v60  ;;  %3084 = vmatprep.mubr.bf16.mxu0 %v11569_v23  ;;  %v14652_v60 = vshll.u32 %v11561_v32, 16  ;;  %v14532_v5 = vshrl.u32 %v11778_v1, 16 }
  0xdf   : > { %3181 = vmatprep.mubr.bf16.mxu1 %v11573_v8  ;;  %v1361_v8 = vrot.slane %v14480_v19, 7  ;;  %v14654_v19 = vshrl.u32 %v11598_v14, 16 }
  0xe1   : > { %v1364_v7 = vor.u32 %v14652_v60, %v1361_v8  ;;  %v1354_v44 = vrot.slane %v14654_v19, 7  ;;  %v10311_v60 = vld [vmem:[%s14431_s2 + $0x5b0] sm:$0xff]   ;;  %v11646_v19 = vsel %vm11206_vm2, 0, %v1378_v46  ;;  %v14506_v46 = vshrl.u32 %v11642_v0, 16 }
  0xe2   : > { %14656 = vst [vmem:[#allocation37_spill] sm:$0xff] %v11646_v19  ;;  %8736 = vmatprep.subr.bf16.mxu1 %v10311_v60  ;;  %v14659_v60 = vshll.u32 %v11601_v45, 16 }
  0xe3   : > { %v11634_v8 = vsel %vm11206_vm2, 0, %v1364_v7  ;;  %v1357_v18 = vor.u32 %v14657_v55, %v1354_v44  ;;  %v14507_v7 = vshrl.u32 %v11639_v26, 16  ;;  %v11663_v44 = vld [vmem:[%s10914_s10 + $0x110] sm:$0xff]  ;;  %8737 = vmatpush3.bf16.msra.mxu1 %v10312_v49 }
  0xe4   : > { %14655 = vst [vmem:[#allocation36_spill] sm:$0xff] %v11634_v8  ;;  %v1371_v55 = vor.u32 %v14659_v60, %v1368_v20  ;;  %v1382_v20 = vrot.slane %v14508_v27, 7  ;;  %v10313_v60 = vld [vmem:[%s14431_s2 + $0x538] sm:$0xff]  }
  0xe5   : > { %3085 = vmatmul.mubr.bf16.gmra.mrb[20].mxu0 %v11593_v52  ;;  %v11669_v61 = vsel %vm11206_vm2, 0, %v1357_v18  ;;  %v1389_v51 = vrot.slane %v14507_v7, 7  ;;  %v14660_v52 = vshll.u32 %v11639_v26, 16  ;;  %v10314_v18 = vld [vmem:[%s14431_s2 + $0x4f8] sm:$0xff]   ;;  %8674 = vmatprep.subr.bf16.mxu0 %v10313_v60  ;;  %v10317_v60 = vld [vmem:[%s14431_s2 + $0x600] sm:$0xff]  }
  0xe6   : > { %3182 = vmatmul.mubr.bf16.gmra.mrb[20].mxu1 %v11609_v15  ;;  %3092 = vmatprep.mubr.bf16.mxu0 %v11634_v8  ;;  %14658 = vst [vmem:[#allocation38_spill] sm:$0xff] %v11669_v61  ;;  %v1403_v15 = vrot.slane %v14506_v46, 7  ;;  %v14514_v8 = vshll.u32 %v11660_v11, 16  ;;  %v14661_v46 = vshll.u32 %v11642_v0, 16 }
  0xe7   : > { %3189 = vmatprep.mubr.bf16.mxu1 %v11646_v19  ;;  %v14509_v19 = vshrl.u32 %v11663_v44, 16  ;;  %v1392_v58 = vor.u32 %v14660_v52, %v1389_v51  ;;  %v11697_v51 = vsel %vm11206_vm2, 0, %v1371_v55  ;;  %v10315_v52 = vld [vmem:[%s14431_s2 + $0x5b8] sm:$0xff]   ;;  %8675 = vmatpush3.bf16.msra.mxu0 %v10314_v18  ;;  %v14665_v18 = vshll.u32 %v11663_v44, 16 }
  0xe8   : > { %v1406_v49 = vor.u32 %v14661_v46, %v1403_v15  ;;  %14662 = vst [vmem:[#allocation39_spill] sm:$0xff] %v11697_v51  ;;  %v10316_v46 = vld [vmem:[%s14431_s2 + $0x578] sm:$0xff]   ;;  %8738 = vmatprep.subr.bf16.mxu1 %v10315_v52  ;;  %8788 = vmatprep.subr.bf16.mxu0 %v10317_v60  ;;  %v14671_v60 = vshrl.u32 %v11258_v40, 16 }
  0xe9   : > { %v1396_v7 = vrot.slane %v14509_v19, 7  ;;  %v11704_v27 = vsel %vm11206_vm2, 0, %v1392_v58  ;;  %v11714_v55 = vld [vmem:[%s10918_s16 + $0x8] sm:$0xff]  ;;  %v1385_v58 = vor.u32 %v14514_v8, %v1382_v20  ;;  %v10319_v19 = vld [vmem:[%s14431_s2 + $0x680] sm:$0xff]   ;;  %8739 = vmatpush3.bf16.msra.mxu1 %v10316_v46  ;;  %v14667_v20 = vshll.u32 %v11193_v9, 16 }
  0xea   : > { %14663 = vst [vmem:[#allocation40_spill] sm:$0xff] %v11704_v27  ;;  %v11708_v15 = vsel %vm11206_vm2, 0, %v1406_v49  ;;  %8852 = vmatprep.subr.bf16.mxu1 %v10319_v19  ;;  %v14527_v46 = vshll.u32 %v11714_v55, 16  ;;  %v14672_v19 = vshrl.u32 %v11714_v55, 16 }
  0xeb   : > { %14664 = vst [vmem:[#allocation41_spill] sm:$0xff] %v11708_v15  ;;  %v1399_v49 = vor.u32 %v14665_v18, %v1396_v7  ;;  %v1620_v8 = vrot.slane %v14667_v20, 1  ;;  %v14668_v7 = vshll.u32 %v11295_v57, 16 }
  0xec   : > { %v1528_v20 = vrot.slane %v14672_v19, 7  ;;  %v14674_v19 = vshll.u32 %v11318_v6, 16 }
  0xed   : > { %3093 = vmatmul.mubr.bf16.gmra.mrb[24].mxu0 %v11669_v61  ;;  %v1634_v18 = vrot.slane %v14668_v7, 1  ;;  %v11743_v52 = vsel %vm11206_vm2, 0, %v1399_v49  ;;  %v14673_v7 = vshrl.u32 %v11295_v57, 16 }
  0xee   : > { %3190 = vmatmul.mubr.bf16.gmra.mrb[24].mxu1 %v11697_v51  ;;  %3100 = vmatprep.mubr.bf16.mxu0 %v11704_v27  ;;  %v14666_v51 = vshll.u32 %v11258_v40, 16  ;;  %14670 = vst [vmem:[#allocation43_spill] sm:$0xff] %v11743_v52  ;;  %v11753_v27 = vld [vmem:[%s10918_s16 + $0x10] sm:$0xff] }
  0xef   : > { %3197 = vmatprep.mubr.bf16.mxu1 %v11708_v15  ;;  %v11739_v15 = vsel %vm11206_vm2, 0, %v1385_v58  ;;  %v11757_v58 = vor.u32 %v1634_v18, %v14673_v7  ;;  %v1536_v23 = vshll.u32 %v11753_v27, 16  ;;  %v1533_v49 = vshrl.u32 %v11753_v27, 16 }
  0xf0   : > { %v1624_v61 = vrot.slane %v14666_v51, 1  ;;  %14669 = vst [vmem:[#allocation42_spill] sm:$0xff] %v11739_v15  ;;  %v1632_v18 = vrot.slane %v14674_v19, 1  ;;  %v14675_v7 = vshrl.u32 %v11193_v9, 16 }
  0xf2   : > { %v11748_v51 = vor.u32 %v1624_v61, %v14671_v60  ;;  %v1531_v61 = vor.u32 %v14527_v46, %v1528_v20  ;;  %v1775_v60 = vrot.slane %v1536_v23, 1  ;;  %v11771_v35 = vor.u32 %v1620_v8, %v14675_v7  ;;  %v10320_v8 = vld [vmem:[%s14431_s2 + $0x640] sm:$0xff]  }
  0xf3   : > { %v1640_v20 = vrot.slane %v14678_v53, 1  ;;  %v14680_v53 = vshrl.u32 %v11365_v48, 16 }
  0xf4   : > { %v11786_v46 = vsel %vm11206_vm2, 0, %v1531_v61  ;;  %v11794_v19 = vor.u32 %v1775_v60, %v1533_v49  ;;  %v14681_v61 = vshrl.u32 %v11390_v12, 16  ;;  %v10324_v60 = vld [vmem:[%s14431_s2 + $0x648] sm:$0xff]  }
  0xf5   : > { %3101 = vmatmul.mubr.bf16.gmra.mrb[28].mxu0 %v11739_v15  ;;  %v14676_v15 = vshrl.u32 %v11318_v6, 16  ;;  %14679 = vst [vmem:[#allocation44_spill] sm:$0xff] %v11786_v46 }
  0xf6   : > { %3198 = vmatmul.mubr.bf16.gmra.mrb[28].mxu1 %v11743_v52  ;;  %3238 = vmatprep.mubr.bf16.mxu0 %v11186_v4  ;;  %v14677_v4 = vshll.u32 %v11365_v48, 16 }
  0xf7   : > { %3335 = vmatprep.mubr.bf16.mxu1 %v11193_v9  ;;  %v11775_v52 = vor.u32 %v1632_v18, %v14676_v15  ;;  %v10318_v9 = vld [vmem:[%s14431_s2 + $0x5c0] sm:$0xff]   ;;  %v1535_v15 = vrot.slane %v1533_v49, 7  ;;  %v10321_v18 = vld [vmem:[%s14431_s2 + $0x608] sm:$0xff]  }
  0xf8   : > { %v1642_v31 = vrot.slane %v14677_v4, 1  ;;  %v11805_v4 = vor.u32 %v1640_v20, %v14681_v61  ;;  %v10322_v49 = vld [vmem:[%s14431_s2 + $0x5c8] sm:$0xff]   ;;  %v1542_v20 = vrot.slane %v14532_v5, 7  ;;  %v10329_v61 = vld [vmem:[%s14431_s2 + $0x618] sm:$0xff]  }
  0xfa   : > { %v11801_v7 = vor.u32 %v1642_v31, %v14680_v53  ;;  %v1538_v31 = vor.u32 %v1536_v23, %v1535_v15  ;;  %v11838_v15 = vld [vmem:[%s10918_s16 + $0x20] sm:$0xff] }
  0xfb   : > { %v10328_v53 = vld [vmem:[%s14431_s2 + $0x650] sm:$0xff]  }
  0xfc   : > { %v11832_v23 = vsel %vm11206_vm2, 0, %v1538_v31  ;;  %v14684_v31 = vshrl.u32 %v11427_v22, 16 }
  0xfd   : > { %3239 = vmatmul.mubr.bf16.vlgmr.msra.gmra.mrb[32].mxu0 %v11786_v46  ;;  %14682 = vst [vmem:[#allocation45_spill] sm:$0xff] %v11832_v23 }
  0xfe   : > { %3336 = vmatmul.mubr.bf16.vlgmr.msra.gmra.mrb[32].mxu1 %v11180_v2  ;;  %8789 = vmatpush3.bf16.msra.mxu0 %v10318_v9  ;;  %v10325_v2 = vld [vmem:[%s14431_s2 + $0x610] sm:$0xff]   ;;  %v14533_v9 = vshll.u32 %v11778_v1, 16 }
  0xff   : > { %3246 = vmatprep.mubr.bf16.mxu0 %v11258_v40  ;;  %3343 = vmatprep.mubr.bf16.mxu1 %v11261_v41  ;;  %v10327_v40 = vld [vmem:[%s14431_s2 + $0x690] sm:$0xff]  }
 0x100   : > { %8853 = vmatpush3.bf16.msra.mxu1 %v10320_v8  ;;  %8790 = vmatprep.subr.bf16.mxu0 %v10321_v18  ;;  %v10326_v8 = vld [vmem:[%s14431_s2 + $0x5d0] sm:$0xff]  }
 0x101   : > { %8854 = vmatprep.subr.bf16.mxu1 %v10323_v38  ;;  %v14683_v38 = vshll.u32 %v11427_v22, 16 }
 0x102   : > { %8791 = vmatpush3.bf16.msra.mxu0 %v10322_v49  ;;  %v10331_v49 = vld [vmem:[%s14431_s2 + $0x698] sm:$0xff]  }
 0x103   : > { %v1650_v18 = vrot.slane %v14683_v38, 1  ;;  %8792 = vmatprep.subr.bf16.mxu0 %v10325_v2  ;;  %v14534_v2 = vshrl.u32 %v11838_v15, 16  ;;  %v10332_v38 = vld [vmem:[%s14431_s2 + $0x658] sm:$0xff]  }
 0x104   : > { %8855 = vmatpush3.bf16.msra.mxu1 %v10324_v60  ;;  %v1545_v60 = vor.u32 %v14533_v9, %v1542_v20  ;;  %v10335_v20 = vld [vmem:[%s14431_s2 + $0x6a0] sm:$0xff]   ;;  %v11884_v9 = vld [vmem:[%s10918_s16 + $0x28] sm:$0xff] }
 0x105   : > { %8856 = vmatprep.subr.bf16.mxu1 %v10327_v40  ;;  %v11853_v5 = vor.u32 %v1650_v18, %v14684_v31  ;;  %3247 = vmatmul.mubr.bf16.gmra.mrb[36].mxu0 %v11832_v23  ;;  %v10330_v40 = vld [vmem:[%s14431_s2 + $0x5d8] sm:$0xff]  }
 0x106   : > { %3344 = vmatmul.mubr.bf16.gmra.mrb[36].mxu1 %v11223_v28  ;;  %3254 = vmatprep.mubr.bf16.mxu0 %v11318_v6  ;;  %v10333_v28 = vld [vmem:[%s14431_s2 + $0x620] sm:$0xff]   ;;  %v14685_v6 = vshll.u32 %v11460_v36, 16  ;;  %v11878_v31 = vsel %vm11206_vm2, 0, %v1545_v60 }
 0x107   : > { %3351 = vmatprep.mubr.bf16.mxu1 %v11332_v16  ;;  %8793 = vmatpush3.bf16.msra.mxu0 %v10326_v8  ;;  %14686 = vst [vmem:[#allocation46_spill] sm:$0xff] %v11878_v31  ;;  %v1549_v8 = vrot.slane %v14534_v2, 7  ;;  %v10336_v60 = vld [vmem:[%s14431_s2 + $0x660] sm:$0xff]   ;;  %v14688_v2 = vshll.u32 %v11506_v37, 16 }
 0x108   : > { %8857 = vmatpush3.bf16.msra.mxu1 %v10328_v53  ;;  %8794 = vmatprep.subr.bf16.mxu0 %v10329_v61  ;;  %v1648_v18 = vrot.slane %v14685_v6, 1  ;;  %v14687_v61 = vshrl.u32 %v11460_v36, 16  ;;  %v10334_v6 = vld [vmem:[%s14431_s2 + $0x5e0] sm:$0xff]   ;;  %v14689_v53 = vshll.u32 %v11526_v13, 16 }
 0x109   : > { %8858 = vmatprep.subr.bf16.mxu1 %v10331_v49  ;;  %v1658_v23 = vrot.slane %v14688_v2, 1  ;;  %v14690_v2 = vshll.u32 %v11838_v15, 16 }
 0x10a   : > { %v11888_v49 = vor.u32 %v1648_v18, %v14687_v61  ;;  %v1656_v46 = vrot.slane %v14689_v53, 1  ;;  %v14691_v53 = vshrl.u32 %v11506_v37, 16 }
 0x10b   : > { %8795 = vmatpush3.bf16.msra.mxu0 %v10330_v40  ;;  %v10337_v40 = vld [vmem:[%s14431_s2 + $0x628] sm:$0xff]   ;;  %v1552_v18 = vor.u32 %v14690_v2, %v1549_v8  ;;  %v11928_v8 = vld [vmem:[%s10918_s16 + $0x30] sm:$0xff] }
 0x10c   : > { %8859 = vmatpush3.bf16.msra.mxu1 %v10332_v38  ;;  %8796 = vmatprep.subr.bf16.mxu0 %v10333_v28  ;;  %v10339_v38 = vld [vmem:[%s14431_s2 + $0x6a8] sm:$0xff]   ;;  %v11918_v61 = vor.u32 %v1658_v23, %v14691_v53  ;;  %v10341_v2 = vld [vmem:[%s14431_s2 + $0x630] sm:$0xff]   ;;  %v14547_v23 = vshll.u32 %v11884_v9, 16  ;;  %v14694_v53 = vshll.u32 %v11561_v32, 16 }
 0x10d   : > { %8860 = vmatprep.subr.bf16.mxu1 %v10335_v20  ;;  %3255 = vmatmul.mubr.bf16.gmra.mrb[40].mxu0 %v11878_v31  ;;  %v10338_v28 = vld [vmem:[%s14431_s2 + $0x5e8] sm:$0xff]   ;;  %v11922_v31 = vor.u32 %v1656_v46, %v14692_v59  ;;  %v10343_v59 = vld [vmem:[%s14431_s2 + $0x6b0] sm:$0xff]  }
 0x10e   : > { %3352 = vmatmul.mubr.bf16.gmra.mrb[40].mxu1 %v11295_v57  ;;  %v10340_v20 = vld [vmem:[%s14431_s2 + $0x668] sm:$0xff]   ;;  %3262 = vmatprep.mubr.bf16.mxu0 %v11390_v12  ;;  %v14542_v57 = vshrl.u32 %v11884_v9, 16  ;;  %v11939_v12 = vsel %vm11206_vm2, 0, %v1552_v18  ;;  %v10342_v46 = vld [vmem:[%s14431_s2 + $0x5f0] sm:$0xff]   ;;  %v10347_v18 = vld [vmem:[%s14431_s2 + $0x6b8] sm:$0xff]  }
 0x10f   : > { %3359 = vmatprep.mubr.bf16.mxu1 %v11401_v25  ;;  %8797 = vmatpush3.bf16.msra.mxu0 %v10334_v6  ;;  %14693 = vst [vmem:[#allocation47_spill] sm:$0xff] %v11939_v12 }
 0x110   : > { %8861 = vmatpush3.bf16.msra.mxu1 %v10336_v60  ;;  %8798 = vmatprep.subr.bf16.mxu0 %v10337_v40  ;;  %v1556_v6 = vrot.slane %v14542_v57, 7  ;;  %v10344_v60 = vld [vmem:[%s14431_s2 + $0x670] sm:$0xff]   ;;  %v1666_v57 = vrot.slane %v14694_v53, 1 }
 0x111   : > { %8862 = vmatprep.subr.bf16.mxu1 %v10339_v38  ;;  %v10345_v38 = vld [vmem:[%s14431_s2 + $0x638] sm:$0xff]  }
 0x113   : > { %8799 = vmatpush3.bf16.msra.mxu0 %v10338_v28  ;;  %v10346_v28 = vld [vmem:[%s14431_s2 + $0x5f8] sm:$0xff]  }
 0x114   : > { %8863 = vmatpush3.bf16.msra.mxu1 %v10340_v20  ;;  %8800 = vmatprep.subr.bf16.mxu0 %v10341_v2  ;;  %v14695_v20 = vshll.u32 %v11598_v14, 16  ;;  %v1559_v2 = vor.u32 %v14547_v23, %v1556_v6  ;;  %v14698_v6 = vshrl.u32 %v11598_v14, 16  ;;  %v14699_v23 = vshll.u32 %v11660_v11, 16 }
 0x115   : > { %8864 = vmatprep.subr.bf16.mxu1 %v10343_v59  ;;  %3263 = vmatmul.mubr.bf16.gmra.mrb[44].mxu0 %v11939_v12  ;;  %v10348_v59 = vld [vmem:[%s14431_s2 + $0x678] sm:$0xff]   ;;  %v14697_v12 = vshll.u32 %v11639_v26, 16 }
 0x116   : > { %3360 = vmatmul.mubr.bf16.gmra.mrb[44].mxu1 %v11365_v48  ;;  %v1664_v40 = vrot.slane %v14695_v20, 1  ;;  %3270 = vmatprep.mubr.bf16.mxu0 %v11460_v36  ;;  %v14696_v48 = vshrl.u32 %v11561_v32, 16  ;;  %v10349_v36 = vld [vmem:[%s14431_s2 + $0x700] sm:$0xff]   ;;  %v1672_v10 = vrot.slane %v14699_v23, 1  ;;  %v12003_v23 = vsel %vm11206_vm2, 0, %v1559_v2 }
 0x117   : > { %3367 = vmatprep.mubr.bf16.mxu1 %v11463_v47  ;;  %v1674_v39 = vrot.slane %v14697_v12, 1  ;;  %8801 = vmatpush3.bf16.msra.mxu0 %v10342_v46  ;;  %v14700_v12 = vshrl.u32 %v11639_v26, 16  ;;  %14702 = vst [vmem:[#allocation48_spill] sm:$0xff] %v12003_v23 }
 0x118   : > { %v11974_v53 = vor.u32 %v1666_v57, %v14696_v48  ;;  %8865 = vmatpush3.bf16.msra.mxu1 %v10344_v60  ;;  %v11983_v20 = vor.u32 %v1664_v40, %v14698_v6  ;;  %8802 = vmatprep.subr.bf16.mxu0 %v10345_v38  ;;  %v11990_v57 = vld [vmem:[%s14431_s2 + $0x740] sm:$0xff]   ;;  %v1564_v60 = vshll.u32 %v11928_v8, 16  ;;  %v14701_v48 = vshrl.u32 %v11660_v11, 16  ;;  %v12008_v6 = vld [vmem:[%s10918_s16 + $0x38] sm:$0xff] }
 0x119   : > { %8866 = vmatprep.subr.bf16.mxu1 %v10347_v18  ;;  %v11994_v46 = vor.u32 %v1674_v39, %v14700_v12  ;;  %v14703_v38 = vshrl.u32 %v11928_v8, 16  ;;  %v1568_v12 = vshrl.u32 %v12008_v6, 16 }
 0x11a   : > { %v11999_v40 = vor.u32 %v1672_v10, %v14701_v48  ;;  %v14704_v10 = vshll.u32 %v11714_v55, 16 }
 0x11b   : > { %v1563_v18 = vrot.slane %v14703_v38, 7  ;;  %8803 = vmatpush3.bf16.msra.mxu0 %v10346_v28  ;;  %v14705_v28 = vshrl.u32 %v11714_v55, 16  ;;  %v12028_v38 = vld [vmem:[%s10918_s16 + $0x40] sm:$0xff] }
 0x11c   : > { %8867 = vmatpush3.bf16.msra.mxu1 %v10348_v59  ;;  %8916 = vmatprep.subr.bf16.mxu0 %v10349_v36  ;;  %v1773_v39 = vrot.slane %v14704_v10, 1  ;;  %v1571_v36 = vshll.u32 %v12008_v6, 16  ;;  %v1575_v56 = vshrl.u32 %v12028_v38, 16 }
 0x11d   : > { %9924 = vmatprep.subr.bf16.mxu1 %v11990_v57  ;;  %3271 = vmatmul.mubr.bf16.gmra.mrb[48].mxu0 %v12003_v23  ;;  %v1566_v2 = vor.u32 %v1564_v60, %v1563_v18  ;;  %v14708_v18 = vshrl.u32 %v11778_v1, 16 }
 0x11e   : > { %3368 = vmatmul.mubr.bf16.gmra.mrb[48].mxu1 %v11427_v22  ;;  %3278 = vmatprep.mubr.bf16.mxu0 %v11526_v13  ;;  %v12020_v59 = vor.u32 %v1773_v39, %v14705_v28  ;;  %v1570_v22 = vrot.slane %v1568_v12, 7  ;;  %v14707_v13 = vshll.u32 %v11778_v1, 16  ;;  %v14709_v28 = vshll.u32 %v11838_v15, 16 }
 0x11f   : > { %3375 = vmatprep.mubr.bf16.mxu1 %v11529_v24  ;;  %v12025_v48 = vsel %vm11206_vm2, 0, %v1566_v2 }
 0x120   : > { %14706 = vst [vmem:[#allocation49_spill] sm:$0xff] %v12025_v48  ;;  %v1777_v10 = vrot.slane %v14707_v13, 1  ;;  %v1779_v23 = vrot.slane %v14709_v28, 1  ;;  %v1573_v2 = vor.u32 %v1571_v36, %v1570_v22  ;;  %v14710_v13 = vshrl.u32 %v11838_v15, 16 }
 0x121   : > { %v14712_v28 = vshll.u32 %v11884_v9, 16  ;;  %v1783_v22 = vrot.slane %v1564_v60, 1  ;;  %v1785_v60 = vrot.slane %v1571_v36, 1  ;;  %v10357_v36 = vld [vmem:[%s14431_s2 + $0x750] sm:$0xff]  }
 0x122   : > { %v12036_v39 = vor.u32 %v1777_v10, %v14708_v18  ;;  %v12045_v34 = vor.u32 %v1779_v23, %v14710_v13  ;;  %v12050_v10 = vsel %vm11206_vm2, 0, %v1573_v2  ;;  %v1577_v18 = vrot.slane %v1575_v56, 7 }
 0x123   : > { %14711 = vst [vmem:[#allocation50_spill] sm:$0xff] %v12050_v10  ;;  %v14714_v13 = vshrl.u32 %v11928_v8, 16 }
 0x125   : > { %3279 = vmatmul.mubr.bf16.gmra.mrb[52].mxu0 %v12025_v48  ;;  %v1781_v48 = vrot.slane %v14712_v28, 1  ;;  %v12064_v30 = vor.u32 %v1783_v22, %v14714_v13  ;;  %v14715_v28 = vmov 0  ;;  %v12090_v22 = vsel %vm12066_vm5, %v11265_v43, 0  ;;  %v10353_v43 = vld [vmem:[%s14431_s2 + $0x6c8] sm:$0xff]   ;;  %v10614_v13 = vld [vmem:[%s10914_s10 + $0x58] sm:$0xff] }
 0x126   : > { %3376 = vmatmul.mubr.bf16.gmra.mrb[52].mxu1 %v11506_v37  ;;  %3286 = vmatprep.mubr.bf16.mxu0 %v11598_v14  ;;  %v1578_v37 = vshll.u32 %v12028_v38, 16  ;;  %v14713_v14 = vshrl.u32 %v11884_v9, 16  ;;  %v14716_v28 = vsel %vm12066_vm5, 4294967295, %v14715_v28 }
 0x127   : > { %3383 = vmatprep.mubr.bf16.mxu1 %v11601_v45  ;;  %14717 = vst [vmem:[#allocation51_spill] sm:$0xff] %v14716_v28  ;;  %v13917_v28 = vld [vmem:[%s14431_s2 + $0xab8] sm:$0xff]  }
 0x128   : > { %v12058_v23 = vor.u32 %v1781_v48, %v14713_v14  ;;  %v1580_v2 = vor.u32 %v1578_v37, %v1577_v18  ;;  %v12081_v48 = vor.u32 %v1785_v60, %v1568_v12  ;;  %v1787_v18 = vrot.slane %v1578_v37, 1  ;;  %v10613_v12 = vld [vmem:[%s10914_s10 + $0x38] sm:$0xff]  ;;  %v10356_v37 = vld [vmem:[%s14431_s2 + $0x6d0] sm:$0xff]   ;;  %v10361_v60 = vld [vmem:[%s14431_s2 + $0x720] sm:$0xff]  }
 0x12a   : > { %v12085_v14 = vor.u32 %v1787_v18, %v1575_v56  ;;  %v10354_v56 = vld [vmem:[%s14431_s2 + $0x748] sm:$0xff]   ;;  %v10363_v18 = vld [vmem:[%s14431_s2 + $0x760] sm:$0xff]  }
 0x12d   : > { %3287 = vmatmul.mubr.bf16.gmra.mrb[56].mxu0 %v12050_v10 }
 0x12e   : > { %3384 = vmatmul.mubr.bf16.gmra.mrb[56].mxu1 %v11561_v32  ;;  %3294 = vmatprep.mubr.bf16.mxu0 %v11660_v11  ;;  %v12072_v32 = vsel %vm11206_vm2, 0, %v1580_v2  ;;  %v12077_v11 = vsel %vm12066_vm5, %v11263_v42, 0  ;;  %v10350_v42 = vld [vmem:[%s14431_s2 + $0x6c0] sm:$0xff]   ;;  %v10358_v2 = vld [vmem:[%s14431_s2 + $0x718] sm:$0xff]  }
 0x12f   : > { %3391 = vmatprep.mubr.bf16.mxu1 %v11663_v44  ;;  %14718 = vst [vmem:[#allocation52_spill] sm:$0xff] %v12072_v32 }
 0x135   : > { %3295 = vmatmul.mubr.bf16.gmra.mrb[60].mxu0 %v12072_v32 }
 0x136   : > { %3392 = vmatmul.mubr.bf16.gmra.mrb[60].mxu1 %v11639_v26  ;;  %3432 = vmatprep.mubr.bf16.mxu0 %v11714_v55  ;;  %v10352_v26 = vld [vmem:[%s14431_s2 + $0x708] sm:$0xff]   ;;  %v12101_v55 = vsel %vm12066_vm5, %v11605_v21, 0  ;;  %v10355_v21 = vld [vmem:[%s14431_s2 + $0x710] sm:$0xff]  }
 0x137   : > { %3529 = vmatprep.mubr.bf16.mxu1 %v12077_v11 }
 0x13d   : > { %3433 = vmatmul.mubr.bf16.vlgmr.msra.gmra.mrb[64].mxu0 %v10613_v12  ;;  %v10615_v12 = vld [vmem:[%s10914_s10 + $0x78] sm:$0xff] }
 0x13e   : > { %3530 = vmatmul.mubr.bf16.vlgmr.msra.gmra.mrb[64].mxu1 %v12090_v22  ;;  %8917 = vmatpush3.bf16.msra.mxu0 %v10350_v42  ;;  %v10362_v42 = vld [vmem:[%s14431_s2 + $0x6e0] sm:$0xff]  }
 0x13f   : > { %3440 = vmatprep.mubr.bf16.mxu0 %v11753_v27  ;;  %3537 = vmatprep.mubr.bf16.mxu1 %v12101_v55  ;;  %v12123_v27 = vsel %vm12066_vm5, %v11748_v51, 0  ;;  %v10360_v51 = vld [vmem:[%s14431_s2 + $0x758] sm:$0xff]  }
 0x140   : > { %9925 = vmatpush3.bf16.msra.mxu1 %v11990_v57  ;;  %8918 = vmatprep.subr.bf16.mxu0 %v10352_v26  ;;  %v12128_v57 = vsel %vm12066_vm5, %v11757_v58, 0  ;;  %v10359_v58 = vld [vmem:[%s14431_s2 + $0x6d8] sm:$0xff]   ;;  %v12163_v26 = vsel %vm12066_vm5, %v11801_v7, 0  ;;  %v10365_v7 = vld [vmem:[%s14431_s2 + $0x6e8] sm:$0xff]  }
 0x141   : > { %9926 = vmatprep.subr.bf16.mxu1 %v10354_v56 }
 0x142   : > { %8919 = vmatpush3.bf16.msra.mxu0 %v10353_v43  ;;  %v10367_v43 = vld [vmem:[%s14431_s2 + $0x730] sm:$0xff]  }
 0x143   : > { %8920 = vmatprep.subr.bf16.mxu0 %v10355_v21  ;;  %v10369_v21 = vld [vmem:[%s14431_s2 + $0x770] sm:$0xff]  }
 0x144   : > { %9927 = vmatpush3.bf16.msra.mxu1 %v10354_v56  ;;  %v10364_v56 = vld [vmem:[%s14431_s2 + $0x728] sm:$0xff]  }
 0x145   : > { %9928 = vmatprep.subr.bf16.mxu1 %v10357_v36  ;;  %3441 = vmatmul.mubr.bf16.gmra.mrb[68].mxu0 %v10614_v13  ;;  %v10373_v13 = vld [vmem:[%s14431_s2 + $0x40] sm:$0xff]  }
 0x146   : > { %3538 = vmatmul.mubr.bf16.gmra.mrb[68].mxu1 %v12123_v27  ;;  %3448 = vmatprep.mubr.bf16.mxu0 %v11778_v1  ;;  %v12155_v1 = vsel %vm12066_vm5, %v11775_v52, 0  ;;  %v10366_v52 = vld [vmem:[%s14431_s2 + $0x768] sm:$0xff]  }
 0x147   : > { %3545 = vmatprep.mubr.bf16.mxu1 %v12128_v57  ;;  %8921 = vmatpush3.bf16.msra.mxu0 %v10356_v37  ;;  %v12195_v37 = vsel %vm12066_vm5, %v11853_v5, 0  ;;  %v10371_v5 = vld [vmem:[%s14431_s2 + $0x6f8] sm:$0xff]  }
 0x148   : > { %9929 = vmatpush3.bf16.msra.mxu1 %v10357_v36  ;;  %8922 = vmatprep.subr.bf16.mxu0 %v10358_v2  ;;  %v10368_v36 = vld [vmem:[%s14431_s2 + $0x6f0] sm:$0xff]   ;;  %v10370_v2 = vld [vmem:[%s14431_s2 + $0x738] sm:$0xff]  }
 0x149   : > { %9930 = vmatprep.subr.bf16.mxu1 %v10360_v51 }
 0x14b   : > { %8923 = vmatpush3.bf16.msra.mxu0 %v10359_v58  ;;  %v10374_v58 = vld [vmem:[%s14431_s2 + $0xc0] sm:$0xff]  }
 0x14c   : > { %9931 = vmatpush3.bf16.msra.mxu1 %v10360_v51  ;;  %8924 = vmatprep.subr.bf16.mxu0 %v10361_v60  ;;  %v10616_v51 = vld [vmem:[%s10914_s10 + $0x98] sm:$0xff]  ;;  %v12224_v60 = vsel %vm12066_vm5, %v11918_v61, 0  ;;  %v12238_v61 = vsel %vm12066_vm5, %v11974_v53, 0 }
 0x14d   : > { %9932 = vmatprep.subr.bf16.mxu1 %v10363_v18  ;;  %3449 = vmatmul.mubr.bf16.gmra.mrb[72].mxu0 %v10615_v12  ;;  %14719 = vst [vmem:[#allocation53_spill] sm:$0xff] %v12224_v60  ;;  %14721 = vst [vmem:[#allocation55_spill] sm:$0xff] %v12238_v61  ;;  %v12256_v12 = vsel %vm12066_vm5, %v11994_v46, 0  ;;  %v12274_v46 = vsel %vm12066_vm5, %v11771_v35, 0  ;;  %v12292_v35 = vsel %vm12066_vm5, %v12020_v59, 0  ;;  %v14741_v59 = vshll.u32 %v11368_v50, 16 }
 0x14e   : > { %3546 = vmatmul.mubr.bf16.gmra.mrb[72].mxu1 %v12155_v1  ;;  %3456 = vmatprep.mubr.bf16.mxu0 %v11838_v15  ;;  %v12187_v15 = vsel %vm12066_vm5, %v11805_v4, 0  ;;  %v10372_v4 = vld [vmem:[%s14431_s2 + $0x778] sm:$0xff]   ;;  %14725 = vst [vmem:[#allocation57_spill] sm:$0xff] %v12256_v12  ;;  %14732 = vst [vmem:[#allocation60_spill] sm:$0xff] %v12292_v35 }
 0x14f   : > { %3553 = vmatprep.mubr.bf16.mxu1 %v12163_v26  ;;  %8925 = vmatpush3.bf16.msra.mxu0 %v10362_v42  ;;  %v10618_v42 = vld [vmem:[%s10914_s10 + $0xd8] sm:$0xff] }
 0x150   : > { %9933 = vmatpush3.bf16.msra.mxu1 %v10363_v18  ;;  %8926 = vmatprep.subr.bf16.mxu0 %v10364_v56  ;;  %v10617_v18 = vld [vmem:[%s10914_s10 + $0xb8] sm:$0xff] }
 0x151   : > { %9934 = vmatprep.subr.bf16.mxu1 %v10366_v52 }
 0x153   : > { %8927 = vmatpush3.bf16.msra.mxu0 %v10365_v7  ;;  %v14727_v7 = vshrl.u32 %v11183_v3, 16 }
 0x154   : > { %9935 = vmatpush3.bf16.msra.mxu1 %v10366_v52  ;;  %8928 = vmatprep.subr.bf16.mxu0 %v10367_v43  ;;  %v14724_v52 = vshll.u32 %v11226_v29, 16  ;;  %v14728_v43 = vshrl.u32 %v11226_v29, 16  ;;  %v14730_v29 = vshll.u32 %v11261_v41, 16 }
 0x155   : > { %9936 = vmatprep.subr.bf16.mxu1 %v10369_v21  ;;  %3457 = vmatmul.mubr.bf16.gmra.mrb[76].mxu0 %v10616_v51 }
 0x156   : > { %3554 = vmatmul.mubr.bf16.gmra.mrb[76].mxu1 %v12187_v15  ;;  %3464 = vmatprep.mubr.bf16.mxu0 %v11884_v9  ;;  %v12219_v9 = vsel %vm12066_vm5, %v11888_v49, 0  ;;  %v12233_v49 = vsel %vm12066_vm5, %v11922_v31, 0  ;;  %v14723_v31 = vshll.u32 %v11183_v3, 16  ;;  %v1630_v53 = vrot.slane %v14724_v52, 1  ;;  %v10620_v52 = vld [vmem:[%s10914_s10 + $0x118] sm:$0xff] }
 0x157   : > { %3561 = vmatprep.mubr.bf16.mxu1 %v12195_v37  ;;  %8929 = vmatpush3.bf16.msra.mxu0 %v10368_v36  ;;  %14720 = vst [vmem:[#allocation54_spill] sm:$0xff] %v12233_v49  ;;  %v10619_v36 = vld [vmem:[%s10914_s10 + $0xf8] sm:$0xff]  ;;  %v12279_v3 = vsel %vm12066_vm5, %v11794_v19, 0  ;;  %v14734_v19 = vshll.u32 %v11332_v16, 16 }
 0x158   : > { %9937 = vmatpush3.bf16.msra.mxu1 %v10369_v21  ;;  %8930 = vmatprep.subr.bf16.mxu0 %v10370_v2  ;;  %v1622_v56 = vrot.slane %v14723_v31, 1  ;;  %v1631_v21 = vor.u32 %v1630_v53, %v14728_v43  ;;  %14729 = vst [vmem:[#allocation59_spill] sm:$0xff] %v12279_v3  ;;  %v14731_v2 = vshll.u32 %v11308_v62, 16  ;;  %v14737_v31 = vshrl.u32 %v11332_v16, 16 }
 0x159   : > { %9938 = vmatprep.subr.bf16.mxu1 %v10372_v4  ;;  %v12322_v16 = vsel %vm12066_vm5, %v12045_v34, 0  ;;  %v1646_v53 = vrot.slane %v14741_v59, 1  ;;  %v10376_v34 = vld [vmem:[%s14431_s2 + $0x80] sm:$0xff]  }
 0x15a   : > { %v12296_v51 = vsel %vm12066_vm5, %v1631_v21, 0  ;;  %14740 = vst [vmem:[#allocation64_spill] sm:$0xff] %v12322_v16  ;;  %v14745_v21 = vshll.u32 %v11401_v25, 16 }
 0x15b   : > { %8931 = vmatpush3.bf16.msra.mxu0 %v10371_v5  ;;  %14733 = vst [vmem:[#allocation61_spill] sm:$0xff] %v12296_v51  ;;  %v1636_v5 = vrot.slane %v14734_v19, 1  ;;  %v10378_v19 = vld [vmem:[%s14431_s2 + $0x8] sm:$0xff]  }
 0x15c   : > { %9939 = vmatpush3.bf16.msra.mxu1 %v10372_v4  ;;  %9060 = vmatprep.subr.bf16.mxu0 %v10374_v58  ;;  %v1638_v4 = vrot.slane %v14731_v2, 1 }
 0x15d   : > { %8996 = vmatprep.subr.bf16.mxu1 %v10373_v13  ;;  %3465 = vmatmul.mubr.bf16.gmra.mrb[80].mxu0 %v10617_v18  ;;  %v14735_v13 = vshrl.u32 %v11261_v41, 16  ;;  %v14736_v18 = vshrl.u32 %v11308_v62, 16  ;;  %v12313_v41 = vsel %vm12066_vm5, %v12036_v39, 0  ;;  %v12333_v39 = vsel %vm12066_vm5, %v12058_v23, 0  ;;  %v10377_v23 = vld [vmem:[%s14431_s2 + $0x48] sm:$0xff]  }
 0x15e   : > { %3562 = vmatmul.mubr.bf16.gmra.mrb[80].mxu1 %v12219_v9  ;;  %3472 = vmatprep.mubr.bf16.mxu0 %v11928_v8  ;;  %v12247_v8 = vsel %vm12066_vm5, %v11983_v20, 0  ;;  %v1623_v20 = vor.u32 %v1622_v56, %v14727_v7  ;;  %v1637_v56 = vor.u32 %v1636_v5, %v14737_v31  ;;  %14738 = vst [vmem:[#allocation62_spill] sm:$0xff] %v12313_v41  ;;  %14743 = vst [vmem:[#allocation66_spill] sm:$0xff] %v12333_v39  ;;  %v10382_v5 = vld [vmem:[%s14431_s2 + $0x88] sm:$0xff]  }
 0x15f   : > { %3569 = vmatprep.mubr.bf16.mxu1 %v12224_v60  ;;  %14722 = vst [vmem:[#allocation56_spill] sm:$0xff] %v12247_v8  ;;  %v12386_v31 = vsel %vm12066_vm5, %v12081_v48, 0  ;;  %v12400_v48 = vsel %vm12066_vm5, %v12085_v14, 0  ;;  %v10392_v14 = vld [vmem:[%s14431_s2 + $0xd8] sm:$0xff]  }
 0x160   : > { %v12343_v43 = vsel %vm12066_vm5, %v1637_v56, 0  ;;  %14750 = vst [vmem:[#allocation70_spill] sm:$0xff] %v12386_v31  ;;  %14752 = vst [vmem:[#allocation72_spill] sm:$0xff] %v12400_v48 }
 0x161   : > { %14744 = vst [vmem:[#allocation67_spill] sm:$0xff] %v12343_v43 }
 0x165   : > { %3473 = vmatmul.mubr.bf16.gmra.mrb[84].mxu0 %v10618_v42  ;;  %v1639_v42 = vor.u32 %v1638_v4, %v14736_v18  ;;  %v12356_v4 = vld [vmem:[%s10914_s10 + $0x8] sm:$0xff]  ;;  %v12374_v18 = vsel %vm12066_vm5, %v12064_v30, 0  ;;  %v10381_v30 = vld [vmem:[%s14431_s2 + $0x10] sm:$0xff]  }
 0x166   : > { %3570 = vmatmul.mubr.bf16.gmra.mrb[84].mxu1 %v12233_v49  ;;  %3480 = vmatprep.mubr.bf16.mxu0 %v12008_v6  ;;  %v12261_v6 = vsel %vm12066_vm5, %v11999_v40, 0  ;;  %v1628_v40 = vrot.slane %v14730_v29, 1  ;;  %v10380_v29 = vld [vmem:[%s14431_s2 + $0xc8] sm:$0xff]   ;;  %14748 = vst [vmem:[#allocation68_spill] sm:$0xff] %v12374_v18 }
 0x167   : > { %3577 = vmatprep.mubr.bf16.mxu1 %v12238_v61  ;;  %14726 = vst [vmem:[#allocation58_spill] sm:$0xff] %v12261_v6  ;;  %v12328_v7 = vsel %vm12066_vm5, %v1639_v42, 0 }
 0x168   : > { %v1629_v58 = vor.u32 %v1628_v40, %v14735_v13  ;;  %14742 = vst [vmem:[#allocation65_spill] sm:$0xff] %v12328_v7  ;;  %v14746_v40 = vshrl.u32 %v11368_v50, 16  ;;  %v14747_v13 = vshrl.u32 %v11401_v25, 16  ;;  %v10379_v50 = vld [vmem:[%s14431_s2 + $0x50] sm:$0xff]  }
 0x169   : > { %v10386_v25 = vld [vmem:[%s14431_s2 + $0xd0] sm:$0xff]  }
 0x16a   : > { %v12317_v62 = vsel %vm12066_vm5, %v1629_v58, 0  ;;  %v1647_v2 = vor.u32 %v1646_v53, %v14746_v40  ;;  %v14558_v53 = vshrl.u32 %v12356_v4, 16  ;;  %v10385_v40 = vld [vmem:[%s14431_s2 + $0x60] sm:$0xff]  }
 0x16b   : > { %14739 = vst [vmem:[#allocation63_spill] sm:$0xff] %v12317_v62 }
 0x16c   : > { %v12381_v42 = vsel %vm12066_vm5, %v1647_v2, 0  ;;  %v10394_v2 = vld [vmem:[%s14431_s2 + $0x98] sm:$0xff]  }
 0x16d   : > { %3481 = vmatmul.mubr.bf16.gmra.mrb[88].mxu0 %v10619_v36  ;;  %v1644_v36 = vrot.slane %v14745_v21, 1  ;;  %14749 = vst [vmem:[#allocation69_spill] sm:$0xff] %v12381_v42  ;;  %v12415_v21 = vld [vmem:[%s10914_s10] sm:$0xff] }
 0x16e   : > { %3578 = vmatmul.mubr.bf16.gmra.mrb[88].mxu1 %v12247_v8  ;;  %3488 = vmatprep.mubr.bf16.mxu0 %v12028_v38  ;;  %v12287_v38 = vsel %vm12066_vm5, %v1623_v20, 0  ;;  %v10375_v20 = vld [vmem:[%s14431_s2] sm:$0xff]  }
 0x16f   : > { %3585 = vmatprep.mubr.bf16.mxu1 %v12256_v12  ;;  %v1645_v58 = vor.u32 %v1644_v36, %v14747_v13  ;;  %v10384_v36 = vld [vmem:[%s14431_s2 + $0x18] sm:$0xff]  }
 0x171   : > { %v12395_v56 = vsel %vm12066_vm5, %v1645_v58, 0  ;;  %v14757_v58 = vshll.u32 %v11529_v24, 16 }
 0x172   : > { %14751 = vst [vmem:[#allocation71_spill] sm:$0xff] %v12395_v56 }
 0x175   : > { %3489 = vmatmul.mubr.bf16.gmra.mrb[92].mxu0 %v10620_v52  ;;  %v14753_v52 = vshll.u32 %v11438_v63, 16 }
 0x176   : > { %3586 = vmatmul.mubr.bf16.gmra.mrb[92].mxu1 %v12261_v6  ;;  %3626 = vmatprep.mubr.bf16.mxu0 %v12287_v38 }
 0x177   : > { %9940 = vmatprep.mubr.bf16.mxu1 %v12292_v35  ;;  %v1654_v59 = vrot.slane %v14753_v52, 1  ;;  %v1165_v52 = vrot.slane %v14558_v53, 7 }
 0x17d   : > { %3627 = vmatmul.mubr.bf16.vlgmr.msra.gmra.mrb[96].mxu0 %v12274_v46 }
 0x17e   : > { %9941 = vmatmul.mubr.bf16.vlgmr.msra.gmra.mrb[96].mxu1 %v12279_v3  ;;  %9061 = vmatpush3.bf16.msra.mxu0 %v10376_v34  ;;  %v10388_v34 = vld [vmem:[%s14431_s2 + $0x90] sm:$0xff]  }
 0x17f   : > { %8997 = vmatpush3.bf16.msra.mxu1 %v10375_v20  ;;  %3634 = vmatprep.mubr.bf16.mxu0 %v12296_v51  ;;  %v10383_v20 = vld [vmem:[%s14431_s2 + $0x58] sm:$0xff]  }
 0x180   : > { %8998 = vmatprep.subr.bf16.mxu1 %v10377_v23  ;;  %9944 = vmatprep.mubr.bf16.mxu1 %v12313_v41  ;;  %v14754_v23 = vshrl.u32 %v11438_v63, 16  ;;  %v14756_v63 = vshll.u32 %v11509_v54, 16  ;;  %v14773_v41 = vld [vmem:[#allocation12_spill] sm:$0xff] }
 0x181   : > { %9062 = vmatprep.subr.bf16.mxu0 %v10380_v29 }
 0x182   : > { %9063 = vmatpush3.bf16.msra.mxu0 %v10382_v5  ;;  %v1655_v29 = vor.u32 %v1654_v59, %v14754_v23  ;;  %v1662_v13 = vrot.slane %v14756_v63, 1  ;;  %v14563_v59 = vshll.u32 %v12356_v4, 16  ;;  %v14559_v23 = vshrl.u32 %v12415_v21, 16 }
 0x183   : > { %8999 = vmatpush3.bf16.msra.mxu1 %v10378_v19  ;;  %9064 = vmatprep.subr.bf16.mxu0 %v10386_v25  ;;  %v14755_v19 = vshll.u32 %v11463_v47, 16  ;;  %v10387_v25 = vld [vmem:[%s14431_s2 + $0x20] sm:$0xff]   ;;  %v14759_v63 = vshrl.u32 %v11463_v47, 16 }
 0x184   : > { %9000 = vmatprep.subr.bf16.mxu1 %v10379_v50  ;;  %v1660_v50 = vrot.slane %v14757_v58, 1  ;;  %v1168_v47 = vor.u32 %v14563_v59, %v1165_v52 }
 0x185   : > { %3635 = vmatmul.mubr.bf16.gmra.mrb[100].mxu0 %v12317_v62  ;;  %v1652_v5 = vrot.slane %v14755_v19, 1  ;;  %v10390_v19 = vld [vmem:[%s14431_s2 + $0x28] sm:$0xff]  }
 0x186   : > { %9945 = vmatmul.mubr.bf16.gmra.mrb[100].mxu1 %v12322_v16  ;;  %3642 = vmatprep.mubr.bf16.mxu0 %v12328_v7 }
 0x187   : > { %9001 = vmatpush3.bf16.msra.mxu1 %v10381_v30  ;;  %9948 = vmatprep.mubr.bf16.mxu1 %v12333_v39  ;;  %v12443_v30 = vsel %vm12066_vm5, %v1655_v29, 0  ;;  %v10398_v29 = vld [vmem:[%s14431_s2 + $0xa0] sm:$0xff]   ;;  %v1653_v58 = vor.u32 %v1652_v5, %v14759_v63  ;;  %v14761_v5 = vshll.u32 %v11579_v33, 16  ;;  %v14762_v63 = vshrl.u32 %v11529_v24, 16 }
 0x188   : > { %9002 = vmatprep.subr.bf16.mxu1 %v10383_v20  ;;  %9065 = vmatpush3.bf16.msra.mxu0 %v10388_v34  ;;  %14758 = vst [vmem:[#allocation73_spill] sm:$0xff] %v12443_v30  ;;  %v10389_v20 = vld [vmem:[%s14431_s2 + $0x68] sm:$0xff]   ;;  %v10397_v34 = vld [vmem:[%s14431_s2 + $0xe0] sm:$0xff]  }
 0x189   : > { %9066 = vmatprep.subr.bf16.mxu0 %v10392_v14  ;;  %v14760_v14 = vshrl.u32 %v11509_v54, 16  ;;  %v10401_v54 = vld [vmem:[%s14431_s2 + $0xe8] sm:$0xff]   ;;  %v12489_v6 = vsel %vm12066_vm5, %v1653_v58, 0 }
 0x18a   : > { %14763 = vst [vmem:[#allocation74_spill] sm:$0xff] %v12489_v6 }
 0x18b   : > { %9003 = vmatpush3.bf16.msra.mxu1 %v10384_v36  ;;  %v1663_v36 = vor.u32 %v1662_v13, %v14760_v14  ;;  %v1670_v13 = vrot.slane %v14761_v5, 1  ;;  %v10395_v5 = vld [vmem:[%s14431_s2 + $0x78] sm:$0xff]  }
 0x18c   : > { %9004 = vmatprep.subr.bf16.mxu1 %v10385_v40  ;;  %9067 = vmatpush3.bf16.msra.mxu0 %v10394_v2  ;;  %v10391_v40 = vld [vmem:[%s14431_s2 + $0x70] sm:$0xff]   ;;  %v1158_v2 = vrot.slane %v14559_v23, 7 }
 0x18d   : > { %3643 = vmatmul.mubr.bf16.gmra.mrb[104].mxu0 %v12343_v43  ;;  %v10393_v23 = vld [vmem:[%s14431_s2 + $0x30] sm:$0xff]   ;;  %9068 = vmatprep.subr.bf16.mxu0 %v10397_v34  ;;  %v14765_v34 = vshll.u32 %v12415_v21, 16 }
 0x18e   : > { %9949 = vmatmul.mubr.bf16.gmra.mrb[104].mxu1 %v12374_v18  ;;  %3650 = vmatprep.mubr.bf16.mxu0 %v12381_v42  ;;  %v14804_v42 = vld [vmem:[#allocation25_spill] sm:$0xff] }
 0x18f   : > { %9005 = vmatpush3.bf16.msra.mxu1 %v10387_v25  ;;  %9952 = vmatprep.mubr.bf16.mxu1 %v12386_v31  ;;  %v1661_v25 = vor.u32 %v1660_v50, %v14762_v63 }
 0x190   : > { %9006 = vmatprep.subr.bf16.mxu1 %v10389_v20  ;;  %v8548_v14 = vpop.f32.mrb[0].mxu0  ;;  %v12493_v20 = vsel %vm12066_vm5, %v1663_v36, 0  ;;  %9069 = vmatpush3.bf16.msra.mxu0 %v10398_v29  ;;  %v1161_v36 = vor.u32 %v14765_v34, %v1158_v2  ;;  %v10402_v29 = vld [vmem:[%s14431_s2 + $0xa8] sm:$0xff]   ;;  %v1479_v2 = vsel %vm11206_vm2, 0, %v1168_v47 }
 0x191   : > { %v8612_v53 = vpop.f32.mrb[0].mxu1  ;;  %14764 = vst [vmem:[#allocation75_spill] sm:$0xff] %v12493_v20  ;;  %v8549_v24 = vpop.f32.mrb[1].mxu0  ;;  %9070 = vmatprep.subr.bf16.mxu0 %v10401_v54  ;;  %v12502_v31 = vsel %vm12066_vm5, %v1661_v25, 0  ;;  %v10405_v25 = vld [vmem:[%s14431_s2 + $0xf0] sm:$0xff]  }
 0x192   : > { %v8613_v50 = vpop.f32.mrb[1].mxu1  ;;  %v8550_v63 = vadd.f32 %v8549_v24, %v8548_v14  ;;  %v8551_v32 = vpop.f32.mrb[2].mxu0  ;;  %14766 = vst [vmem:[#allocation76_spill] sm:$0xff] %v12502_v31 }
 0x193   : > { %v8614_v12 = vadd.f32 %v8613_v50, %v8612_v53  ;;  %v8615_v52 = vpop.f32.mrb[2].mxu1  ;;  %9007 = vmatpush3.bf16.msra.mxu1 %v10390_v19  ;;  %v8552_v58 = vpop.f32.mrb[3].mxu0  ;;  %v14767_v53 = vshrl.u32 %v11579_v33, 16  ;;  %v10399_v33 = vld [vmem:[%s14431_s2 + $0x140] sm:$0xff]   ;;  %v14769_v50 = vshll.u32 %v11601_v45, 16 }
 0x194   : > { %v8616_v59 = vpop.f32.mrb[3].mxu1  ;;  %9008 = vmatprep.subr.bf16.mxu1 %v10391_v40  ;;  %v8553_v19 = vadd.f32 %v8552_v58, %v8551_v32  ;;  %v10396_v40 = vld [vmem:[%s14431_s2 + $0x38] sm:$0xff]   ;;  %9071 = vmatpush3.bf16.msra.mxu0 %v10402_v29  ;;  %v14771_v58 = vshll.u32 %v11663_v44, 16  ;;  %v10400_v29 = vld [vmem:[%s14431_s2 + $0x100] sm:$0xff]  }
 0x195   : > { %v1671_v14 = vor.u32 %v1670_v13, %v14767_v53  ;;  %v12509_v24 = vadd.f32 %v8614_v12, %v8550_v63  ;;  %v8617_v54 = vadd.f32 %v8616_v59, %v8615_v52  ;;  %3651 = vmatmul.mubr.bf16.gmra.mrb[108].mxu0 %v12395_v56  ;;  %v1478_v12 = vsel %vm11206_vm2, 0, %v1161_v36  ;;  %9072 = vmatprep.subr.bf16.mxu0 %v10405_v25  ;;  %v12557_v25 = vld [vmem:[%s10914_s10 + $0x18] sm:$0xff] }
 0x196   : > { %9953 = vmatmul.mubr.bf16.gmra.mrb[108].mxu1 %v12400_v48  ;;  %3658 = vmatprep.mubr.bf16.mxu0 %v12443_v30  ;;  %v1668_v63 = vrot.slane %v14769_v50, 1  ;;  %v12542_v34 = vrot.slane %v14771_v58, 1  ;;  %v10410_v58 = vld [vmem:[%s14431_s2 + $0xb8] sm:$0xff]  }
 0x197   : > { %v12524_v32 = vadd.f32 %v8617_v54, %v8553_v19  ;;  %9009 = vmatpush3.bf16.msra.mxu1 %v10393_v23  ;;  %4540 = vmatprep.mubr.bf16.mxu1 %v1479_v2  ;;  %v12531_v59 = vsel %vm12066_vm5, %v1671_v14, 0  ;;  %v10406_v23 = vld [vmem:[%s14431_s2 + $0xb0] sm:$0xff]   ;;  %v10409_v14 = vld [vmem:[%s14431_s2 + $0xf8] sm:$0xff]  }
 0x198   : > { %9010 = vmatprep.subr.bf16.mxu1 %v10395_v5  ;;  %14768 = vst [vmem:[#allocation77_spill] sm:$0xff] %v12531_v59  ;;  %v8554_v47 = vpop.f32.mrb[4].mxu0  ;;  %v14770_v5 = vshll.u32 %v11642_v0, 16  ;;  %9073 = vmatpush3.bf16.msra.mxu0 %v10406_v23  ;;  %v14796_v30 = vld [vmem:[#allocation34_spill] sm:$0xff] }
 0x199   : > { %v8618_v13 = vpop.f32.mrb[4].mxu1  ;;  %v8555_v36 = vpop.f32.mrb[5].mxu0  ;;  %9074 = vmatprep.subr.bf16.mxu0 %v10409_v14 }
 0x19a   : > { %v1678_v52 = vrot.slane %v14770_v5, 1  ;;  %v8619_v53 = vpop.f32.mrb[5].mxu1  ;;  %v8556_v19 = vadd.f32 %v8555_v36, %v8554_v47  ;;  %v8557_v2 = vpop.f32.mrb[6].mxu0  ;;  %v10403_v5 = vld [vmem:[%s14431_s2 + $0x148] sm:$0xff]   ;;  %v10413_v47 = vld [vmem:[%s14431_s2 + $0x1c0] sm:$0xff]  }
 0x19b   : > { %v8620_v54 = vadd.f32 %v8619_v53, %v8618_v13  ;;  %v8621_v50 = vpop.f32.mrb[6].mxu1  ;;  %9011 = vmatpush3.bf16.msra.mxu1 %v10396_v40  ;;  %v8558_v48 = vpop.f32.mrb[7].mxu0  ;;  %v14772_v53 = vshrl.u32 %v11601_v45, 16 }
 0x19c   : > { %v8622_v18 = vpop.f32.mrb[7].mxu1  ;;  %9124 = vmatprep.subr.bf16.mxu1 %v10399_v33  ;;  %v8559_v40 = vadd.f32 %v8558_v48, %v8557_v2  ;;  %v10404_v33 = vld [vmem:[%s14431_s2 + $0x108] sm:$0xff]   ;;  %9075 = vmatpush3.bf16.msra.mxu0 %v10410_v58 }
 0x19d   : > { %v12562_v13 = vadd.f32 %v8620_v54, %v8556_v19  ;;  %v8623_v36 = vadd.f32 %v8622_v18, %v8621_v50  ;;  %v1669_v39 = vor.u32 %v1668_v63, %v14772_v53  ;;  %3659 = vmatmul.mubr.bf16.gmra.mrb[112].mxu0 %v12489_v6  ;;  %v10407_v18 = vld [vmem:[%s14431_s2 + $0x150] sm:$0xff]   ;;  %9188 = vmatprep.subr.bf16.mxu0 %v10413_v47  ;;  %v14775_v50 = vshrl.u32 %v11642_v0, 16  ;;  %v14792_v6 = vld [vmem:[#allocation30_spill] sm:$0xff] }
 0x19e   : > { %4541 = vmatmul.mubr.bf16.vlgmr.msra.gmra.mrb[112].mxu1 %v1478_v12  ;;  %3666 = vmatprep.mubr.bf16.mxu0 %v12493_v20 }
 0x19f   : > { %v12570_v16 = vadd.f32 %v8623_v36, %v8559_v40  ;;  %4548 = vmatprep.mubr.bf16.mxu1 %v14773_v41  ;;  %9125 = vmatpush3.bf16.msra.mxu1 %v10400_v29  ;;  %v12579_v12 = vsel %vm12066_vm5, %v1669_v39, 0  ;;  %v10408_v41 = vld [vmem:[%s14431_s2 + $0x110] sm:$0xff]   ;;  %v10411_v39 = vld [vmem:[%s14431_s2 + $0x158] sm:$0xff]  }
 0x1a0   : > { %v8560_v45 = vpop.f32.mrb[8].mxu0  ;;  %9126 = vmatprep.subr.bf16.mxu1 %v10403_v5  ;;  %14774 = vst [vmem:[#allocation12_spill] sm:$0xff] %v12579_v12  ;;  %v1679_v5 = vor.u32 %v1678_v52, %v14775_v50  ;;  %v12591_v36 = vld [vmem:[%s10914_s10 + $0x10] sm:$0xff]  ;;  %v14777_v52 = vld [vmem:[#allocation16_spill] sm:$0xff] }
 0x1a1   : > { %v8624_v48 = vpop.f32.mrb[8].mxu1  ;;  %v8561_v23 = vpop.f32.mrb[9].mxu0 }
 0x1a2   : > { %v8625_v19 = vpop.f32.mrb[9].mxu1  ;;  %v8562_v29 = vadd.f32 %v8561_v23, %v8560_v45  ;;  %v8563_v54 = vpop.f32.mrb[10].mxu0  ;;  %v14776_v45 = vld [vmem:[#allocation14_spill] sm:$0xff] }
 0x1a3   : > { %v8626_v14 = vadd.f32 %v8625_v19, %v8624_v48  ;;  %v8627_v2 = vpop.f32.mrb[10].mxu1  ;;  %v8564_v58 = vpop.f32.mrb[11].mxu0  ;;  %9127 = vmatpush3.bf16.msra.mxu1 %v10404_v33  ;;  %v12603_v33 = vsel %vm12066_vm5, %v1679_v5, 0  ;;  %v14779_v48 = vshrl.u32 %v12557_v25, 16  ;;  %v10416_v5 = vld [vmem:[%s14431_s2 + $0x120] sm:$0xff]  }
 0x1a4   : > { %v8628_v40 = vpop.f32.mrb[11].mxu1  ;;  %v8565_v63 = vadd.f32 %v8564_v58, %v8563_v54  ;;  %9128 = vmatprep.subr.bf16.mxu1 %v10407_v18  ;;  %14778 = vst [vmem:[#allocation14_spill] sm:$0xff] %v12603_v33  ;;  %v10412_v18 = vld [vmem:[%s14431_s2 + $0x118] sm:$0xff]   ;;  %v10415_v54 = vld [vmem:[%s14431_s2 + $0x160] sm:$0xff]  }
 0x1a5   : > { %v12593_v53 = vadd.f32 %v8626_v14, %v8562_v29  ;;  %v8629_v47 = vadd.f32 %v8628_v40, %v8627_v2  ;;  %3667 = vmatmul.mubr.bf16.gmra.mrb[116].mxu0 %v12502_v31  ;;  %v1179_v23 = vrot.slane %v14779_v48, 7  ;;  %v10419_v48 = vld [vmem:[%s14431_s2 + $0x168] sm:$0xff]   ;;  %v14786_v31 = vshll.u32 %v12591_v36, 16 }
 0x1a6   : > { %4549 = vmatmul.mubr.bf16.gmra.mrb[116].mxu1 %v14776_v45  ;;  %3674 = vmatprep.mubr.bf16.mxu0 %v12531_v59 }
 0x1a7   : > { %v12597_v0 = vadd.f32 %v8629_v47, %v8565_v63  ;;  %4556 = vmatprep.mubr.bf16.mxu1 %v14777_v52  ;;  %9129 = vmatpush3.bf16.msra.mxu1 %v10408_v41  ;;  %v14780_v41 = vshrl.u32 %v11663_v44, 16  ;;  %v14782_v44 = vld [vmem:[#allocation18_spill] sm:$0xff] }
 0x1a8   : > { %v8566_v63 = vpop.f32.mrb[12].mxu0  ;;  %9130 = vmatprep.subr.bf16.mxu1 %v10411_v39 }
 0x1a9   : > { %v8630_v29 = vpop.f32.mrb[12].mxu1  ;;  %v8567_v2 = vpop.f32.mrb[13].mxu0  ;;  %v1677_v39 = vor.u32 %v12542_v34, %v14780_v41 }
 0x1aa   : > { %v8631_v50 = vpop.f32.mrb[13].mxu1  ;;  %v8568_v58 = vadd.f32 %v8567_v2, %v8566_v63  ;;  %v8569_v47 = vpop.f32.mrb[14].mxu0  ;;  %v14781_v63 = vshll.u32 %v12557_v25, 16  ;;  %v14783_v2 = vld [vmem:[#allocation20_spill] sm:$0xff] }
 0x1ab   : > { %v8632_v40 = vadd.f32 %v8631_v50, %v8630_v29  ;;  %v8633_v45 = vpop.f32.mrb[14].mxu1  ;;  %v8570_v14 = vpop.f32.mrb[15].mxu0  ;;  %9131 = vmatpush3.bf16.msra.mxu1 %v10412_v18  ;;  %v12636_v18 = vsel %vm12066_vm5, %v1677_v39, 0 }
 0x1ac   : > { %v8634_v19 = vpop.f32.mrb[15].mxu1  ;;  %v8571_v35 = vadd.f32 %v8570_v14, %v8569_v47  ;;  %v1182_v29 = vor.u32 %v14781_v63, %v1179_v23  ;;  %9132 = vmatprep.subr.bf16.mxu1 %v10415_v54  ;;  %14784 = vst [vmem:[#allocation78_spill] sm:$0xff] %v12636_v18  ;;  %v10420_v54 = vld [vmem:[%s14431_s2 + $0x128] sm:$0xff]  }
 0x1ad   : > { %v12624_v3 = vadd.f32 %v8632_v40, %v8568_v58  ;;  %v8635_v59 = vadd.f32 %v8634_v19, %v8633_v45  ;;  %3675 = vmatmul.mubr.bf16.gmra.mrb[120].mxu0 %v12579_v12  ;;  %v14785_v19 = vshrl.u32 %v12591_v36, 16  ;;  %v10423_v58 = vld [vmem:[%s14431_s2 + $0x170] sm:$0xff]  }
 0x1ae   : > { %4557 = vmatmul.mubr.bf16.gmra.mrb[120].mxu1 %v14782_v44  ;;  %3682 = vmatprep.mubr.bf16.mxu0 %v12603_v33  ;;  %v1481_v50 = vsel %vm11206_vm2, 0, %v1182_v29  ;;  %v10424_v45 = vld [vmem:[%s14431_s2 + $0x130] sm:$0xff]   ;;  %v14797_v44 = vld [vmem:[#allocation19_spill] sm:$0xff] }
 0x1af   : > { %v12630_v34 = vadd.f32 %v8635_v59, %v8571_v35  ;;  %4564 = vmatprep.mubr.bf16.mxu1 %v14783_v2  ;;  %v1172_v14 = vrot.slane %v14785_v19, 7  ;;  %9133 = vmatpush3.bf16.msra.mxu1 %v10416_v5  ;;  %v10427_v19 = vld [vmem:[%s14431_s2 + $0x178] sm:$0xff]  }
 0x1b0   : > { %v8572_v35 = vpop.f32.mrb[16].mxu0  ;;  %9134 = vmatprep.subr.bf16.mxu1 %v10419_v48 }
 0x1b1   : > { %v8636_v59 = vpop.f32.mrb[16].mxu1  ;;  %v8573_v40 = vpop.f32.mrb[17].mxu0  ;;  %v1175_v20 = vor.u32 %v14786_v31, %v1172_v14  ;;  %v10414_v14 = vld [vmem:[%s14431_s2 + $0x180] sm:$0xff]  }
 0x1b2   : > { %v8637_v47 = vpop.f32.mrb[17].mxu1  ;;  %v8574_v41 = vadd.f32 %v8573_v40, %v8572_v35  ;;  %v8575_v63 = vpop.f32.mrb[18].mxu0  ;;  %v14787_v35 = vld [vmem:[#allocation22_spill] sm:$0xff]  ;;  %v14788_v40 = vld [vmem:[#allocation24_spill] sm:$0xff] }
 0x1b3   : > { %v8638_v39 = vadd.f32 %v8637_v47, %v8636_v59  ;;  %v8639_v5 = vpop.f32.mrb[18].mxu1  ;;  %v8576_v29 = vpop.f32.mrb[19].mxu0  ;;  %9135 = vmatpush3.bf16.msra.mxu1 %v10420_v54  ;;  %v10428_v54 = vld [vmem:[%s14431_s2 + $0x138] sm:$0xff]   ;;  %v1480_v31 = vsel %vm11206_vm2, 0, %v1175_v20  ;;  %v10417_v20 = vld [vmem:[%s14431_s2 + $0x1c8] sm:$0xff]  }
 0x1b4   : > { %v8640_v48 = vpop.f32.mrb[19].mxu1  ;;  %v8577_v33 = vadd.f32 %v8576_v29, %v8575_v63  ;;  %9136 = vmatprep.subr.bf16.mxu1 %v10423_v58 }
 0x1b5   : > { %v12655_v23 = vadd.f32 %v8638_v39, %v8574_v41  ;;  %v8641_v12 = vadd.f32 %v8640_v48, %v8639_v5  ;;  %3683 = vmatmul.mubr.bf16.gmra.mrb[124].mxu0 %v12636_v18 }
 0x1b6   : > { %4565 = vmatmul.mubr.bf16.gmra.mrb[124].mxu1 %v14787_v35  ;;  %4637 = vmatprep.mubr.bf16.mxu0 %v1481_v50 }
 0x1b7   : > { %v12661_v59 = vadd.f32 %v8641_v12, %v8577_v33  ;;  %4572 = vmatprep.mubr.bf16.mxu1 %v14788_v40  ;;  %9137 = vmatpush3.bf16.msra.mxu1 %v10424_v45  ;;  %v10431_v12 = vld [vmem:[%s14431_s2 + $0x240] sm:$0xff]   ;;  %v14789_v40 = vld [vmem:[#allocation26_spill] sm:$0xff] }
 0x1b8   : > { %v8578_v47 = vpop.f32.mrb[20].mxu0  ;;  %9138 = vmatprep.subr.bf16.mxu1 %v10427_v19 }
 0x1b9   : > { %v8642_v41 = vpop.f32.mrb[20].mxu1  ;;  %v8579_v33 = vpop.f32.mrb[21].mxu0 }
 0x1ba   : > { %v8643_v50 = vpop.f32.mrb[21].mxu1  ;;  %v8580_v58 = vadd.f32 %v8579_v33, %v8578_v47  ;;  %v8581_v39 = vpop.f32.mrb[22].mxu0  ;;  %v14790_v47 = vld [vmem:[#allocation28_spill] sm:$0xff]  ;;  %v14791_v33 = vld [vmem:[#allocation13_spill] sm:$0xff] }
 0x1bb   : > { %v8644_v45 = vadd.f32 %v8643_v50, %v8642_v41  ;;  %v8645_v63 = vpop.f32.mrb[22].mxu1  ;;  %v8582_v5 = vpop.f32.mrb[23].mxu0  ;;  %9139 = vmatpush3.bf16.msra.mxu1 %v10428_v54  ;;  %v10418_v41 = vld [vmem:[%s14431_s2 + $0x188] sm:$0xff]   ;;  %v10421_v54 = vld [vmem:[%s14431_s2 + $0x1d0] sm:$0xff]  }
 0x1bc   : > { %v8646_v29 = vpop.f32.mrb[23].mxu1  ;;  %v8583_v19 = vadd.f32 %v8582_v5, %v8581_v39  ;;  %9252 = vmatprep.subr.bf16.mxu1 %v10431_v12  ;;  %v10425_v5 = vld [vmem:[%s14431_s2 + $0x1d8] sm:$0xff]  }
 0x1bd   : > { %v12678_v48 = vadd.f32 %v8644_v45, %v8580_v58  ;;  %v8647_v18 = vadd.f32 %v8646_v29, %v8645_v63  ;;  %4638 = vmatmul.mubr.bf16.vlgmr.msra.gmra.mrb[128].mxu0 %v1480_v31 }
 0x1be   : > { %4573 = vmatmul.mubr.bf16.gmra.mrb[128].mxu1 %v14789_v40  ;;  %9189 = vmatpush3.bf16.msra.mxu0 %v10414_v14  ;;  %v10422_v14 = vld [vmem:[%s14431_s2 + $0x190] sm:$0xff]  }
 0x1bf   : > { %v12681_v35 = vadd.f32 %v8647_v18, %v8583_v19  ;;  %4580 = vmatprep.mubr.bf16.mxu1 %v14790_v47  ;;  %4645 = vmatprep.mubr.bf16.mxu0 %v14791_v33 }
 0x1c0   : > { %9190 = vmatprep.subr.bf16.mxu0 %v10417_v20  ;;  %v8584_v12 = vpop.f32.mrb[24].mxu0  ;;  %v12698_v20 = vld [vmem:[%s10918_s16] sm:$0xff] }
 0x1c1   : > { %v8648_v50 = vpop.f32.mrb[24].mxu1  ;;  %v8585_v31 = vpop.f32.mrb[25].mxu0  ;;  %v14801_v56 = vshll.u32 %v12698_v20, 16 }
 0x1c2   : > { %v8649_v18 = vpop.f32.mrb[25].mxu1  ;;  %v8586_v58 = vadd.f32 %v8585_v31, %v8584_v12  ;;  %v8587_v39 = vpop.f32.mrb[26].mxu0  ;;  %9191 = vmatpush3.bf16.msra.mxu0 %v10418_v41  ;;  %v14793_v12 = vld [vmem:[#allocation15_spill] sm:$0xff]  ;;  %v14794_v41 = vld [vmem:[#allocation32_spill] sm:$0xff]  ;;  %v14795_v31 = vld [vmem:[#allocation17_spill] sm:$0xff] }
 0x1c3   : > { %v8650_v45 = vadd.f32 %v8649_v18, %v8648_v50  ;;  %v8651_v63 = vpop.f32.mrb[26].mxu1  ;;  %v8588_v29 = vpop.f32.mrb[27].mxu0  ;;  %9192 = vmatprep.subr.bf16.mxu0 %v10421_v54  ;;  %v10426_v54 = vld [vmem:[%s14431_s2 + $0x198] sm:$0xff]  }
 0x1c4   : > { %v8652_v19 = vpop.f32.mrb[27].mxu1  ;;  %v8589_v47 = vadd.f32 %v8588_v29, %v8587_v39  ;;  %v10429_v39 = vld [vmem:[%s14431_s2 + $0x1e0] sm:$0xff]  }
 0x1c5   : > { %v12700_v33 = vadd.f32 %v8650_v45, %v8586_v58  ;;  %v8653_v40 = vadd.f32 %v8652_v19, %v8651_v63  ;;  %4646 = vmatmul.mubr.bf16.gmra.mrb[132].mxu0 %v14793_v12  ;;  %v10430_v63 = vld [vmem:[%s14431_s2 + $0x1a0] sm:$0xff]  }
 0x1c6   : > { %4581 = vmatmul.mubr.bf16.gmra.mrb[132].mxu1 %v14792_v6  ;;  %4653 = vmatprep.mubr.bf16.mxu0 %v14795_v31 }
 0x1c7   : > { %v12704_v50 = vadd.f32 %v8653_v40, %v8589_v47  ;;  %4588 = vmatprep.mubr.bf16.mxu1 %v14794_v41  ;;  %9193 = vmatpush3.bf16.msra.mxu0 %v10422_v14  ;;  %v10433_v14 = vld [vmem:[%s14431_s2 + $0x1e8] sm:$0xff]  }
 0x1c8   : > { %v8590_v18 = vpop.f32.mrb[28].mxu0  ;;  %9194 = vmatprep.subr.bf16.mxu0 %v10425_v5 }
 0x1c9   : > { %v8654_v58 = vpop.f32.mrb[28].mxu1  ;;  %v8591_v40 = vpop.f32.mrb[29].mxu0 }
 0x1ca   : > { %v8655_v47 = vpop.f32.mrb[29].mxu1  ;;  %v8592_v29 = vadd.f32 %v8591_v40, %v8590_v18  ;;  %v8593_v12 = vpop.f32.mrb[30].mxu0  ;;  %v14799_v40 = vld [vmem:[#allocation21_spill] sm:$0xff] }
 0x1cb   : > { %v8656_v19 = vadd.f32 %v8655_v47, %v8654_v58  ;;  %v8657_v31 = vpop.f32.mrb[30].mxu1  ;;  %v8594_v5 = vpop.f32.mrb[31].mxu0  ;;  %9195 = vmatpush3.bf16.msra.mxu0 %v10426_v54  ;;  %v14798_v58 = vld [vmem:[#allocation36_spill] sm:$0xff] }
 0x1cc   : > { %v8658_v45 = vpop.f32.mrb[31].mxu1  ;;  %v8595_v6 = vadd.f32 %v8594_v5, %v8593_v12  ;;  %9196 = vmatprep.subr.bf16.mxu0 %v10429_v39  ;;  %v10434_v54 = vld [vmem:[%s14431_s2 + $0x1a8] sm:$0xff]  }
 0x1cd   : > { %v12721_v41 = vadd.f32 %v8656_v19, %v8592_v29  ;;  %v8659_v2 = vadd.f32 %v8658_v45, %v8657_v31  ;;  %4654 = vmatmul.mubr.bf16.gmra.mrb[136].mxu0 %v14797_v44  ;;  %v14800_v45 = vshrl.u32 %v12698_v20, 16 }
 0x1ce   : > { %4589 = vmatmul.mubr.bf16.gmra.mrb[136].mxu1 %v14796_v30  ;;  %4661 = vmatprep.mubr.bf16.mxu0 %v14799_v40 }
 0x1cf   : > { %v12725_v18 = vadd.f32 %v8659_v2, %v8595_v6  ;;  %4596 = vmatprep.mubr.bf16.mxu1 %v14798_v58  ;;  %9197 = vmatpush3.bf16.msra.mxu0 %v10430_v63  ;;  %v1521_v39 = vrot.slane %v14800_v45, 7  ;;  %v10437_v6 = vld [vmem:[%s14431_s2 + $0x1f0] sm:$0xff]  }
 0x1d0   : > { %v8676_v29 = vpop.f32.mrb[32].mxu0  ;;  %9198 = vmatprep.subr.bf16.mxu0 %v10433_v14  ;;  %v10438_v63 = vld [vmem:[%s14431_s2 + $0x1b0] sm:$0xff]  }
 0x1d1   : > { %v8740_v31 = vpop.f32.mrb[32].mxu1  ;;  %v8677_v2 = vpop.f32.mrb[33].mxu0  ;;  %v1524_v52 = vor.u32 %v14801_v56, %v1521_v39  ;;  %v10442_v56 = vld [vmem:[%s14431_s2 + $0x1b8] sm:$0xff]  }
 0x1d2   : > { %v8741_v19 = vpop.f32.mrb[33].mxu1  ;;  %v8678_v12 = vadd.f32 %v8677_v2, %v8676_v29  ;;  %v8679_v5 = vpop.f32.mrb[34].mxu0  ;;  %v10441_v29 = vld [vmem:[%s14431_s2 + $0x1f8] sm:$0xff]   ;;  %v14803_v2 = vld [vmem:[#allocation23_spill] sm:$0xff] }
 0x1d3   : > { %v8742_v47 = vadd.f32 %v8741_v19, %v8740_v31  ;;  %v8743_v40 = vpop.f32.mrb[34].mxu1  ;;  %v8680_v44 = vpop.f32.mrb[35].mxu0  ;;  %9199 = vmatpush3.bf16.msra.mxu0 %v10434_v54  ;;  %v14802_v31 = vld [vmem:[#allocation38_spill] sm:$0xff] }
 0x1d4   : > { %v8744_v58 = vpop.f32.mrb[35].mxu1  ;;  %v3241_v45 = vadd.f32 %v8678_v12, %v12509_v24  ;;  %v8681_v14 = vadd.f32 %v8680_v44, %v8679_v5  ;;  %9200 = vmatprep.subr.bf16.mxu0 %v10437_v6 }
 0x1d5   : > { %v8745_v30 = vadd.f32 %v8744_v58, %v8743_v40  ;;  %4662 = vmatmul.mubr.bf16.gmra.mrb[140].mxu0 %v14803_v2  ;;  %v1598_v40 = vsel %vm11206_vm2, 0, %v1524_v52  ;;  %v14808_v2 = vld [vmem:[#allocation44_spill] sm:$0xff] }
 0x1d6   : > { %4597 = vmatmul.mubr.bf16.gmra.mrb[140].mxu1 %v14802_v31  ;;  %v3244_v54 = vadd.f32 %v8681_v14, %v12524_v32  ;;  %v12750_v19 = vadd.f32 %v8742_v47, %v3241_v45  ;;  %4669 = vmatprep.mubr.bf16.mxu0 %v14804_v42  ;;  %v10445_v32 = vld [vmem:[%s14431_s2 + $0x2c0] sm:$0xff]   ;;  %v10435_v42 = vld [vmem:[%s14431_s2 + $0x248] sm:$0xff]  }
 0x1d7   : > { %4734 = vmatprep.mubr.bf16.mxu1 %v12415_v21  ;;  %9201 = vmatpush3.bf16.msra.mxu0 %v10438_v63  ;;  %v10432_v14 = vld [vmem:[%s14431_s2 + $0x200] sm:$0xff]  }
 0x1d8   : > { %v12757_v24 = vadd.f32 %v8745_v30, %v3244_v54  ;;  %v8682_v44 = vpop.f32.mrb[36].mxu0  ;;  %9202 = vmatprep.subr.bf16.mxu0 %v10441_v29 }
 0x1d9   : > { %v8746_v58 = vpop.f32.mrb[36].mxu1  ;;  %v8683_v47 = vpop.f32.mrb[37].mxu0 }
 0x1da   : > { %v8747_v39 = vpop.f32.mrb[37].mxu1  ;;  %v8684_v6 = vadd.f32 %v8683_v47, %v8682_v44  ;;  %v8685_v12 = vpop.f32.mrb[38].mxu0  ;;  %v14805_v44 = vld [vmem:[#allocation27_spill] sm:$0xff] }
 0x1db   : > { %v8748_v5 = vadd.f32 %v8747_v39, %v8746_v58  ;;  %v8749_v63 = vpop.f32.mrb[38].mxu1  ;;  %v8686_v45 = vpop.f32.mrb[39].mxu0  ;;  %9203 = vmatpush3.bf16.msra.mxu0 %v10442_v56  ;;  %v10436_v58 = vld [vmem:[%s14431_s2 + $0x208] sm:$0xff]   ;;  %v14806_v56 = vld [vmem:[#allocation29_spill] sm:$0xff] }
 0x1dc   : > { %v8750_v30 = vpop.f32.mrb[39].mxu1  ;;  %v3249_v52 = vadd.f32 %v8684_v6, %v12562_v13  ;;  %v8687_v29 = vadd.f32 %v8686_v45, %v8685_v12  ;;  %9316 = vmatprep.subr.bf16.mxu0 %v10445_v32  ;;  %v10621_v13 = vld [vmem:[%s10914_s10 + $0x20] sm:$0xff]  ;;  %v10439_v6 = vld [vmem:[%s14431_s2 + $0x250] sm:$0xff]  }
 0x1dd   : > { %v8751_v54 = vadd.f32 %v8750_v30, %v8749_v63  ;;  %4670 = vmatmul.mubr.bf16.gmra.mrb[144].mxu0 %v14805_v44  ;;  %v14807_v44 = vld [vmem:[#allocation31_spill] sm:$0xff] }
 0x1de   : > { %4735 = vmatmul.mubr.bf16.vlgmr.msra.gmra.mrb[144].mxu1 %v1598_v40  ;;  %v3252_v47 = vadd.f32 %v8687_v29, %v12570_v16  ;;  %v12776_v39 = vadd.f32 %v8748_v5, %v3249_v52  ;;  %4677 = vmatprep.mubr.bf16.mxu0 %v14806_v56  ;;  %v10440_v16 = vld [vmem:[%s14431_s2 + $0x210] sm:$0xff]  }
 0x1df   : > { %4742 = vmatprep.mubr.bf16.mxu1 %v10621_v13  ;;  %9253 = vmatpush3.bf16.msra.mxu1 %v10432_v14  ;;  %v10443_v14 = vld [vmem:[%s14431_s2 + $0x258] sm:$0xff]  }
 0x1e0   : > { %v12783_v32 = vadd.f32 %v8751_v54, %v3252_v47  ;;  %v8688_v40 = vpop.f32.mrb[40].mxu0  ;;  %9254 = vmatprep.subr.bf16.mxu1 %v10435_v42 }
 0x1e1   : > { %v8752_v12 = vpop.f32.mrb[40].mxu1  ;;  %v8689_v63 = vpop.f32.mrb[41].mxu0 }
 0x1e2   : > { %v8753_v45 = vpop.f32.mrb[41].mxu1  ;;  %v8690_v5 = vadd.f32 %v8689_v63, %v8688_v40  ;;  %v8691_v30 = vpop.f32.mrb[42].mxu0  ;;  %v14809_v63 = vld [vmem:[#allocation33_spill] sm:$0xff] }
 0x1e3   : > { %v8754_v52 = vadd.f32 %v8753_v45, %v8752_v12  ;;  %v8755_v29 = vpop.f32.mrb[42].mxu1  ;;  %v8692_v54 = vpop.f32.mrb[43].mxu0  ;;  %9255 = vmatpush3.bf16.msra.mxu1 %v10436_v58  ;;  %v10622_v45 = vld [vmem:[%s10914_s10 + $0x40] sm:$0xff]  ;;  %v10444_v58 = vld [vmem:[%s14431_s2 + $0x218] sm:$0xff]  }
 0x1e4   : > { %v8756_v47 = vpop.f32.mrb[43].mxu1  ;;  %v3257_v42 = vadd.f32 %v8690_v5, %v12593_v53  ;;  %v8693_v13 = vadd.f32 %v8692_v54, %v8691_v30  ;;  %9256 = vmatprep.subr.bf16.mxu1 %v10439_v6  ;;  %v10447_v53 = vld [vmem:[%s14431_s2 + $0x260] sm:$0xff]  }
 0x1e5   : > { %v8757_v56 = vadd.f32 %v8756_v47, %v8755_v29  ;;  %4678 = vmatmul.mubr.bf16.gmra.mrb[148].mxu0 %v14807_v44  ;;  %v14811_v44 = vld [vmem:[#allocation45_spill] sm:$0xff] }
 0x1e6   : > { %4743 = vmatmul.mubr.bf16.gmra.mrb[148].mxu1 %v14808_v2  ;;  %v3260_v40 = vadd.f32 %v8693_v13, %v12597_v0  ;;  %v12795_v12 = vadd.f32 %v8754_v52, %v3257_v42  ;;  %4685 = vmatprep.mubr.bf16.mxu0 %v14809_v63  ;;  %v10448_v52 = vld [vmem:[%s14431_s2 + $0x220] sm:$0xff]  }
 0x1e7   : > { %4750 = vmatprep.mubr.bf16.mxu1 %v10622_v45  ;;  %9257 = vmatpush3.bf16.msra.mxu1 %v10440_v16  ;;  %v10451_v16 = vld [vmem:[%s14431_s2 + $0x268] sm:$0xff]   ;;  %v14810_v63 = vld [vmem:[#allocation35_spill] sm:$0xff] }
 0x1e8   : > { %v12805_v6 = vadd.f32 %v8757_v56, %v3260_v40  ;;  %v8694_v2 = vpop.f32.mrb[44].mxu0  ;;  %9258 = vmatprep.subr.bf16.mxu1 %v10443_v14 }
 0x1e9   : > { %v8758_v5 = vpop.f32.mrb[44].mxu1  ;;  %v8695_v0 = vpop.f32.mrb[45].mxu0 }
 0x1ea   : > { %v8759_v30 = vpop.f32.mrb[45].mxu1  ;;  %v8696_v29 = vadd.f32 %v8695_v0, %v8694_v2  ;;  %v8697_v54 = vpop.f32.mrb[46].mxu0  ;;  %v14812_v0 = vld [vmem:[#allocation37_spill] sm:$0xff] }
 0x1eb   : > { %v8760_v47 = vadd.f32 %v8759_v30, %v8758_v5  ;;  %v8761_v42 = vpop.f32.mrb[46].mxu1  ;;  %v8698_v56 = vpop.f32.mrb[47].mxu0  ;;  %9259 = vmatpush3.bf16.msra.mxu1 %v10444_v58  ;;  %v10623_v30 = vld [vmem:[%s10914_s10 + $0x60] sm:$0xff]  ;;  %v10452_v58 = vld [vmem:[%s14431_s2 + $0x228] sm:$0xff]  }
 0x1ec   : > { %v8762_v13 = vpop.f32.mrb[47].mxu1  ;;  %v3265_v14 = vadd.f32 %v8696_v29, %v12624_v3  ;;  %v8699_v40 = vadd.f32 %v8698_v56, %v8697_v54  ;;  %9260 = vmatprep.subr.bf16.mxu1 %v10447_v53  ;;  %v10455_v3 = vld [vmem:[%s14431_s2 + $0x270] sm:$0xff]  }
 0x1ed   : > { %v8763_v45 = vadd.f32 %v8762_v13, %v8761_v42  ;;  %4686 = vmatmul.mubr.bf16.gmra.mrb[152].mxu0 %v14810_v63  ;;  %v10456_v42 = vld [vmem:[%s14431_s2 + $0x230] sm:$0xff]   ;;  %v14813_v63 = vld [vmem:[#allocation39_spill] sm:$0xff] }
 0x1ee   : > { %4751 = vmatmul.mubr.bf16.gmra.mrb[152].mxu1 %v14811_v44  ;;  %v3268_v2 = vadd.f32 %v8699_v40, %v12630_v34  ;;  %v12817_v5 = vadd.f32 %v8760_v47, %v3265_v14  ;;  %4693 = vmatprep.mubr.bf16.mxu0 %v14812_v0  ;;  %v14814_v44 = vld [vmem:[#allocation46_spill] sm:$0xff] }
 0x1ef   : > { %4758 = vmatprep.mubr.bf16.mxu1 %v10623_v30  ;;  %9261 = vmatpush3.bf16.msra.mxu1 %v10448_v52  ;;  %v10459_v52 = vld [vmem:[%s14431_s2 + $0x278] sm:$0xff]  }
 0x1f0   : > { %v12827_v53 = vadd.f32 %v8763_v45, %v3268_v2  ;;  %v8700_v29 = vpop.f32.mrb[48].mxu0  ;;  %9262 = vmatprep.subr.bf16.mxu1 %v10451_v16 }
 0x1f1   : > { %v8764_v54 = vpop.f32.mrb[48].mxu1  ;;  %v8701_v34 = vpop.f32.mrb[49].mxu0 }
 0x1f2   : > { %v8765_v47 = vpop.f32.mrb[49].mxu1  ;;  %v8702_v56 = vadd.f32 %v8701_v34, %v8700_v29  ;;  %v8703_v13 = vpop.f32.mrb[50].mxu0  ;;  %v10624_v34 = vld [vmem:[%s10914_s10 + $0x80] sm:$0xff] }
 0x1f3   : > { %v8766_v14 = vadd.f32 %v8765_v47, %v8764_v54  ;;  %v8767_v40 = vpop.f32.mrb[50].mxu1  ;;  %v8704_v45 = vpop.f32.mrb[51].mxu0  ;;  %9263 = vmatpush3.bf16.msra.mxu1 %v10452_v58  ;;  %v10460_v58 = vld [vmem:[%s14431_s2 + $0x238] sm:$0xff]  }
 0x1f4   : > { %v8768_v2 = vpop.f32.mrb[51].mxu1  ;;  %v3273_v16 = vadd.f32 %v8702_v56, %v12655_v23  ;;  %v8705_v30 = vadd.f32 %v8704_v45, %v8703_v13  ;;  %9264 = vmatprep.subr.bf16.mxu1 %v10455_v3  ;;  %v10463_v23 = vld [vmem:[%s14431_s2 + $0x340] sm:$0xff]  }
 0x1f5   : > { %v8769_v0 = vadd.f32 %v8768_v2, %v8767_v40  ;;  %4694 = vmatmul.mubr.bf16.gmra.mrb[156].mxu0 %v14813_v63  ;;  %v10449_v40 = vld [vmem:[%s14431_s2 + $0x2c8] sm:$0xff]   ;;  %v14815_v63 = vld [vmem:[#allocation47_spill] sm:$0xff] }
 0x1f6   : > { %4759 = vmatmul.mubr.bf16.gmra.mrb[156].mxu1 %v14814_v44  ;;  %v3276_v29 = vadd.f32 %v8705_v30, %v12661_v59  ;;  %v12839_v54 = vadd.f32 %v8766_v14, %v3273_v16  ;;  %4831 = vmatprep.mubr.bf16.mxu0 %v12591_v36  ;;  %v10446_v59 = vld [vmem:[%s14431_s2 + $0x280] sm:$0xff]   ;;  %v10625_v44 = vld [vmem:[%s10914_s10 + $0x8] sm:$0xff] }
 0x1f7   : > { %4766 = vmatprep.mubr.bf16.mxu1 %v10624_v34  ;;  %9265 = vmatpush3.bf16.msra.mxu1 %v10456_v42 }
 0x1f8   : > { %v12849_v3 = vadd.f32 %v8769_v0, %v3276_v29  ;;  %v8706_v47 = vpop.f32.mrb[52].mxu0  ;;  %9266 = vmatprep.subr.bf16.mxu1 %v10459_v52 }
 0x1f9   : > { %v8770_v56 = vpop.f32.mrb[52].mxu1  ;;  %v8707_v13 = vpop.f32.mrb[53].mxu0 }
 0x1fa   : > { %v8771_v14 = vpop.f32.mrb[53].mxu1  ;;  %v8708_v45 = vadd.f32 %v8707_v13, %v8706_v47  ;;  %v8709_v2 = vpop.f32.mrb[54].mxu0 }
 0x1fb   : > { %v8772_v42 = vadd.f32 %v8771_v14, %v8770_v56  ;;  %v8773_v0 = vpop.f32.mrb[54].mxu1  ;;  %v8710_v16 = vpop.f32.mrb[55].mxu0  ;;  %9267 = vmatpush3.bf16.msra.mxu1 %v10460_v58  ;;  %v10626_v56 = vld [vmem:[%s10914_s10 + $0xa0] sm:$0xff]  ;;  %v10450_v58 = vld [vmem:[%s14431_s2 + $0x288] sm:$0xff]  }
 0x1fc   : > { %v8774_v30 = vpop.f32.mrb[55].mxu1  ;;  %v3281_v29 = vadd.f32 %v8708_v45, %v12678_v48  ;;  %v8711_v34 = vadd.f32 %v8710_v16, %v8709_v2  ;;  %9380 = vmatprep.subr.bf16.mxu1 %v10463_v23  ;;  %v10453_v48 = vld [vmem:[%s14431_s2 + $0x2d0] sm:$0xff]  }
 0x1fd   : > { %v8775_v52 = vadd.f32 %v8774_v30, %v8773_v0  ;;  %4832 = vmatmul.mubr.bf16.vlgmr.msra.gmra.mrb[160].mxu0 %v10625_v44  ;;  %v10627_v23 = vld [vmem:[%s10914_s10 + $0x30] sm:$0xff] }
 0x1fe   : > { %4767 = vmatmul.mubr.bf16.gmra.mrb[160].mxu1 %v14815_v63  ;;  %v3284_v17 = vadd.f32 %v8711_v34, %v12681_v35  ;;  %v12861_v47 = vadd.f32 %v8772_v42, %v3281_v29  ;;  %9317 = vmatpush3.bf16.msra.mxu0 %v10446_v59  ;;  %v10454_v45 = vld [vmem:[%s14431_s2 + $0x290] sm:$0xff]  }
 0x1ff   : > { %4774 = vmatprep.mubr.bf16.mxu1 %v10626_v56  ;;  %4839 = vmatprep.mubr.bf16.mxu0 %v10627_v23  ;;  %v14816_v56 = vld [vmem:[#allocation48_spill] sm:$0xff] }
 0x200   : > { %9318 = vmatprep.subr.bf16.mxu0 %v10449_v40  ;;  %v12871_v13 = vadd.f32 %v8775_v52, %v3284_v17  ;;  %v8712_v44 = vpop.f32.mrb[56].mxu0  ;;  %v10457_v17 = vld [vmem:[%s14431_s2 + $0x2d8] sm:$0xff]   ;;  %v10628_v23 = vld [vmem:[%s10914_s10 + $0x28] sm:$0xff] }
 0x201   : > { %v8776_v35 = vpop.f32.mrb[56].mxu1  ;;  %v8713_v14 = vpop.f32.mrb[57].mxu0 }
 0x202   : > { %v8777_v59 = vpop.f32.mrb[57].mxu1  ;;  %v8714_v2 = vadd.f32 %v8713_v14, %v8712_v44  ;;  %v8715_v42 = vpop.f32.mrb[58].mxu0  ;;  %9319 = vmatpush3.bf16.msra.mxu0 %v10450_v58  ;;  %v10629_v58 = vld [vmem:[%s10914_s10 + $0xc0] sm:$0xff]  ;;  %v10630_v14 = vld [vmem:[%s10914_s10 + $0x50] sm:$0xff] }
 0x203   : > { %v8778_v0 = vadd.f32 %v8777_v59, %v8776_v35  ;;  %v8779_v16 = vpop.f32.mrb[58].mxu1  ;;  %v8716_v40 = vpop.f32.mrb[59].mxu0  ;;  %9320 = vmatprep.subr.bf16.mxu0 %v10453_v48  ;;  %v10458_v48 = vld [vmem:[%s14431_s2 + $0x298] sm:$0xff]  }
 0x204   : > { %v8780_v30 = vpop.f32.mrb[59].mxu1  ;;  %v3289_v29 = vadd.f32 %v8714_v2, %v12700_v33  ;;  %v8717_v34 = vadd.f32 %v8716_v40, %v8715_v42  ;;  %v10461_v33 = vld [vmem:[%s14431_s2 + $0x2e0] sm:$0xff]  }
 0x205   : > { %v8781_v52 = vadd.f32 %v8780_v30, %v8779_v16  ;;  %4840 = vmatmul.mubr.bf16.gmra.mrb[164].mxu0 %v10628_v23  ;;  %v10462_v16 = vld [vmem:[%s14431_s2 + $0x2a0] sm:$0xff]  }
 0x206   : > { %4775 = vmatmul.mubr.bf16.gmra.mrb[164].mxu1 %v14816_v56  ;;  %v3292_v44 = vadd.f32 %v8717_v34, %v12704_v50  ;;  %v12883_v35 = vadd.f32 %v8778_v0, %v3289_v29  ;;  %4847 = vmatprep.mubr.bf16.mxu0 %v10630_v14  ;;  %v14817_v14 = vld [vmem:[#allocation49_spill] sm:$0xff] }
 0x207   : > { %4782 = vmatprep.mubr.bf16.mxu1 %v10629_v58  ;;  %9321 = vmatpush3.bf16.msra.mxu0 %v10454_v45  ;;  %v10465_v58 = vld [vmem:[%s14431_s2 + $0x2e8] sm:$0xff]  }
 0x208   : > { %v12893_v59 = vadd.f32 %v8781_v52, %v3292_v44  ;;  %v8718_v2 = vpop.f32.mrb[60].mxu0  ;;  %9322 = vmatprep.subr.bf16.mxu0 %v10457_v17 }
 0x209   : > { %v8782_v42 = vpop.f32.mrb[60].mxu1  ;;  %v8719_v50 = vpop.f32.mrb[61].mxu0 }
 0x20a   : > { %v8783_v0 = vpop.f32.mrb[61].mxu1  ;;  %v8720_v40 = vadd.f32 %v8719_v50, %v8718_v2  ;;  %v8721_v30 = vpop.f32.mrb[62].mxu0  ;;  %v10631_v2 = vld [vmem:[%s10914_s10 + $0x48] sm:$0xff] }
 0x20b   : > { %v8784_v29 = vadd.f32 %v8783_v0, %v8782_v42  ;;  %v8785_v34 = vpop.f32.mrb[62].mxu1  ;;  %v8722_v23 = vpop.f32.mrb[63].mxu0  ;;  %9323 = vmatpush3.bf16.msra.mxu0 %v10458_v48  ;;  %v10632_v0 = vld [vmem:[%s10914_s10 + $0xe0] sm:$0xff]  ;;  %v10633_v48 = vld [vmem:[%s10914_s10 + $0x70] sm:$0xff] }
 0x20c   : > { %v8786_v45 = vpop.f32.mrb[63].mxu1  ;;  %v3297_v52 = vadd.f32 %v8720_v40, %v12721_v41  ;;  %v8723_v44 = vadd.f32 %v8722_v23, %v8721_v30  ;;  %9324 = vmatprep.subr.bf16.mxu0 %v10461_v33  ;;  %v10466_v41 = vld [vmem:[%s14431_s2 + $0x2a8] sm:$0xff]  }
 0x20d   : > { %v8787_v17 = vadd.f32 %v8786_v45, %v8785_v34  ;;  %4848 = vmatmul.mubr.bf16.gmra.mrb[168].mxu0 %v10631_v2 }
 0x20e   : > { %4783 = vmatmul.mubr.bf16.gmra.mrb[168].mxu1 %v14817_v14  ;;  %v3300_v42 = vadd.f32 %v8723_v44, %v12725_v18  ;;  %v12905_v50 = vadd.f32 %v8784_v29, %v3297_v52  ;;  %4855 = vmatprep.mubr.bf16.mxu0 %v10633_v48  ;;  %v10469_v18 = vld [vmem:[%s14431_s2 + $0x2f0] sm:$0xff]   ;;  %v10473_v48 = vld [vmem:[%s14431_s2 + $0x2f8] sm:$0xff]  }
 0x20f   : > { %4790 = vmatprep.mubr.bf16.mxu1 %v10632_v0  ;;  %9325 = vmatpush3.bf16.msra.mxu0 %v10462_v16  ;;  %v10647_v14 = vld [vmem:[%s10918_s16 + $0x18] sm:$0xff] }
 0x210   : > { %v12912_v33 = vadd.f32 %v8787_v17, %v3300_v42  ;;  %v8804_v40 = vpop.f32.mrb[64].mxu0  ;;  %9326 = vmatprep.subr.bf16.mxu0 %v10465_v58  ;;  %v10470_v17 = vld [vmem:[%s14431_s2 + $0x2b0] sm:$0xff]  }
 0x211   : > { %v8868_v30 = vpop.f32.mrb[64].mxu1  ;;  %v8805_v29 = vpop.f32.mrb[65].mxu0 }
 0x212   : > { %v8869_v34 = vpop.f32.mrb[65].mxu1  ;;  %v8806_v23 = vadd.f32 %v8805_v29, %v8804_v40  ;;  %v8807_v45 = vpop.f32.mrb[66].mxu0  ;;  %v10634_v40 = vld [vmem:[%s10914_s10 + $0x68] sm:$0xff]  ;;  %v10635_v29 = vld [vmem:[%s10914_s10 + $0x90] sm:$0xff] }
 0x213   : > { %v8870_v52 = vadd.f32 %v8869_v34, %v8868_v30  ;;  %v8871_v16 = vpop.f32.mrb[66].mxu1  ;;  %v8808_v44 = vpop.f32.mrb[67].mxu0  ;;  %9327 = vmatpush3.bf16.msra.mxu0 %v10466_v41 }
 0x214   : > { %v8872_v2 = vpop.f32.mrb[67].mxu1  ;;  %v3435_v58 = vadd.f32 %v8806_v23, %v12750_v19  ;;  %v8809_v42 = vadd.f32 %v8808_v44, %v8807_v45  ;;  %9328 = vmatprep.subr.bf16.mxu0 %v10469_v18  ;;  %v10474_v19 = vld [vmem:[%s14431_s2 + $0x2b8] sm:$0xff]  }
 0x215   : > { %v8873_v0 = vadd.f32 %v8872_v2, %v8871_v16  ;;  %4856 = vmatmul.mubr.bf16.gmra.mrb[172].mxu0 %v10634_v40 }
 0x216   : > { %4791 = vmatmul.mubr.bf16.gmra.mrb[172].mxu1 %v12050_v10  ;;  %v3438_v30 = vadd.f32 %v8809_v42, %v12757_v24  ;;  %v12927_v41 = vadd.f32 %v8870_v52, %v3435_v58  ;;  %4863 = vmatprep.mubr.bf16.mxu0 %v10635_v29  ;;  %v10477_v24 = vld [vmem:[%s14431_s2 + $0x7c0] sm:$0xff]   ;;  %v10467_v29 = vld [vmem:[%s14431_s2 + $0x348] sm:$0xff]   ;;  %v10638_v10 = vld [vmem:[%s10914_s10 + $0xb0] sm:$0xff] }
 0x217   : > { %4928 = vmatprep.mubr.bf16.mxu1 %v12698_v20  ;;  %9329 = vmatpush3.bf16.msra.mxu0 %v10470_v17 }
 0x218   : > { %v12934_v18 = vadd.f32 %v8873_v0, %v3438_v30  ;;  %v8810_v34 = vpop.f32.mrb[68].mxu0  ;;  %9330 = vmatprep.subr.bf16.mxu0 %v10473_v48  ;;  %v10464_v0 = vld [vmem:[%s14431_s2 + $0x300] sm:$0xff]  }
 0x219   : > { %v8874_v23 = vpop.f32.mrb[68].mxu1  ;;  %v8811_v45 = vpop.f32.mrb[69].mxu0 }
 0x21a   : > { %v8875_v52 = vpop.f32.mrb[69].mxu1  ;;  %v8812_v16 = vadd.f32 %v8811_v45, %v8810_v34  ;;  %v8813_v44 = vpop.f32.mrb[70].mxu0  ;;  %v10636_v34 = vld [vmem:[%s10914_s10 + $0x88] sm:$0xff] }
 0x21b   : > { %v8876_v2 = vadd.f32 %v8875_v52, %v8874_v23  ;;  %v8877_v17 = vpop.f32.mrb[70].mxu1  ;;  %v8814_v58 = vpop.f32.mrb[71].mxu0  ;;  %9331 = vmatpush3.bf16.msra.mxu0 %v10474_v19  ;;  %v10637_v23 = vld [vmem:[%s10914_s10 + $0x18] sm:$0xff] }
 0x21c   : > { %v8878_v42 = vpop.f32.mrb[71].mxu1  ;;  %v3443_v48 = vadd.f32 %v8812_v16, %v12776_v39  ;;  %v8815_v40 = vadd.f32 %v8814_v58, %v8813_v44  ;;  %9460 = vmatprep.subr.bf16.mxu0 %v10477_v24  ;;  %v10639_v19 = vld [vmem:[%s10918_s16 + $0x8] sm:$0xff] }
 0x21d   : > { %v8879_v30 = vadd.f32 %v8878_v42, %v8877_v17  ;;  %4864 = vmatmul.mubr.bf16.gmra.mrb[176].mxu0 %v10636_v34  ;;  %v10468_v39 = vld [vmem:[%s14431_s2 + $0x308] sm:$0xff]  }
 0x21e   : > { %4929 = vmatmul.mubr.bf16.vlgmr.msra.gmra.mrb[176].mxu1 %v10637_v23  ;;  %v3446_v45 = vadd.f32 %v8815_v40, %v12783_v32  ;;  %v12949_v52 = vadd.f32 %v8876_v2, %v3443_v48  ;;  %4871 = vmatprep.mubr.bf16.mxu0 %v10638_v10  ;;  %v10471_v32 = vld [vmem:[%s14431_s2 + $0x350] sm:$0xff]  }
 0x21f   : > { %4936 = vmatprep.mubr.bf16.mxu1 %v10639_v19  ;;  %9381 = vmatpush3.bf16.msra.mxu1 %v10464_v0  ;;  %v10640_v19 = vld [vmem:[%s10914_s10 + $0xa8] sm:$0xff] }
 0x220   : > { %v12956_v16 = vadd.f32 %v8879_v30, %v3446_v45  ;;  %v8816_v24 = vpop.f32.mrb[72].mxu0  ;;  %9382 = vmatprep.subr.bf16.mxu1 %v10467_v29  ;;  %v10472_v30 = vld [vmem:[%s14431_s2 + $0x310] sm:$0xff]   ;;  %v10475_v45 = vld [vmem:[%s14431_s2 + $0x358] sm:$0xff]  }
 0x221   : > { %v8880_v44 = vpop.f32.mrb[72].mxu1  ;;  %v8817_v2 = vpop.f32.mrb[73].mxu0 }
 0x222   : > { %v8881_v17 = vpop.f32.mrb[73].mxu1  ;;  %v8818_v10 = vadd.f32 %v8817_v2, %v8816_v24  ;;  %v8819_v58 = vpop.f32.mrb[74].mxu0  ;;  %v10641_v24 = vld [vmem:[%s10914_s10 + $0x38] sm:$0xff]  ;;  %v10642_v2 = vld [vmem:[%s10914_s10 + $0xd0] sm:$0xff] }
 0x223   : > { %v8882_v42 = vadd.f32 %v8881_v17, %v8880_v44  ;;  %v8883_v0 = vpop.f32.mrb[74].mxu1  ;;  %v8820_v48 = vpop.f32.mrb[75].mxu0  ;;  %9383 = vmatpush3.bf16.msra.mxu1 %v10468_v39  ;;  %v10643_v17 = vld [vmem:[%s10918_s16 + $0x10] sm:$0xff] }
 0x224   : > { %v8884_v40 = vpop.f32.mrb[75].mxu1  ;;  %v8821_v29 = vadd.f32 %v8820_v48, %v8819_v58  ;;  %v3451_v34 = vadd.f32 %v8818_v10, %v12795_v12  ;;  %9384 = vmatprep.subr.bf16.mxu1 %v10471_v32  ;;  %v10476_v12 = vld [vmem:[%s14431_s2 + $0x318] sm:$0xff]  }
 0x225   : > { %v8885_v23 = vadd.f32 %v8884_v40, %v8883_v0  ;;  %4872 = vmatmul.mubr.bf16.gmra.mrb[180].mxu0 %v10640_v19 }
 0x226   : > { %4937 = vmatmul.mubr.bf16.gmra.mrb[180].mxu1 %v10641_v24  ;;  %v12970_v44 = vadd.f32 %v8882_v42, %v3451_v34  ;;  %v3454_v39 = vadd.f32 %v8821_v29, %v12805_v6  ;;  %4879 = vmatprep.mubr.bf16.mxu0 %v10642_v2  ;;  %v10479_v42 = vld [vmem:[%s14431_s2 + $0x360] sm:$0xff]  }
 0x227   : > { %4944 = vmatprep.mubr.bf16.mxu1 %v10643_v17  ;;  %9385 = vmatpush3.bf16.msra.mxu1 %v10472_v30 }
 0x228   : > { %v12978_v32 = vadd.f32 %v8885_v23, %v3454_v39  ;;  %v8822_v10 = vpop.f32.mrb[76].mxu0  ;;  %9386 = vmatprep.subr.bf16.mxu1 %v10475_v45  ;;  %v14818_v23 = vshll.u32 %v12356_v4, 16  ;;  %v10480_v45 = vld [vmem:[%s14431_s2 + $0x320] sm:$0xff]  }
 0x229   : > { %v8886_v58 = vpop.f32.mrb[76].mxu1  ;;  %v8823_v0 = vpop.f32.mrb[77].mxu0 }
 0x22a   : > { %v8887_v6 = vpop.f32.mrb[77].mxu1  ;;  %v8824_v48 = vadd.f32 %v8823_v0, %v8822_v10  ;;  %v8825_v40 = vpop.f32.mrb[78].mxu0  ;;  %v1610_v24 = vrot.slane %v14818_v23, 1  ;;  %v10483_v10 = vld [vmem:[%s14431_s2 + $0x368] sm:$0xff]   ;;  %v10645_v0 = vld [vmem:[%s10914_s10 + $0x58] sm:$0xff]  ;;  %v10646_v23 = vld [vmem:[%s10914_s10 + $0xf0] sm:$0xff] }
 0x22b   : > { %v8888_v30 = vadd.f32 %v8887_v6, %v8886_v58  ;;  %v8889_v29 = vpop.f32.mrb[78].mxu1  ;;  %v8826_v34 = vpop.f32.mrb[79].mxu0  ;;  %9387 = vmatpush3.bf16.msra.mxu1 %v10476_v12  ;;  %v10644_v58 = vld [vmem:[%s10914_s10 + $0xc8] sm:$0xff] }
 0x22c   : > { %v8890_v19 = vpop.f32.mrb[79].mxu1  ;;  %v8827_v39 = vadd.f32 %v8826_v34, %v8825_v40  ;;  %v3459_v2 = vadd.f32 %v8824_v48, %v12817_v5  ;;  %9388 = vmatprep.subr.bf16.mxu1 %v10479_v42  ;;  %v14819_v5 = vshrl.u32 %v12356_v4, 16  ;;  %v10484_v42 = vld [vmem:[%s14431_s2 + $0x328] sm:$0xff]   ;;  %v14820_v4 = vshll.u32 %v12415_v21, 16 }
 0x22d   : > { %v8891_v17 = vadd.f32 %v8890_v19, %v8889_v29  ;;  %4880 = vmatmul.mubr.bf16.gmra.mrb[184].mxu0 %v10644_v58 }
 0x22e   : > { %4945 = vmatmul.mubr.bf16.gmra.mrb[184].mxu1 %v10645_v0  ;;  %v12994_v6 = vadd.f32 %v8888_v30, %v3459_v2  ;;  %v3462_v12 = vadd.f32 %v8827_v39, %v12827_v53  ;;  %4887 = vmatprep.mubr.bf16.mxu0 %v10646_v23  ;;  %v1611_v48 = vor.u32 %v1610_v24, %v14819_v5  ;;  %v10487_v53 = vld [vmem:[%s14431_s2 + $0x370] sm:$0xff]   ;;  %v1608_v19 = vrot.slane %v14820_v4, 1 }
 0x22f   : > { %4952 = vmatprep.mubr.bf16.mxu1 %v10647_v14  ;;  %9389 = vmatpush3.bf16.msra.mxu1 %v10480_v45  ;;  %v10488_v0 = vld [vmem:[%s14431_s2 + $0x330] sm:$0xff]  }
 0x230   : > { %v13004_v40 = vadd.f32 %v8891_v17, %v3462_v12  ;;  %v8828_v29 = vpop.f32.mrb[80].mxu0  ;;  %9390 = vmatprep.subr.bf16.mxu1 %v10483_v10  ;;  %v1732_v10 = vsel %vm12066_vm5, %v1611_v48, 0  ;;  %v13017_v12 = vld [vmem:[%s10914_s10 + $0x120] sm:$0xff]  ;;  %v10648_v48 = vld [vmem:[%s10914_s10 + $0xe8] sm:$0xff] }
 0x231   : > { %v8892_v30 = vpop.f32.mrb[80].mxu1  ;;  %v8829_v34 = vpop.f32.mrb[81].mxu0 }
 0x232   : > { %v8893_v14 = vpop.f32.mrb[81].mxu1  ;;  %v8830_v24 = vadd.f32 %v8829_v34, %v8828_v29  ;;  %v8831_v45 = vpop.f32.mrb[82].mxu0  ;;  %v14599_v34 = vshll.u32 %v13017_v12, 16 }
 0x233   : > { %v8894_v39 = vadd.f32 %v8893_v14, %v8892_v30  ;;  %v8895_v2 = vpop.f32.mrb[82].mxu1  ;;  %v8832_v17 = vpop.f32.mrb[83].mxu0  ;;  %9391 = vmatpush3.bf16.msra.mxu1 %v10484_v42  ;;  %v10491_v30 = vld [vmem:[%s14431_s2 + $0x378] sm:$0xff]   ;;  %v14821_v14 = vshrl.u32 %v12415_v21, 16 }
 0x234   : > { %v8896_v58 = vpop.f32.mrb[83].mxu1  ;;  %v8833_v23 = vadd.f32 %v8832_v17, %v8831_v45  ;;  %v3467_v5 = vadd.f32 %v8830_v24, %v12839_v54  ;;  %9392 = vmatprep.subr.bf16.mxu1 %v10487_v53  ;;  %v10649_v42 = vld [vmem:[%s10914_s10 + $0x78] sm:$0xff]  ;;  %v10650_v54 = vld [vmem:[%s10918_s16 + $0x20] sm:$0xff]  ;;  %v14600_v53 = vshrl.u32 %v13017_v12, 16  ;;  %v1680_v24 = vrot.slane %v14599_v34, 1 }
 0x235   : > { %v8897_v29 = vadd.f32 %v8896_v58, %v8895_v2  ;;  %4888 = vmatmul.mubr.bf16.gmra.mrb[188].mxu0 %v10648_v48  ;;  %v1609_v4 = vor.u32 %v1608_v19, %v14821_v14  ;;  %v10492_v2 = vld [vmem:[%s14431_s2 + $0x338] sm:$0xff]  }
 0x236   : > { %4953 = vmatmul.mubr.bf16.gmra.mrb[188].mxu1 %v10649_v42  ;;  %v13028_v56 = vadd.f32 %v8894_v39, %v3467_v5  ;;  %v3470_v45 = vadd.f32 %v8833_v23, %v12849_v3  ;;  %5025 = vmatprep.mubr.bf16.mxu0 %v1732_v10  ;;  %v13043_v3 = vld [vmem:[%s14431_s2 + $0x380] sm:$0xff]   ;;  %v13047_v39 = vor.u32 %v1680_v24, %v14600_v53  ;;  %v14851_v53 = vld [vmem:[#allocation62_spill] sm:$0xff] }
 0x237   : > { %4960 = vmatprep.mubr.bf16.mxu1 %v10650_v54  ;;  %9393 = vmatpush3.bf16.msra.mxu1 %v10488_v0  ;;  %v1731_v48 = vsel %vm12066_vm5, %v1609_v4, 0 }
 0x238   : > { %v13038_v17 = vadd.f32 %v8897_v29, %v3470_v45  ;;  %v8834_v21 = vpop.f32.mrb[84].mxu0  ;;  %9394 = vmatprep.subr.bf16.mxu1 %v10491_v30  ;;  %14822 = vst [vmem:[#allocation13_spill] sm:$0xff] %v13047_v39  ;;  %v10478_v30 = vld [vmem:[%s14431_s2 + $0x780] sm:$0xff]   ;;  %v10481_v45 = vld [vmem:[%s14431_s2 + $0x7c8] sm:$0xff]  }
 0x239   : > { %v8898_v19 = vpop.f32.mrb[84].mxu1  ;;  %v8835_v58 = vpop.f32.mrb[85].mxu0 }
 0x23a   : > { %v8899_v10 = vpop.f32.mrb[85].mxu1  ;;  %v8836_v0 = vadd.f32 %v8835_v58, %v8834_v21  ;;  %v8837_v23 = vpop.f32.mrb[86].mxu0 }
 0x23b   : > { %v8900_v5 = vadd.f32 %v8899_v10, %v8898_v19  ;;  %v8901_v29 = vpop.f32.mrb[86].mxu1  ;;  %v8838_v42 = vpop.f32.mrb[87].mxu0  ;;  %9395 = vmatpush3.bf16.msra.mxu1 %v10492_v2  ;;  %v10651_v19 = vld [vmem:[%s10914_s10 + $0x98] sm:$0xff]  ;;  %v10482_v2 = vld [vmem:[%s14431_s2 + $0x788] sm:$0xff]  }
 0x23c   : > { %v8902_v14 = vpop.f32.mrb[87].mxu1  ;;  %v8839_v54 = vadd.f32 %v8838_v42, %v8837_v23  ;;  %v3475_v24 = vadd.f32 %v8836_v0, %v12861_v47  ;;  %9956 = vmatprep.subr.bf16.mxu1 %v13043_v3  ;;  %v10652_v10 = vld [vmem:[%s10918_s16 + $0x28] sm:$0xff]  ;;  %v10485_v47 = vld [vmem:[%s14431_s2 + $0x7d0] sm:$0xff]  }
 0x23d   : > { %v8903_v21 = vadd.f32 %v8902_v14, %v8901_v29  ;;  %5026 = vmatmul.mubr.bf16.vlgmr.msra.gmra.mrb[192].mxu0 %v1731_v48 }
 0x23e   : > { %4961 = vmatmul.mubr.bf16.gmra.mrb[192].mxu1 %v10651_v19  ;;  %v13060_v4 = vadd.f32 %v8900_v5, %v3475_v24  ;;  %v3478_v58 = vadd.f32 %v8839_v54, %v12871_v13  ;;  %9461 = vmatpush3.bf16.msra.mxu0 %v10478_v30 }
 0x23f   : > { %4968 = vmatprep.mubr.bf16.mxu1 %v10652_v10  ;;  %5033 = vmatprep.mubr.bf16.mxu0 %v12077_v11  ;;  %v10653_v10 = vld [vmem:[%s10914_s10 + $0xb8] sm:$0xff] }
 0x240   : > { %9462 = vmatprep.subr.bf16.mxu0 %v10481_v45  ;;  %v13071_v0 = vadd.f32 %v8903_v21, %v3478_v58  ;;  %v8840_v23 = vpop.f32.mrb[88].mxu0  ;;  %v10486_v45 = vld [vmem:[%s14431_s2 + $0x790] sm:$0xff]   ;;  %v10489_v58 = vld [vmem:[%s14431_s2 + $0x7d8] sm:$0xff]  }
 0x241   : > { %v8904_v5 = vpop.f32.mrb[88].mxu1  ;;  %v8841_v13 = vpop.f32.mrb[89].mxu0 }
 0x242   : > { %v8905_v29 = vpop.f32.mrb[89].mxu1  ;;  %v8842_v48 = vadd.f32 %v8841_v13, %v8840_v23  ;;  %v8843_v30 = vpop.f32.mrb[90].mxu0  ;;  %9463 = vmatpush3.bf16.msra.mxu0 %v10482_v2  ;;  %v10654_v23 = vld [vmem:[%s10918_s16 + $0x30] sm:$0xff] }
 0x243   : > { %v8906_v42 = vadd.f32 %v8905_v29, %v8904_v5  ;;  %v8907_v14 = vpop.f32.mrb[90].mxu1  ;;  %v8844_v54 = vpop.f32.mrb[91].mxu0  ;;  %9464 = vmatprep.subr.bf16.mxu0 %v10485_v47 }
 0x244   : > { %v8908_v11 = vpop.f32.mrb[91].mxu1  ;;  %v8845_v24 = vadd.f32 %v8844_v54, %v8843_v30  ;;  %v3483_v21 = vadd.f32 %v8842_v48, %v12883_v35  ;;  %v10490_v35 = vld [vmem:[%s14431_s2 + $0x798] sm:$0xff]  }
 0x245   : > { %v8909_v19 = vadd.f32 %v8908_v11, %v8907_v14  ;;  %5034 = vmatmul.mubr.bf16.gmra.mrb[196].mxu0 %v12090_v22  ;;  %v10493_v22 = vld [vmem:[%s14431_s2 + $0x7e0] sm:$0xff]  }
 0x246   : > { %4969 = vmatmul.mubr.bf16.gmra.mrb[196].mxu1 %v10653_v10  ;;  %v13082_v2 = vadd.f32 %v8906_v42, %v3483_v21  ;;  %v3486_v47 = vadd.f32 %v8845_v24, %v12893_v59  ;;  %5041 = vmatprep.mubr.bf16.mxu0 %v12101_v55  ;;  %v14823_v24 = vshll.u32 %v12557_v25, 16 }
 0x247   : > { %4976 = vmatprep.mubr.bf16.mxu1 %v10654_v23  ;;  %9465 = vmatpush3.bf16.msra.mxu0 %v10486_v45  ;;  %v10496_v23 = vld [vmem:[%s14431_s2 + $0x7e8] sm:$0xff]  }
 0x248   : > { %v13090_v5 = vadd.f32 %v8909_v19, %v3486_v47  ;;  %v8846_v13 = vpop.f32.mrb[92].mxu0  ;;  %9466 = vmatprep.subr.bf16.mxu0 %v10489_v58  ;;  %v1614_v21 = vrot.slane %v14823_v24, 1  ;;  %v10494_v19 = vld [vmem:[%s14431_s2 + $0x7a0] sm:$0xff]  }
 0x249   : > { %v8910_v29 = vpop.f32.mrb[92].mxu1  ;;  %v8847_v48 = vpop.f32.mrb[93].mxu0 }
 0x24a   : > { %v8911_v59 = vpop.f32.mrb[93].mxu1  ;;  %v8848_v30 = vadd.f32 %v8847_v48, %v8846_v13  ;;  %v8849_v42 = vpop.f32.mrb[94].mxu0  ;;  %v10655_v13 = vld [vmem:[%s10914_s10 + $0xd8] sm:$0xff] }
 0x24b   : > { %v8912_v14 = vadd.f32 %v8911_v59, %v8910_v29  ;;  %v8913_v54 = vpop.f32.mrb[94].mxu1  ;;  %v8850_v11 = vpop.f32.mrb[95].mxu0  ;;  %9467 = vmatpush3.bf16.msra.mxu0 %v10490_v35  ;;  %v10656_v48 = vld [vmem:[%s10918_s16 + $0x38] sm:$0xff] }
 0x24c   : > { %v8914_v45 = vpop.f32.mrb[95].mxu1  ;;  %v8851_v58 = vadd.f32 %v8850_v11, %v8849_v42  ;;  %v3491_v10 = vadd.f32 %v8848_v30, %v12905_v50  ;;  %9468 = vmatprep.subr.bf16.mxu0 %v10493_v22  ;;  %v14824_v50 = vshrl.u32 %v12557_v25, 16  ;;  %v10497_v22 = vld [vmem:[%s14431_s2 + $0x7a8] sm:$0xff]   ;;  %v14825_v25 = vshll.u32 %v12591_v36, 16 }
 0x24d   : > { %v8915_v47 = vadd.f32 %v8914_v45, %v8913_v54  ;;  %5042 = vmatmul.mubr.bf16.gmra.mrb[200].mxu0 %v12123_v27 }
 0x24e   : > { %4977 = vmatmul.mubr.bf16.gmra.mrb[200].mxu1 %v10655_v13  ;;  %v13106_v35 = vadd.f32 %v8912_v14, %v3491_v10  ;;  %v3494_v29 = vadd.f32 %v8851_v58, %v12912_v33  ;;  %5049 = vmatprep.mubr.bf16.mxu0 %v12128_v57  ;;  %v1615_v59 = vor.u32 %v1614_v21, %v14824_v50  ;;  %v10499_v33 = vld [vmem:[%s14431_s2 + $0x7f0] sm:$0xff]   ;;  %v1612_v45 = vrot.slane %v14825_v25, 1 }
 0x24f   : > { %4984 = vmatprep.mubr.bf16.mxu1 %v10656_v48  ;;  %9469 = vmatpush3.bf16.msra.mxu0 %v10494_v19  ;;  %v10500_v19 = vld [vmem:[%s14431_s2 + $0x7b0] sm:$0xff]   ;;  %v14826_v13 = vshrl.u32 %v12591_v36, 16 }
 0x250   : > { %v13116_v30 = vadd.f32 %v8915_v47, %v3494_v29  ;;  %v8932_v42 = vpop.f32.mrb[96].mxu0  ;;  %9470 = vmatprep.subr.bf16.mxu0 %v10496_v23  ;;  %v1734_v21 = vsel %vm12066_vm5, %v1615_v59, 0  ;;  %v10502_v47 = vld [vmem:[%s14431_s2 + $0x7f8] sm:$0xff]   ;;  %v10505_v59 = vld [vmem:[%s14431_s2 + $0x840] sm:$0xff]  }
 0x251   : > { %v8933_v14 = vpop.f32.mrb[97].mxu0  ;;  %v10657_v23 = vld [vmem:[%s10914_s10 + $0xf8] sm:$0xff]  ;;  %v1613_v29 = vor.u32 %v1612_v45, %v14826_v13 }
 0x252   : > { %v8934_v54 = vadd.f32 %v8933_v14, %v8932_v42  ;;  %v8935_v11 = vpop.f32.mrb[98].mxu0 }
 0x253   : > { %v8936_v24 = vpop.f32.mrb[99].mxu0  ;;  %9471 = vmatpush3.bf16.msra.mxu0 %v10497_v22  ;;  %v1733_v36 = vsel %vm12066_vm5, %v1613_v29, 0 }
 0x254   : > { %v8937_v58 = vadd.f32 %v8936_v24, %v8935_v11  ;;  %9472 = vmatprep.subr.bf16.mxu0 %v10499_v33  ;;  %v13129_v10 = vadd.f32 %v8934_v54, %v12927_v41  ;;  %v10503_v41 = vld [vmem:[%s14431_s2 + $0x7b8] sm:$0xff]   ;;  %v10498_v54 = vld [vmem:[%s14431_s2 + $0x388] sm:$0xff]  }
 0x255   : > { %5050 = vmatmul.mubr.bf16.gmra.mrb[204].mxu0 %v12155_v1 }
 0x256   : > { %4985 = vmatmul.mubr.bf16.gmra.mrb[204].mxu1 %v10657_v23  ;;  %5057 = vmatprep.mubr.bf16.mxu0 %v12163_v26  ;;  %v13140_v48 = vadd.f32 %v8937_v58, %v12934_v18  ;;  %v10507_v23 = vld [vmem:[%s14431_s2 + $0x3a0] sm:$0xff]  }
 0x257   : > { %5122 = vmatprep.mubr.bf16.mxu1 %v1734_v21  ;;  %9473 = vmatpush3.bf16.msra.mxu0 %v10500_v19 }
 0x258   : > { %v8938_v50 = vpop.f32.mrb[100].mxu0  ;;  %9474 = vmatprep.subr.bf16.mxu0 %v10502_v47 }
 0x259   : > { %v8939_v22 = vpop.f32.mrb[101].mxu0 }
 0x25a   : > { %v8940_v42 = vadd.f32 %v8939_v22, %v8938_v50  ;;  %v8941_v33 = vpop.f32.mrb[102].mxu0 }
 0x25b   : > { %v8942_v14 = vpop.f32.mrb[103].mxu0  ;;  %9475 = vmatpush3.bf16.msra.mxu0 %v10503_v41 }
 0x25c   : > { %v8943_v18 = vadd.f32 %v8942_v14, %v8941_v33  ;;  %v13154_v11 = vadd.f32 %v8940_v42, %v12949_v52  ;;  %9524 = vmatprep.subr.bf16.mxu0 %v10505_v59  ;;  %v10501_v52 = vld [vmem:[%s14431_s2 + $0x390] sm:$0xff]   ;;  %v10510_v59 = vld [vmem:[%s14431_s2 + $0x3a8] sm:$0xff]  }
 0x25d   : > { %5058 = vmatmul.mubr.bf16.gmra.mrb[208].mxu0 %v12187_v15  ;;  %v10513_v33 = vld [vmem:[%s14431_s2 + $0x3b0] sm:$0xff]  }
 0x25e   : > { %5123 = vmatmul.mubr.bf16.vlgmr.msra.gmra.mrb[208].mxu1 %v1733_v36  ;;  %5065 = vmatprep.mubr.bf16.mxu0 %v12195_v37  ;;  %v13160_v25 = vadd.f32 %v8943_v18, %v12956_v16  ;;  %v10504_v16 = vld [vmem:[%s14431_s2 + $0x398] sm:$0xff]  }
 0x25f   : > { %5130 = vmatprep.mubr.bf16.mxu1 %v12287_v38  ;;  %9957 = vmatpush3.bf16.msra.mxu1 %v13043_v3 }
 0x260   : > { %v8944_v45 = vpop.f32.mrb[104].mxu0  ;;  %9958 = vmatprep.subr.bf16.mxu1 %v10498_v54 }
 0x261   : > { %v8945_v24 = vpop.f32.mrb[105].mxu0 }
 0x262   : > { %v8946_v21 = vadd.f32 %v8945_v24, %v8944_v45  ;;  %v8947_v19 = vpop.f32.mrb[106].mxu0 }
 0x263   : > { %v8948_v58 = vpop.f32.mrb[107].mxu0  ;;  %9959 = vmatpush3.bf16.msra.mxu1 %v10498_v54 }
 0x264   : > { %v13167_v47 = vadd.f32 %v8946_v21, %v12970_v44  ;;  %v8949_v38 = vadd.f32 %v8948_v58, %v8947_v19  ;;  %9960 = vmatprep.subr.bf16.mxu1 %v10501_v52 }
 0x265   : > { %5066 = vmatmul.mubr.bf16.gmra.mrb[212].mxu0 %v12219_v9 }
 0x266   : > { %5131 = vmatmul.mubr.bf16.gmra.mrb[212].mxu1 %v12274_v46  ;;  %v13175_v3 = vadd.f32 %v8949_v38, %v12978_v32  ;;  %5073 = vmatprep.mubr.bf16.mxu0 %v12224_v60 }
 0x267   : > { %5138 = vmatprep.mubr.bf16.mxu1 %v12296_v51  ;;  %9961 = vmatpush3.bf16.msra.mxu1 %v10501_v52 }
 0x268   : > { %v8950_v44 = vpop.f32.mrb[108].mxu0  ;;  %9962 = vmatprep.subr.bf16.mxu1 %v10504_v16 }
 0x269   : > { %v8951_v13 = vpop.f32.mrb[109].mxu0 }
 0x26a   : > { %v8952_v29 = vadd.f32 %v8951_v13, %v8950_v44  ;;  %v8953_v41 = vpop.f32.mrb[110].mxu0 }
 0x26b   : > { %v8954_v50 = vpop.f32.mrb[111].mxu0  ;;  %9963 = vmatpush3.bf16.msra.mxu1 %v10504_v16  ;;  %v10516_v16 = vld [vmem:[%s14431_s2 + $0x3b8] sm:$0xff]  }
 0x26c   : > { %v13183_v46 = vadd.f32 %v8952_v29, %v12994_v6  ;;  %v8955_v32 = vadd.f32 %v8954_v50, %v8953_v41  ;;  %9964 = vmatprep.subr.bf16.mxu1 %v10507_v23  ;;  %v10518_v41 = vld [vmem:[%s14431_s2 + $0x8c0] sm:$0xff]  }
 0x26d   : > { %5074 = vmatmul.mubr.bf16.gmra.mrb[216].mxu0 %v12233_v49  ;;  %v10680_v49 = vld [vmem:[%s10914_s10 + $0xa8] sm:$0xff] }
 0x26e   : > { %5139 = vmatmul.mubr.bf16.gmra.mrb[216].mxu1 %v12317_v62  ;;  %v13191_v22 = vadd.f32 %v8955_v32, %v13004_v40  ;;  %5081 = vmatprep.mubr.bf16.mxu0 %v12238_v61  ;;  %v14856_v62 = vld [vmem:[#allocation66_spill] sm:$0xff]  ;;  %v13888_v61 = vld [vmem:[%s14431_s2 + $0xab0] sm:$0xff]  }
 0x26f   : > { %5146 = vmatprep.mubr.bf16.mxu1 %v12328_v7  ;;  %9965 = vmatpush3.bf16.msra.mxu1 %v10507_v23  ;;  %v14827_v23 = vld [vmem:[#allocation69_spill] sm:$0xff]  ;;  %14884 = vst [vmem:[#allocation44_spill] sm:$0xff] %v13888_v61 }
 0x270   : > { %v8956_v6 = vpop.f32.mrb[112].mxu0  ;;  %9966 = vmatprep.subr.bf16.mxu1 %v10510_v59  ;;  %14886 = vst [vmem:[#allocation69_spill] sm:$0xff] %v13917_v28 }
 0x271   : > { %v9012_v42 = vpop.f32.mrb[112].mxu1  ;;  %v8957_v36 = vpop.f32.mrb[113].mxu0 }
 0x272   : > { %v9013_v14 = vpop.f32.mrb[113].mxu1  ;;  %v8958_v18 = vadd.f32 %v8957_v36, %v8956_v6  ;;  %v8959_v45 = vpop.f32.mrb[114].mxu0 }
 0x273   : > { %v9014_v54 = vadd.f32 %v9013_v14, %v9012_v42  ;;  %v9015_v52 = vpop.f32.mrb[114].mxu1  ;;  %v8960_v40 = vpop.f32.mrb[115].mxu0  ;;  %9967 = vmatpush3.bf16.msra.mxu1 %v10510_v59 }
 0x274   : > { %v9016_v24 = vpop.f32.mrb[115].mxu1  ;;  %v13199_v21 = vadd.f32 %v8958_v18, %v13028_v56  ;;  %v8961_v58 = vadd.f32 %v8960_v40, %v8959_v45  ;;  %9968 = vmatprep.subr.bf16.mxu1 %v10513_v33  ;;  %v14829_v40 = vld [vmem:[#allocation71_spill] sm:$0xff] }
 0x275   : > { %v13202_v19 = vadd.f32 %v9014_v54, %v13129_v10  ;;  %v9017_v38 = vadd.f32 %v9016_v24, %v9015_v52  ;;  %5082 = vmatmul.mubr.bf16.gmra.mrb[220].mxu0 %v12247_v8  ;;  %v14828_v10 = vld [vmem:[#allocation16_spill] sm:$0xff]  ;;  %v14830_v24 = vld [vmem:[#allocation18_spill] sm:$0xff] }
 0x276   : > { %5147 = vmatmul.mubr.bf16.gmra.mrb[220].mxu1 %v12343_v43  ;;  %v13210_v44 = vadd.f32 %v8961_v58, %v13038_v17  ;;  %6277 = vmatprep.mubr.bf16.mxu0 %v14828_v10  ;;  %v10511_v10 = vld [vmem:[%s14431_s2 + $0x850] sm:$0xff]   ;;  %v10676_v8 = vld [vmem:[%s10914_s10 + $0x88] sm:$0xff] }
 0x277   : > { %v13213_v56 = vadd.f32 %v9017_v38, %v13140_v48  ;;  %5154 = vmatprep.mubr.bf16.mxu1 %v14827_v23  ;;  %9969 = vmatpush3.bf16.msra.mxu1 %v10513_v33  ;;  %v10506_v48 = vld [vmem:[%s14431_s2 + $0x800] sm:$0xff]   ;;  %v10508_v33 = vld [vmem:[%s14431_s2 + $0x848] sm:$0xff]  }
 0x278   : > { %v8962_v13 = vpop.f32.mrb[116].mxu0  ;;  %9970 = vmatprep.subr.bf16.mxu1 %v10516_v16 }
 0x279   : > { %v9018_v29 = vpop.f32.mrb[116].mxu1  ;;  %v8963_v50 = vpop.f32.mrb[117].mxu0 }
 0x27a   : > { %v9019_v32 = vpop.f32.mrb[117].mxu1  ;;  %v8964_v59 = vadd.f32 %v8963_v50, %v8962_v13  ;;  %v8965_v6 = vpop.f32.mrb[118].mxu0 }
 0x27b   : > { %v9020_v17 = vadd.f32 %v9019_v32, %v9018_v29  ;;  %v9021_v42 = vpop.f32.mrb[118].mxu1  ;;  %v8966_v36 = vpop.f32.mrb[119].mxu0  ;;  %9971 = vmatpush3.bf16.msra.mxu1 %v10516_v16  ;;  %v14831_v16 = vld [vmem:[#allocation73_spill] sm:$0xff] }
 0x27c   : > { %v9022_v14 = vpop.f32.mrb[119].mxu1  ;;  %v13227_v18 = vadd.f32 %v8964_v59, %v13060_v4  ;;  %v8967_v45 = vadd.f32 %v8966_v36, %v8965_v6  ;;  %9588 = vmatprep.subr.bf16.mxu1 %v10518_v41  ;;  %v10509_v4 = vld [vmem:[%s14431_s2 + $0x808] sm:$0xff]  }
 0x27d   : > { %v13230_v54 = vadd.f32 %v9020_v17, %v13154_v11  ;;  %v9023_v52 = vadd.f32 %v9022_v14, %v9021_v42  ;;  %6278 = vmatmul.mubr.bf16.vlgmr.msra.gmra.mrb[224].mxu0 %v14830_v24  ;;  %v14832_v11 = vld [vmem:[#allocation20_spill] sm:$0xff]  ;;  %v10512_v42 = vld [vmem:[%s14431_s2 + $0x810] sm:$0xff]   ;;  %v14834_v24 = vld [vmem:[#allocation22_spill] sm:$0xff] }
 0x27e   : > { %5155 = vmatmul.mubr.bf16.gmra.mrb[224].mxu1 %v14829_v40  ;;  %v13235_v58 = vadd.f32 %v8967_v45, %v13071_v0  ;;  %9525 = vmatpush3.bf16.msra.mxu0 %v10506_v48  ;;  %v10514_v45 = vld [vmem:[%s14431_s2 + $0x858] sm:$0xff]  }
 0x27f   : > { %v13238_v38 = vadd.f32 %v9023_v52, %v13160_v25  ;;  %5162 = vmatprep.mubr.bf16.mxu1 %v14831_v16  ;;  %6285 = vmatprep.mubr.bf16.mxu0 %v14832_v11  ;;  %v14833_v52 = vld [vmem:[#allocation74_spill] sm:$0xff] }
 0x280   : > { %9526 = vmatprep.subr.bf16.mxu0 %v10508_v33  ;;  %v8968_v13 = vpop.f32.mrb[120].mxu0 }
 0x281   : > { %v9024_v0 = vpop.f32.mrb[120].mxu1  ;;  %v8969_v29 = vpop.f32.mrb[121].mxu0 }
 0x282   : > { %v9025_v41 = vpop.f32.mrb[121].mxu1  ;;  %v8970_v25 = vadd.f32 %v8969_v29, %v8968_v13  ;;  %v8971_v32 = vpop.f32.mrb[122].mxu0  ;;  %9527 = vmatpush3.bf16.msra.mxu0 %v10509_v4 }
 0x283   : > { %v9026_v50 = vadd.f32 %v9025_v41, %v9024_v0  ;;  %v9027_v59 = vpop.f32.mrb[122].mxu1  ;;  %v8972_v17 = vpop.f32.mrb[123].mxu0  ;;  %9528 = vmatprep.subr.bf16.mxu0 %v10511_v10  ;;  %v10515_v10 = vld [vmem:[%s14431_s2 + $0x818] sm:$0xff]  }
 0x284   : > { %v9028_v6 = vpop.f32.mrb[123].mxu1  ;;  %v13252_v48 = vadd.f32 %v8970_v25, %v13082_v2  ;;  %v8973_v14 = vadd.f32 %v8972_v17, %v8971_v32  ;;  %v14835_v2 = vld [vmem:[#allocation75_spill] sm:$0xff] }
 0x285   : > { %v13255_v36 = vadd.f32 %v9026_v50, %v13167_v47  ;;  %v9029_v33 = vadd.f32 %v9028_v6, %v9027_v59  ;;  %6286 = vmatmul.mubr.bf16.gmra.mrb[228].mxu0 %v14834_v24  ;;  %v14836_v47 = vld [vmem:[#allocation24_spill] sm:$0xff]  ;;  %v14837_v6 = vshll.u32 %v12698_v20, 16 }
 0x286   : > { %5163 = vmatmul.mubr.bf16.gmra.mrb[228].mxu1 %v14833_v52  ;;  %v13263_v4 = vadd.f32 %v8973_v14, %v13090_v5  ;;  %6293 = vmatprep.mubr.bf16.mxu0 %v14836_v47  ;;  %v10517_v5 = vld [vmem:[%s14431_s2 + $0x860] sm:$0xff]  }
 0x287   : > { %v13266_v11 = vadd.f32 %v9029_v33, %v13175_v3  ;;  %5170 = vmatprep.mubr.bf16.mxu1 %v14835_v2  ;;  %9529 = vmatpush3.bf16.msra.mxu0 %v10512_v42  ;;  %v1771_v42 = vrot.slane %v14837_v6, 1  ;;  %v10519_v14 = vld [vmem:[%s14431_s2 + $0x820] sm:$0xff]  }
 0x288   : > { %v8974_v13 = vpop.f32.mrb[124].mxu0  ;;  %9530 = vmatprep.subr.bf16.mxu0 %v10514_v45 }
 0x289   : > { %v9030_v0 = vpop.f32.mrb[124].mxu1  ;;  %v8975_v29 = vpop.f32.mrb[125].mxu0 }
 0x28a   : > { %v9031_v41 = vpop.f32.mrb[125].mxu1  ;;  %v8976_v3 = vadd.f32 %v8975_v29, %v8974_v13  ;;  %v8977_v50 = vpop.f32.mrb[126].mxu0  ;;  %v14838_v13 = vld [vmem:[#allocation76_spill] sm:$0xff] }
 0x28b   : > { %v9032_v25 = vadd.f32 %v9031_v41, %v9030_v0  ;;  %v9033_v32 = vpop.f32.mrb[126].mxu1  ;;  %v8978_v59 = vpop.f32.mrb[127].mxu0  ;;  %9531 = vmatpush3.bf16.msra.mxu0 %v10515_v10  ;;  %v10523_v10 = vld [vmem:[%s14431_s2 + $0x868] sm:$0xff]   ;;  %v14839_v0 = vld [vmem:[#allocation26_spill] sm:$0xff]  ;;  %v14840_v41 = vld [vmem:[#allocation77_spill] sm:$0xff] }
 0x28c   : > { %v9034_v17 = vpop.f32.mrb[127].mxu1  ;;  %v13282_v33 = vadd.f32 %v8976_v3, %v13106_v35  ;;  %v8979_v24 = vadd.f32 %v8978_v59, %v8977_v50  ;;  %9532 = vmatprep.subr.bf16.mxu0 %v10517_v5  ;;  %v14842_v5 = vshrl.u32 %v12698_v20, 16 }
 0x28d   : > { %v13285_v45 = vadd.f32 %v9032_v25, %v13183_v46  ;;  %v9035_v47 = vadd.f32 %v9034_v17, %v9033_v32  ;;  %6294 = vmatmul.mubr.bf16.gmra.mrb[232].mxu0 %v14839_v0  ;;  %v14841_v46 = vld [vmem:[#allocation28_spill] sm:$0xff] }
 0x28e   : > { %5171 = vmatmul.mubr.bf16.gmra.mrb[232].mxu1 %v14838_v13  ;;  %v13293_v29 = vadd.f32 %v8979_v24, %v13116_v30  ;;  %6301 = vmatprep.mubr.bf16.mxu0 %v14841_v46  ;;  %v1772_v3 = vor.u32 %v1771_v42, %v14842_v5  ;;  %v10525_v25 = vld [vmem:[%s14431_s2 + $0x828] sm:$0xff]   ;;  %v10529_v30 = vld [vmem:[%s14431_s2 + $0x870] sm:$0xff]  }
 0x28f   : > { %v13296_v35 = vadd.f32 %v9035_v47, %v13191_v22  ;;  %5178 = vmatprep.mubr.bf16.mxu1 %v14840_v41  ;;  %9533 = vmatpush3.bf16.msra.mxu0 %v10519_v14 }
 0x290   : > { %v9076_v32 = vpop.f32.mrb[128].mxu0  ;;  %9534 = vmatprep.subr.bf16.mxu0 %v10523_v10  ;;  %v1801_v14 = vsel %vm12066_vm5, %v1772_v3, 0  ;;  %v10531_v10 = vld [vmem:[%s14431_s2 + $0x830] sm:$0xff]   ;;  %v14844_v3 = vld [vmem:[#allocation30_spill] sm:$0xff] }
 0x291   : > { %v9036_v50 = vpop.f32.mrb[128].mxu1  ;;  %v9077_v59 = vpop.f32.mrb[129].mxu0 }
 0x292   : > { %v9037_v22 = vpop.f32.mrb[129].mxu1  ;;  %v9078_v6 = vadd.f32 %v9077_v59, %v9076_v32  ;;  %v9079_v47 = vpop.f32.mrb[130].mxu0  ;;  %v10535_v32 = vld [vmem:[%s14431_s2 + $0x878] sm:$0xff]  }
 0x293   : > { %v9038_v17 = vadd.f32 %v9037_v22, %v9036_v50  ;;  %v9039_v24 = vpop.f32.mrb[130].mxu1  ;;  %v9080_v42 = vpop.f32.mrb[131].mxu0  ;;  %9535 = vmatpush3.bf16.msra.mxu0 %v10525_v25  ;;  %v14843_v22 = vld [vmem:[#allocation12_spill] sm:$0xff] }
 0x294   : > { %v9040_v20 = vpop.f32.mrb[131].mxu1  ;;  %v13317_v46 = vadd.f32 %v13202_v19, %v9078_v6  ;;  %v9081_v50 = vadd.f32 %v9080_v42, %v9079_v47  ;;  %9536 = vmatprep.subr.bf16.mxu0 %v10529_v30  ;;  %v14845_v19 = vld [vmem:[#allocation32_spill] sm:$0xff]  ;;  %v10537_v30 = vld [vmem:[%s14431_s2 + $0x838] sm:$0xff]   ;;  %v10541_v6 = vld [vmem:[%s14431_s2 + $0x940] sm:$0xff]  }
 0x295   : > { %v13314_v0 = vadd.f32 %v9038_v17, %v13199_v21  ;;  %v9041_v5 = vadd.f32 %v9040_v20, %v9039_v24  ;;  %6302 = vmatmul.mubr.bf16.gmra.mrb[236].mxu0 %v14844_v3 }
 0x296   : > { %5179 = vmatmul.mubr.bf16.gmra.mrb[236].mxu1 %v14843_v22  ;;  %v13328_v21 = vadd.f32 %v13213_v56, %v9081_v50  ;;  %6309 = vmatprep.mubr.bf16.mxu0 %v14845_v19  ;;  %v10521_v50 = vld [vmem:[%s14431_s2 + $0x8c8] sm:$0xff]  }
 0x297   : > { %v13325_v25 = vadd.f32 %v9041_v5, %v13210_v44  ;;  %9972 = vmatprep.mubr.bf16.mxu1 %v1801_v14  ;;  %9537 = vmatpush3.bf16.msra.mxu0 %v10531_v10  ;;  %v10520_v14 = vld [vmem:[%s14431_s2 + $0x880] sm:$0xff]  }
 0x298   : > { %v9082_v17 = vpop.f32.mrb[132].mxu0  ;;  %9538 = vmatprep.subr.bf16.mxu0 %v10535_v32 }
 0x299   : > { %v9042_v59 = vpop.f32.mrb[132].mxu1  ;;  %v9083_v24 = vpop.f32.mrb[133].mxu0 }
 0x29a   : > { %v9043_v44 = vpop.f32.mrb[133].mxu1  ;;  %v9084_v47 = vadd.f32 %v9083_v24, %v9082_v17  ;;  %v9085_v42 = vpop.f32.mrb[134].mxu0  ;;  %v13350_v17 = vld [vmem:[%s10914_s10 + $0x128] sm:$0xff]  ;;  %v14848_v24 = vld [vmem:[#allocation34_spill] sm:$0xff] }
 0x29b   : > { %v9044_v56 = vadd.f32 %v9043_v44, %v9042_v59  ;;  %v9045_v20 = vpop.f32.mrb[134].mxu1  ;;  %v9086_v5 = vpop.f32.mrb[135].mxu0  ;;  %9539 = vmatpush3.bf16.msra.mxu0 %v10537_v30  ;;  %14846 = vst [vmem:[#allocation15_spill] sm:$0xff] %v13350_v17  ;;  %v14847_v44 = vld [vmem:[#allocation60_spill] sm:$0xff] }
 0x29c   : > { %v9046_v10 = vpop.f32.mrb[135].mxu1  ;;  %v13347_v3 = vadd.f32 %v13230_v54, %v9084_v47  ;;  %v9087_v59 = vadd.f32 %v9086_v5, %v9085_v42  ;;  %9652 = vmatprep.subr.bf16.mxu0 %v10541_v6  ;;  %v14849_v54 = vld [vmem:[#allocation59_spill] sm:$0xff]  ;;  %v10524_v6 = vld [vmem:[%s14431_s2 + $0x8d0] sm:$0xff]  }
 0x29d   : > { %v13344_v32 = vadd.f32 %v9044_v56, %v13227_v18  ;;  %v9047_v19 = vadd.f32 %v9046_v10, %v9045_v20  ;;  %6310 = vmatmul.mubr.bf16.gmra.mrb[240].mxu0 %v14848_v24  ;;  %v10522_v18 = vld [vmem:[%s14431_s2 + $0x888] sm:$0xff]   ;;  %v10527_v24 = vld [vmem:[%s14431_s2 + $0x8d8] sm:$0xff]  }
 0x29e   : > { %9973 = vmatmul.mubr.bf16.vlgmr.msra.gmra.mrb[96].mxu1 %v14847_v44  ;;  %v13358_v30 = vadd.f32 %v13238_v38, %v9087_v59  ;;  %v14850_v56 = vld [vmem:[#allocation36_spill] sm:$0xff] }
 0x29f   : > { %v13355_v34 = vadd.f32 %v9047_v19, %v13235_v58  ;;  %9589 = vmatpush3.bf16.msra.mxu1 %v10520_v14  ;;  %9976 = vmatprep.mubr.bf16.mxu1 %v14849_v54  ;;  %v14602_v58 = vshrl.u32 %v13350_v17, 16  ;;  %v10593_v54 = vld [vmem:[%s14431_s2 + $0xa68] sm:$0xff]  }
 0x2a0   : > { %9590 = vmatprep.subr.bf16.mxu1 %v10521_v50  ;;  %6317 = vmatprep.mubr.bf16.mxu0 %v14850_v56  ;;  %v9088_v20 = vpop.f32.mrb[136].mxu0  ;;  %v10526_v50 = vld [vmem:[%s14431_s2 + $0x890] sm:$0xff]  }
 0x2a1   : > { %v9048_v47 = vpop.f32.mrb[136].mxu1  ;;  %v9089_v42 = vpop.f32.mrb[137].mxu0  ;;  %v1417_v56 = vrot.slane %v14602_v58, 7 }
 0x2a2   : > { %v9049_v38 = vpop.f32.mrb[137].mxu1  ;;  %v9090_v10 = vadd.f32 %v9089_v42, %v9088_v20  ;;  %v9091_v19 = vpop.f32.mrb[138].mxu0 }
 0x2a3   : > { %v9050_v14 = vadd.f32 %v9049_v38, %v9048_v47  ;;  %v9051_v5 = vpop.f32.mrb[138].mxu1  ;;  %9591 = vmatpush3.bf16.msra.mxu1 %v10522_v18  ;;  %v9092_v44 = vpop.f32.mrb[139].mxu0  ;;  %v14604_v47 = vshll.u32 %v13350_v17, 16  ;;  %v13873_v17 = vld [vmem:[%s14431_s2 + $0xaf0] sm:$0xff]  }
 0x2a4   : > { %v9052_v59 = vpop.f32.mrb[139].mxu1  ;;  %9592 = vmatprep.subr.bf16.mxu1 %v10524_v6  ;;  %v13382_v18 = vadd.f32 %v13255_v36, %v9090_v10  ;;  %v9093_v42 = vadd.f32 %v9092_v44, %v9091_v19  ;;  %v14853_v36 = vld [vmem:[#allocation40_spill] sm:$0xff]  ;;  %14883 = vst [vmem:[#allocation38_spill] sm:$0xff] %v13873_v17 }
 0x2a5   : > { %v13379_v20 = vadd.f32 %v9050_v14, %v13252_v48  ;;  %v9053_v38 = vadd.f32 %v9052_v59, %v9051_v5  ;;  %6318 = vmatmul.mubr.bf16.gmra.mrb[244].mxu0 %v14802_v31  ;;  %v10528_v48 = vld [vmem:[%s14431_s2 + $0x898] sm:$0xff]   ;;  %v14852_v14 = vld [vmem:[#allocation64_spill] sm:$0xff]  ;;  %v10530_v31 = vld [vmem:[%s14431_s2 + $0x8e0] sm:$0xff]  }
 0x2a6   : > { %9977 = vmatmul.mubr.bf16.gmra.mrb[100].mxu1 %v14851_v53  ;;  %v13390_v43 = vadd.f32 %v13266_v11, %v9093_v42  ;;  %6325 = vmatprep.mubr.bf16.mxu0 %v14853_v36  ;;  %v14854_v42 = vshrl.u32 %v13017_v12, 16  ;;  %v13825_v53 = vld [vmem:[%s14431_s2 + $0xae0] sm:$0xff]  }
 0x2a7   : > { %v13387_v6 = vadd.f32 %v9053_v38, %v13263_v4  ;;  %9593 = vmatpush3.bf16.msra.mxu1 %v10526_v50  ;;  %9980 = vmatprep.mubr.bf16.mxu1 %v14852_v14  ;;  %v1420_v4 = vor.u32 %v14604_v47, %v1417_v56  ;;  %v10533_v56 = vld [vmem:[%s14431_s2 + $0x8e8] sm:$0xff]   ;;  %v10666_v47 = vld [vmem:[%s10914_s10 + $0x50] sm:$0xff] }
 0x2a8   : > { %9594 = vmatprep.subr.bf16.mxu1 %v10527_v24  ;;  %v9094_v11 = vpop.f32.mrb[140].mxu0  ;;  %v10532_v24 = vld [vmem:[%s14431_s2 + $0x8a0] sm:$0xff]   ;;  %v1410_v36 = vrot.slane %v14854_v42, 7  ;;  %v14857_v42 = vld [vmem:[#allocation42_spill] sm:$0xff] }
 0x2a9   : > { %v9054_v10 = vpop.f32.mrb[140].mxu1  ;;  %v9095_v19 = vpop.f32.mrb[141].mxu0 }
 0x2aa   : > { %v9055_v5 = vpop.f32.mrb[141].mxu1  ;;  %v9096_v59 = vadd.f32 %v9095_v19, %v9094_v11  ;;  %v9097_v38 = vpop.f32.mrb[142].mxu0 }
 0x2ab   : > { %v9056_v50 = vadd.f32 %v9055_v5, %v9054_v10  ;;  %v9057_v44 = vpop.f32.mrb[142].mxu1  ;;  %9595 = vmatpush3.bf16.msra.mxu1 %v10528_v48  ;;  %v9098_v7 = vpop.f32.mrb[143].mxu0  ;;  %v1515_v10 = vsel %vm11206_vm2, 0, %v1420_v4  ;;  %v14858_v4 = vld [vmem:[#allocation68_spill] sm:$0xff] }
 0x2ac   : > { %v9058_v58 = vpop.f32.mrb[143].mxu1  ;;  %9596 = vmatprep.subr.bf16.mxu1 %v10530_v31  ;;  %v13416_v48 = vadd.f32 %v13285_v45, %v9096_v59  ;;  %v9099_v19 = vadd.f32 %v9098_v7, %v9097_v38  ;;  %v14859_v45 = vshll.u32 %v13017_v12, 16  ;;  %v10538_v12 = vld [vmem:[%s14431_s2 + $0x8b0] sm:$0xff]  }
 0x2ad   : > { %v13413_v11 = vadd.f32 %v9056_v50, %v13282_v33  ;;  %v9059_v5 = vadd.f32 %v9058_v58, %v9057_v44  ;;  %6326 = vmatmul.mubr.bf16.gmra.mrb[248].mxu0 %v14857_v42  ;;  %v10534_v33 = vld [vmem:[%s14431_s2 + $0x8a8] sm:$0xff]  }
 0x2ae   : > { %9981 = vmatmul.mubr.bf16.gmra.mrb[104].mxu1 %v14856_v62  ;;  %v13424_v51 = vadd.f32 %v13296_v35, %v9099_v19  ;;  %v1413_v7 = vor.u32 %v14859_v45, %v1410_v36  ;;  %6333 = vmatprep.mubr.bf16.mxu0 %v1515_v10  ;;  %v10539_v10 = vld [vmem:[%s14431_s2 + $0x8f8] sm:$0xff]   ;;  %v14878_v62 = vld [vmem:[#allocation41_spill] sm:$0xff] }
 0x2af   : > { %v13421_v31 = vadd.f32 %v9059_v5, %v13293_v29  ;;  %9597 = vmatpush3.bf16.msra.mxu1 %v10532_v24  ;;  %9984 = vmatprep.mubr.bf16.mxu1 %v14858_v4  ;;  %v10536_v29 = vld [vmem:[%s14431_s2 + $0x8f0] sm:$0xff]  }
 0x2b0   : > { %9598 = vmatprep.subr.bf16.mxu1 %v10533_v56  ;;  %v9100_v58 = vpop.f32.mrb[144].mxu0  ;;  %v1514_v19 = vsel %vm11206_vm2, 0, %v1413_v7 }
 0x2b1   : > { %v9140_v50 = vpop.f32.mrb[144].mxu1  ;;  %v9101_v35 = vpop.f32.mrb[145].mxu0 }
 0x2b2   : > { %v9141_v59 = vpop.f32.mrb[145].mxu1  ;;  %v9102_v44 = vadd.f32 %v9101_v35, %v9100_v58  ;;  %v9103_v24 = vpop.f32.mrb[146].mxu0  ;;  %v14860_v58 = vld [vmem:[#allocation70_spill] sm:$0xff]  ;;  %v14861_v35 = vld [vmem:[#allocation17_spill] sm:$0xff] }
 0x2b3   : > { %v9142_v38 = vadd.f32 %v9141_v59, %v9140_v50  ;;  %v9143_v5 = vpop.f32.mrb[146].mxu1  ;;  %9599 = vmatpush3.bf16.msra.mxu1 %v10534_v33  ;;  %v9104_v36 = vpop.f32.mrb[147].mxu0  ;;  %v10543_v59 = vld [vmem:[%s14431_s2 + $0x9c0] sm:$0xff]  }
 0x2b4   : > { %v9144_v56 = vpop.f32.mrb[147].mxu1  ;;  %9600 = vmatprep.subr.bf16.mxu1 %v10536_v29  ;;  %v13444_v42 = vadd.f32 %v13314_v0, %v9102_v44  ;;  %v9105_v45 = vadd.f32 %v9104_v36, %v9103_v24  ;;  %v10540_v0 = vld [vmem:[%s14431_s2 + $0x8b8] sm:$0xff]   ;;  %v10542_v36 = vld [vmem:[%s14431_s2 + $0x900] sm:$0xff]  }
 0x2b5   : > { %v13447_v33 = vadd.f32 %v13317_v46, %v9142_v38  ;;  %v9145_v7 = vadd.f32 %v9144_v56, %v9143_v5  ;;  %6334 = vmatmul.mubr.bf16.gmra.mrb[252].mxu0 %v1514_v19  ;;  %v10658_v46 = vld [vmem:[%s10914_s10 + $0x40] sm:$0xff] }
 0x2b6   : > { %9985 = vmatmul.mubr.bf16.gmra.mrb[108].mxu1 %v14860_v58  ;;  %v13451_v50 = vadd.f32 %v13325_v25, %v9105_v45  ;;  %6374 = vmatprep.mubr.bf16.mxu0 %v14861_v35  ;;  %v10544_v45 = vld [vmem:[%s14431_s2 + $0x980] sm:$0xff]   ;;  %v14877_v58 = vld [vmem:[#allocation50_spill] sm:$0xff] }
 0x2b7   : > { %v13454_v29 = vadd.f32 %v13328_v21, %v9145_v7  ;;  %9601 = vmatpush3.bf16.msra.mxu1 %v10538_v12  ;;  %6471 = vmatprep.mubr.bf16.mxu1 %v10658_v46 }
 0x2b8   : > { %9602 = vmatprep.subr.bf16.mxu1 %v10539_v10  ;;  %v9106_v44 = vpop.f32.mrb[148].mxu0 }
 0x2b9   : > { %v9146_v25 = vpop.f32.mrb[148].mxu1  ;;  %v9107_v38 = vpop.f32.mrb[149].mxu0 }
 0x2ba   : > { %v9147_v24 = vpop.f32.mrb[149].mxu1  ;;  %v9108_v21 = vadd.f32 %v9107_v38, %v9106_v44  ;;  %v9109_v19 = vpop.f32.mrb[150].mxu0  ;;  %v10545_v44 = vld [vmem:[%s14431_s2 + $0x948] sm:$0xff]   ;;  %v14863_v38 = vld [vmem:[#allocation45_spill] sm:$0xff] }
 0x2bb   : > { %v9148_v5 = vadd.f32 %v9147_v24, %v9146_v25  ;;  %v9149_v12 = vpop.f32.mrb[150].mxu1  ;;  %9603 = vmatpush3.bf16.msra.mxu1 %v10540_v0  ;;  %v9110_v56 = vpop.f32.mrb[151].mxu0  ;;  %v14862_v25 = vld [vmem:[#allocation19_spill] sm:$0xff]  ;;  %v14864_v24 = vld [vmem:[#allocation21_spill] sm:$0xff] }
 0x2bc   : > { %v9150_v10 = vpop.f32.mrb[151].mxu1  ;;  %9716 = vmatprep.subr.bf16.mxu1 %v10543_v59  ;;  %v13471_v7 = vadd.f32 %v13344_v32, %v9108_v21  ;;  %v9111_v46 = vadd.f32 %v9110_v56, %v9109_v19  ;;  %v10547_v59 = vld [vmem:[%s14431_s2 + $0x9c8] sm:$0xff]  }
 0x2bd   : > { %v13474_v35 = vadd.f32 %v13347_v3, %v9148_v5  ;;  %v9151_v0 = vadd.f32 %v9150_v10, %v9149_v12  ;;  %6375 = vmatmul.mubr.bf16.vlgmr.msra.gmra.mrb[0].mxu0 %v14862_v25  ;;  %v10546_v21 = vld [vmem:[%s14431_s2 + $0x908] sm:$0xff]   ;;  %v10659_v5 = vld [vmem:[%s10914_s10 + $0x60] sm:$0xff] }
 0x2be   : > { %6472 = vmatmul.mubr.bf16.vlgmr.msra.gmra.mrb[240].mxu1 %v14863_v38  ;;  %v13485_v32 = vadd.f32 %v13355_v34, %v9111_v46  ;;  %9653 = vmatpush3.bf16.msra.mxu0 %v10542_v36  ;;  %v10548_v19 = vld [vmem:[%s14431_s2 + $0x988] sm:$0xff]   ;;  %v10549_v34 = vld [vmem:[%s14431_s2 + $0x950] sm:$0xff]  }
 0x2bf   : > { %v13488_v3 = vadd.f32 %v13358_v30, %v9151_v0  ;;  %6382 = vmatprep.mubr.bf16.mxu0 %v14864_v24  ;;  %6479 = vmatprep.mubr.bf16.mxu1 %v10659_v5  ;;  %v10551_v36 = vld [vmem:[%s14431_s2 + $0x9d0] sm:$0xff]  }
 0x2c0   : > { %9717 = vmatpush3.bf16.msra.mxu1 %v10544_v45  ;;  %v9112_v30 = vpop.f32.mrb[152].mxu0  ;;  %9654 = vmatprep.subr.bf16.mxu0 %v10545_v44  ;;  %v10550_v44 = vld [vmem:[%s14431_s2 + $0x910] sm:$0xff]  }
 0x2c1   : > { %v9152_v12 = vpop.f32.mrb[152].mxu1  ;;  %9718 = vmatprep.subr.bf16.mxu1 %v10547_v59  ;;  %v9113_v56 = vpop.f32.mrb[153].mxu0  ;;  %v10552_v59 = vld [vmem:[%s14431_s2 + $0x990] sm:$0xff]  }
 0x2c2   : > { %v9153_v10 = vpop.f32.mrb[153].mxu1  ;;  %v9114_v46 = vadd.f32 %v9113_v56, %v9112_v30  ;;  %v9115_v0 = vpop.f32.mrb[154].mxu0  ;;  %9655 = vmatpush3.bf16.msra.mxu0 %v10546_v21  ;;  %v14865_v56 = vld [vmem:[#allocation23_spill] sm:$0xff] }
 0x2c3   : > { %v9154_v45 = vadd.f32 %v9153_v10, %v9152_v12  ;;  %v9155_v25 = vpop.f32.mrb[154].mxu1  ;;  %v9116_v38 = vpop.f32.mrb[155].mxu0  ;;  %9656 = vmatprep.subr.bf16.mxu0 %v10549_v34  ;;  %v10555_v34 = vld [vmem:[%s14431_s2 + $0x9d8] sm:$0xff]  }
 0x2c4   : > { %v9156_v24 = vpop.f32.mrb[155].mxu1  ;;  %9719 = vmatpush3.bf16.msra.mxu1 %v10548_v19  ;;  %v13511_v5 = vadd.f32 %v13379_v20, %v9114_v46  ;;  %v9117_v21 = vadd.f32 %v9116_v38, %v9115_v0  ;;  %v10553_v19 = vld [vmem:[%s14431_s2 + $0x958] sm:$0xff]   ;;  %v14867_v46 = vld [vmem:[#allocation25_spill] sm:$0xff] }
 0x2c5   : > { %v13514_v30 = vadd.f32 %v13382_v18, %v9154_v45  ;;  %v9157_v12 = vadd.f32 %v9156_v24, %v9155_v25  ;;  %9720 = vmatprep.subr.bf16.mxu1 %v10551_v36  ;;  %6383 = vmatmul.mubr.bf16.gmra.mrb[4].mxu0 %v14865_v56  ;;  %v14866_v10 = vld [vmem:[#allocation46_spill] sm:$0xff]  ;;  %v10660_v36 = vld [vmem:[%s10914_s10 + $0x80] sm:$0xff] }
 0x2c6   : > { %6480 = vmatmul.mubr.bf16.gmra.mrb[244].mxu1 %v14866_v10  ;;  %v13525_v20 = vadd.f32 %v13387_v6, %v9117_v21  ;;  %6390 = vmatprep.mubr.bf16.mxu0 %v14867_v46  ;;  %v10554_v45 = vld [vmem:[%s14431_s2 + $0x918] sm:$0xff]  }
 0x2c7   : > { %v13528_v18 = vadd.f32 %v13390_v43, %v9157_v12  ;;  %6487 = vmatprep.mubr.bf16.mxu1 %v10660_v36  ;;  %9657 = vmatpush3.bf16.msra.mxu0 %v10550_v44  ;;  %v10556_v0 = vld [vmem:[%s14431_s2 + $0x998] sm:$0xff]   ;;  %v10557_v43 = vld [vmem:[%s14431_s2 + $0x960] sm:$0xff]  }
 0x2c8   : > { %9721 = vmatpush3.bf16.msra.mxu1 %v10552_v59  ;;  %v9118_v25 = vpop.f32.mrb[156].mxu0  ;;  %9658 = vmatprep.subr.bf16.mxu0 %v10553_v19  ;;  %v10558_v19 = vld [vmem:[%s14431_s2 + $0x920] sm:$0xff]  }
 0x2c9   : > { %v9158_v6 = vpop.f32.mrb[156].mxu1  ;;  %9722 = vmatprep.subr.bf16.mxu1 %v10555_v34  ;;  %v9119_v38 = vpop.f32.mrb[157].mxu0  ;;  %v10559_v34 = vld [vmem:[%s14431_s2 + $0x9e0] sm:$0xff]  }
 0x2ca   : > { %v9159_v24 = vpop.f32.mrb[157].mxu1  ;;  %v9120_v44 = vadd.f32 %v9119_v38, %v9118_v25  ;;  %v9121_v21 = vpop.f32.mrb[158].mxu0  ;;  %v14868_v38 = vld [vmem:[#allocation27_spill] sm:$0xff] }
 0x2cb   : > { %v9160_v59 = vadd.f32 %v9159_v24, %v9158_v6  ;;  %v9161_v12 = vpop.f32.mrb[158].mxu1  ;;  %v9122_v56 = vpop.f32.mrb[159].mxu0  ;;  %9659 = vmatpush3.bf16.msra.mxu0 %v10554_v45  ;;  %v10560_v45 = vld [vmem:[%s14431_s2 + $0x9a0] sm:$0xff]   ;;  %v14869_v24 = vld [vmem:[#allocation29_spill] sm:$0xff] }
 0x2cc   : > { %v9162_v10 = vpop.f32.mrb[159].mxu1  ;;  %9723 = vmatpush3.bf16.msra.mxu1 %v10556_v0  ;;  %v13548_v46 = vadd.f32 %v13413_v11, %v9120_v44  ;;  %v9123_v25 = vadd.f32 %v9122_v56, %v9121_v21  ;;  %9660 = vmatprep.subr.bf16.mxu0 %v10557_v43  ;;  %v10561_v0 = vld [vmem:[%s14431_s2 + $0x968] sm:$0xff]   ;;  %v10661_v44 = vld [vmem:[%s10914_s10 + $0xa0] sm:$0xff] }
 0x2cd   : > { %v13551_v36 = vadd.f32 %v13416_v48, %v9160_v59  ;;  %v9163_v6 = vadd.f32 %v9162_v10, %v9161_v12  ;;  %6391 = vmatmul.mubr.bf16.gmra.mrb[8].mxu0 %v14868_v38  ;;  %v10563_v11 = vld [vmem:[%s14431_s2 + $0x9e8] sm:$0xff]   ;;  %9724 = vmatprep.subr.bf16.mxu1 %v10559_v34  ;;  %v10565_v38 = vld [vmem:[%s14431_s2 + $0x970] sm:$0xff]  }
 0x2ce   : > { %6488 = vmatmul.mubr.bf16.gmra.mrb[248].mxu1 %v14815_v63  ;;  %v13565_v48 = vadd.f32 %v13421_v31, %v9123_v25  ;;  %6398 = vmatprep.mubr.bf16.mxu0 %v14869_v24  ;;  %v10562_v63 = vld [vmem:[%s14431_s2 + $0x928] sm:$0xff]  }
 0x2cf   : > { %v13568_v43 = vadd.f32 %v13424_v51, %v9163_v6  ;;  %6495 = vmatprep.mubr.bf16.mxu1 %v10661_v44  ;;  %9661 = vmatpush3.bf16.msra.mxu0 %v10558_v19  ;;  %v10564_v31 = vld [vmem:[%s14431_s2 + $0x9a8] sm:$0xff]  }
 0x2d0   : > { %v9204_v21 = vpop.f32.mrb[160].mxu0  ;;  %9725 = vmatpush3.bf16.msra.mxu1 %v10560_v45  ;;  %9662 = vmatprep.subr.bf16.mxu0 %v10561_v0  ;;  %v10567_v45 = vld [vmem:[%s14431_s2 + $0x9f0] sm:$0xff]  }
 0x2d1   : > { %v9164_v59 = vpop.f32.mrb[160].mxu1  ;;  %v9205_v12 = vpop.f32.mrb[161].mxu0  ;;  %9726 = vmatprep.subr.bf16.mxu1 %v10563_v11 }
 0x2d2   : > { %v9165_v51 = vpop.f32.mrb[161].mxu1  ;;  %v9206_v10 = vadd.f32 %v9205_v12, %v9204_v21  ;;  %v9207_v19 = vpop.f32.mrb[162].mxu0  ;;  %v14870_v21 = vld [vmem:[#allocation31_spill] sm:$0xff] }
 0x2d3   : > { %v9166_v56 = vadd.f32 %v9165_v51, %v9164_v59  ;;  %v9167_v25 = vpop.f32.mrb[162].mxu1  ;;  %v9208_v6 = vpop.f32.mrb[163].mxu0  ;;  %9663 = vmatpush3.bf16.msra.mxu0 %v10562_v63  ;;  %v10566_v63 = vld [vmem:[%s14431_s2 + $0x930] sm:$0xff]   ;;  %v14871_v51 = vld [vmem:[#allocation48_spill] sm:$0xff] }
 0x2d4   : > { %v9168_v34 = vpop.f32.mrb[163].mxu1  ;;  %v13588_v11 = vadd.f32 %v13447_v33, %v9206_v10  ;;  %v9209_v44 = vadd.f32 %v9208_v6, %v9207_v19  ;;  %9727 = vmatpush3.bf16.msra.mxu1 %v10564_v31  ;;  %v10568_v59 = vld [vmem:[%s14431_s2 + $0x9b0] sm:$0xff]   ;;  %v10571_v33 = vld [vmem:[%s14431_s2 + $0x9f8] sm:$0xff]   ;;  %v10662_v10 = vld [vmem:[%s10914_s10 + $0xc0] sm:$0xff]  ;;  %9664 = vmatprep.subr.bf16.mxu0 %v10565_v38 }
 0x2d5   : > { %v13585_v0 = vadd.f32 %v13444_v42, %v9166_v56  ;;  %v9169_v24 = vadd.f32 %v9168_v34, %v9167_v25  ;;  %6399 = vmatmul.mubr.bf16.gmra.mrb[12].mxu0 %v14870_v21  ;;  %v10569_v42 = vld [vmem:[%s14431_s2 + $0x978] sm:$0xff]   ;;  %v14872_v56 = vld [vmem:[#allocation33_spill] sm:$0xff]  ;;  %9728 = vmatprep.subr.bf16.mxu1 %v10567_v45 }
 0x2d6   : > { %6496 = vmatmul.mubr.bf16.gmra.mrb[252].mxu1 %v14871_v51  ;;  %v13608_v12 = vadd.f32 %v13454_v29, %v9209_v44  ;;  %6406 = vmatprep.mubr.bf16.mxu0 %v14872_v56  ;;  %v10570_v34 = vld [vmem:[%s14431_s2 + $0x938] sm:$0xff]  }
 0x2d7   : > { %v13605_v31 = vadd.f32 %v13451_v50, %v9169_v24  ;;  %6503 = vmatprep.mubr.bf16.mxu1 %v10662_v10  ;;  %9665 = vmatpush3.bf16.msra.mxu0 %v10566_v63  ;;  %v10572_v45 = vld [vmem:[%s14431_s2 + $0x9b8] sm:$0xff]   ;;  %v10573_v63 = vld [vmem:[%s14431_s2 + $0xa40] sm:$0xff]  }
 0x2d8   : > { %v9210_v19 = vpop.f32.mrb[164].mxu0  ;;  %9729 = vmatpush3.bf16.msra.mxu1 %v10568_v59  ;;  %9666 = vmatprep.subr.bf16.mxu0 %v10569_v42  ;;  %v13628_v10 = vld [vmem:[%s10914_s10 + $0x138] sm:$0xff] }
 0x2d9   : > { %v9170_v25 = vpop.f32.mrb[164].mxu1  ;;  %v9211_v50 = vpop.f32.mrb[165].mxu0  ;;  %9730 = vmatprep.subr.bf16.mxu1 %v10571_v33 }
 0x2da   : > { %v9171_v6 = vpop.f32.mrb[165].mxu1  ;;  %v9212_v24 = vadd.f32 %v9211_v50, %v9210_v19  ;;  %v9213_v21 = vpop.f32.mrb[166].mxu0  ;;  %v14873_v19 = vld [vmem:[#allocation35_spill] sm:$0xff]  ;;  %v14875_v50 = vld [vmem:[#allocation37_spill] sm:$0xff] }
 0x2db   : > { %v9172_v29 = vadd.f32 %v9171_v6, %v9170_v25  ;;  %v9173_v44 = vpop.f32.mrb[166].mxu1  ;;  %v9214_v38 = vpop.f32.mrb[167].mxu0  ;;  %9667 = vmatpush3.bf16.msra.mxu0 %v10570_v34  ;;  %v13633_v25 = vld [vmem:[%s14431_s2 + $0xac0] sm:$0xff]   ;;  %v14874_v6 = vld [vmem:[#allocation49_spill] sm:$0xff]  ;;  %v14607_v34 = vshrl.u32 %v13628_v10, 16 }
 0x2dc   : > { %v9174_v51 = vpop.f32.mrb[167].mxu1  ;;  %v13625_v42 = vadd.f32 %v13474_v35, %v9212_v24  ;;  %v9215_v56 = vadd.f32 %v9214_v38, %v9213_v21  ;;  %9731 = vmatpush3.bf16.msra.mxu1 %v10572_v45  ;;  %9780 = vmatprep.subr.bf16.mxu0 %v10573_v63 }
 0x2dd   : > { %v13622_v59 = vadd.f32 %v13471_v7, %v9172_v29  ;;  %v9175_v33 = vadd.f32 %v9174_v51, %v9173_v44  ;;  %6407 = vmatmul.mubr.bf16.gmra.mrb[16].mxu0 %v14873_v19  ;;  %v10663_v29 = vld [vmem:[%s10914_s10 + $0xe0] sm:$0xff]  ;;  %10020 = vmatprep.subr.bf16.mxu1 %v13633_v25  ;;  %v1431_v45 = vrot.slane %v14607_v34, 7 }
 0x2de   : > { %6504 = vmatmul.mubr.bf16.gmra.mrb[0].mxu1 %v14874_v6  ;;  %v13641_v35 = vadd.f32 %v13488_v3, %v9215_v56  ;;  %6414 = vmatprep.mubr.bf16.mxu0 %v14875_v50  ;;  %v13648_v56 = vld [vmem:[%s10914_s10 + $0x130] sm:$0xff]  ;;  %v13654_v50 = vld [vmem:[%s10918_s16 + $0x48] sm:$0xff] }
 0x2df   : > { %v13638_v7 = vadd.f32 %v13485_v32, %v9175_v33  ;;  %6511 = vmatprep.mubr.bf16.mxu1 %v10663_v29  ;;  %v14608_v4 = vshrl.u32 %v13648_v56, 16 }
 0x2e0   : > { %v9216_v44 = vpop.f32.mrb[168].mxu0 }
 0x2e1   : > { %v9176_v24 = vpop.f32.mrb[168].mxu1  ;;  %v9217_v32 = vpop.f32.mrb[169].mxu0 }
 0x2e2   : > { %v9177_v21 = vpop.f32.mrb[169].mxu1  ;;  %v9218_v38 = vadd.f32 %v9217_v32, %v9216_v44  ;;  %v9219_v33 = vpop.f32.mrb[170].mxu0  ;;  %v14876_v32 = vld [vmem:[#allocation39_spill] sm:$0xff] }
 0x2e3   : > { %v9178_v51 = vadd.f32 %v9177_v21, %v9176_v24  ;;  %v9179_v3 = vpop.f32.mrb[170].mxu1  ;;  %v9220_v6 = vpop.f32.mrb[171].mxu0 }
 0x2e4   : > { %v9180_v19 = vpop.f32.mrb[171].mxu1  ;;  %v13660_v24 = vadd.f32 %v13514_v30, %v9218_v38  ;;  %v9221_v21 = vadd.f32 %v9220_v6, %v9219_v33  ;;  %v14609_v30 = vshrl.u32 %v13654_v50, 16  ;;  %v14610_v6 = vshll.u32 %v13648_v56, 16 }
 0x2e5   : > { %v13657_v29 = vadd.f32 %v13511_v5, %v9178_v51  ;;  %v9181_v44 = vadd.f32 %v9180_v19, %v9179_v3  ;;  %6415 = vmatmul.mubr.bf16.gmra.mrb[20].mxu0 %v14876_v32  ;;  %v10664_v5 = vld [vmem:[%s10914_s10 + $0x100] sm:$0xff]  ;;  %v14879_v51 = vshll.u32 %v13628_v10, 16 }
 0x2e6   : > { %6512 = vmatmul.mubr.bf16.gmra.mrb[4].mxu1 %v14877_v58  ;;  %v13669_v63 = vadd.f32 %v13528_v18, %v9221_v21  ;;  %6422 = vmatprep.mubr.bf16.mxu0 %v14878_v62  ;;  %v1584_v32 = vrot.slane %v14609_v30, 7 }
 0x2e7   : > { %v13666_v34 = vadd.f32 %v13525_v20, %v9181_v44  ;;  %6519 = vmatprep.mubr.bf16.mxu1 %v10664_v5  ;;  %v1434_v38 = vor.u32 %v14879_v51, %v1431_v45  ;;  %v1424_v20 = vrot.slane %v14608_v4, 7 }
 0x2e8   : > { %v9222_v33 = vpop.f32.mrb[172].mxu0 }
 0x2e9   : > { %v9182_v3 = vpop.f32.mrb[172].mxu1  ;;  %v9223_v19 = vpop.f32.mrb[173].mxu0  ;;  %v1517_v39 = vsel %vm11206_vm2, 0, %v1434_v38  ;;  %v1427_v30 = vor.u32 %v14610_v6, %v1424_v20 }
 0x2ea   : > { %v9183_v58 = vpop.f32.mrb[173].mxu1  ;;  %v9224_v44 = vadd.f32 %v9223_v19, %v9222_v33  ;;  %v9225_v62 = vpop.f32.mrb[174].mxu0  ;;  %v14881_v19 = vld [vmem:[#allocation52_spill] sm:$0xff] }
 0x2eb   : > { %v9184_v18 = vadd.f32 %v9183_v58, %v9182_v3  ;;  %v9185_v21 = vpop.f32.mrb[174].mxu1  ;;  %v9226_v51 = vpop.f32.mrb[175].mxu0  ;;  %v14880_v58 = vld [vmem:[#allocation43_spill] sm:$0xff] }
 0x2ec   : > { %v9186_v45 = vpop.f32.mrb[175].mxu1  ;;  %v13688_v4 = vadd.f32 %v13551_v36, %v9224_v44  ;;  %v9227_v33 = vadd.f32 %v9226_v51, %v9225_v62  ;;  %v14882_v36 = vshll.u32 %v13654_v50, 16 }
 0x2ed   : > { %v13685_v14 = vadd.f32 %v13548_v46, %v9184_v18  ;;  %v9187_v3 = vadd.f32 %v9186_v45, %v9185_v21  ;;  %6423 = vmatmul.mubr.bf16.gmra.mrb[24].mxu0 %v14880_v58  ;;  %v10665_v46 = vld [vmem:[%s10914_s10 + $0x120] sm:$0xff] }
 0x2ee   : > { %6520 = vmatmul.mubr.bf16.gmra.mrb[8].mxu1 %v14881_v19  ;;  %v13698_v38 = vadd.f32 %v13568_v43, %v9227_v33  ;;  %6430 = vmatprep.mubr.bf16.mxu0 %v1517_v39  ;;  %v1587_v18 = vor.u32 %v14882_v36, %v1584_v32  ;;  %v1516_v43 = vsel %vm11206_vm2, 0, %v1427_v30 }
 0x2ef   : > { %v13695_v5 = vadd.f32 %v13565_v48, %v9187_v3  ;;  %6527 = vmatprep.mubr.bf16.mxu1 %v10665_v46 }
 0x2f0   : > { %v9228_v44 = vpop.f32.mrb[176].mxu0  ;;  %v1607_v39 = vsel %vm11206_vm2, 0, %v1587_v18  ;;  %v10667_v18 = vld [vmem:[%s10918_s16 + $0x10] sm:$0xff] }
 0x2f1   : > { %v9268_v21 = vpop.f32.mrb[176].mxu1  ;;  %v9229_v62 = vpop.f32.mrb[177].mxu0 }
 0x2f2   : > { %v9269_v45 = vpop.f32.mrb[177].mxu1  ;;  %v9230_v51 = vadd.f32 %v9229_v62, %v9228_v44  ;;  %v9231_v20 = vpop.f32.mrb[178].mxu0 }
 0x2f3   : > { %v9270_v58 = vadd.f32 %v9269_v45, %v9268_v21  ;;  %v9271_v48 = vpop.f32.mrb[178].mxu1  ;;  %v9232_v3 = vpop.f32.mrb[179].mxu0 }
 0x2f4   : > { %v9272_v33 = vpop.f32.mrb[179].mxu1  ;;  %v13708_v32 = vadd.f32 %v13585_v0, %v9230_v51  ;;  %v9233_v46 = vadd.f32 %v9232_v3, %v9231_v20 }
 0x2f5   : > { %v13711_v19 = vadd.f32 %v13588_v11, %v9270_v58  ;;  %v9273_v36 = vadd.f32 %v9272_v33, %v9271_v48  ;;  %6431 = vmatmul.mubr.bf16.gmra.mrb[28].mxu0 %v1516_v43  ;;  %v13727_v43 = vld [vmem:[%s14431_s2 + $0xa80] sm:$0xff]  }
 0x2f6   : > { %6528 = vmatmul.mubr.bf16.gmra.mrb[12].mxu1 %v1607_v39  ;;  %v13714_v44 = vadd.f32 %v13605_v31, %v9233_v46  ;;  %6568 = vmatprep.mubr.bf16.mxu0 %v10666_v47  ;;  %v10574_v31 = vld [vmem:[%s14431_s2 + $0xa00] sm:$0xff]   ;;  %v13741_v47 = vld [vmem:[%s14431_s2 + $0xac8] sm:$0xff]  }
 0x2f7   : > { %v13717_v30 = vadd.f32 %v13608_v12, %v9273_v36  ;;  %6665 = vmatprep.mubr.bf16.mxu1 %v10667_v18  ;;  %v10577_v36 = vld [vmem:[%s14431_s2 + $0xa48] sm:$0xff]  }
 0x2f8   : > { %v9234_v21 = vpop.f32.mrb[180].mxu0  ;;  %v10668_v18 = vld [vmem:[%s10914_s10 + $0x48] sm:$0xff] }
 0x2f9   : > { %v9274_v0 = vpop.f32.mrb[180].mxu1  ;;  %v9235_v62 = vpop.f32.mrb[181].mxu0 }
 0x2fa   : > { %v9275_v11 = vpop.f32.mrb[181].mxu1  ;;  %v9236_v45 = vadd.f32 %v9235_v62, %v9234_v21  ;;  %v9237_v58 = vpop.f32.mrb[182].mxu0  ;;  %v10669_v21 = vld [vmem:[%s10914_s10 + $0x58] sm:$0xff]  ;;  %v10578_v62 = vld [vmem:[%s14431_s2 + $0xa08] sm:$0xff]  }
 0x2fb   : > { %v9276_v51 = vadd.f32 %v9275_v11, %v9274_v0  ;;  %v9277_v20 = vpop.f32.mrb[182].mxu1  ;;  %v9238_v12 = vpop.f32.mrb[183].mxu0  ;;  %v10670_v0 = vld [vmem:[%s10914_s10 + $0x70] sm:$0xff]  ;;  %v10671_v11 = vld [vmem:[%s10918_s16 + $0x18] sm:$0xff] }
 0x2fc   : > { %v9278_v48 = vpop.f32.mrb[183].mxu1  ;;  %v13730_v39 = vadd.f32 %v13622_v59, %v9236_v45  ;;  %v9239_v33 = vadd.f32 %v9238_v12, %v9237_v58  ;;  %v13760_v45 = vld [vmem:[%s14431_s2 + $0xa88] sm:$0xff]   ;;  %v13769_v58 = vld [vmem:[%s14431_s2 + $0xad0] sm:$0xff]  }
 0x2fd   : > { %v13733_v3 = vadd.f32 %v13625_v42, %v9276_v51  ;;  %v9279_v46 = vadd.f32 %v9278_v48, %v9277_v20  ;;  %6569 = vmatmul.mubr.bf16.vlgmr.msra.gmra.mrb[32].mxu0 %v10668_v18 }
 0x2fe   : > { %6666 = vmatmul.mubr.bf16.vlgmr.msra.gmra.mrb[16].mxu1 %v10669_v21  ;;  %v13746_v59 = vadd.f32 %v13638_v7, %v9239_v33  ;;  %9781 = vmatpush3.bf16.msra.mxu0 %v10574_v31  ;;  %v10581_v7 = vld [vmem:[%s14431_s2 + $0xa50] sm:$0xff]  }
 0x2ff   : > { %v13749_v42 = vadd.f32 %v13641_v35, %v9279_v46  ;;  %6576 = vmatprep.mubr.bf16.mxu0 %v10670_v0  ;;  %6673 = vmatprep.mubr.bf16.mxu1 %v10671_v11  ;;  %v13778_v0 = vld [vmem:[%s14431_s2 + $0xa90] sm:$0xff]  }
 0x300   : > { %10028 = vmatpush3.bf16.msra.mxu1 %v13727_v43  ;;  %v9240_v35 = vpop.f32.mrb[184].mxu0  ;;  %9782 = vmatprep.subr.bf16.mxu0 %v10577_v36  ;;  %v10582_v36 = vld [vmem:[%s14431_s2 + $0xa10] sm:$0xff]  }
 0x301   : > { %v9280_v51 = vpop.f32.mrb[184].mxu1  ;;  %10021 = vmatprep.subr.bf16.mxu1 %v13741_v47  ;;  %v9241_v20 = vpop.f32.mrb[185].mxu0 }
 0x302   : > { %v9281_v31 = vpop.f32.mrb[185].mxu1  ;;  %v9242_v12 = vadd.f32 %v9241_v20, %v9240_v35  ;;  %v9243_v33 = vpop.f32.mrb[186].mxu0  ;;  %9783 = vmatpush3.bf16.msra.mxu0 %v10578_v62  ;;  %v13793_v20 = vld [vmem:[%s14431_s2 + $0xad8] sm:$0xff]  }
 0x303   : > { %v9282_v48 = vadd.f32 %v9281_v31, %v9280_v51  ;;  %v9283_v46 = vpop.f32.mrb[186].mxu1  ;;  %v9244_v18 = vpop.f32.mrb[187].mxu0  ;;  %9784 = vmatprep.subr.bf16.mxu0 %v10581_v7  ;;  %v10585_v7 = vld [vmem:[%s14431_s2 + $0xa58] sm:$0xff]   ;;  %v10672_v31 = vld [vmem:[%s10914_s10 + $0x68] sm:$0xff] }
 0x304   : > { %v9284_v21 = vpop.f32.mrb[187].mxu1  ;;  %10029 = vmatpush3.bf16.msra.mxu1 %v13760_v45  ;;  %v13781_v11 = vadd.f32 %v13657_v29, %v9242_v12  ;;  %v9245_v35 = vadd.f32 %v9244_v18, %v9243_v33  ;;  %v10673_v29 = vld [vmem:[%s10914_s10 + $0x78] sm:$0xff]  ;;  %v10675_v33 = vld [vmem:[%s10918_s16 + $0x20] sm:$0xff] }
 0x305   : > { %v13784_v62 = vadd.f32 %v13660_v24, %v9282_v48  ;;  %v9285_v51 = vadd.f32 %v9284_v21, %v9283_v46  ;;  %10022 = vmatprep.subr.bf16.mxu1 %v13769_v58  ;;  %6577 = vmatmul.mubr.bf16.gmra.mrb[36].mxu0 %v10672_v31  ;;  %v10674_v48 = vld [vmem:[%s10914_s10 + $0x90] sm:$0xff]  ;;  %v10586_v46 = vld [vmem:[%s14431_s2 + $0xa18] sm:$0xff]  }
 0x306   : > { %6674 = vmatmul.mubr.bf16.gmra.mrb[20].mxu1 %v10673_v29  ;;  %v13798_v24 = vadd.f32 %v13666_v34, %v9245_v35  ;;  %6584 = vmatprep.mubr.bf16.mxu0 %v10674_v48  ;;  %v13812_v18 = vld [vmem:[%s14431_s2 + $0xa98] sm:$0xff]  }
 0x307   : > { %v13801_v12 = vadd.f32 %v13669_v63, %v9285_v51  ;;  %6681 = vmatprep.mubr.bf16.mxu1 %v10675_v33  ;;  %9785 = vmatpush3.bf16.msra.mxu0 %v10582_v36  ;;  %v10589_v63 = vld [vmem:[%s14431_s2 + $0xa60] sm:$0xff]  }
 0x308   : > { %10030 = vmatpush3.bf16.msra.mxu1 %v13778_v0  ;;  %v9246_v34 = vpop.f32.mrb[188].mxu0  ;;  %9786 = vmatprep.subr.bf16.mxu0 %v10585_v7  ;;  %v10590_v7 = vld [vmem:[%s14431_s2 + $0xa20] sm:$0xff]  }
 0x309   : > { %v9286_v21 = vpop.f32.mrb[188].mxu1  ;;  %10023 = vmatprep.subr.bf16.mxu1 %v13793_v20  ;;  %v9247_v36 = vpop.f32.mrb[189].mxu0 }
 0x30a   : > { %v9287_v35 = vpop.f32.mrb[189].mxu1  ;;  %v9248_v51 = vadd.f32 %v9247_v36, %v9246_v34  ;;  %v9249_v29 = vpop.f32.mrb[190].mxu0 }
 0x30b   : > { %v9288_v31 = vadd.f32 %v9287_v35, %v9286_v21  ;;  %v9289_v48 = vpop.f32.mrb[190].mxu1  ;;  %v9250_v33 = vpop.f32.mrb[191].mxu0  ;;  %9787 = vmatpush3.bf16.msra.mxu0 %v10586_v46  ;;  %v13836_v35 = vld [vmem:[%s14431_s2 + $0xaa0] sm:$0xff]  }
 0x30c   : > { %v9290_v6 = vpop.f32.mrb[191].mxu1  ;;  %10031 = vmatpush3.bf16.msra.mxu1 %v13812_v18  ;;  %v13828_v34 = vadd.f32 %v13685_v14, %v9248_v51  ;;  %v9251_v46 = vadd.f32 %v9250_v33, %v9249_v29  ;;  %9788 = vmatprep.subr.bf16.mxu0 %v10589_v63  ;;  %v10677_v14 = vld [vmem:[%s10914_s10 + $0x98] sm:$0xff]  ;;  %v10678_v51 = vld [vmem:[%s10914_s10 + $0xb0] sm:$0xff] }
 0x30d   : > { %v13831_v21 = vadd.f32 %v13688_v4, %v9288_v31  ;;  %v9291_v36 = vadd.f32 %v9290_v6, %v9289_v48  ;;  %6585 = vmatmul.mubr.bf16.gmra.mrb[40].mxu0 %v10676_v8  ;;  %v13846_v4 = vld [vmem:[%s14431_s2 + $0xae8] sm:$0xff]   ;;  %10024 = vmatprep.subr.bf16.mxu1 %v13825_v53 }
 0x30e   : > { %6682 = vmatmul.mubr.bf16.gmra.mrb[24].mxu1 %v10677_v14  ;;  %v13849_v6 = vadd.f32 %v13695_v5, %v9251_v46  ;;  %6592 = vmatprep.mubr.bf16.mxu0 %v10678_v51  ;;  %v10679_v31 = vld [vmem:[%s10918_s16 + $0x28] sm:$0xff] }
 0x30f   : > { %v13852_v63 = vadd.f32 %v13698_v38, %v9291_v36  ;;  %6689 = vmatprep.mubr.bf16.mxu1 %v10679_v31  ;;  %9789 = vmatpush3.bf16.msra.mxu0 %v10590_v7  ;;  %v10594_v8 = vld [vmem:[%s14431_s2 + $0xa28] sm:$0xff]  }
 0x310   : > { %v9332_v48 = vpop.f32.mrb[192].mxu0  ;;  %10032 = vmatpush3.bf16.msra.mxu1 %v13836_v35  ;;  %9790 = vmatprep.subr.bf16.mxu0 %v10593_v54  ;;  %v13864_v5 = vld [vmem:[%s14431_s2 + $0xaa8] sm:$0xff]   ;;  %v10597_v54 = vld [vmem:[%s14431_s2 + $0xa70] sm:$0xff]  }
 0x311   : > { %v9292_v29 = vpop.f32.mrb[192].mxu1  ;;  %v9333_v33 = vpop.f32.mrb[193].mxu0  ;;  %10025 = vmatprep.subr.bf16.mxu1 %v13846_v4 }
 0x312   : > { %v9293_v38 = vpop.f32.mrb[193].mxu1  ;;  %v9334_v46 = vadd.f32 %v9333_v33, %v9332_v48  ;;  %v9335_v14 = vpop.f32.mrb[194].mxu0 }
 0x313   : > { %v9294_v7 = vadd.f32 %v9293_v38, %v9292_v29  ;;  %v9295_v36 = vpop.f32.mrb[194].mxu1  ;;  %v9336_v31 = vpop.f32.mrb[195].mxu0  ;;  %9791 = vmatpush3.bf16.msra.mxu0 %v10594_v8  ;;  %v10598_v8 = vld [vmem:[%s14431_s2 + $0xa30] sm:$0xff]  }
 0x314   : > { %v9296_v51 = vpop.f32.mrb[195].mxu1  ;;  %v13879_v48 = vadd.f32 %v13711_v19, %v9334_v46  ;;  %v9337_v33 = vadd.f32 %v9336_v31, %v9335_v14  ;;  %10033 = vmatpush3.bf16.msra.mxu1 %v13864_v5  ;;  %v10601_v19 = vld [vmem:[%s14431_s2 + $0xa78] sm:$0xff]   ;;  %v10682_v14 = vld [vmem:[%s10914_s10 + $0xd0] sm:$0xff]  ;;  %9792 = vmatprep.subr.bf16.mxu0 %v10597_v54 }
 0x315   : > { %v13876_v29 = vadd.f32 %v13708_v32, %v9294_v7  ;;  %v9297_v38 = vadd.f32 %v9296_v51, %v9295_v36  ;;  %6593 = vmatmul.mubr.bf16.gmra.mrb[44].mxu0 %v10680_v49  ;;  %v10681_v32 = vld [vmem:[%s10914_s10 + $0xb8] sm:$0xff]  ;;  %v10683_v49 = vld [vmem:[%s10918_s16 + $0x30] sm:$0xff]  ;;  %10026 = vmatprep.subr.bf16.mxu1 %v13873_v17 }
 0x316   : > { %6690 = vmatmul.mubr.bf16.gmra.mrb[28].mxu1 %v10681_v32  ;;  %v13898_v7 = vld [vmem:[%s14431_s2 + $0xaf8] sm:$0xff]   ;;  %v13904_v36 = vadd.f32 %v13717_v30, %v9337_v33  ;;  %6600 = vmatprep.mubr.bf16.mxu0 %v10682_v14 }
 0x317   : > { %14885 = vst [vmem:[#allocation47_spill] sm:$0xff] %v13898_v7  ;;  %v13901_v46 = vadd.f32 %v13714_v44, %v9297_v38  ;;  %6697 = vmatprep.mubr.bf16.mxu1 %v10683_v49  ;;  %9793 = vmatpush3.bf16.msra.mxu0 %v10598_v8  ;;  %v10602_v44 = vld [vmem:[%s14431_s2 + $0xa38] sm:$0xff]  }
 0x318   : > { %v9338_v31 = vpop.f32.mrb[196].mxu0  ;;  %10034 = vmatpush3.bf16.msra.mxu1 %v13888_v61  ;;  %9794 = vmatprep.subr.bf16.mxu0 %v10601_v19 }
 0x319   : > { %v9298_v51 = vpop.f32.mrb[196].mxu1  ;;  %v9339_v32 = vpop.f32.mrb[197].mxu0  ;;  %10027 = vmatprep.subr.bf16.mxu1 %v13898_v7 }
 0x31a   : > { %v9299_v38 = vpop.f32.mrb[197].mxu1  ;;  %v9340_v54 = vadd.f32 %v9339_v32, %v9338_v31  ;;  %v9341_v14 = vpop.f32.mrb[198].mxu0  ;;  %v13928_v31 = vld [vmem:[%s14431_s2 + $0xb00] sm:$0xff]   ;;  %v10685_v32 = vld [vmem:[%s10914_s10 + $0xd8] sm:$0xff] }
 0x31b   : > { %v9300_v30 = vadd.f32 %v9299_v38, %v9298_v51  ;;  %v9301_v33 = vpop.f32.mrb[198].mxu1  ;;  %v9342_v8 = vpop.f32.mrb[199].mxu0  ;;  %9795 = vmatpush3.bf16.msra.mxu0 %v10602_v44  ;;  %v10684_v38 = vld [vmem:[%s10914_s10 + $0xc8] sm:$0xff] }
 0x31c   : > { %v9302_v49 = vpop.f32.mrb[199].mxu1  ;;  %v13923_v19 = vadd.f32 %v13733_v3, %v9340_v54  ;;  %v9343_v51 = vadd.f32 %v9342_v8, %v9341_v14  ;;  %v10686_v3 = vld [vmem:[%s10914_s10 + $0xf0] sm:$0xff]  ;;  %10035 = vmatpush3.bf16.msra.mxu1 %v13917_v28  ;;  %9844 = vmatprep.subr.bf16.mxu0 %v13633_v25  ;;  %v10689_v28 = vld [vmem:[%s10914_s10 + $0xf8] sm:$0xff] }
 0x31d   : > { %v13920_v61 = vadd.f32 %v13730_v39, %v9300_v30  ;;  %v9303_v7 = vadd.f32 %v9302_v49, %v9301_v33  ;;  %6601 = vmatmul.mubr.bf16.gmra.mrb[48].mxu0 %v10684_v38  ;;  %v10687_v30 = vld [vmem:[%s10918_s16 + $0x38] sm:$0xff]  ;;  %9988 = vmatprep.subr.bf16.mxu1 %v13928_v31 }
 0x31e   : > { %6698 = vmatmul.mubr.bf16.gmra.mrb[32].mxu1 %v10685_v32  ;;  %v13936_v39 = vadd.f32 %v13749_v42, %v9343_v51  ;;  %6608 = vmatprep.mubr.bf16.mxu0 %v10686_v3 }
 0x31f   : > { %v13933_v17 = vadd.f32 %v13746_v59, %v9303_v7  ;;  %6705 = vmatprep.mubr.bf16.mxu1 %v10687_v30  ;;  %v10688_v30 = vld [vmem:[%s10914_s10 + $0xe8] sm:$0xff] }
 0x320   : > { %v9344_v54 = vpop.f32.mrb[200].mxu0 }
 0x321   : > { %v9304_v44 = vpop.f32.mrb[200].mxu1  ;;  %v9345_v59 = vpop.f32.mrb[201].mxu0 }
 0x322   : > { %v9305_v33 = vpop.f32.mrb[201].mxu1  ;;  %v9346_v42 = vadd.f32 %v9345_v59, %v9344_v54  ;;  %v9347_v49 = vpop.f32.mrb[202].mxu0  ;;  %v10691_v59 = vld [vmem:[%s10918_s16 + $0x40] sm:$0xff] }
 0x323   : > { %v9306_v7 = vadd.f32 %v9305_v33, %v9304_v44  ;;  %v9307_v14 = vpop.f32.mrb[202].mxu1  ;;  %v9348_v51 = vpop.f32.mrb[203].mxu0  ;;  %v10690_v33 = vld [vmem:[%s10914_s10 + $0x110] sm:$0xff] }
 0x324   : > { %v9308_v8 = vpop.f32.mrb[203].mxu1  ;;  %v13947_v25 = vadd.f32 %v13784_v62, %v9346_v42  ;;  %v9349_v3 = vadd.f32 %v9348_v51, %v9347_v49 }
 0x325   : > { %v13944_v38 = vadd.f32 %v13781_v11, %v9306_v7  ;;  %v9309_v32 = vadd.f32 %v9308_v8, %v9307_v14  ;;  %6609 = vmatmul.mubr.bf16.gmra.mrb[52].mxu0 %v10688_v30 }
 0x326   : > { %6706 = vmatmul.mubr.bf16.gmra.mrb[36].mxu1 %v10689_v28  ;;  %v13955_v54 = vadd.f32 %v13801_v12, %v9349_v3  ;;  %6616 = vmatprep.mubr.bf16.mxu0 %v10690_v33  ;;  %v10692_v33 = vld [vmem:[%s10914_s10 + $0x108] sm:$0xff] }
 0x327   : > { %v13952_v44 = vadd.f32 %v13798_v24, %v9309_v32  ;;  %6713 = vmatprep.mubr.bf16.mxu1 %v10691_v59  ;;  %v10693_v59 = vld [vmem:[%s10914_s10 + $0x118] sm:$0xff] }
 0x328   : > { %v9350_v62 = vpop.f32.mrb[204].mxu0 }
 0x329   : > { %v9310_v11 = vpop.f32.mrb[204].mxu1  ;;  %v9351_v42 = vpop.f32.mrb[205].mxu0 }
 0x32a   : > { %v9311_v7 = vpop.f32.mrb[205].mxu1  ;;  %v9352_v49 = vadd.f32 %v9351_v42, %v9350_v62  ;;  %v9353_v28 = vpop.f32.mrb[206].mxu0 }
 0x32b   : > { %v9312_v14 = vadd.f32 %v9311_v7, %v9310_v11  ;;  %v9313_v8 = vpop.f32.mrb[206].mxu1  ;;  %v9354_v24 = vpop.f32.mrb[207].mxu0 }
 0x32c   : > { %v9314_v51 = vpop.f32.mrb[207].mxu1  ;;  %v13963_v12 = vadd.f32 %v13831_v21, %v9352_v49  ;;  %v9355_v30 = vadd.f32 %v9354_v24, %v9353_v28 }
 0x32d   : > { %v13960_v32 = vadd.f32 %v13828_v34, %v9312_v14  ;;  %v9315_v3 = vadd.f32 %v9314_v51, %v9313_v8  ;;  %6617 = vmatmul.mubr.bf16.gmra.mrb[56].mxu0 %v10692_v33 }
 0x32e   : > { %6714 = vmatmul.mubr.bf16.gmra.mrb[40].mxu1 %v10693_v59  ;;  %v13971_v11 = vadd.f32 %v13852_v63, %v9355_v30  ;;  %6624 = vmatprep.mubr.bf16.mxu0 %v13648_v56  ;;  %v10694_v30 = vld [vmem:[%s10914_s10 + $0x128] sm:$0xff] }
 0x32f   : > { %v13968_v60 = vadd.f32 %v13849_v6, %v9315_v3  ;;  %6721 = vmatprep.mubr.bf16.mxu1 %v13654_v50 }
 0x330   : > { %v9356_v34 = vpop.f32.mrb[208].mxu0 }
 0x331   : > { %v9396_v21 = vpop.f32.mrb[208].mxu1  ;;  %v9357_v62 = vpop.f32.mrb[209].mxu0 }
 0x332   : > { %v9397_v7 = vpop.f32.mrb[209].mxu1  ;;  %v9358_v42 = vadd.f32 %v9357_v62, %v9356_v34  ;;  %v9359_v49 = vpop.f32.mrb[210].mxu0 }
 0x333   : > { %v9398_v14 = vadd.f32 %v9397_v7, %v9396_v21  ;;  %v9399_v8 = vpop.f32.mrb[210].mxu1  ;;  %v9360_v28 = vpop.f32.mrb[211].mxu0 }
 0x334   : > { %v9400_v51 = vpop.f32.mrb[211].mxu1  ;;  %v13976_v6 = vadd.f32 %v13876_v29, %v9358_v42  ;;  %v9361_v24 = vadd.f32 %v9360_v28, %v9359_v49 }
 0x335   : > { %v13979_v63 = vadd.f32 %v13879_v48, %v9398_v14  ;;  %v9401_v3 = vadd.f32 %v9400_v51, %v9399_v8  ;;  %6625 = vmatmul.mubr.bf16.gmra.mrb[60].mxu0 %v10694_v30 }
 0x336   : > { %6722 = vmatmul.mubr.bf16.gmra.mrb[44].mxu1 %v13628_v10  ;;  %v13984_v33 = vadd.f32 %v13901_v46, %v9361_v24  ;;  %6762 = vmatprep.mubr.bf16.mxu0 %v12101_v55 }
 0x337   : > { %v13987_v59 = vadd.f32 %v13904_v36, %v9401_v3  ;;  %6875 = vmatprep.mubr.bf16.mxu1 %v14827_v23  ;;  %v10606_v23 = vld [vmem:[%s14431_s2 + $0xb08] sm:$0xff]  }
 0x338   : > { %v9362_v29 = vpop.f32.mrb[212].mxu0 }
 0x339   : > { %v9402_v34 = vpop.f32.mrb[212].mxu1  ;;  %v9363_v48 = vpop.f32.mrb[213].mxu0 }
 0x33a   : > { %v9403_v21 = vpop.f32.mrb[213].mxu1  ;;  %v9364_v62 = vadd.f32 %v9363_v48, %v9362_v29  ;;  %v9365_v42 = vpop.f32.mrb[214].mxu0  ;;  %v10608_v48 = vld [vmem:[%s14431_s2 + $0xb18] sm:$0xff]  }
 0x33b   : > { %v9404_v7 = vadd.f32 %v9403_v21, %v9402_v34  ;;  %v9405_v14 = vpop.f32.mrb[214].mxu1  ;;  %v9366_v49 = vpop.f32.mrb[215].mxu0 }
 0x33c   : > { %v9406_v8 = vpop.f32.mrb[215].mxu1  ;;  %v13992_v46 = vadd.f32 %v13920_v61, %v9364_v62  ;;  %v9367_v28 = vadd.f32 %v9366_v49, %v9365_v42  ;;  %v10610_v49 = vld [vmem:[%s14431_s2 + $0xb28] sm:$0xff]  }
 0x33d   : > { %v13995_v36 = vadd.f32 %v13923_v19, %v9404_v7  ;;  %v9407_v55 = vadd.f32 %v9406_v8, %v9405_v14  ;;  %6763 = vmatmul.mubr.bf16.vlgmr.msra.gmra.mrb[64].mxu0 %v12123_v27  ;;  %v10607_v27 = vld [vmem:[%s14431_s2 + $0xb10] sm:$0xff]  }
 0x33e   : > { %6876 = vmatmul.mubr.bf16.vlgmr.msra.gmra.mrb[48].mxu1 %v14829_v40  ;;  %v14003_v51 = vadd.f32 %v13933_v17, %v9367_v28  ;;  %9845 = vmatpush3.bf16.msra.mxu0 %v13727_v43 }
 0x33f   : > { %v14006_v24 = vadd.f32 %v13936_v39, %v9407_v55  ;;  %6770 = vmatprep.mubr.bf16.mxu0 %v12128_v57  ;;  %6883 = vmatprep.mubr.bf16.mxu1 %v14831_v16 }
 0x340   : > { %9989 = vmatpush3.bf16.msra.mxu1 %v13928_v31  ;;  %v9368_v61 = vpop.f32.mrb[216].mxu0  ;;  %9846 = vmatprep.subr.bf16.mxu0 %v13741_v47 }
 0x341   : > { %v9408_v19 = vpop.f32.mrb[216].mxu1  ;;  %9990 = vmatprep.subr.bf16.mxu1 %v10606_v23  ;;  %v9369_v40 = vpop.f32.mrb[217].mxu0 }
 0x342   : > { %v9409_v17 = vpop.f32.mrb[217].mxu1  ;;  %v9370_v39 = vadd.f32 %v9369_v40, %v9368_v61  ;;  %v9371_v43 = vpop.f32.mrb[218].mxu0  ;;  %9847 = vmatpush3.bf16.msra.mxu0 %v13760_v45 }
 0x343   : > { %v9410_v3 = vadd.f32 %v9409_v17, %v9408_v19  ;;  %v9411_v30 = vpop.f32.mrb[218].mxu1  ;;  %v9372_v57 = vpop.f32.mrb[219].mxu0  ;;  %9848 = vmatprep.subr.bf16.mxu0 %v13769_v58  ;;  %v14888_v17 = vld [vmem:[#allocation53_spill] sm:$0xff] }
 0x344   : > { %v9412_v16 = vpop.f32.mrb[219].mxu1  ;;  %9991 = vmatpush3.bf16.msra.mxu1 %v10606_v23  ;;  %v14019_v47 = vadd.f32 %v13944_v38, %v9370_v39  ;;  %v9373_v29 = vadd.f32 %v9372_v57, %v9371_v43  ;;  %v14887_v23 = vshll.u32 %v13628_v10, 16  ;;  %v14890_v39 = vshrl.u32 %v13628_v10, 16  ;;  %v14892_v57 = vld [vmem:[#allocation44_spill] sm:$0xff] }
 0x345   : > { %v14022_v31 = vadd.f32 %v13947_v25, %v9410_v3  ;;  %v9413_v34 = vadd.f32 %v9412_v16, %v9411_v30  ;;  %9992 = vmatprep.subr.bf16.mxu1 %v10607_v27  ;;  %6771 = vmatmul.mubr.bf16.gmra.mrb[68].mxu0 %v12155_v1  ;;  %v10609_v1 = vld [vmem:[%s14431_s2 + $0xb20] sm:$0xff]   ;;  %v14894_v10 = vshll.u32 %v13648_v56, 16 }
 0x346   : > { %6884 = vmatmul.mubr.bf16.gmra.mrb[52].mxu1 %v14833_v52  ;;  %v14030_v45 = vadd.f32 %v13952_v44, %v9373_v29  ;;  %6778 = vmatprep.mubr.bf16.mxu0 %v12163_v26  ;;  %v14893_v16 = vld [vmem:[#allocation47_spill] sm:$0xff] }
 0x347   : > { %v14033_v58 = vadd.f32 %v13955_v54, %v9413_v34  ;;  %6891 = vmatprep.mubr.bf16.mxu1 %v14835_v2  ;;  %9849 = vmatpush3.bf16.msra.mxu0 %v13778_v0 }
 0x348   : > { %9993 = vmatpush3.bf16.msra.mxu1 %v10607_v27  ;;  %v9374_v38 = vpop.f32.mrb[220].mxu0  ;;  %9850 = vmatprep.subr.bf16.mxu0 %v13793_v20 }
 0x349   : > { %v9414_v25 = vpop.f32.mrb[220].mxu1  ;;  %9994 = vmatprep.subr.bf16.mxu1 %v10608_v48  ;;  %v9375_v52 = vpop.f32.mrb[221].mxu0 }
 0x34a   : > { %v9415_v44 = vpop.f32.mrb[221].mxu1  ;;  %v9376_v54 = vadd.f32 %v9375_v52, %v9374_v38  ;;  %v9377_v62 = vpop.f32.mrb[222].mxu0  ;;  %v1684_v38 = vrot.slane %v14894_v10, 1 }
 0x34b   : > { %v9416_v21 = vadd.f32 %v9415_v44, %v9414_v25  ;;  %v9417_v26 = vpop.f32.mrb[222].mxu1  ;;  %v9378_v7 = vpop.f32.mrb[223].mxu0  ;;  %9851 = vmatpush3.bf16.msra.mxu0 %v13812_v18 }
 0x34c   : > { %v9418_v2 = vpop.f32.mrb[223].mxu1  ;;  %9995 = vmatpush3.bf16.msra.mxu1 %v10608_v48  ;;  %v14044_v0 = vadd.f32 %v13960_v32, %v9376_v54  ;;  %v9379_v42 = vadd.f32 %v9378_v7, %v9377_v62  ;;  %9852 = vmatprep.subr.bf16.mxu0 %v13825_v53  ;;  %v14897_v7 = vld [vmem:[#allocation54_spill] sm:$0xff] }
 0x34d   : > { %v14047_v20 = vadd.f32 %v13963_v12, %v9416_v21  ;;  %v9419_v14 = vadd.f32 %v9418_v2, %v9417_v26  ;;  %9996 = vmatprep.subr.bf16.mxu1 %v10609_v1  ;;  %6779 = vmatmul.mubr.bf16.gmra.mrb[72].mxu0 %v12187_v15  ;;  %v10611_v15 = vld [vmem:[%s14431_s2 + $0xb30] sm:$0xff]   ;;  %v14898_v2 = vld [vmem:[#allocation78_spill] sm:$0xff] }
 0x34e   : > { %6892 = vmatmul.mubr.bf16.gmra.mrb[56].mxu1 %v14838_v13  ;;  %v14055_v18 = vadd.f32 %v13968_v60, %v9379_v42  ;;  %6786 = vmatprep.mubr.bf16.mxu0 %v12195_v37  ;;  %v14896_v26 = vld [vmem:[#allocation69_spill] sm:$0xff] }
 0x34f   : > { %v14058_v32 = vadd.f32 %v13971_v11, %v9419_v14  ;;  %6899 = vmatprep.mubr.bf16.mxu1 %v14840_v41  ;;  %9853 = vmatpush3.bf16.msra.mxu0 %v13836_v35  ;;  %v1686_v35 = vrot.slane %v14887_v23, 1  ;;  %v14899_v14 = vld [vmem:[#allocation55_spill] sm:$0xff] }
 0x350   : > { %9997 = vmatpush3.bf16.msra.mxu1 %v10609_v1  ;;  %v9476_v8 = vpop.f32.mrb[224].mxu0  ;;  %9854 = vmatprep.subr.bf16.mxu0 %v13846_v4  ;;  %v10612_v4 = vld [vmem:[%s14431_s2 + $0xb38] sm:$0xff]   ;;  %v14901_v23 = vld [vmem:[#allocation15_spill] sm:$0xff] }
 0x351   : > { %v9420_v12 = vpop.f32.mrb[224].mxu1  ;;  %9998 = vmatprep.subr.bf16.mxu1 %v10610_v49  ;;  %v9477_v13 = vpop.f32.mrb[225].mxu0  ;;  %v1687_v3 = vor.u32 %v1686_v35, %v14890_v39  ;;  %v14902_v35 = vshll.u32 %v14901_v23, 16 }
 0x352   : > { %v9421_v60 = vpop.f32.mrb[225].mxu1  ;;  %v14068_v37 = vadd.f32 %v9477_v13, %v9476_v8  ;;  %v9479_v28 = vpop.f32.mrb[226].mxu0 }
 0x353   : > { %v9422_v11 = vadd.f32 %v9421_v60, %v9420_v12  ;;  %v9423_v41 = vpop.f32.mrb[226].mxu1  ;;  %v9480_v53 = vpop.f32.mrb[227].mxu0  ;;  %9855 = vmatpush3.bf16.msra.mxu0 %v13864_v5  ;;  %v14891_v5 = vld [vmem:[#allocation38_spill] sm:$0xff]  ;;  %v1770_v44 = vsel %vm12066_vm5, %v1687_v3, 0  ;;  %v14904_v3 = vld [vmem:[#allocation57_spill] sm:$0xff] }
 0x354   : > { %v9424_v55 = vpop.f32.mrb[227].mxu1  ;;  %9999 = vmatpush3.bf16.msra.mxu1 %v10610_v49  ;;  %v14075_v27 = vadd.f32 %v9480_v53, %v9479_v28  ;;  %9856 = vmatprep.subr.bf16.mxu0 %v14891_v5  ;;  %v14900_v49 = vshrl.u32 %v13648_v56, 16  ;;  %v14905_v5 = vld [vmem:[#allocation59_spill] sm:$0xff] }
 0x355   : > { %v14073_v61 = vadd.f32 %v13976_v6, %v9422_v11  ;;  %v9425_v19 = vadd.f32 %v9424_v55, %v9423_v41  ;;  %10000 = vmatprep.subr.bf16.mxu1 %v10611_v15  ;;  %6787 = vmatmul.mubr.bf16.gmra.mrb[76].mxu0 %v12219_v9  ;;  %v14889_v6 = vld [vmem:[#allocation14_spill] sm:$0xff] }
 0x356   : > { %6900 = vmatmul.mubr.bf16.gmra.mrb[60].mxu1 %v14843_v22  ;;  %6794 = vmatprep.mubr.bf16.mxu0 %v14888_v17  ;;  %v1685_v12 = vor.u32 %v1684_v38, %v14900_v49 }
 0x357   : > { %v14084_v40 = vadd.f32 %v13984_v33, %v9425_v19  ;;  %6907 = vmatprep.mubr.bf16.mxu1 %v14889_v6  ;;  %9857 = vmatpush3.bf16.msra.mxu0 %v14892_v57  ;;  %v1682_v19 = vrot.slane %v14902_v35, 1  ;;  %v14903_v6 = vld [vmem:[#allocation56_spill] sm:$0xff] }
 0x358   : > { %10001 = vmatpush3.bf16.msra.mxu1 %v10611_v15  ;;  %v9482_v30 = vpop.f32.mrb[228].mxu0  ;;  %9858 = vmatprep.subr.bf16.mxu0 %v14893_v16  ;;  %v1769_v55 = vsel %vm12066_vm5, %v1685_v12, 0 }
 0x359   : > { %v9426_v43 = vpop.f32.mrb[228].mxu1  ;;  %10002 = vmatprep.subr.bf16.mxu1 %v10612_v4  ;;  %v9483_v22 = vpop.f32.mrb[229].mxu0 }
 0x35a   : > { %v9427_v9 = vpop.f32.mrb[229].mxu1  ;;  %v14093_v29 = vadd.f32 %v9483_v22, %v9482_v30  ;;  %v9485_v48 = vpop.f32.mrb[230].mxu0 }
 0x35b   : > { %v9428_v33 = vadd.f32 %v9427_v9, %v9426_v43  ;;  %v9429_v34 = vpop.f32.mrb[230].mxu1  ;;  %v9486_v1 = vpop.f32.mrb[231].mxu0  ;;  %9859 = vmatpush3.bf16.msra.mxu0 %v14896_v26  ;;  %v14906_v43 = vshrl.u32 %v14901_v23, 16  ;;  %v14908_v26 = vld [vmem:[#allocation62_spill] sm:$0xff]  ;;  %v14914_v23 = vshll.u32 %v13654_v50, 16 }
 0x35c   : > { %v9430_v25 = vpop.f32.mrb[231].mxu1  ;;  %10003 = vmatpush3.bf16.msra.mxu1 %v10612_v4  ;;  %v14102_v62 = vadd.f32 %v9486_v1, %v9485_v48 }
 0x35d   : > { %v14100_v54 = vadd.f32 %v13992_v46, %v9428_v33  ;;  %v9431_v21 = vadd.f32 %v9430_v25, %v9429_v34  ;;  %6795 = vmatmul.mubr.bf16.gmra.mrb[80].mxu0 %v14897_v7  ;;  %v1683_v30 = vor.u32 %v1682_v19, %v14906_v43  ;;  %v1789_v35 = vrot.slane %v14914_v23, 1  ;;  %v14918_v43 = vld [vmem:[#allocation72_spill] sm:$0xff] }
 0x35e   : > { %6908 = vmatmul.mubr.bf16.gmra.mrb[64].mxu1 %v14898_v2  ;;  %6802 = vmatprep.mubr.bf16.mxu0 %v14899_v14  ;;  %v14909_v2 = vld [vmem:[#allocation64_spill] sm:$0xff] }
 0x35f   : > { %v14108_v42 = vadd.f32 %v14003_v51, %v9431_v21  ;;  %6915 = vmatprep.mubr.bf16.mxu1 %v1770_v44  ;;  %v14907_v21 = vld [vmem:[#allocation58_spill] sm:$0xff] }
 0x360   : > { %v9488_v8 = vpop.f32.mrb[232].mxu0 }
 0x361   : > { %v9432_v46 = vpop.f32.mrb[232].mxu1  ;;  %v9489_v60 = vpop.f32.mrb[233].mxu0 }
 0x362   : > { %v9433_v15 = vpop.f32.mrb[233].mxu1  ;;  %v14113_v11 = vadd.f32 %v9489_v60, %v9488_v8  ;;  %v9491_v28 = vpop.f32.mrb[234].mxu0 }
 0x363   : > { %v9434_v13 = vadd.f32 %v9433_v15, %v9432_v46  ;;  %v9435_v41 = vpop.f32.mrb[234].mxu1  ;;  %v9492_v53 = vpop.f32.mrb[235].mxu0 }
 0x364   : > { %v9436_v51 = vpop.f32.mrb[235].mxu1  ;;  %v14122_v17 = vadd.f32 %v9492_v53, %v9491_v28 }
 0x365   : > { %v14120_v56 = vadd.f32 %v14019_v47, %v9434_v13  ;;  %v9437_v4 = vadd.f32 %v9436_v51, %v9435_v41  ;;  %6803 = vmatmul.mubr.bf16.gmra.mrb[84].mxu0 %v14903_v6  ;;  %v14911_v13 = vld [vmem:[#allocation66_spill] sm:$0xff]  ;;  %v14913_v41 = vld [vmem:[#allocation68_spill] sm:$0xff]  ;;  %v14915_v6 = vld [vmem:[#allocation63_spill] sm:$0xff] }
 0x366   : > { %6916 = vmatmul.mubr.bf16.gmra.mrb[68].mxu1 %v1769_v55  ;;  %6810 = vmatprep.mubr.bf16.mxu0 %v14904_v3  ;;  %v14916_v3 = vld [vmem:[#allocation70_spill] sm:$0xff] }
 0x367   : > { %v14126_v39 = vadd.f32 %v14030_v45, %v9437_v4  ;;  %10004 = vmatprep.mubr.bf16.mxu1 %v14905_v5  ;;  %v1768_v45 = vsel %vm12066_vm5, %v1683_v30, 0  ;;  %v14917_v5 = vld [vmem:[#allocation65_spill] sm:$0xff]  ;;  %v14919_v30 = vshrl.u32 %v13654_v50, 16 }
 0x368   : > { %v9494_v9 = vpop.f32.mrb[236].mxu0 }
 0x369   : > { %v9438_v57 = vpop.f32.mrb[236].mxu1  ;;  %v9495_v22 = vpop.f32.mrb[237].mxu0 }
 0x36a   : > { %v9439_v47 = vpop.f32.mrb[237].mxu1  ;;  %v14132_v33 = vadd.f32 %v9495_v22, %v9494_v9  ;;  %v9497_v48 = vpop.f32.mrb[238].mxu0 }
 0x36b   : > { %v9440_v16 = vadd.f32 %v9439_v47, %v9438_v57  ;;  %v9441_v34 = vpop.f32.mrb[238].mxu1  ;;  %v9498_v38 = vpop.f32.mrb[239].mxu0  ;;  %v1790_v57 = vor.u32 %v1789_v35, %v14919_v30 }
 0x36c   : > { %v9442_v10 = vpop.f32.mrb[239].mxu1  ;;  %v14139_v44 = vadd.f32 %v9498_v38, %v9497_v48  ;;  %v14920_v38 = vld [vmem:[#allocation67_spill] sm:$0xff] }
 0x36d   : > { %v14137_v25 = vadd.f32 %v14044_v0, %v9440_v16  ;;  %v9443_v1 = vadd.f32 %v9442_v10, %v9441_v34  ;;  %6811 = vmatmul.mubr.bf16.gmra.mrb[88].mxu0 %v14907_v21  ;;  %v14910_v0 = vld [vmem:[#allocation13_spill] sm:$0xff]  ;;  %v1810_v34 = vsel %vm12066_vm5, %v1790_v57, 0 }
 0x36e   : > { %10005 = vmatmul.mubr.bf16.vlgmr.msra.gmra.mrb[96].mxu1 %v14908_v26  ;;  %6818 = vmatprep.mubr.bf16.mxu0 %v1768_v45  ;;  %v1767_v8 = vsel %vm12066_vm5, %v14910_v0, 0 }
 0x36f   : > { %v14144_v7 = vadd.f32 %v14055_v18, %v9443_v1  ;;  %10008 = vmatprep.mubr.bf16.mxu1 %v14909_v2  ;;  %v14912_v18 = vld [vmem:[#allocation61_spill] sm:$0xff] }
 0x370   : > { %v9500_v14 = vpop.f32.mrb[240].mxu0 }
 0x371   : > { %v9501_v49 = vpop.f32.mrb[241].mxu0 }
 0x372   : > { %v14147_v12 = vadd.f32 %v9501_v49, %v9500_v14  ;;  %v9503_v46 = vpop.f32.mrb[242].mxu0 }
 0x373   : > { %v9504_v15 = vpop.f32.mrb[243].mxu0 }
 0x374   : > { %v14152_v60 = vadd.f32 %v9504_v15, %v9503_v46 }
 0x375   : > { %6819 = vmatmul.mubr.bf16.gmra.mrb[92].mxu0 %v1767_v8 }
 0x376   : > { %10009 = vmatmul.mubr.bf16.gmra.mrb[100].mxu1 %v14911_v13  ;;  %6859 = vmatprep.mubr.bf16.mxu0 %v14912_v18 }
 0x377   : > { %10012 = vmatprep.mubr.bf16.mxu1 %v14913_v41 }
 0x378   : > { %v9506_v28 = vpop.f32.mrb[244].mxu0 }
 0x379   : > { %v9507_v55 = vpop.f32.mrb[245].mxu0 }
 0x37a   : > { %v14157_v51 = vadd.f32 %v9507_v55, %v9506_v28  ;;  %v9509_v53 = vpop.f32.mrb[246].mxu0 }
 0x37b   : > { %v9510_v19 = vpop.f32.mrb[247].mxu0 }
 0x37c   : > { %v14161_v4 = vadd.f32 %v9510_v19, %v9509_v53 }
 0x37d   : > { %6860 = vmatmul.mubr.bf16.vlgmr.msra.gmra.mrb[96].mxu0 %v14915_v6 }
 0x37e   : > { %10013 = vmatmul.mubr.bf16.gmra.mrb[104].mxu1 %v14916_v3  ;;  %6867 = vmatprep.mubr.bf16.mxu0 %v14917_v5 }
 0x37f   : > { %10016 = vmatprep.mubr.bf16.mxu1 %v14918_v43 }
 0x380   : > { %v9512_v9 = vpop.f32.mrb[248].mxu0 }
 0x381   : > { %v9513_v47 = vpop.f32.mrb[249].mxu0 }
 0x382   : > { %v14169_v22 = vadd.f32 %v9513_v47, %v9512_v9  ;;  %v9515_v16 = vpop.f32.mrb[250].mxu0 }
 0x383   : > { %v9516_v48 = vpop.f32.mrb[251].mxu0 }
 0x384   : > { %v14173_v10 = vadd.f32 %v9516_v48, %v9515_v16 }
 0x385   : > { %6868 = vmatmul.mubr.bf16.gmra.mrb[100].mxu0 %v14920_v38 }
 0x386   : > { %10017 = vmatmul.mubr.bf16.gmra.mrb[108].mxu1 %v1810_v34 }
 0x388   : > { %v9518_v45 = vpop.f32.mrb[252].mxu0 }
 0x389   : > { %v9519_v1 = vpop.f32.mrb[253].mxu0 }
 0x38a   : > { %v14176_v21 = vadd.f32 %v9519_v1, %v9518_v45  ;;  %v9521_v50 = vpop.f32.mrb[254].mxu0 }
 0x38b   : > { %v9522_v26 = vpop.f32.mrb[255].mxu0 }
 0x38c   : > { %v14178_v2 = vadd.f32 %v9522_v26, %v9521_v50 }
 0x390   : > { %v9540_v14 = vpop.f32.mrb[0].mxu0 }
 0x391   : > { %v9604_v49 = vpop.f32.mrb[240].mxu1  ;;  %v9541_v46 = vpop.f32.mrb[1].mxu0 }
 0x392   : > { %v9605_v0 = vpop.f32.mrb[241].mxu1  ;;  %v9542_v52 = vadd.f32 %v9541_v46, %v9540_v14  ;;  %v9543_v8 = vpop.f32.mrb[2].mxu0 }
 0x393   : > { %v9606_v15 = vadd.f32 %v9605_v0, %v9604_v49  ;;  %v9607_v13 = vpop.f32.mrb[242].mxu1  ;;  %v9544_v18 = vpop.f32.mrb[3].mxu0 }
 0x394   : > { %v9608_v41 = vpop.f32.mrb[243].mxu1  ;;  %v6377_v28 = vadd.f32 %v9542_v52, %v14068_v37  ;;  %v9545_v55 = vadd.f32 %v9544_v18, %v9543_v8 }
 0x395   : > { %v9609_v53 = vadd.f32 %v9608_v41, %v9607_v13 }
 0x396   : > { %v6380_v23 = vadd.f32 %v9545_v55, %v14075_v27  ;;  %v14182_v35 = vadd.f32 %v9606_v15, %v6377_v28 }
 0x398   : > { %v14184_v19 = vadd.f32 %v9609_v53, %v6380_v23  ;;  %v9546_v6 = vpop.f32.mrb[4].mxu0 }
 0x399   : > { %v9610_v3 = vpop.f32.mrb[244].mxu1  ;;  %v9547_v5 = vpop.f32.mrb[5].mxu0 }
 0x39a   : > { %v9611_v43 = vpop.f32.mrb[245].mxu1  ;;  %v9548_v30 = vadd.f32 %v9547_v5, %v9546_v6  ;;  %v9549_v57 = vpop.f32.mrb[6].mxu0 }
 0x39b   : > { %v9612_v9 = vadd.f32 %v9611_v43, %v9610_v3  ;;  %v9613_v47 = vpop.f32.mrb[246].mxu1  ;;  %v9550_v16 = vpop.f32.mrb[7].mxu0 }
 0x39c   : > { %v9614_v34 = vpop.f32.mrb[247].mxu1  ;;  %v6385_v37 = vadd.f32 %v9548_v30, %v14093_v29  ;;  %v9551_v48 = vadd.f32 %v9550_v16, %v9549_v57 }
 0x39d   : > { %v9615_v38 = vadd.f32 %v9614_v34, %v9613_v47 }
 0x39e   : > { %v6388_v27 = vadd.f32 %v9551_v48, %v14102_v62  ;;  %v14188_v45 = vadd.f32 %v9612_v9, %v6385_v37 }
 0x3a0   : > { %v14190_v1 = vadd.f32 %v9615_v38, %v6388_v27  ;;  %v9552_v50 = vpop.f32.mrb[8].mxu0 }
 0x3a1   : > { %v9616_v26 = vpop.f32.mrb[248].mxu1  ;;  %v9553_v14 = vpop.f32.mrb[9].mxu0 }
 0x3a2   : > { %v9617_v49 = vpop.f32.mrb[249].mxu1  ;;  %v9554_v46 = vadd.f32 %v9553_v14, %v9552_v50  ;;  %v9555_v0 = vpop.f32.mrb[10].mxu0 }
 0x3a3   : > { %v9618_v52 = vadd.f32 %v9617_v49, %v9616_v26  ;;  %v9619_v8 = vpop.f32.mrb[250].mxu1  ;;  %v9556_v15 = vpop.f32.mrb[11].mxu0 }
 0x3a4   : > { %v9620_v13 = vpop.f32.mrb[251].mxu1  ;;  %v6393_v29 = vadd.f32 %v9554_v46, %v14113_v11  ;;  %v9557_v18 = vadd.f32 %v9556_v15, %v9555_v0 }
 0x3a5   : > { %v9621_v41 = vadd.f32 %v9620_v13, %v9619_v8 }
 0x3a6   : > { %v6396_v62 = vadd.f32 %v9557_v18, %v14122_v17  ;;  %v14194_v28 = vadd.f32 %v9618_v52, %v6393_v29 }
 0x3a8   : > { %v14196_v55 = vadd.f32 %v9621_v41, %v6396_v62  ;;  %v9558_v53 = vpop.f32.mrb[12].mxu0 }
 0x3a9   : > { %v9622_v23 = vpop.f32.mrb[252].mxu1  ;;  %v9559_v6 = vpop.f32.mrb[13].mxu0 }
 0x3aa   : > { %v9623_v3 = vpop.f32.mrb[253].mxu1  ;;  %v9560_v5 = vadd.f32 %v9559_v6, %v9558_v53  ;;  %v9561_v43 = vpop.f32.mrb[14].mxu0 }
 0x3ab   : > { %v9624_v30 = vadd.f32 %v9623_v3, %v9622_v23  ;;  %v9625_v57 = vpop.f32.mrb[254].mxu1  ;;  %v9562_v9 = vpop.f32.mrb[15].mxu0 }
 0x3ac   : > { %v9626_v47 = vpop.f32.mrb[255].mxu1  ;;  %v6401_v11 = vadd.f32 %v9560_v5, %v14132_v33  ;;  %v9563_v16 = vadd.f32 %v9562_v9, %v9561_v43 }
 0x3ad   : > { %v9627_v34 = vadd.f32 %v9626_v47, %v9625_v57 }
 0x3ae   : > { %v6404_v17 = vadd.f32 %v9563_v16, %v14139_v44  ;;  %v14200_v37 = vadd.f32 %v9624_v30, %v6401_v11 }
 0x3b0   : > { %v14202_v48 = vadd.f32 %v9627_v34, %v6404_v17  ;;  %v9564_v38 = vpop.f32.mrb[16].mxu0 }
 0x3b1   : > { %v9628_v27 = vpop.f32.mrb[0].mxu1  ;;  %v9565_v50 = vpop.f32.mrb[17].mxu0 }
 0x3b2   : > { %v9629_v26 = vpop.f32.mrb[1].mxu1  ;;  %v9566_v14 = vadd.f32 %v9565_v50, %v9564_v38  ;;  %v9567_v49 = vpop.f32.mrb[18].mxu0 }
 0x3b3   : > { %v9630_v46 = vadd.f32 %v9629_v26, %v9628_v27  ;;  %v9631_v0 = vpop.f32.mrb[2].mxu1  ;;  %v9568_v52 = vpop.f32.mrb[19].mxu0 }
 0x3b4   : > { %v9632_v8 = vpop.f32.mrb[3].mxu1  ;;  %v6409_v33 = vadd.f32 %v9566_v14, %v14147_v12  ;;  %v9569_v15 = vadd.f32 %v9568_v52, %v9567_v49 }
 0x3b5   : > { %v9633_v13 = vadd.f32 %v9632_v8, %v9631_v0 }
 0x3b6   : > { %v6412_v44 = vadd.f32 %v9569_v15, %v14152_v60  ;;  %v14206_v29 = vadd.f32 %v9630_v46, %v6409_v33 }
 0x3b8   : > { %v14208_v18 = vadd.f32 %v9633_v13, %v6412_v44  ;;  %v9570_v41 = vpop.f32.mrb[20].mxu0 }
 0x3b9   : > { %v9634_v62 = vpop.f32.mrb[4].mxu1  ;;  %v9571_v53 = vpop.f32.mrb[21].mxu0 }
 0x3ba   : > { %v9635_v23 = vpop.f32.mrb[5].mxu1  ;;  %v9572_v6 = vadd.f32 %v9571_v53, %v9570_v41  ;;  %v9573_v3 = vpop.f32.mrb[22].mxu0 }
 0x3bb   : > { %v9636_v5 = vadd.f32 %v9635_v23, %v9634_v62  ;;  %v9637_v43 = vpop.f32.mrb[6].mxu1  ;;  %v9574_v30 = vpop.f32.mrb[23].mxu0 }
 0x3bc   : > { %v9638_v57 = vpop.f32.mrb[7].mxu1  ;;  %v6417_v12 = vadd.f32 %v9572_v6, %v14157_v51  ;;  %v9575_v9 = vadd.f32 %v9574_v30, %v9573_v3 }
 0x3bd   : > { %v9639_v47 = vadd.f32 %v9638_v57, %v9637_v43 }
 0x3be   : > { %v6420_v60 = vadd.f32 %v9575_v9, %v14161_v4  ;;  %v14212_v11 = vadd.f32 %v9636_v5, %v6417_v12 }
 0x3c0   : > { %v14214_v16 = vadd.f32 %v9639_v47, %v6420_v60  ;;  %v9576_v34 = vpop.f32.mrb[24].mxu0 }
 0x3c1   : > { %v9640_v17 = vpop.f32.mrb[8].mxu1  ;;  %v9577_v38 = vpop.f32.mrb[25].mxu0 }
 0x3c2   : > { %v9641_v27 = vpop.f32.mrb[9].mxu1  ;;  %v9578_v50 = vadd.f32 %v9577_v38, %v9576_v34  ;;  %v9579_v26 = vpop.f32.mrb[26].mxu0 }
 0x3c3   : > { %v9642_v14 = vadd.f32 %v9641_v27, %v9640_v17  ;;  %v9643_v49 = vpop.f32.mrb[10].mxu1  ;;  %v9580_v46 = vpop.f32.mrb[27].mxu0 }
 0x3c4   : > { %v9644_v0 = vpop.f32.mrb[11].mxu1  ;;  %v6425_v51 = vadd.f32 %v9578_v50, %v14169_v22  ;;  %v9581_v52 = vadd.f32 %v9580_v46, %v9579_v26 }
 0x3c5   : > { %v9645_v8 = vadd.f32 %v9644_v0, %v9643_v49 }
 0x3c6   : > { %v6428_v4 = vadd.f32 %v9581_v52, %v14173_v10  ;;  %v14218_v33 = vadd.f32 %v9642_v14, %v6425_v51 }
 0x3c8   : > { %v14220_v15 = vadd.f32 %v9645_v8, %v6428_v4  ;;  %v9582_v13 = vpop.f32.mrb[28].mxu0 }
 0x3c9   : > { %v9646_v44 = vpop.f32.mrb[12].mxu1  ;;  %v9583_v41 = vpop.f32.mrb[29].mxu0 }
 0x3ca   : > { %v9647_v62 = vpop.f32.mrb[13].mxu1  ;;  %v9584_v53 = vadd.f32 %v9583_v41, %v9582_v13  ;;  %v9585_v23 = vpop.f32.mrb[30].mxu0 }
 0x3cb   : > { %v9648_v6 = vadd.f32 %v9647_v62, %v9646_v44  ;;  %v9649_v3 = vpop.f32.mrb[14].mxu1  ;;  %v9586_v5 = vpop.f32.mrb[31].mxu0 }
 0x3cc   : > { %v9650_v43 = vpop.f32.mrb[15].mxu1  ;;  %v6433_v22 = vadd.f32 %v9584_v53, %v14176_v21  ;;  %v9587_v30 = vadd.f32 %v9586_v5, %v9585_v23 }
 0x3cd   : > { %v9651_v57 = vadd.f32 %v9650_v43, %v9649_v3 }
 0x3ce   : > { %v6436_v10 = vadd.f32 %v9587_v30, %v14178_v2  ;;  %v14224_v12 = vadd.f32 %v9648_v6, %v6433_v22 }
 0x3d0   : > { %v14226_v9 = vadd.f32 %v9651_v57, %v6436_v10  ;;  %v9668_v47 = vpop.f32.mrb[32].mxu0 }
 0x3d1   : > { %v9732_v60 = vpop.f32.mrb[16].mxu1  ;;  %v9669_v34 = vpop.f32.mrb[33].mxu0 }
 0x3d2   : > { %v9733_v17 = vpop.f32.mrb[17].mxu1  ;;  %v9670_v38 = vadd.f32 %v9669_v34, %v9668_v47  ;;  %v9671_v27 = vpop.f32.mrb[34].mxu0 }
 0x3d3   : > { %v9734_v50 = vadd.f32 %v9733_v17, %v9732_v60  ;;  %v9735_v26 = vpop.f32.mrb[18].mxu1  ;;  %v9672_v14 = vpop.f32.mrb[35].mxu0 }
 0x3d4   : > { %v9736_v49 = vpop.f32.mrb[19].mxu1  ;;  %v6571_v21 = vadd.f32 %v9670_v38, %v14182_v35  ;;  %v9673_v46 = vadd.f32 %v9672_v14, %v9671_v27 }
 0x3d5   : > { %v9737_v0 = vadd.f32 %v9736_v49, %v9735_v26 }
 0x3d6   : > { %v6574_v2 = vadd.f32 %v9673_v46, %v14184_v19  ;;  %v14230_v51 = vadd.f32 %v9734_v50, %v6571_v21 }
 0x3d8   : > { %v14232_v52 = vadd.f32 %v9737_v0, %v6574_v2  ;;  %v9674_v8 = vpop.f32.mrb[36].mxu0 }
 0x3d9   : > { %v9738_v4 = vpop.f32.mrb[20].mxu1  ;;  %v9675_v13 = vpop.f32.mrb[37].mxu0 }
 0x3da   : > { %v9739_v44 = vpop.f32.mrb[21].mxu1  ;;  %v9676_v41 = vadd.f32 %v9675_v13, %v9674_v8  ;;  %v9677_v62 = vpop.f32.mrb[38].mxu0 }
 0x3db   : > { %v9740_v53 = vadd.f32 %v9739_v44, %v9738_v4  ;;  %v9741_v23 = vpop.f32.mrb[22].mxu1  ;;  %v9678_v6 = vpop.f32.mrb[39].mxu0 }
 0x3dc   : > { %v9742_v3 = vpop.f32.mrb[23].mxu1  ;;  %v6579_v35 = vadd.f32 %v9676_v41, %v14188_v45  ;;  %v9679_v5 = vadd.f32 %v9678_v6, %v9677_v62 }
 0x3dd   : > { %v9743_v43 = vadd.f32 %v9742_v3, %v9741_v23 }
 0x3de   : > { %v6582_v19 = vadd.f32 %v9679_v5, %v14190_v1  ;;  %v14236_v22 = vadd.f32 %v9740_v53, %v6579_v35 }
 0x3e0   : > { %v14238_v30 = vadd.f32 %v9743_v43, %v6582_v19  ;;  %v9680_v57 = vpop.f32.mrb[40].mxu0 }
 0x3e1   : > { %v9744_v10 = vpop.f32.mrb[24].mxu1  ;;  %v9681_v47 = vpop.f32.mrb[41].mxu0 }
 0x3e2   : > { %v9745_v60 = vpop.f32.mrb[25].mxu1  ;;  %v9682_v34 = vadd.f32 %v9681_v47, %v9680_v57  ;;  %v9683_v17 = vpop.f32.mrb[42].mxu0 }
 0x3e3   : > { %v9746_v38 = vadd.f32 %v9745_v60, %v9744_v10  ;;  %v9747_v27 = vpop.f32.mrb[26].mxu1  ;;  %v9684_v50 = vpop.f32.mrb[43].mxu0 }
 0x3e4   : > { %v9748_v26 = vpop.f32.mrb[27].mxu1  ;;  %v6587_v45 = vadd.f32 %v9682_v34, %v14194_v28  ;;  %v9685_v14 = vadd.f32 %v9684_v50, %v9683_v17 }
 0x3e5   : > { %v9749_v49 = vadd.f32 %v9748_v26, %v9747_v27 }
 0x3e6   : > { %v6590_v1 = vadd.f32 %v9685_v14, %v14196_v55  ;;  %v14242_v21 = vadd.f32 %v9746_v38, %v6587_v45 }
 0x3e8   : > { %v14244_v46 = vadd.f32 %v9749_v49, %v6590_v1  ;;  %v9686_v0 = vpop.f32.mrb[44].mxu0 }
 0x3e9   : > { %v9750_v2 = vpop.f32.mrb[28].mxu1  ;;  %v9687_v8 = vpop.f32.mrb[45].mxu0 }
 0x3ea   : > { %v9751_v4 = vpop.f32.mrb[29].mxu1  ;;  %v9688_v13 = vadd.f32 %v9687_v8, %v9686_v0  ;;  %v9689_v44 = vpop.f32.mrb[46].mxu0 }
 0x3eb   : > { %v9752_v41 = vadd.f32 %v9751_v4, %v9750_v2  ;;  %v9753_v62 = vpop.f32.mrb[30].mxu1  ;;  %v9690_v53 = vpop.f32.mrb[47].mxu0 }
 0x3ec   : > { %v9754_v23 = vpop.f32.mrb[31].mxu1  ;;  %v6595_v28 = vadd.f32 %v9688_v13, %v14200_v37  ;;  %v9691_v6 = vadd.f32 %v9690_v53, %v9689_v44 }
 0x3ed   : > { %v9755_v3 = vadd.f32 %v9754_v23, %v9753_v62 }
 0x3ee   : > { %v6598_v55 = vadd.f32 %v9691_v6, %v14202_v48  ;;  %v14248_v35 = vadd.f32 %v9752_v41, %v6595_v28 }
 0x3f0   : > { %v14250_v5 = vadd.f32 %v9755_v3, %v6598_v55  ;;  %v9692_v43 = vpop.f32.mrb[48].mxu0 }
 0x3f1   : > { %v9756_v19 = vpop.f32.mrb[32].mxu1  ;;  %v9693_v57 = vpop.f32.mrb[49].mxu0 }
 0x3f2   : > { %v9757_v10 = vpop.f32.mrb[33].mxu1  ;;  %v9694_v47 = vadd.f32 %v9693_v57, %v9692_v43  ;;  %v9695_v60 = vpop.f32.mrb[50].mxu0 }
 0x3f3   : > { %v9758_v34 = vadd.f32 %v9757_v10, %v9756_v19  ;;  %v9759_v17 = vpop.f32.mrb[34].mxu1  ;;  %v9696_v38 = vpop.f32.mrb[51].mxu0 }
 0x3f4   : > { %v9760_v27 = vpop.f32.mrb[35].mxu1  ;;  %v6603_v37 = vadd.f32 %v9694_v47, %v14206_v29  ;;  %v9697_v50 = vadd.f32 %v9696_v38, %v9695_v60 }
 0x3f5   : > { %v9761_v26 = vadd.f32 %v9760_v27, %v9759_v17 }
 0x3f6   : > { %v6606_v48 = vadd.f32 %v9697_v50, %v14208_v18  ;;  %v14254_v45 = vadd.f32 %v9758_v34, %v6603_v37 }
 0x3f8   : > { %v14256_v14 = vadd.f32 %v9761_v26, %v6606_v48  ;;  %v9698_v49 = vpop.f32.mrb[52].mxu0 }
 0x3f9   : > { %v9762_v1 = vpop.f32.mrb[36].mxu1  ;;  %v9699_v0 = vpop.f32.mrb[53].mxu0 }
 0x3fa   : > { %v9763_v2 = vpop.f32.mrb[37].mxu1  ;;  %v9700_v8 = vadd.f32 %v9699_v0, %v9698_v49  ;;  %v9701_v4 = vpop.f32.mrb[54].mxu0 }
 0x3fb   : > { %v9764_v13 = vadd.f32 %v9763_v2, %v9762_v1  ;;  %v9765_v44 = vpop.f32.mrb[38].mxu1  ;;  %v9702_v41 = vpop.f32.mrb[55].mxu0 }
 0x3fc   : > { %v9766_v62 = vpop.f32.mrb[39].mxu1  ;;  %v6611_v29 = vadd.f32 %v9700_v8, %v14212_v11  ;;  %v9703_v53 = vadd.f32 %v9702_v41, %v9701_v4 }
 0x3fd   : > { %v9767_v23 = vadd.f32 %v9766_v62, %v9765_v44 }
 0x3fe   : > { %v6614_v18 = vadd.f32 %v9703_v53, %v14214_v16  ;;  %v14260_v28 = vadd.f32 %v9764_v13, %v6611_v29 }
 0x400   : > { %v14262_v6 = vadd.f32 %v9767_v23, %v6614_v18  ;;  %v9704_v3 = vpop.f32.mrb[56].mxu0 }
 0x401   : > { %v9768_v55 = vpop.f32.mrb[40].mxu1  ;;  %v9705_v43 = vpop.f32.mrb[57].mxu0 }
 0x402   : > { %v9769_v19 = vpop.f32.mrb[41].mxu1  ;;  %v9706_v57 = vadd.f32 %v9705_v43, %v9704_v3  ;;  %v9707_v10 = vpop.f32.mrb[58].mxu0 }
 0x403   : > { %v9770_v47 = vadd.f32 %v9769_v19, %v9768_v55  ;;  %v9771_v60 = vpop.f32.mrb[42].mxu1  ;;  %v9708_v34 = vpop.f32.mrb[59].mxu0 }
 0x404   : > { %v9772_v17 = vpop.f32.mrb[43].mxu1  ;;  %v6619_v11 = vadd.f32 %v9706_v57, %v14218_v33  ;;  %v9709_v38 = vadd.f32 %v9708_v34, %v9707_v10 }
 0x405   : > { %v9773_v27 = vadd.f32 %v9772_v17, %v9771_v60 }
 0x406   : > { %v6622_v16 = vadd.f32 %v9709_v38, %v14220_v15  ;;  %v14266_v37 = vadd.f32 %v9770_v47, %v6619_v11 }
 0x408   : > { %v14268_v50 = vadd.f32 %v9773_v27, %v6622_v16  ;;  %v9710_v26 = vpop.f32.mrb[60].mxu0 }
 0x409   : > { %v9774_v48 = vpop.f32.mrb[44].mxu1  ;;  %v9711_v49 = vpop.f32.mrb[61].mxu0 }
 0x40a   : > { %v9775_v1 = vpop.f32.mrb[45].mxu1  ;;  %v9712_v0 = vadd.f32 %v9711_v49, %v9710_v26  ;;  %v9713_v2 = vpop.f32.mrb[62].mxu0 }
 0x40b   : > { %v9776_v8 = vadd.f32 %v9775_v1, %v9774_v48  ;;  %v9777_v4 = vpop.f32.mrb[46].mxu1  ;;  %v9714_v13 = vpop.f32.mrb[63].mxu0 }
 0x40c   : > { %v9778_v44 = vpop.f32.mrb[47].mxu1  ;;  %v6627_v33 = vadd.f32 %v9712_v0, %v14224_v12  ;;  %v9715_v41 = vadd.f32 %v9714_v13, %v9713_v2 }
 0x40d   : > { %v9779_v62 = vadd.f32 %v9778_v44, %v9777_v4 }
 0x40e   : > { %v6630_v15 = vadd.f32 %v9715_v41, %v14226_v9  ;;  %v14272_v29 = vadd.f32 %v9776_v8, %v6627_v33 }
 0x410   : > { %v14274_v53 = vadd.f32 %v9779_v62, %v6630_v15  ;;  %v9796_v23 = vpop.f32.mrb[64].mxu0 }
 0x411   : > { %v9872_v18 = vpop.f32.mrb[48].mxu1  ;;  %v9797_v3 = vpop.f32.mrb[65].mxu0 }
 0x412   : > { %v9873_v55 = vpop.f32.mrb[49].mxu1  ;;  %v9798_v43 = vadd.f32 %v9797_v3, %v9796_v23  ;;  %v9799_v19 = vpop.f32.mrb[66].mxu0 }
 0x413   : > { %v9874_v57 = vadd.f32 %v9873_v55, %v9872_v18  ;;  %v9875_v10 = vpop.f32.mrb[50].mxu1  ;;  %v9800_v47 = vpop.f32.mrb[67].mxu0 }
 0x414   : > { %v9876_v60 = vpop.f32.mrb[51].mxu1  ;;  %v14277_v12 = vadd.f32 %v9798_v43, %v14230_v51  ;;  %v9801_v34 = vadd.f32 %v9800_v47, %v9799_v19 }
 0x415   : > { %v9877_v17 = vadd.f32 %v9876_v60, %v9875_v10 }
 0x416   : > { %v14280_v9 = vadd.f32 %v9801_v34, %v14232_v52 }
 0x418   : > { %v9802_v11 = vpop.f32.mrb[68].mxu0 }
 0x419   : > { %v9878_v38 = vpop.f32.mrb[52].mxu1  ;;  %v9803_v27 = vpop.f32.mrb[69].mxu0 }
 0x41a   : > { %v9879_v16 = vpop.f32.mrb[53].mxu1  ;;  %v9804_v26 = vadd.f32 %v9803_v27, %v9802_v11  ;;  %v9805_v48 = vpop.f32.mrb[70].mxu0 }
 0x41b   : > { %v9880_v49 = vadd.f32 %v9879_v16, %v9878_v38  ;;  %v9881_v1 = vpop.f32.mrb[54].mxu1  ;;  %v9806_v0 = vpop.f32.mrb[71].mxu0 }
 0x41c   : > { %v9882_v2 = vpop.f32.mrb[55].mxu1  ;;  %v14283_v8 = vadd.f32 %v9804_v26, %v14236_v22  ;;  %v9807_v51 = vadd.f32 %v9806_v0, %v9805_v48 }
 0x41d   : > { %v9883_v4 = vadd.f32 %v9882_v2, %v9881_v1 }
 0x41e   : > { %v14286_v13 = vadd.f32 %v9807_v51, %v14238_v30 }
 0x420   : > { %v9808_v52 = vpop.f32.mrb[72].mxu0 }
 0x421   : > { %v9884_v44 = vpop.f32.mrb[56].mxu1  ;;  %v9809_v33 = vpop.f32.mrb[73].mxu0 }
 0x422   : > { %v9885_v41 = vpop.f32.mrb[57].mxu1  ;;  %v9810_v62 = vadd.f32 %v9809_v33, %v9808_v52  ;;  %v9811_v15 = vpop.f32.mrb[74].mxu0 }
 0x423   : > { %v9886_v23 = vadd.f32 %v9885_v41, %v9884_v44  ;;  %v9887_v18 = vpop.f32.mrb[58].mxu1  ;;  %v9812_v3 = vpop.f32.mrb[75].mxu0 }
 0x424   : > { %v9888_v55 = vpop.f32.mrb[59].mxu1  ;;  %v6781_v43 = vadd.f32 %v9810_v62, %v14242_v21  ;;  %v9813_v19 = vadd.f32 %v9812_v3, %v9811_v15 }
 0x425   : > { %v9889_v22 = vadd.f32 %v9888_v55, %v9887_v18 }
 0x426   : > { %v6784_v10 = vadd.f32 %v9813_v19, %v14244_v46  ;;  %v6878_v47 = vadd.f32 %v9874_v57, %v6781_v43 }
 0x428   : > { %v9814_v60 = vpop.f32.mrb[76].mxu0  ;;  %v14291_v34 = vadd.f32 %v14022_v31, %v6878_v47  ;;  %v6881_v11 = vadd.f32 %v9877_v17, %v6784_v10 }
 0x429   : > { %v9890_v30 = vpop.f32.mrb[60].mxu1  ;;  %v9815_v38 = vpop.f32.mrb[77].mxu0 }
 0x42a   : > { %v9891_v27 = vpop.f32.mrb[61].mxu1  ;;  %v9816_v16 = vadd.f32 %v9815_v38, %v9814_v60  ;;  %v9817_v26 = vpop.f32.mrb[78].mxu0  ;;  %v14294_v0 = vadd.f32 %v14033_v58, %v6881_v11 }
 0x42b   : > { %v9892_v48 = vadd.f32 %v9891_v27, %v9890_v30  ;;  %v9893_v1 = vpop.f32.mrb[62].mxu1  ;;  %v9818_v21 = vpop.f32.mrb[79].mxu0 }
 0x42c   : > { %v9894_v2 = vpop.f32.mrb[63].mxu1  ;;  %v6789_v46 = vadd.f32 %v9816_v16, %v14248_v35  ;;  %v9819_v57 = vadd.f32 %v9818_v21, %v9817_v26 }
 0x42d   : > { %v9895_v51 = vadd.f32 %v9894_v2, %v9893_v1 }
 0x42e   : > { %v6792_v52 = vadd.f32 %v9819_v57, %v14250_v5  ;;  %v6886_v31 = vadd.f32 %v9880_v49, %v6789_v46 }
 0x430   : > { %v9820_v44 = vpop.f32.mrb[80].mxu0  ;;  %v10079_v33 = vadd.f32 %v14047_v20, %v6886_v31  ;;  %v6889_v41 = vadd.f32 %v9883_v4, %v6792_v52 }
 0x431   : > { %v9896_v17 = vpop.f32.mrb[64].mxu1  ;;  %v9821_v62 = vpop.f32.mrb[81].mxu0 }
 0x432   : > { %v9897_v15 = vpop.f32.mrb[65].mxu1  ;;  %v9822_v18 = vadd.f32 %v9821_v62, %v9820_v44  ;;  %v9823_v3 = vpop.f32.mrb[82].mxu0  ;;  %v10097_v43 = vadd.f32 %v14058_v32, %v6889_v41 }
 0x433   : > { %v9898_v58 = vadd.f32 %v9897_v15, %v9896_v17  ;;  %v9899_v55 = vpop.f32.mrb[66].mxu1  ;;  %v9824_v19 = vpop.f32.mrb[83].mxu0 }
 0x434   : > { %v9900_v35 = vpop.f32.mrb[67].mxu1  ;;  %v6797_v10 = vadd.f32 %v9822_v18, %v14254_v45  ;;  %v9825_v47 = vadd.f32 %v9824_v19, %v9823_v3 }
 0x435   : > { %v9901_v5 = vadd.f32 %v9900_v35, %v9899_v55 }
 0x436   : > { %v6800_v49 = vadd.f32 %v9825_v47, %v14256_v14  ;;  %v6894_v60 = vadd.f32 %v9886_v23, %v6797_v10 }
 0x438   : > { %v9826_v30 = vpop.f32.mrb[84].mxu0  ;;  %v10124_v4 = vadd.f32 %v14073_v61, %v6894_v60  ;;  %v6897_v11 = vadd.f32 %v9889_v22, %v6800_v49 }
 0x439   : > { %v9902_v20 = vpop.f32.mrb[68].mxu1  ;;  %v9827_v38 = vpop.f32.mrb[85].mxu0 }
 0x43a   : > { %v9903_v27 = vpop.f32.mrb[69].mxu1  ;;  %v9828_v16 = vadd.f32 %v9827_v38, %v9826_v30  ;;  %v9829_v26 = vpop.f32.mrb[86].mxu0  ;;  %v10142_v21 = vadd.f32 %v14084_v40, %v6897_v11 }
 0x43b   : > { %v9904_v1 = vadd.f32 %v9903_v27, %v9902_v20  ;;  %v9905_v32 = vpop.f32.mrb[70].mxu1  ;;  %v9830_v2 = vpop.f32.mrb[87].mxu0 }
 0x43c   : > { %v9906_v45 = vpop.f32.mrb[71].mxu1  ;;  %v6805_v46 = vadd.f32 %v9828_v16, %v14260_v28  ;;  %v9831_v57 = vadd.f32 %v9830_v2, %v9829_v26 }
 0x43d   : > { %v9907_v14 = vadd.f32 %v9906_v45, %v9905_v32 }
 0x43e   : > { %v6808_v23 = vadd.f32 %v9831_v57, %v14262_v6  ;;  %v6902_v52 = vadd.f32 %v9892_v48, %v6805_v46 }
 0x440   : > { %v9832_v31 = vpop.f32.mrb[88].mxu0  ;;  %v10115_v22 = vadd.f32 %v14100_v54, %v6902_v52  ;;  %v6905_v44 = vadd.f32 %v9895_v51, %v6808_v23 }
 0x441   : > { %v14306_v61 = vpop.f32.mrb[96].mxu1  ;;  %v9833_v17 = vpop.f32.mrb[89].mxu0 }
 0x442   : > { %v6958_v41 = vpop.f32.mrb[97].mxu1  ;;  %v9834_v62 = vadd.f32 %v9833_v17, %v9832_v31  ;;  %v9835_v15 = vpop.f32.mrb[90].mxu0  ;;  %v10133_v18 = vadd.f32 %v14108_v42, %v6905_v44 }
 0x443   : > { %v14309_v40 = vpop.f32.mrb[98].mxu1  ;;  %v9836_v28 = vpop.f32.mrb[91].mxu0 }
 0x444   : > { %v6961_v3 = vpop.f32.mrb[99].mxu1  ;;  %v6813_v55 = vadd.f32 %v9834_v62, %v14266_v37  ;;  %v9837_v6 = vadd.f32 %v9836_v28, %v9835_v15 }
 0x446   : > { %v6816_v48 = vadd.f32 %v9837_v6, %v14268_v50  ;;  %v6910_v19 = vadd.f32 %v9898_v58, %v6813_v55 }
 0x448   : > { %v9838_v35 = vpop.f32.mrb[92].mxu0  ;;  %v10160_v54 = vadd.f32 %v14120_v56, %v6910_v19  ;;  %v6913_v51 = vadd.f32 %v9901_v5, %v6816_v48 }
 0x449   : > { %v10010_v10 = vpop.f32.mrb[100].mxu1  ;;  %v9839_v49 = vpop.f32.mrb[93].mxu0 }
 0x44a   : > { %v14315_v47 = vadd.f32 %v10079_v33, %v10010_v10  ;;  %v6974_v60 = vpop.f32.mrb[101].mxu1  ;;  %v9840_v30 = vadd.f32 %v9839_v49, %v9838_v35  ;;  %v9841_v20 = vpop.f32.mrb[94].mxu0  ;;  %v10178_v37 = vadd.f32 %v14126_v39, %v6913_v51 }
 0x44b   : > { %v14318_v42 = vadd.f32 %v14291_v34, %v6974_v60  ;;  %v10011_v11 = vpop.f32.mrb[102].mxu1  ;;  %v9842_v50 = vpop.f32.mrb[95].mxu0  ;;  %v10739_v60 = vmov (!%p7417_p7), 0.0  }
 0x44c   : > { %v14321_v38 = vadd.f32 %v10097_v43, %v10011_v11  ;;  %v6977_v58 = vpop.f32.mrb[103].mxu1  ;;  %v6821_v27 = vadd.f32 %v9840_v30, %v14272_v29  ;;  %v9843_v56 = vadd.f32 %v9842_v50, %v9841_v20  ;;  %7040 = vst [vmem:[%s10817_s7] sm:$0x1] (!%p7417_p7), %v10739_v60  ;;  %7041 = vst [vmem:[%s10822_s11] sm:$0x1] (!%p7417_p7), %v10739_v60 }
 0x44d   : > { %v14325_v33 = vadd.f32 %v14294_v0, %v6977_v58 }
 0x44e   : > { %v6824_v5 = vadd.f32 %v9843_v56, %v14274_v53  ;;  %v6918_v16 = vadd.f32 %v9904_v1, %v6821_v27 }
 0x450   : > { %v9860_v26 = vpop.f32.mrb[96].mxu0  ;;  %v10151_v32 = vadd.f32 %v14137_v25, %v6918_v16  ;;  %v6921_v2 = vadd.f32 %v9907_v14, %v6824_v5 }
 0x451   : > { %v10014_v34 = vpop.f32.mrb[104].mxu1  ;;  %v9861_v39 = vpop.f32.mrb[97].mxu0 }
 0x452   : > { %v14329_v45 = vadd.f32 %v10115_v22, %v10014_v34  ;;  %v6990_v43 = vpop.f32.mrb[105].mxu1  ;;  %v9862_v46 = vadd.f32 %v9861_v39, %v9860_v26  ;;  %v9863_v29 = vpop.f32.mrb[98].mxu0  ;;  %v10169_v0 = vadd.f32 %v14144_v7, %v6921_v2 }
 0x453   : > { %v14331_v57 = vadd.f32 %v10124_v4, %v6990_v43  ;;  %v10015_v23 = vpop.f32.mrb[106].mxu1  ;;  %v9864_v53 = vpop.f32.mrb[99].mxu0 }
 0x454   : > { %v14334_v52 = vadd.f32 %v10133_v18, %v10015_v23  ;;  %v6993_v1 = vpop.f32.mrb[107].mxu1  ;;  %v6862_v31 = vadd.f32 %v9862_v46, %v14277_v12  ;;  %v9865_v44 = vadd.f32 %v9864_v53, %v9863_v29 }
 0x455   : > { %v14337_v25 = vadd.f32 %v10142_v21, %v6993_v1 }
 0x456   : > { %v10052_v14 = vadd.f32 %v13979_v63, %v6862_v31  ;;  %v6865_v22 = vadd.f32 %v9865_v44, %v14280_v9 }
 0x458   : > { %v10053_v17 = vadd.f32 %v10052_v14, %v6958_v41  ;;  %v10070_v4 = vadd.f32 %v13987_v59, %v6865_v22  ;;  %v9866_v62 = vpop.f32.mrb[100].mxu0 }
 0x459   : > { %v10018_v15 = vpop.f32.mrb[108].mxu1  ;;  %v9867_v7 = vpop.f32.mrb[101].mxu0 }
 0x45a   : > { %v14342_v28 = vadd.f32 %v10151_v32, %v10018_v15  ;;  %v7006_v18 = vpop.f32.mrb[109].mxu1  ;;  %v10071_v55 = vadd.f32 %v10070_v4, %v6961_v3  ;;  %v9868_v6 = vadd.f32 %v9867_v7, %v9866_v62  ;;  %v9869_v12 = vpop.f32.mrb[102].mxu0 }
 0x45b   : > { %v14344_v48 = vadd.f32 %v10160_v54, %v7006_v18  ;;  %v10019_v21 = vpop.f32.mrb[110].mxu1  ;;  %v9870_v63 = vpop.f32.mrb[103].mxu0 }
 0x45c   : > { %v14346_v19 = vadd.f32 %v10169_v0, %v10019_v21  ;;  %v7009_v35 = vpop.f32.mrb[111].mxu1  ;;  %v6870_v9 = vadd.f32 %v9868_v6, %v14283_v8  ;;  %v9871_v41 = vadd.f32 %v9870_v63, %v9869_v12  ;;  %7039 = sbr.rel (%p7417_p7) target bundleno = 1123 (0x463), region = 178 }
 0x45d   : > { %v10179_v59 = vadd.f32 %v10178_v37, %v7009_v35 }
 0x45e   : > { %v10043_v10 = vadd.f32 %v13995_v36, %v6870_v9  ;;  %v6873_v51 = vadd.f32 %v9871_v41, %v14286_v13 }
 0x460   : > { %v10044_v49 = vadd.f32 %v10043_v10, %v14306_v61  ;;  %v10061_v3 = vadd.f32 %v14006_v24, %v6873_v51 }
 0x462   : > { %v10062_v54 = vadd.f32 %v10061_v3, %v14309_v40 }
 0x463 PF: > { %v7043_v8 = vadd.f32 %v10071_v55, %v10053_v17  ;;  %v7067_v30 = vmul.f32 %v10053_v17, %v10053_v17  ;;  %v7068_v36 = vmul.f32 %v10071_v55, %v10071_v55  ;;  %v7069_v61 = vmul.f32 %v10044_v49, %v10044_v49  ;;  %v7042_v60 = vld [vmem:[%s10817_s7] sm:$0x1] }
 0x464   : > { %v7070_v40 = vmul.f32 %v10062_v54, %v10062_v54  ;;  %v7071_v20 = vmul.f32 %v14318_v42, %v14318_v42  ;;  %v8488_v37 = vpack.c.bf16 %v10071_v55, %v10053_v17  ;;  %v8493_v50 = vpack.c.bf16 %v10062_v54, %v10044_v49 }
 0x465   : > { %v7044_v13 = vadd.f32 %v10044_v49, %v7043_v8  ;;  %v7083_v11 = vadd.f32 %v7068_v36, %v7067_v30  ;;  %v8498_v58 = vpack.c.bf16 %v14325_v33, %v14318_v42  ;;  %v8503_v27 = vpack.c.bf16 %v14321_v38, %v14315_v47 }
 0x466   : > { %v8508_v16 = vpack.c.bf16 %v14337_v25, %v14331_v57  ;;  %v8513_v26 = vpack.c.bf16 %v14334_v52, %v14329_v45  ;;  %8489 = vst [vmem:[%s10827_s15] sm:$0xff] %v8488_v37   ;;  %8525 = vst [vmem:[%s10827_s15 + $0x8] sm:$0xff] %v8493_v50   ;;  %v8518_v34 = vpack.c.bf16 %v10179_v59, %v14344_v48 }
 0x467   : > { %v7045_v24 = vadd.f32 %v10062_v54, %v7044_v13  ;;  %v7084_v5 = vadd.f32 %v7083_v11, %v7069_v61  ;;  %8526 = vst [vmem:[%s10827_s15 + $0x10] sm:$0xff] %v8498_v58   ;;  %8527 = vst [vmem:[%s10827_s15 + $0x18] sm:$0xff] %v8503_v27   ;;  %v8523_v32 = vpack.c.bf16 %v14346_v19, %v14342_v28 }
 0x468   : > { %8528 = vst [vmem:[%s10827_s15 + $0x20] sm:$0xff] %v8508_v16   ;;  %8529 = vst [vmem:[%s10827_s15 + $0x28] sm:$0xff] %v8513_v26   ;;  %v7073_v46 = vmul.f32 %v14315_v47, %v14315_v47  ;;  %v7074_v0 = vmul.f32 %v14321_v38, %v14321_v38  ;;  %v7076_v14 = vmul.f32 %v14337_v25, %v14337_v25 }
 0x469   : > { %v7046_v56 = vadd.f32 %v14318_v42, %v7045_v24  ;;  %v7072_v42 = vmul.f32 %v14325_v33, %v14325_v33  ;;  %v7085_v39 = vadd.f32 %v7084_v5, %v7070_v40  ;;  %8530 = vst [vmem:[%s10827_s15 + $0x30] sm:$0xff] %v8518_v34   ;;  %8531 = vst [vmem:[%s10827_s15 + $0x38] sm:$0xff] %v8523_v32  }
 0x46a   : > { %v7077_v17 = vmul.f32 %v14329_v45, %v14329_v45  ;;  %v7078_v62 = vmul.f32 %v14334_v52, %v14334_v52  ;;  %v7079_v7 = vmul.f32 %v14344_v48, %v14344_v48  ;;  %v7080_v55 = vmul.f32 %v10179_v59, %v10179_v59 }
 0x46b   : > { %v7047_v2 = vadd.f32 %v14325_v33, %v7046_v56  ;;  %v7086_v29 = vadd.f32 %v7085_v39, %v7071_v20  ;;  %v7075_v33 = vmul.f32 %v14331_v57, %v14331_v57 }
 0x46d   : > { %v7048_v43 = vadd.f32 %v14315_v47, %v7047_v2  ;;  %v7087_v53 = vadd.f32 %v7086_v29, %v7072_v42 }
 0x46f   : > { %v7049_v23 = vadd.f32 %v14321_v38, %v7048_v43  ;;  %v7088_v31 = vadd.f32 %v7087_v53, %v7073_v46 }
 0x471   : > { %v7050_v1 = vadd.f32 %v14331_v57, %v7049_v23  ;;  %v7089_v22 = vadd.f32 %v7088_v31, %v7074_v0 }
 0x473   : > { %v7051_v44 = vadd.f32 %v14337_v25, %v7050_v1  ;;  %v7090_v4 = vadd.f32 %v7089_v22, %v7075_v33 }
 0x475   : > { %v7052_v47 = vadd.f32 %v14329_v45, %v7051_v44  ;;  %v7091_v15 = vadd.f32 %v7090_v4, %v7076_v14  ;;  %v7081_v45 = vmul.f32 %v14342_v28, %v14342_v28 }
 0x477   : > { %v7053_v38 = vadd.f32 %v14334_v52, %v7052_v47  ;;  %v7092_v18 = vadd.f32 %v7091_v15, %v7077_v17  ;;  %v7082_v52 = vmul.f32 %v14346_v19, %v14346_v19 }
 0x479   : > { %v7054_v57 = vadd.f32 %v14344_v48, %v7053_v38  ;;  %v7093_v6 = vadd.f32 %v7092_v18, %v7078_v62 }
 0x47b   : > { %v7055_v25 = vadd.f32 %v10179_v59, %v7054_v57  ;;  %v7094_v21 = vadd.f32 %v7093_v6, %v7079_v7 }
 0x47d   : > { %v7056_v12 = vadd.f32 %v14342_v28, %v7055_v25  ;;  %v7095_v35 = vadd.f32 %v7094_v21, %v7080_v55 }
 0x47f   : > { %v7057_v63 = vadd.f32 %v14346_v19, %v7056_v12  ;;  %v7096_v48 = vadd.f32 %v7095_v35, %v7081_v45  ;;  %v7066_v19 = vld [vmem:[%s10822_s11] sm:$0x1] }
 0x481   : > { %v7058_v9 = vrot.slane %v7057_v63, 4  ;;  %v7097_v59 = vadd.f32 %v7096_v48, %v7082_v52 }
 0x483   : > { %v7059_v41 = vadd.f32 %v7058_v9, %v7057_v63  ;;  %v7098_v51 = vrot.slane %v7097_v59, 4 }
 0x485   : > { %v7060_v10 = vrot.slane %v7059_v41, 2  ;;  %v7099_v3 = vadd.f32 %v7098_v51, %v7097_v59 }
 0x487   : > { %v7061_v49 = vadd.f32 %v7060_v10, %v7059_v41  ;;  %v7100_v28 = vrot.slane %v7099_v3, 2 }
 0x489   : > { %v7062_v54 = vrot.slane %v7061_v49, 1  ;;  %v7101_v30 = vadd.f32 %v7100_v28, %v7099_v3 }
 0x48b   : > { %v7063_v8 = vadd.f32 %v7062_v54, %v7061_v49  ;;  %v7102_v13 = vrot.slane %v7101_v30, 1 }
 0x48d   : > { %v7064_v36 = vadd.f32 %v7063_v8, %v7042_v60  ;;  %v7103_v61 = vadd.f32 %v7102_v13, %v7101_v30 }
 0x48f   : > { %7065 = vst [vmem:[%s10817_s7] sm:$0x1] %v7064_v36  ;;  %v7104_v24 = vadd.f32 %v7103_v61, %v7066_v19 }
 0x491   : > { %7105 = vst [vmem:[%s10822_s11] sm:$0x1] %v7104_v24 }
 0x492 PF: > { %s16_s22 = sadd.s32 1, %s10737_s22   ;;  %s14921_s18 = smov %s10729_s20 }
 0x493   : > { %p13_p9 = scmp.ge.s32.totalorder %s16_s22, 6   ;;  %s14922_s19 = smov %s10733_s21 }
 0x494   : > { %s14923_s20 = smov %s14926_s23  ;;  %s14924_s21 = smov %s14930_s24 }
 0x495   :  { %15 = sbr.rel (!%p13_p9) target bundleno = 3 (0x3), region = 291 }
 0x49c   :  { %7240 = vsyncmov [#allocation4] }
 0x49f   :  { %s7241_s7 = vpop.sfrf %7240 }
 0x4a0   :  { %p8459_p10 = scmp.ne.s32.totalorder %s7241_s7, 0 }
 0x4a2   :  { %7245 = shalt.err (%p8459_p10)  }
 0x4a3   :  { %7247 = vsyncmov [#allocation4 + $0x1] }
 0x4a6   :  { %s7248_s11 = vpop.sfrf %7247 }
 0x4a7   :  { %p8460_p11 = scmp.ne.s32.totalorder %s7248_s11, 0 }
 0x4a9   :  { %7252 = shalt.err (%p8460_p11)  }
 0x4aa   :  { %7254 = vsyncmov [#allocation4 + $0x2] }
 0x4ad   :  { %s7255_s15 = vpop.sfrf %7254 }
 0x4ae   :  { %p8461_p12 = scmp.ne.s32.totalorder %s7255_s15, 0 }
 0x4b0   :  { %7259 = shalt.err (%p8461_p12)  }
 0x4b1   :  { %7261 = vsyncmov [#allocation4 + $0x3] }
 0x4b4   :  { %s7262_s14 = vpop.sfrf %7261 }
 0x4b5   :  { %p8462_p13 = scmp.ne.s32.totalorder %s7262_s14, 0 }
 0x4b7   :  { %7266 = shalt.err (%p8462_p13)  }

</bundles_post_ra>
